<compile_context>
chip_gen: v7x
topology: tpu7x:2x2x1
jax: 0.10.0
libtpu: 0.0.40
codegen_flags: <defaults>
</compile_context>

<pallas_src>
import functools

import jax
import jax.numpy as jnp
from jax.experimental import pallas as pl
from jax.experimental.pallas import tpu as pltpu


_VMEM_LIMIT_BYTES = 32 * 1024 * 1024   # >= scoped default on v5e/v6e/v7x, < physical on all.
_VMEM_BUDGET_BYTES = 20 * 1024 * 1024  # what the block chooser may spend (headroom for temps).


def _hattn_kernel(x_ref, w_ref, colk_ref, colq_ref, o_ref, *, num_heads, head_dim):
    """One grid step: `bt` images, native (C, H*W) layout end to end.

    x_ref   : (bt, C, L)  float32, L = H*W   (lane-dense: L is the lane dim)
    w_ref   : (3C, C)     bfloat16, attention scale pre-folded into the q rows
    colk_ref: (L, 1) int32  image-column id (p mod W) of each spatial position
    colq_ref: (1, L) int32  same ids, as a row vector
    o_ref   : (bt, C, L)  output, same native layout as the input
    """
    bt, C, L = x_ref.shape
    hd = head_dim

    # "Same image column" mask: query position (i, w) may only attend to key
    # positions (j, w).  Built once per grid step from two tiny resident
    # vectors; identical for every head / image.
    mask = colk_ref[...] == colq_ref[...]                      # (L, L) bool

    w = w_ref[...]                                             # (3C, C) bf16, resident

    for img in range(bt):                                      # static unroll, bt small
        # Fused qkv projection in the native layout: (3C, C) @ (C, L) on the
        # MXU; bf16 operands (cast here -- x never takes an extra HBM pass),
        # f32 accumulation.
        xb = x_ref[img].astype(jnp.bfloat16)                   # (C, L)
        qkv = jnp.dot(w, xb, preferred_element_type=jnp.float32)   # (3C, L) f32
        qkvb = qkv.astype(jnp.bfloat16)

        # Per-head attention.  Every matmul is lane-dense (last dim = L), and
        # each head's output is written directly into its channel rows of the
        # output block -- no lane concatenate, no transposes.
        for n in range(num_heads):
            q_h = qkvb[n * hd:(n + 1) * hd, :]                         # (hd, L)
            k_h = qkvb[C + n * hd:C + (n + 1) * hd, :]                 # (hd, L)
            v_h = qkvb[2 * C + n * hd:2 * C + (n + 1) * hd, :]         # (hd, L)

            # scores[key, query] = sum_d k[d, key] * q[d, query]   (scale folded in q)
            s = jax.lax.dot_general(
                k_h, q_h, (((0,), (0,)), ((), ())),
                preferred_element_type=jnp.float32)                    # (L, L) f32
            s = jnp.where(mask, s, -1e30)                              # off-column keys
            s = s - jnp.max(s, axis=0, keepdims=True)                  # softmax over keys
            e = jnp.exp(s)
            p = e / jnp.sum(e, axis=0, keepdims=True)                  # exact normalize

            # out[d, query] = sum_key v[d, key] * p[key, query]
            o_h = jnp.dot(v_h, p.astype(jnp.bfloat16),
                          preferred_element_type=jnp.float32)          # (hd, L)
            o_ref[img, n * hd:(n + 1) * hd, :] = o_h.astype(o_ref.dtype)


def _choose_images_per_block(B, C, L):
    """Images per grid step, sized from an explicit per-step VMEM budget.

    Accounts for everything resident per step: double-buffered x + out blocks
    (f32), the (double-buffered) bf16 weight, the in-kernel qkv intermediate
    (f32 + bf16 copy) and the per-head (L, L) score/probability matrices.
    Keeps at least min(B, 8) grid steps so megacore parts get several
    pipelined iterations per TensorCore.
    """
    per_image = C * L * 4 * 4                         # x in + out, 2 pipeline buffers each
    fixed = (3 * C * C * 2 * 2                        # bf16 weight, 2 buffers
             + 3 * C * L * (4 + 2)                    # qkv f32 + bf16 copy
             + L * L * (4 + 2 + 1)                    # scores f32, probs bf16, mask
             + 16 * L)                                # column-id vectors
    if _VMEM_BUDGET_BYTES > fixed:
        cap = max(1, (_VMEM_BUDGET_BYTES - fixed) // per_image)
    else:
        cap = 1                                       # large L: run one image per step
    steps_floor = min(B, 8)
    best = 1
    for bt in range(1, B + 1):
        if bt > cap or (B // bt) < steps_floor:
            break
        if B % bt == 0:
            best = bt
    return best


def hattention_forward(x, w_qkv, num_heads):
    """x: (B, C, H, W) float32; w_qkv: (3C, C) (PyTorch nn.Linear weight layout)."""
    B, C, H, W = x.shape
    assert C % num_heads == 0
    head_dim = C // num_heads
    scale = head_dim ** (-0.5)
    L = H * W

    # Native layout all the way: (B, C, H, W) -> (B, C, H*W) is a free,
    # contiguous reshape; no HBM transpose on either side of the kernel.
    xf = x.reshape(B, C, L)

    # Weight stays in PyTorch (3C, C) layout -- exactly the lhs of the
    # in-kernel (3C, C) @ (C, L) projection.  Fold the attention scale into
    # the q rows, cast once to bf16 (resident MXU operand).
    w = w_qkv.astype(jnp.float32)
    w = w.at[:C, :].multiply(scale)
    w = w.astype(jnp.bfloat16)

    # Image-column id (p mod W) of every flattened spatial position; the
    # kernel builds its block-diagonal column mask from these two vectors.
    col = jnp.arange(L, dtype=jnp.int32) % W
    col_k = col.reshape(L, 1)
    col_q = col.reshape(1, L)

    bt = _choose_images_per_block(B, C, L)
    grid = (B // bt,)

    kernel = functools.partial(_hattn_kernel, num_heads=num_heads, head_dim=head_dim)

    out = pl.pallas_call(
        kernel,
        out_shape=jax.ShapeDtypeStruct((B, C, L), x.dtype),
        grid_spec=pltpu.PrefetchScalarGridSpec(
            num_scalar_prefetch=0,
            grid=grid,
            in_specs=[
                pl.BlockSpec((bt, C, L), lambda b: (b, 0, 0)),
                # Constant index maps -> fetched once, kept resident, no re-DMA.
                pl.BlockSpec((3 * C, C), lambda b: (0, 0)),
                pl.BlockSpec((L, 1), lambda b: (0, 0)),
                pl.BlockSpec((1, L), lambda b: (0, 0)),
            ],
            out_specs=pl.BlockSpec((bt, C, L), lambda b: (b, 0, 0)),
        ),
        compiler_params=pltpu.CompilerParams(
            dimension_semantics=("parallel",),
            vmem_limit_bytes=_VMEM_LIMIT_BYTES,
        ),
    )(xf, w, col_k, col_q)

    # (B, C, H*W) -> (B, C, H, W): free contiguous split.
    return out.reshape(B, C, H, W)


def hattention_ref(x, w_qkv, num_heads):
    """Pure-JAX f32 reference mirroring the PyTorch forward exactly."""
    B, C, H, W = x.shape
    hd = C // num_heads
    scale = hd ** (-0.5)
    xg = jnp.transpose(x, (0, 3, 2, 1)).reshape(B * W, H, C)
    qkv = xg @ w_qkv.T  # (B*W, H, 3C)
    qkv = qkv.reshape(B, W, H, 3, num_heads, hd)
    qkv = jnp.transpose(qkv, (3, 0, 1, 4, 2, 5))  # (3, B, W, nh, H, hd)
    q, k, v = qkv[0], qkv[1], qkv[2]
    attn = jnp.einsum("bwnqd,bwnkd->bwnqk", q, k) * scale
    attn = jax.nn.softmax(attn, axis=-1)
    o = jnp.einsum("bwnqk,bwnkd->bwnqd", attn, v)
    o = jnp.transpose(o, (0, 1, 3, 2, 4)).reshape(B, W, H, C)
    return jnp.transpose(o, (0, 3, 2, 1))


if __name__ == "__main__":
    B, C, H, W = 2, 32, 16, 16
    num_heads = 8

    key = jax.random.PRNGKey(0)
    kx, kw = jax.random.split(key)
    x = jax.random.normal(kx, (B, C, H, W), dtype=jnp.float32)
    # Deterministic synthetic init of nn.Linear(dim, 3*dim, bias=False) weight.
    w_qkv = jax.random.normal(kw, (3 * C, C), dtype=jnp.float32) * (C ** -0.5)

    out = jax.block_until_ready(hattention_forward(x, w_qkv, num_heads))
    ref = hattention_ref(x, w_qkv, num_heads)

    assert out.shape == (B, C, H, W)
    # bf16 MXU operands (f32 accumulation, f32 softmax with exact normalize).
    assert jnp.allclose(out, ref, atol=2e-2, rtol=2e-2), "mismatch vs reference"

    print("KERNEL_OK")
</pallas_src>

<mosaic_0001>
module attributes {stable_mosaic.version = 11 : i64} {
  func.func @_hattn_kernel(%arg0: i32, %arg1: memref<1x32x256xf32, #tpu.memory_space<vmem>>, %arg2: memref<96x32xbf16, #tpu.memory_space<vmem>>, %arg3: memref<256x1xi32, #tpu.memory_space<vmem>>, %arg4: memref<1x256xi32, #tpu.memory_space<vmem>>, %arg5: memref<1x32x256xf32, #tpu.memory_space<vmem>>) attributes {dimension_semantics = [#tpu.dimension_semantics<parallel>], iteration_bounds = array<i64: 2>, scalar_prefetch = 0 : i64, scratch_operands = 0 : i64, tpu.core_type = #tpu.core_type<tc>, window_params = [{transform_indices = @transform_0, window_bounds = array<i64: 1, 32, 256>}, {pipeline_mode = #tpu.pipeline_mode<synchronous>, transform_indices = @transform_1, window_bounds = array<i64: 96, 32>}, {pipeline_mode = #tpu.pipeline_mode<synchronous>, transform_indices = @transform_2, window_bounds = array<i64: 256, 1>}, {pipeline_mode = #tpu.pipeline_mode<synchronous>, transform_indices = @transform_3, window_bounds = array<i64: 1, 256>}, {transform_indices = @transform_4, window_bounds = array<i64: 1, 32, 256>}]} {
    %c0 = arith.constant 0 : index
    %c0_0 = arith.constant 0 : index
    %0 = vector.load %arg3[%c0, %c0_0] : memref<256x1xi32, #tpu.memory_space<vmem>>, vector<256x1xi32>
    %c0_1 = arith.constant 0 : index
    %c0_2 = arith.constant 0 : index
    %1 = vector.load %arg4[%c0_1, %c0_2] : memref<1x256xi32, #tpu.memory_space<vmem>>, vector<1x256xi32>
    %2 = vector.broadcast %0 : vector<256x1xi32> to vector<256x256xi32>
    %3 = vector.broadcast %1 : vector<1x256xi32> to vector<256x256xi32>
    %4 = arith.cmpi eq, %2, %3 : vector<256x256xi32>
    %c0_3 = arith.constant 0 : index
    %c0_4 = arith.constant 0 : index
    %5 = vector.load %arg2[%c0_3, %c0_4] : memref<96x32xbf16, #tpu.memory_space<vmem>>, vector<96x32xbf16>
    %c0_5 = arith.constant 0 : index
    %c0_6 = arith.constant 0 : index
    %c0_7 = arith.constant 0 : index
    %6 = vector.load %arg1[%c0_5, %c0_6, %c0_7] : memref<1x32x256xf32, #tpu.memory_space<vmem>>, vector<1x32x256xf32>
    %7 = vector.shape_cast %6 : vector<1x32x256xf32> to vector<32x256xf32>
    %8 = arith.truncf %7 : vector<32x256xf32> to vector<32x256xbf16>
    %cst = arith.constant dense<0.000000e+00> : vector<96x256xf32>
    %9 = tpu.matmul %5, %8, %cst {dimension_numbers = #tpu.dot_dimension_numbers<[1], [0], [0], [1], [0, 0, 1, 1], [], []>} : vector<96x32xbf16>, vector<32x256xbf16>, vector<96x256xf32> -> vector<96x256xf32>
    %10 = arith.truncf %9 : vector<96x256xf32> to vector<96x256xbf16>
    %11 = vector.extract_strided_slice %10 {offsets = [0, 0], sizes = [4, 256], strides = [1, 1]} : vector<96x256xbf16> to vector<4x256xbf16>
    %12 = vector.extract_strided_slice %10 {offsets = [32, 0], sizes = [4, 256], strides = [1, 1]} : vector<96x256xbf16> to vector<4x256xbf16>
    %13 = vector.extract_strided_slice %10 {offsets = [64, 0], sizes = [4, 256], strides = [1, 1]} : vector<96x256xbf16> to vector<4x256xbf16>
    %cst_8 = arith.constant dense<0.000000e+00> : vector<256x256xf32>
    %14 = tpu.matmul %12, %11, %cst_8 {dimension_numbers = #tpu.dot_dimension_numbers<[0], [0], [1], [1], [0, 1, 1, 1], [], []>} : vector<4x256xbf16>, vector<4x256xbf16>, vector<256x256xf32> -> vector<256x256xf32>
    %cst_9 = arith.constant -1.000000e+30 : f32
    %15 = vector.broadcast %cst_9 : f32 to vector<256x256xf32>
    %16 = arith.select %4, %14, %15 : vector<256x256xi1>, vector<256x256xf32>
    %cst_10 = arith.constant dense<0xFF800000> : vector<256xf32>
    %17 = vector.multi_reduction <maximumf>, %16, %cst_10 [0] : vector<256x256xf32> to vector<256xf32>
    %18 = vector.shape_cast %17 : vector<256xf32> to vector<1x256xf32>
    %19 = vector.broadcast %18 : vector<1x256xf32> to vector<256x256xf32>
    %20 = arith.subf %16, %19 : vector<256x256xf32>
    %21 = math.exp %20 : vector<256x256xf32>
    %cst_11 = arith.constant dense<0.000000e+00> : vector<256xf32>
    %22 = vector.multi_reduction <add>, %21, %cst_11 [0] : vector<256x256xf32> to vector<256xf32>
    %23 = vector.shape_cast %22 : vector<256xf32> to vector<1x256xf32>
    %24 = vector.broadcast %23 : vector<1x256xf32> to vector<256x256xf32>
    %25 = arith.divf %21, %24 : vector<256x256xf32>
    %26 = arith.truncf %25 : vector<256x256xf32> to vector<256x256xbf16>
    %cst_12 = arith.constant dense<0.000000e+00> : vector<4x256xf32>
    %27 = tpu.matmul %13, %26, %cst_12 {dimension_numbers = #tpu.dot_dimension_numbers<[1], [0], [0], [1], [0, 0, 1, 1], [], []>} : vector<4x256xbf16>, vector<256x256xbf16>, vector<4x256xf32> -> vector<4x256xf32>
    %c0_13 = arith.constant 0 : index
    %c0_14 = arith.constant 0 : index
    %c0_15 = arith.constant 0 : index
    %28 = vector.load %arg5[%c0_13, %c0_14, %c0_15] : memref<1x32x256xf32, #tpu.memory_space<vmem>>, vector<1x4x256xf32>
    %29 = vector.shape_cast %28 : vector<1x4x256xf32> to vector<4x256xf32>
    %30 = vector.shape_cast %27 : vector<4x256xf32> to vector<1x4x256xf32>
    tpu.vector_store %arg5[%c0_13, %c0_14, %c0_15], %30 {strides = array<i32>} : memref<1x32x256xf32, #tpu.memory_space<vmem>>, vector<1x4x256xf32>,
    %31 = vector.extract_strided_slice %10 {offsets = [4, 0], sizes = [4, 256], strides = [1, 1]} : vector<96x256xbf16> to vector<4x256xbf16>
    %32 = vector.extract_strided_slice %10 {offsets = [36, 0], sizes = [4, 256], strides = [1, 1]} : vector<96x256xbf16> to vector<4x256xbf16>
    %33 = vector.extract_strided_slice %10 {offsets = [68, 0], sizes = [4, 256], strides = [1, 1]} : vector<96x256xbf16> to vector<4x256xbf16>
    %cst_16 = arith.constant dense<0.000000e+00> : vector<256x256xf32>
    %34 = tpu.matmul %32, %31, %cst_16 {dimension_numbers = #tpu.dot_dimension_numbers<[0], [0], [1], [1], [0, 1, 1, 1], [], []>} : vector<4x256xbf16>, vector<4x256xbf16>, vector<256x256xf32> -> vector<256x256xf32>
    %cst_17 = arith.constant -1.000000e+30 : f32
    %35 = vector.broadcast %cst_17 : f32 to vector<256x256xf32>
    %36 = arith.select %4, %34, %35 : vector<256x256xi1>, vector<256x256xf32>
    %cst_18 = arith.constant dense<0xFF800000> : vector<256xf32>
    %37 = vector.multi_reduction <maximumf>, %36, %cst_18 [0] : vector<256x256xf32> to vector<256xf32>
    %38 = vector.shape_cast %37 : vector<256xf32> to vector<1x256xf32>
    %39 = vector.broadcast %38 : vector<1x256xf32> to vector<256x256xf32>
    %40 = arith.subf %36, %39 : vector<256x256xf32>
    %41 = math.exp %40 : vector<256x256xf32>
    %cst_19 = arith.constant dense<0.000000e+00> : vector<256xf32>
    %42 = vector.multi_reduction <add>, %41, %cst_19 [0] : vector<256x256xf32> to vector<256xf32>
    %43 = vector.shape_cast %42 : vector<256xf32> to vector<1x256xf32>
    %44 = vector.broadcast %43 : vector<1x256xf32> to vector<256x256xf32>
    %45 = arith.divf %41, %44 : vector<256x256xf32>
    %46 = arith.truncf %45 : vector<256x256xf32> to vector<256x256xbf16>
    %cst_20 = arith.constant dense<0.000000e+00> : vector<4x256xf32>
    %47 = tpu.matmul %33, %46, %cst_20 {dimension_numbers = #tpu.dot_dimension_numbers<[1], [0], [0], [1], [0, 0, 1, 1], [], []>} : vector<4x256xbf16>, vector<256x256xbf16>, vector<4x256xf32> -> vector<4x256xf32>
    %c0_21 = arith.constant 0 : index
    %c4 = arith.constant 4 : index
    %c0_22 = arith.constant 0 : index
    %48 = vector.load %arg5[%c0_21, %c4, %c0_22] : memref<1x32x256xf32, #tpu.memory_space<vmem>>, vector<1x4x256xf32>
    %49 = vector.shape_cast %48 : vector<1x4x256xf32> to vector<4x256xf32>
    %50 = vector.shape_cast %47 : vector<4x256xf32> to vector<1x4x256xf32>
    tpu.vector_store %arg5[%c0_21, %c4, %c0_22], %50 {strides = array<i32>} : memref<1x32x256xf32, #tpu.memory_space<vmem>>, vector<1x4x256xf32>,
    %51 = vector.extract_strided_slice %10 {offsets = [8, 0], sizes = [4, 256], strides = [1, 1]} : vector<96x256xbf16> to vector<4x256xbf16>
    %52 = vector.extract_strided_slice %10 {offsets = [40, 0], sizes = [4, 256], strides = [1, 1]} : vector<96x256xbf16> to vector<4x256xbf16>
    %53 = vector.extract_strided_slice %10 {offsets = [72, 0], sizes = [4, 256], strides = [1, 1]} : vector<96x256xbf16> to vector<4x256xbf16>
    %cst_23 = arith.constant dense<0.000000e+00> : vector<256x256xf32>
    %54 = tpu.matmul %52, %51, %cst_23 {dimension_numbers = #tpu.dot_dimension_numbers<[0], [0], [1], [1], [0, 1, 1, 1], [], []>} : vector<4x256xbf16>, vector<4x256xbf16>, vector<256x256xf32> -> vector<256x256xf32>
    %cst_24 = arith.constant -1.000000e+30 : f32
    %55 = vector.broadcast %cst_24 : f32 to vector<256x256xf32>
    %56 = arith.select %4, %54, %55 : vector<256x256xi1>, vector<256x256xf32>
    %cst_25 = arith.constant dense<0xFF800000> : vector<256xf32>
    %57 = vector.multi_reduction <maximumf>, %56, %cst_25 [0] : vector<256x256xf32> to vector<256xf32>
    %58 = vector.shape_cast %57 : vector<256xf32> to vector<1x256xf32>
    %59 = vector.broadcast %58 : vector<1x256xf32> to vector<256x256xf32>
    %60 = arith.subf %56, %59 : vector<256x256xf32>
    %61 = math.exp %60 : vector<256x256xf32>
    %cst_26 = arith.constant dense<0.000000e+00> : vector<256xf32>
    %62 = vector.multi_reduction <add>, %61, %cst_26 [0] : vector<256x256xf32> to vector<256xf32>
    %63 = vector.shape_cast %62 : vector<256xf32> to vector<1x256xf32>
    %64 = vector.broadcast %63 : vector<1x256xf32> to vector<256x256xf32>
    %65 = arith.divf %61, %64 : vector<256x256xf32>
    %66 = arith.truncf %65 : vector<256x256xf32> to vector<256x256xbf16>
    %cst_27 = arith.constant dense<0.000000e+00> : vector<4x256xf32>
    %67 = tpu.matmul %53, %66, %cst_27 {dimension_numbers = #tpu.dot_dimension_numbers<[1], [0], [0], [1], [0, 0, 1, 1], [], []>} : vector<4x256xbf16>, vector<256x256xbf16>, vector<4x256xf32> -> vector<4x256xf32>
    %c0_28 = arith.constant 0 : index
    %c8 = arith.constant 8 : index
    %c0_29 = arith.constant 0 : index
    %68 = vector.load %arg5[%c0_28, %c8, %c0_29] : memref<1x32x256xf32, #tpu.memory_space<vmem>>, vector<1x4x256xf32>
    %69 = vector.shape_cast %68 : vector<1x4x256xf32> to vector<4x256xf32>
    %70 = vector.shape_cast %67 : vector<4x256xf32> to vector<1x4x256xf32>
    tpu.vector_store %arg5[%c0_28, %c8, %c0_29], %70 {strides = array<i32>} : memref<1x32x256xf32, #tpu.memory_space<vmem>>, vector<1x4x256xf32>,
    %71 = vector.extract_strided_slice %10 {offsets = [12, 0], sizes = [4, 256], strides = [1, 1]} : vector<96x256xbf16> to vector<4x256xbf16>
    %72 = vector.extract_strided_slice %10 {offsets = [44, 0], sizes = [4, 256], strides = [1, 1]} : vector<96x256xbf16> to vector<4x256xbf16>
    %73 = vector.extract_strided_slice %10 {offsets = [76, 0], sizes = [4, 256], strides = [1, 1]} : vector<96x256xbf16> to vector<4x256xbf16>
    %cst_30 = arith.constant dense<0.000000e+00> : vector<256x256xf32>
    %74 = tpu.matmul %72, %71, %cst_30 {dimension_numbers = #tpu.dot_dimension_numbers<[0], [0], [1], [1], [0, 1, 1, 1], [], []>} : vector<4x256xbf16>, vector<4x256xbf16>, vector<256x256xf32> -> vector<256x256xf32>
    %cst_31 = arith.constant -1.000000e+30 : f32
    %75 = vector.broadcast %cst_31 : f32 to vector<256x256xf32>
    %76 = arith.select %4, %74, %75 : vector<256x256xi1>, vector<256x256xf32>
    %cst_32 = arith.constant dense<0xFF800000> : vector<256xf32>
    %77 = vector.multi_reduction <maximumf>, %76, %cst_32 [0] : vector<256x256xf32> to vector<256xf32>
    %78 = vector.shape_cast %77 : vector<256xf32> to vector<1x256xf32>
    %79 = vector.broadcast %78 : vector<1x256xf32> to vector<256x256xf32>
    %80 = arith.subf %76, %79 : vector<256x256xf32>
    %81 = math.exp %80 : vector<256x256xf32>
    %cst_33 = arith.constant dense<0.000000e+00> : vector<256xf32>
    %82 = vector.multi_reduction <add>, %81, %cst_33 [0] : vector<256x256xf32> to vector<256xf32>
    %83 = vector.shape_cast %82 : vector<256xf32> to vector<1x256xf32>
    %84 = vector.broadcast %83 : vector<1x256xf32> to vector<256x256xf32>
    %85 = arith.divf %81, %84 : vector<256x256xf32>
    %86 = arith.truncf %85 : vector<256x256xf32> to vector<256x256xbf16>
    %cst_34 = arith.constant dense<0.000000e+00> : vector<4x256xf32>
    %87 = tpu.matmul %73, %86, %cst_34 {dimension_numbers = #tpu.dot_dimension_numbers<[1], [0], [0], [1], [0, 0, 1, 1], [], []>} : vector<4x256xbf16>, vector<256x256xbf16>, vector<4x256xf32> -> vector<4x256xf32>
    %c0_35 = arith.constant 0 : index
    %c12 = arith.constant 12 : index
    %c0_36 = arith.constant 0 : index
    %88 = vector.load %arg5[%c0_35, %c12, %c0_36] : memref<1x32x256xf32, #tpu.memory_space<vmem>>, vector<1x4x256xf32>
    %89 = vector.shape_cast %88 : vector<1x4x256xf32> to vector<4x256xf32>
    %90 = vector.shape_cast %87 : vector<4x256xf32> to vector<1x4x256xf32>
    tpu.vector_store %arg5[%c0_35, %c12, %c0_36], %90 {strides = array<i32>} : memref<1x32x256xf32, #tpu.memory_space<vmem>>, vector<1x4x256xf32>,
    %91 = vector.extract_strided_slice %10 {offsets = [16, 0], sizes = [4, 256], strides = [1, 1]} : vector<96x256xbf16> to vector<4x256xbf16>
    %92 = vector.extract_strided_slice %10 {offsets = [48, 0], sizes = [4, 256], strides = [1, 1]} : vector<96x256xbf16> to vector<4x256xbf16>
    %93 = vector.extract_strided_slice %10 {offsets = [80, 0], sizes = [4, 256], strides = [1, 1]} : vector<96x256xbf16> to vector<4x256xbf16>
    %cst_37 = arith.constant dense<0.000000e+00> : vector<256x256xf32>
    %94 = tpu.matmul %92, %91, %cst_37 {dimension_numbers = #tpu.dot_dimension_numbers<[0], [0], [1], [1], [0, 1, 1, 1], [], []>} : vector<4x256xbf16>, vector<4x256xbf16>, vector<256x256xf32> -> vector<256x256xf32>
    %cst_38 = arith.constant -1.000000e+30 : f32
    %95 = vector.broadcast %cst_38 : f32 to vector<256x256xf32>
    %96 = arith.select %4, %94, %95 : vector<256x256xi1>, vector<256x256xf32>
    %cst_39 = arith.constant dense<0xFF800000> : vector<256xf32>
    %97 = vector.multi_reduction <maximumf>, %96, %cst_39 [0] : vector<256x256xf32> to vector<256xf32>
    %98 = vector.shape_cast %97 : vector<256xf32> to vector<1x256xf32>
    %99 = vector.broadcast %98 : vector<1x256xf32> to vector<256x256xf32>
    %100 = arith.subf %96, %99 : vector<256x256xf32>
    %101 = math.exp %100 : vector<256x256xf32>
    %cst_40 = arith.constant dense<0.000000e+00> : vector<256xf32>
    %102 = vector.multi_reduction <add>, %101, %cst_40 [0] : vector<256x256xf32> to vector<256xf32>
    %103 = vector.shape_cast %102 : vector<256xf32> to vector<1x256xf32>
    %104 = vector.broadcast %103 : vector<1x256xf32> to vector<256x256xf32>
    %105 = arith.divf %101, %104 : vector<256x256xf32>
    %106 = arith.truncf %105 : vector<256x256xf32> to vector<256x256xbf16>
    %cst_41 = arith.constant dense<0.000000e+00> : vector<4x256xf32>
    %107 = tpu.matmul %93, %106, %cst_41 {dimension_numbers = #tpu.dot_dimension_numbers<[1], [0], [0], [1], [0, 0, 1, 1], [], []>} : vector<4x256xbf16>, vector<256x256xbf16>, vector<4x256xf32> -> vector<4x256xf32>
    %c0_42 = arith.constant 0 : index
    %c16 = arith.constant 16 : index
    %c0_43 = arith.constant 0 : index
    %108 = vector.load %arg5[%c0_42, %c16, %c0_43] : memref<1x32x256xf32, #tpu.memory_space<vmem>>, vector<1x4x256xf32>
    %109 = vector.shape_cast %108 : vector<1x4x256xf32> to vector<4x256xf32>
    %110 = vector.shape_cast %107 : vector<4x256xf32> to vector<1x4x256xf32>
    tpu.vector_store %arg5[%c0_42, %c16, %c0_43], %110 {strides = array<i32>} : memref<1x32x256xf32, #tpu.memory_space<vmem>>, vector<1x4x256xf32>,
    %111 = vector.extract_strided_slice %10 {offsets = [20, 0], sizes = [4, 256], strides = [1, 1]} : vector<96x256xbf16> to vector<4x256xbf16>
    %112 = vector.extract_strided_slice %10 {offsets = [52, 0], sizes = [4, 256], strides = [1, 1]} : vector<96x256xbf16> to vector<4x256xbf16>
    %113 = vector.extract_strided_slice %10 {offsets = [84, 0], sizes = [4, 256], strides = [1, 1]} : vector<96x256xbf16> to vector<4x256xbf16>
    %cst_44 = arith.constant dense<0.000000e+00> : vector<256x256xf32>
    %114 = tpu.matmul %112, %111, %cst_44 {dimension_numbers = #tpu.dot_dimension_numbers<[0], [0], [1], [1], [0, 1, 1, 1], [], []>} : vector<4x256xbf16>, vector<4x256xbf16>, vector<256x256xf32> -> vector<256x256xf32>
    %cst_45 = arith.constant -1.000000e+30 : f32
    %115 = vector.broadcast %cst_45 : f32 to vector<256x256xf32>
    %116 = arith.select %4, %114, %115 : vector<256x256xi1>, vector<256x256xf32>
    %cst_46 = arith.constant dense<0xFF800000> : vector<256xf32>
    %117 = vector.multi_reduction <maximumf>, %116, %cst_46 [0] : vector<256x256xf32> to vector<256xf32>
    %118 = vector.shape_cast %117 : vector<256xf32> to vector<1x256xf32>
    %119 = vector.broadcast %118 : vector<1x256xf32> to vector<256x256xf32>
    %120 = arith.subf %116, %119 : vector<256x256xf32>
    %121 = math.exp %120 : vector<256x256xf32>
    %cst_47 = arith.constant dense<0.000000e+00> : vector<256xf32>
    %122 = vector.multi_reduction <add>, %121, %cst_47 [0] : vector<256x256xf32> to vector<256xf32>
    %123 = vector.shape_cast %122 : vector<256xf32> to vector<1x256xf32>
    %124 = vector.broadcast %123 : vector<1x256xf32> to vector<256x256xf32>
    %125 = arith.divf %121, %124 : vector<256x256xf32>
    %126 = arith.truncf %125 : vector<256x256xf32> to vector<256x256xbf16>
    %cst_48 = arith.constant dense<0.000000e+00> : vector<4x256xf32>
    %127 = tpu.matmul %113, %126, %cst_48 {dimension_numbers = #tpu.dot_dimension_numbers<[1], [0], [0], [1], [0, 0, 1, 1], [], []>} : vector<4x256xbf16>, vector<256x256xbf16>, vector<4x256xf32> -> vector<4x256xf32>
    %c0_49 = arith.constant 0 : index
    %c20 = arith.constant 20 : index
    %c0_50 = arith.constant 0 : index
    %128 = vector.load %arg5[%c0_49, %c20, %c0_50] : memref<1x32x256xf32, #tpu.memory_space<vmem>>, vector<1x4x256xf32>
    %129 = vector.shape_cast %128 : vector<1x4x256xf32> to vector<4x256xf32>
    %130 = vector.shape_cast %127 : vector<4x256xf32> to vector<1x4x256xf32>
    tpu.vector_store %arg5[%c0_49, %c20, %c0_50], %130 {strides = array<i32>} : memref<1x32x256xf32, #tpu.memory_space<vmem>>, vector<1x4x256xf32>,
    %131 = vector.extract_strided_slice %10 {offsets = [24, 0], sizes = [4, 256], strides = [1, 1]} : vector<96x256xbf16> to vector<4x256xbf16>
    %132 = vector.extract_strided_slice %10 {offsets = [56, 0], sizes = [4, 256], strides = [1, 1]} : vector<96x256xbf16> to vector<4x256xbf16>
    %133 = vector.extract_strided_slice %10 {offsets = [88, 0], sizes = [4, 256], strides = [1, 1]} : vector<96x256xbf16> to vector<4x256xbf16>
    %cst_51 = arith.constant dense<0.000000e+00> : vector<256x256xf32>
    %134 = tpu.matmul %132, %131, %cst_51 {dimension_numbers = #tpu.dot_dimension_numbers<[0], [0], [1], [1], [0, 1, 1, 1], [], []>} : vector<4x256xbf16>, vector<4x256xbf16>, vector<256x256xf32> -> vector<256x256xf32>
    %cst_52 = arith.constant -1.000000e+30 : f32
    %135 = vector.broadcast %cst_52 : f32 to vector<256x256xf32>
    %136 = arith.select %4, %134, %135 : vector<256x256xi1>, vector<256x256xf32>
    %cst_53 = arith.constant dense<0xFF800000> : vector<256xf32>
    %137 = vector.multi_reduction <maximumf>, %136, %cst_53 [0] : vector<256x256xf32> to vector<256xf32>
    %138 = vector.shape_cast %137 : vector<256xf32> to vector<1x256xf32>
    %139 = vector.broadcast %138 : vector<1x256xf32> to vector<256x256xf32>
    %140 = arith.subf %136, %139 : vector<256x256xf32>
    %141 = math.exp %140 : vector<256x256xf32>
    %cst_54 = arith.constant dense<0.000000e+00> : vector<256xf32>
    %142 = vector.multi_reduction <add>, %141, %cst_54 [0] : vector<256x256xf32> to vector<256xf32>
    %143 = vector.shape_cast %142 : vector<256xf32> to vector<1x256xf32>
    %144 = vector.broadcast %143 : vector<1x256xf32> to vector<256x256xf32>
    %145 = arith.divf %141, %144 : vector<256x256xf32>
    %146 = arith.truncf %145 : vector<256x256xf32> to vector<256x256xbf16>
    %cst_55 = arith.constant dense<0.000000e+00> : vector<4x256xf32>
    %147 = tpu.matmul %133, %146, %cst_55 {dimension_numbers = #tpu.dot_dimension_numbers<[1], [0], [0], [1], [0, 0, 1, 1], [], []>} : vector<4x256xbf16>, vector<256x256xbf16>, vector<4x256xf32> -> vector<4x256xf32>
    %c0_56 = arith.constant 0 : index
    %c24 = arith.constant 24 : index
    %c0_57 = arith.constant 0 : index
    %148 = vector.load %arg5[%c0_56, %c24, %c0_57] : memref<1x32x256xf32, #tpu.memory_space<vmem>>, vector<1x4x256xf32>
    %149 = vector.shape_cast %148 : vector<1x4x256xf32> to vector<4x256xf32>
    %150 = vector.shape_cast %147 : vector<4x256xf32> to vector<1x4x256xf32>
    tpu.vector_store %arg5[%c0_56, %c24, %c0_57], %150 {strides = array<i32>} : memref<1x32x256xf32, #tpu.memory_space<vmem>>, vector<1x4x256xf32>,
    %151 = vector.extract_strided_slice %10 {offsets = [28, 0], sizes = [4, 256], strides = [1, 1]} : vector<96x256xbf16> to vector<4x256xbf16>
    %152 = vector.extract_strided_slice %10 {offsets = [60, 0], sizes = [4, 256], strides = [1, 1]} : vector<96x256xbf16> to vector<4x256xbf16>
    %153 = vector.extract_strided_slice %10 {offsets = [92, 0], sizes = [4, 256], strides = [1, 1]} : vector<96x256xbf16> to vector<4x256xbf16>
    %cst_58 = arith.constant dense<0.000000e+00> : vector<256x256xf32>
    %154 = tpu.matmul %152, %151, %cst_58 {dimension_numbers = #tpu.dot_dimension_numbers<[0], [0], [1], [1], [0, 1, 1, 1], [], []>} : vector<4x256xbf16>, vector<4x256xbf16>, vector<256x256xf32> -> vector<256x256xf32>
    %cst_59 = arith.constant -1.000000e+30 : f32
    %155 = vector.broadcast %cst_59 : f32 to vector<256x256xf32>
    %156 = arith.select %4, %154, %155 : vector<256x256xi1>, vector<256x256xf32>
    %cst_60 = arith.constant dense<0xFF800000> : vector<256xf32>
    %157 = vector.multi_reduction <maximumf>, %156, %cst_60 [0] : vector<256x256xf32> to vector<256xf32>
    %158 = vector.shape_cast %157 : vector<256xf32> to vector<1x256xf32>
    %159 = vector.broadcast %158 : vector<1x256xf32> to vector<256x256xf32>
    %160 = arith.subf %156, %159 : vector<256x256xf32>
    %161 = math.exp %160 : vector<256x256xf32>
    %cst_61 = arith.constant dense<0.000000e+00> : vector<256xf32>
    %162 = vector.multi_reduction <add>, %161, %cst_61 [0] : vector<256x256xf32> to vector<256xf32>
    %163 = vector.shape_cast %162 : vector<256xf32> to vector<1x256xf32>
    %164 = vector.broadcast %163 : vector<1x256xf32> to vector<256x256xf32>
    %165 = arith.divf %161, %164 : vector<256x256xf32>
    %166 = arith.truncf %165 : vector<256x256xf32> to vector<256x256xbf16>
    %cst_62 = arith.constant dense<0.000000e+00> : vector<4x256xf32>
    %167 = tpu.matmul %153, %166, %cst_62 {dimension_numbers = #tpu.dot_dimension_numbers<[1], [0], [0], [1], [0, 0, 1, 1], [], []>} : vector<4x256xbf16>, vector<256x256xbf16>, vector<4x256xf32> -> vector<4x256xf32>
    %c0_63 = arith.constant 0 : index
    %c28 = arith.constant 28 : index
    %c0_64 = arith.constant 0 : index
    %168 = vector.load %arg5[%c0_63, %c28, %c0_64] : memref<1x32x256xf32, #tpu.memory_space<vmem>>, vector<1x4x256xf32>
    %169 = vector.shape_cast %168 : vector<1x4x256xf32> to vector<4x256xf32>
    %170 = vector.shape_cast %167 : vector<4x256xf32> to vector<1x4x256xf32>
    tpu.vector_store %arg5[%c0_63, %c28, %c0_64], %170 {strides = array<i32>} : memref<1x32x256xf32, #tpu.memory_space<vmem>>, vector<1x4x256xf32>,
    return
  }
  func.func @transform_0(%arg0: i32) -> (i32, i32, i32) {
    %c0_i32 = arith.constant 0 : i32
    %c0_i32_0 = arith.constant 0 : i32
    %c0_i32_1 = arith.constant 0 : i32
    return %arg0, %c0_i32, %c0_i32_0 : i32, i32, i32
  }
  func.func @transform_1(%arg0: i32) -> (i32, i32) {
    %c0_i32 = arith.constant 0 : i32
    %c0_i32_0 = arith.constant 0 : i32
    %c0_i32_1 = arith.constant 0 : i32
    return %c0_i32, %c0_i32_0 : i32, i32
  }
  func.func @transform_2(%arg0: i32) -> (i32, i32) {
    %c0_i32 = arith.constant 0 : i32
    %c0_i32_0 = arith.constant 0 : i32
    %c0_i32_1 = arith.constant 0 : i32
    return %c0_i32, %c0_i32_0 : i32, i32
  }
  func.func @transform_3(%arg0: i32) -> (i32, i32) {
    %c0_i32 = arith.constant 0 : i32
    %c0_i32_0 = arith.constant 0 : i32
    %c0_i32_1 = arith.constant 0 : i32
    return %c0_i32, %c0_i32_0 : i32, i32
  }
  func.func @transform_4(%arg0: i32) -> (i32, i32, i32) {
    %c0_i32 = arith.constant 0 : i32
    %c0_i32_0 = arith.constant 0 : i32
    %c0_i32_1 = arith.constant 0 : i32
    return %arg0, %c0_i32, %c0_i32_0 : i32, i32, i32
  }
}

</mosaic_0001>

<bundles_post_ra>
// kernel: tpu_custom_call.1
= control target key start
LH: loop header
LB: loop body
LE: loop exit
PB: predicated region body
PF: predicated region fallthrough
CT: control target
= control target key end

     0   :  { %9 = vsyncpa [#allocation3], 0  ;;  %s17854_s0 = inlined_call_operand.vmem [shape: f32[2,32,256], index: 0, kind: input, shape index: {}]   ;;  %s17855_s1 = inlined_call_operand.vmem [shape: bf16[96,32], index: 1, kind: input, shape index: {}]   ;;  %s17856_s2 = inlined_call_operand.vmem [shape: s32[256,1], index: 2, kind: input, shape index: {}]   ;;  %s17857_s3 = inlined_call_operand.vmem [shape: s32[1,256], index: 3, kind: input, shape index: {}]   ;;  %s17858_s4 = inlined_call_operand.hbm [shape: f32[2,32,256], index: 4, kind: output, shape index: {}]  }
   0x1   :  { %11 = vsyncpa [#allocation3 + $0x1], 0  ;;  %s8703_s15 = smov 0   ;;  %s8705_s16 = smov 0  }
   0x2   :  { %s8707_s17 = smov 0   ;;  %s8709_s18 = smov 0  }
   0x3 LB: > { %s8724_s19 = sadd.s32 4294967295, %s8672_s18   ;;  %s7342_s20 = sadd.s32 4294967294, %s8672_s18   ;;  %s8672_s18 = sphi %s8709_s18, %s20721_s18   ;;  %s8668_s17 = sphi %s8707_s17, %s20720_s17   ;;  %s8664_s16 = sphi %s8705_s16, %s20719_s16   ;;  %s8660_s15 = sphi %s8703_s15, %s20718_s15  }
   0x4   : > { %s8728_s21 = sadd.s32 1, %s8672_s18   ;;  %s113_s22 = sadd.s32 1, %s8668_s17 }
   0x5   : > { %s110_s23 = ssub.s32 %s8672_s18, %s8728_s21  ;;  %p123_p0 = scmp.ne.s32.totalorder %s8668_s17, %s8664_s16 }
   0x6   : > { %p111_p1 = scmp.eq.s32.totalorder %s110_s23, 0  ;;  %p124_p2 = scmp.eq.s32.totalorder %s8724_s19, 1 }
   0x7   : > { %p129_p3 = scmp.ne.s32.totalorder %s8664_s16, %s8660_s15  ;;  %p130_p4 = scmp.eq.s32.totalorder %s7342_s20, 1 }
   0x8   : > { %s8739_s24 = scalar_select %p111_p1, %s8668_s17, %s113_s22  }
   0x9   : > { %p8741_p5 = por %p124_p2, %p123_p0  ;;  %p8745_p6 = por %p130_p4, %p129_p3 }
   0xa   : > { %p7345_p7 = scmp.ge.s32.totalorder %s8672_s18, 1  ;;  %p165_p8 = scmp.lt.s32.totalorder %s8672_s18, 3 }
   0xc   : > { %p166_p9 = pnand %p7345_p7, %p165_p8 }
   0xe   : > { %169 = sbr.rel (%p166_p9) target bundleno = 5051 (0x13bb), region = 36 }
  0x15   : > { %p191_p10 = scmp.lt.s32.totalorder %s8724_s19, 1  ;;  %v17859_v0 = vmov 0   ;;  %v197_v1 = vld [vmem:[%s17856_s2] sm:$0xff]  ;;  %v198_v2 = vld [vmem:[%s17856_s2 + $0x8] sm:$0xff]  ;;  %v199_v14 = vld [vmem:[%s17856_s2 + $0x10] sm:$0xff]  ;;  %vm452_vm0 = vcmask 261120  }
  0x16   : > { %503 = vmatprep.mubr.bf16.mxu1 %v17859_v0  ;;  %7546 = vset.pattern.permute.xlu1 %v17859_v0  ;;  %v7548_v16 = vld [vmem:[%s17855_s1] sm:$0xff]   ;;  %v200_v17 = vld [vmem:[%s17856_s2 + $0x18] sm:$0xff]  ;;  %v7549_v19 = vld [vmem:[%s17855_s1 + $0x8] sm:$0xff]   ;;  %vm17884_vm1 = vcmask 1041408   ;;  %vm17883_vm2 = vcmask 31744   ;;  %s188_s22 = sand.u32 1, %s8664_s16  }
  0x17   : > { %s192_s27 = scalar_select %p191_p10, %s8724_s19, 1  ;;  %231 = vperm.xlu1 %7546, %v197_v1   ;;  %v201_v18 = vld [vmem:[%s17856_s2 + $0x20] sm:$0xff]  ;;  %v202_v20 = vld [vmem:[%s17856_s2 + $0x28] sm:$0xff]  ;;  %v203_v21 = vld [vmem:[%s17856_s2 + $0x30] sm:$0xff] }
  0x18   : > { %v7550_v22 = vld [vmem:[%s17855_s1 + $0x10] sm:$0xff]   ;;  %v204_v23 = vld [vmem:[%s17856_s2 + $0x38] sm:$0xff]  ;;  %v205_v24 = vld [vmem:[%s17856_s2 + $0x40] sm:$0xff]  ;;  %s7346_s23 = sshll.u32 %s188_s22, 6  ;;  %s7503_s28 = sshll.u32 %s8724_s19, 10 }
  0x19   : > { %s7502_s30 = sshll.u32 %s192_s27, 6  ;;  %v207_v25 = vld [vmem:[%s17856_s2 + $0x50] sm:$0xff]  ;;  %v208_v26 = vld [vmem:[%s17856_s2 + $0x58] sm:$0xff]  ;;  %v209_v27 = vld [vmem:[%s17856_s2 + $0x60] sm:$0xff]  ;;  %s10507_s27 = scalar_lea.vmem [#allocation2], %s7346_s23 }
  0x1a   : > { %s195_s7 = scalar_lea.vmem %s17854_s0, %s7502_s30  ;;  %v210_v28 = vld [vmem:[%s17856_s2 + $0x68] sm:$0xff]  ;;  %v211_v29 = vld [vmem:[%s17856_s2 + $0x70] sm:$0xff]  ;;  %v212_v30 = vld [vmem:[%s17856_s2 + $0x78] sm:$0xff]  ;;  %s7280_s29 = sshll.u32 %s10507_s27, 4  ;;  %s17807_s29 = int_to_ptr.vmem [resolvable:$true] %s7280_s29 }
  0x1b   : > { %v411_v3 = vld [vmem:[%s195_s7 + $0x8] sm:$0xff]  ;;  %v413_v4 = vld [vmem:[%s195_s7 + $0x18] sm:$0xff]  ;;  %v410_v5 = vld [vmem:[%s195_s7] sm:$0xff]  ;;  %234 = vperm.xlu1 %7546, %v198_v2   ;;  %s17805_s6 = scalar_lea.hbm %s17858_s4, %s7503_s28  ;;  %s17813_s19 = scalar_lea.sflag [#allocation3], %s188_s22 }
  0x1c   : > { %v419_v6 = vpack.c.bf16 %v413_v4, %v411_v3  ;;  %v412_v7 = vld [vmem:[%s195_s7 + $0x10] sm:$0xff]  ;;  %v415_v8 = vld [vmem:[%s195_s7 + $0x28] sm:$0xff]  ;;  %v417_v9 = vld [vmem:[%s195_s7 + $0x38] sm:$0xff]  ;;  %s8675_s8 = smov [#allocation2]  }
  0x1d   : > { %v418_v10 = vpack.c.bf16 %v412_v7, %v410_v5  ;;  %v421_v11 = vpack.c.bf16 %v417_v9, %v415_v8  ;;  %v414_v12 = vld [vmem:[%s195_s7 + $0x20] sm:$0xff]  ;;  %v416_v13 = vld [vmem:[%s195_s7 + $0x30] sm:$0xff]  ;;  %v214_v32 = vld [vmem:[%s17856_s2 + $0x88] sm:$0xff]  ;;  %s8610_s7 = scalar_lea.vmem %s17807_s29, 1024  ;;  %s8614_s9 = sshll.u32 %s8675_s8, 4  ;;  %s8615_s9 = int_to_ptr.vmem [resolvable:$false] %s8614_s9 }
  0x1e   : > { %471 = vmatprep.subr.bf16.mxu1 %v419_v6  ;;  %v420_v15 = vpack.c.bf16 %v416_v13, %v414_v12  ;;  %v213_v31 = vld [vmem:[%s17856_s2 + $0x80] sm:$0xff]  ;;  %v215_v33 = vld [vmem:[%s17856_s2 + $0x90] sm:$0xff]  ;;  %v7551_v40 = vld [vmem:[%s17855_s1 + $0x18] sm:$0xff]   ;;  %p8611_p11 = scmp.ne.s32.totalorder %s17807_s29, %s8610_s7  ;;  %s8616_s10 = scalar_lea.vmem %s8615_s9, 2048 }
  0x1f   : > { %472 = vmatpush1.bf16.msra.mxu1 %v418_v10  ;;  %237 = vperm.xlu1 %7546, %v199_v14   ;;  %v217_v34 = vld [vmem:[%s17856_s2 + $0xa0] sm:$0xff]  ;;  %v219_v35 = vld [vmem:[%s17856_s2 + $0xb0] sm:$0xff]  ;;  %v7553_v42 = vld [vmem:[%s17855_s1 + $0x28] sm:$0xff]   ;;  %p8617_p0 = scmp.lt.s32.totalorder %s17807_s29, %s8615_s9  ;;  %p8618_p1 = scmp.lt.s32.totalorder %s8616_s10, %s8610_s7 }
  0x20   : > { %473 = vmatprep.subr.bf16.mxu1 %v421_v11  ;;  %v221_v36 = vld [vmem:[%s17856_s2 + $0xc0] sm:$0xff]  ;;  %v223_v37 = vld [vmem:[%s17856_s2 + $0xd0] sm:$0xff]  ;;  %v206_v7 = vld [vmem:[%s17856_s2 + $0x48] sm:$0xff]  ;;  %p8612_p12 = pnand %p8611_p11, %p8741_p5 }
  0x21   : > { %v225_v38 = vld [vmem:[%s17856_s2 + $0xe0] sm:$0xff]  ;;  %v227_v39 = vld [vmem:[%s17856_s2 + $0xf0] sm:$0xff]  ;;  %v216_v9 = vld [vmem:[%s17856_s2 + $0x98] sm:$0xff]  ;;  %p8619_p2 = por %p8618_p1, %p8617_p0 }
  0x22   : > { %v7552_v41 = vld [vmem:[%s17855_s1 + $0x20] sm:$0xff]   ;;  %v218_v11 = vld [vmem:[%s17856_s2 + $0xa8] sm:$0xff]  ;;  %v220_v14 = vld [vmem:[%s17856_s2 + $0xb8] sm:$0xff]  ;;  %p8613_p13 = pneg %p8612_p12 }
  0x23   : > { %474 = vmatpush1.bf16.msra.mxu1 %v420_v15  ;;  %240 = vperm.xlu1 %7546, %v200_v17  }
  0x24   : > { %p8620_p3 = pnand %p8619_p2, %p8613_p13 }
  0x26   : > { %7355 = vmatmul.mubr.msk.bf16.vlgmr.msra.gmra.mrb[0].mxu1 %vm452_vm0, %v7548_v16 }
  0x27   : > { %513 = vmatprep.mubr.bf16.mxu1 %v17859_v0  ;;  %243 = vperm.xlu1 %7546, %v201_v18  }
  0x2b   : > { %246 = vperm.xlu1 %7546, %v202_v20  }
  0x2e   : > { %7356 = vmatmul.mubr.msk.bf16.gmra.mrb[4].mxu1 %vm452_vm0, %v7549_v19 }
  0x2f   : > { %523 = vmatprep.mubr.bf16.mxu1 %v17859_v0  ;;  %249 = vperm.xlu1 %7546, %v203_v21   ;;  %v222_v21 = vld [vmem:[%s17856_s2 + $0xc8] sm:$0xff] }
  0x33   : > { %252 = vperm.xlu1 %7546, %v204_v23   ;;  %v224_v23 = vld [vmem:[%s17856_s2 + $0xd8] sm:$0xff] }
  0x36   : > { %7357 = vmatmul.mubr.msk.bf16.gmra.mrb[8].mxu1 %vm452_vm0, %v7550_v22 }
  0x37   : > { %533 = vmatprep.mubr.bf16.mxu1 %v17859_v0  ;;  %255 = vperm.xlu1 %7546, %v205_v24  }
  0x3b   : > { %261 = vperm.xlu1 %7546, %v207_v25   ;;  %v226_v25 = vld [vmem:[%s17856_s2 + $0xe8] sm:$0xff] }
  0x3e   : > { %7358 = vmatmul.mubr.msk.bf16.gmra.mrb[12].mxu1 %vm452_vm0, %v7551_v40 }
  0x3f   : > { %264 = vperm.xlu1 %7546, %v208_v26   ;;  %543 = vmatprep.mubr.bf16.mxu1 %v17859_v0 }
  0x43   : > { %267 = vperm.xlu1 %7546, %v209_v27   ;;  %v228_v27 = vld [vmem:[%s17856_s2 + $0xf8] sm:$0xff] }
  0x46   : > { %7359 = vmatmul.mubr.msk.bf16.gmra.mrb[16].mxu1 %vm452_vm0, %v7552_v41 }
  0x47   : > { %270 = vperm.xlu1 %7546, %v210_v28   ;;  %553 = vmatprep.mubr.bf16.mxu1 %v17859_v0 }
  0x4b   : > { %273 = vperm.xlu1 %7546, %v211_v29  }
  0x4e   : > { %7360 = vmatmul.mubr.msk.bf16.gmra.mrb[20].mxu1 %vm452_vm0, %v7553_v42 }
  0x4f   : > { %276 = vperm.xlu1 %7546, %v212_v30   ;;  %696 = vmatprep.mubr.bf16.mxu1 %v17859_v0 }
  0x53   : > { %279 = vperm.xlu1 %7546, %v213_v31  }
  0x57   : > { %282 = vperm.xlu1 %7546, %v214_v32  }
  0x5b   : > { %285 = vperm.xlu1 %7546, %v215_v33  }
  0x5f   : > { %291 = vperm.xlu1 %7546, %v217_v34  }
  0x63   : > { %297 = vperm.xlu1 %7546, %v219_v35  }
  0x67   : > { %303 = vperm.xlu1 %7546, %v221_v36  }
  0x6b   : > { %309 = vperm.xlu1 %7546, %v223_v37  }
  0x6f   : > { %315 = vperm.xlu1 %7546, %v225_v38  }
  0x73   : > { %321 = vperm.xlu1 %7546, %v227_v39  }
  0x96   : > { %v8881_v1 = vpop.permute.xlu1 %231 }
  0x9a   : > { %v8883_v2 = vpop.permute.xlu1 %234 }
  0x9e   : > { %v8885_v3 = vpop.permute.xlu1 %237 }
  0xa2   : > { %v8888_v5 = vpop.permute.xlu1 %240 }
  0xa6   : > { %v8890_v6 = vpop.permute.xlu1 %243 }
  0xaa   : > { %v8895_v8 = vpop.permute.xlu1 %246 }
  0xae   : > { %v8900_v10 = vpop.permute.xlu1 %249 }
  0xb2   : > { %v8905_v13 = vpop.permute.xlu1 %252 }
  0xb6   : > { %v8914_v20 = vpop.permute.xlu1 %255 }
  0xba   : > { %v8919_v22 = vpop.permute.xlu1 %261 }
  0xbe   : > { %v8924_v24 = vpop.permute.xlu1 %264 }
  0xc2   : > { %v8930_v26 = vpop.permute.xlu1 %267 }
  0xc6   : > { %v8935_v28 = vpop.permute.xlu1 %270 }
  0xca   : > { %v8937_v29 = vpop.permute.xlu1 %273 }
  0xce   : > { %v8939_v31 = vpop.permute.xlu1 %276 }
  0xd2   : > { %v8943_v32 = vpop.permute.xlu1 %279 }
  0xd6   : > { %v8945_v34 = vpop.permute.xlu1 %282 }
  0xda   : > { %v8950_v36 = vpop.permute.xlu1 %285 }
  0xde   : > { %v8952_v38 = vpop.permute.xlu1 %291 }
  0xe2   : > { %v8957_v40 = vpop.permute.xlu1 %297 }
  0xe6   : > { %v8959_v42 = vpop.permute.xlu1 %303 }
  0xf9   : > { %v505_v43 = vpop.f32.mrb[0].mxu1 }
  0xfa   : > { %v507_v44 = vpop.f32.mrb[1].mxu1 }
  0xfb   : > { %v509_v45 = vpop.f32.mrb[2].mxu1 }
  0xfc   : > { %v8860_v46 = vpack.c.bf16 %v509_v45, %v505_v43  ;;  %v511_v47 = vpop.f32.mrb[3].mxu1  ;;  %v8963_v43 = vpop.permute.xlu1 %309 }
  0xfd   : > { %v8862_v48 = vpack.c.bf16 %v511_v47, %v507_v44 }
  0xfe   : > { %18524 = vst [vmem:[#allocation5_spill] sm:$0xff] %v8860_v46  ;;  %v659_v49 = vsel %vm17884_vm1, %v8860_v46, 0 }
  0xff   : > { %18525 = vst [vmem:[#allocation6_spill] sm:$0xff] %v8862_v48  ;;  %7361 = vmatprep.subr.msk.bf16.mxu1 %vm17884_vm1, %v8862_v48 }
 0x100   : > { %665 = vmatpush1.bf16.msra.mxu1 %v659_v49  ;;  %v8965_v45 = vpop.permute.xlu1 %315 }
 0x101   : > { %v515_v50 = vpop.f32.mrb[4].mxu1 }
 0x102   : > { %v517_v51 = vpop.f32.mrb[5].mxu1 }
 0x103   : > { %v519_v52 = vpop.f32.mrb[6].mxu1 }
 0x104   : > { %v8868_v53 = vpack.c.bf16 %v519_v52, %v515_v50  ;;  %v521_v54 = vpop.f32.mrb[7].mxu1  ;;  %v8969_v47 = vpop.permute.xlu1 %321 }
 0x105   : > { %v8870_v55 = vpack.c.bf16 %v521_v54, %v517_v51 }
 0x106   : > { %18526 = vst [vmem:[#allocation7_spill] sm:$0xff] %v8868_v53 }
 0x107   : > { %18527 = vst [vmem:[#allocation8_spill] sm:$0xff] %v8870_v55 }
 0x109   : > { %v525_v56 = vpop.f32.mrb[8].mxu1 }
 0x10a   : > { %v527_v57 = vpop.f32.mrb[9].mxu1 }
 0x10b   : > { %v529_v58 = vpop.f32.mrb[10].mxu1 }
 0x10c   : > { %v8872_v59 = vpack.c.bf16 %v529_v58, %v525_v56  ;;  %v531_v60 = vpop.f32.mrb[11].mxu1 }
 0x10d   : > { %v8874_v61 = vpack.c.bf16 %v531_v60, %v527_v57 }
 0x10e   : > { %576 = vxpose.xlu0.c.b16.start.end [1/1] (short) %v8872_v59, 128  ;;  %v1404_v62 = vrot.slane %v8872_v59, 2  ;;  %v2248_v57 = vrot.slane %v8872_v59, 4 }
 0x10f   : > { %v2249_v63 = vrot.slane %v8874_v61, 4  ;;  %v3083_v4 = vrot.slane %v8874_v61, 6  ;;  %v1405_v39 = vrot.slane %v8874_v61, 2 }
 0x110   : > { %1408 = vxpose.xlu1.c.b16.start.end [1/1] (short) %v1404_v62, 128 }
 0x111   : > { %v535_v12 = vpop.f32.mrb[12].mxu1 }
 0x112   : > { %v537_v15 = vpop.f32.mrb[13].mxu1 }
 0x113   : > { %v539_v16 = vpop.f32.mrb[14].mxu1 }
 0x114   : > { %v8910_v17 = vpack.c.bf16 %v539_v16, %v535_v12  ;;  %v541_v18 = vpop.f32.mrb[15].mxu1 }
 0x115   : > { %v8912_v19 = vpack.c.bf16 %v541_v18, %v537_v15 }
 0x117   : > { %v4749_v35 = vrot.slane %v8912_v19, 2  ;;  %v5593_v51 = vrot.slane %v8912_v19, 4  ;;  %v6427_v16 = vrot.slane %v8912_v19, 6 }
 0x12b   : > { %592 = vxpose.xlu0.c.b16.start.end [1/1] (short) %v8874_v61, 128 }
 0x12d   : > { %2268 = vxpose.xlu1.c.b16.start.end [1/1] (short) %v2249_v63, 128  ;;  %v545_v63 = vpop.f32.mrb[16].mxu1 }
 0x134   : > { %7547 = vset.pattern.permute.xlu0 %v17859_v0 }
 0x14a   : > { %3102 = vxpose.xlu1.c.b16.start.end [1/1] (short) %v3083_v4, 128 }
 0x150   : > { %258 = vperm.xlu0 %7547, %v206_v7   ;;  %v547_v7 = vpop.f32.mrb[17].mxu1 }
 0x154   : > { %288 = vperm.xlu0 %7547, %v216_v9   ;;  %v549_v9 = vpop.f32.mrb[18].mxu1 }
 0x155   : > { %v551_v12 = vpop.f32.mrb[19].mxu1 }
 0x158   : > { %294 = vperm.xlu0 %7547, %v218_v11   ;;  %v8993_v11 = vpack.c.bf16 %v549_v9, %v545_v63 }
 0x15a   : > { %18534 = vst [vmem:[#allocation15_spill] sm:$0xff] %v8993_v11 }
 0x15c   : > { %300 = vperm.xlu0 %7547, %v220_v14   ;;  %v8995_v14 = vpack.c.bf16 %v551_v12, %v547_v7 }
 0x15e   : > { %18535 = vst [vmem:[#allocation16_spill] sm:$0xff] %v8995_v14  ;;  %1391 = vmatprep.mubr.bf16.mxu0 %v8995_v14 }
 0x160   : > { %306 = vperm.xlu0 %7547, %v222_v21   ;;  %v555_v21 = vpop.f32.mrb[20].mxu1 }
 0x164   : > { %312 = vperm.xlu0 %7547, %v224_v23   ;;  %v557_v23 = vpop.f32.mrb[21].mxu1 }
 0x167   : > { %3938 = vxpose.xlu1.c.b16.start.end [1/1] (short) %v8912_v19, 128  ;;  %v3082_v19 = vrot.slane %v8872_v59, 6 }
 0x168   : > { %318 = vperm.xlu0 %7547, %v226_v25   ;;  %v559_v25 = vpop.f32.mrb[22].mxu1 }
 0x16c   : > { %324 = vperm.xlu0 %7547, %v228_v27   ;;  %v9003_v27 = vpack.c.bf16 %v559_v25, %v555_v21 }
 0x16e   : > { %18537 = vst [vmem:[#allocation18_spill] sm:$0xff] %v9003_v27 }
 0x174   : > { %v584_v30 = vpop.trf.xlu0 }
 0x175   : > { %7362 = vmatmul.mubr.msk.bf16.vlgmr.msra.gmra.mrb[24].mxu1 %vm17883_vm2, %v584_v30  ;;  %v561_v30 = vpop.f32.mrb[23].mxu1 }
 0x176   : > { %706 = vmatprep.mubr.bf16.mxu1 %v17859_v0  ;;  %v8971_v50 = vpop.trf.xlu1 }
 0x177   : > { %18528 = vst [vmem:[#allocation9_spill] sm:$0xff] %v8971_v50 }
 0x178   : > { %v585_v33 = vpop.trf.xlu0 }
 0x17a   : > { %v8976_v52 = vpop.trf.xlu1 }
 0x17b   : > { %18529 = vst [vmem:[#allocation10_spill] sm:$0xff] %v8976_v52 }
 0x17c   : > { %v586_v37 = vpop.trf.xlu0 }
 0x17d   : > { %7363 = vmatmul.mubr.msk.bf16.gmra.mrb[28].mxu1 %vm17883_vm2, %v585_v33  ;;  %v9005_v33 = vpack.c.bf16 %v561_v30, %v557_v23 }
 0x17e   : > { %716 = vmatprep.mubr.bf16.mxu1 %v17859_v0  ;;  %v8978_v56 = vpop.trf.xlu1 }
 0x17f   : > { %18530 = vst [vmem:[#allocation11_spill] sm:$0xff] %v8978_v56  ;;  %18538 = vst [vmem:[#allocation19_spill] sm:$0xff] %v9005_v33 }
 0x180   : > { %v587_v41 = vpop.trf.xlu0 }
 0x182   : > { %v8983_v60 = vpop.trf.xlu1 }
 0x183   : > { %18531 = vst [vmem:[#allocation12_spill] sm:$0xff] %v8983_v60 }
 0x184   : > { %4768 = vxpose.xlu1.c.b16.start.end [1/1] (short) %v4749_v35, 128  ;;  %v588_v44 = vpop.trf.xlu0 }
 0x185   : > { %7364 = vmatmul.mubr.msk.bf16.gmra.mrb[32].mxu1 %vm17883_vm2, %v586_v37 }
 0x186   : > { %726 = vmatprep.mubr.bf16.mxu1 %v17859_v0  ;;  %v8987_v61 = vpop.trf.xlu1 }
 0x187   : > { %18532 = vst [vmem:[#allocation13_spill] sm:$0xff] %v8987_v61 }
 0x188   : > { %v589_v49 = vpop.trf.xlu0 }
 0x18a   : > { %1424 = vxpose.xlu0.c.b16.start.end [1/1] (short) %v1405_v39, 128  ;;  %v8991_v4 = vpop.trf.xlu1 }
 0x18b   : > { %18533 = vst [vmem:[#allocation14_spill] sm:$0xff] %v8991_v4 }
 0x18c   : > { %v590_v54 = vpop.trf.xlu0 }
 0x18d   : > { %7365 = vmatmul.mubr.msk.bf16.gmra.mrb[36].mxu1 %vm17883_vm2, %v587_v41 }
 0x18e   : > { %736 = vmatprep.mubr.bf16.mxu1 %v17859_v0  ;;  %v8999_v18 = vpop.trf.xlu1 }
 0x18f   : > { %18536 = vst [vmem:[#allocation17_spill] sm:$0xff] %v8999_v18 }
 0x190   : > { %v591_v58 = vpop.trf.xlu0 }
 0x194   : > { %v600_v62 = vpop.trf.xlu0 }
 0x195   : > { %7366 = vmatmul.mubr.msk.bf16.gmra.mrb[40].mxu1 %vm17883_vm2, %v588_v44 }
 0x196   : > { %746 = vmatprep.mubr.bf16.mxu1 %v17859_v0 }
 0x198   : > { %v601_v15 = vpop.trf.xlu0 }
 0x19c   : > { %v602_v35 = vpop.trf.xlu0 }
 0x19d   : > { %7367 = vmatmul.mubr.msk.bf16.gmra.mrb[44].mxu1 %vm17883_vm2, %v589_v49 }
 0x19e   : > { %756 = vmatprep.mubr.bf16.mxu1 %v17859_v0 }
 0x1a0   : > { %v603_v37 = vpop.trf.xlu0 }
 0x1a1   : > { %5612 = vxpose.xlu1.c.b16.start.end [1/1] (short) %v5593_v51, 128 }
 0x1a4   : > { %v604_v39 = vpop.trf.xlu0 }
 0x1a5   : > { %7368 = vmatmul.mubr.msk.bf16.gmra.mrb[48].mxu1 %vm17883_vm2, %v590_v54  ;;  %v2196_v54 = vrot.slane %v8995_v14, 2 }
 0x1a6   : > { %766 = vmatprep.mubr.bf16.mxu1 %v17859_v0 }
 0x1a7   : > { %2252 = vxpose.xlu0.c.b16.start.end [1/1] (short) %v2248_v57, 128 }
 0x1a8   : > { %v605_v41 = vpop.trf.xlu0 }
 0x1ac   : > { %v606_v44 = vpop.trf.xlu0 }
 0x1ad   : > { %7369 = vmatmul.mubr.msk.bf16.gmra.mrb[52].mxu1 %vm17883_vm2, %v591_v58 }
 0x1ae   : > { %776 = vmatprep.mubr.bf16.mxu1 %v17859_v0 }
 0x1b0   : > { %v607_v59 = vpop.trf.xlu0 }
 0x1b5   : > { %7370 = vmatmul.mubr.msk.bf16.gmra.mrb[56].mxu1 %vm17883_vm2, %v600_v62  ;;  %v4748_v62 = vrot.slane %v8910_v17, 2 }
 0x1b6   : > { %786 = vmatprep.mubr.bf16.mxu1 %v17859_v0 }
 0x1bd   : > { %7371 = vmatmul.mubr.msk.bf16.gmra.mrb[60].mxu1 %vm17883_vm2, %v601_v15 }
 0x1be   : > { %796 = vmatprep.mubr.bf16.mxu1 %v17859_v0  ;;  %6446 = vxpose.xlu1.c.b16.start.end [1/1] (short) %v6427_v16, 128  ;;  %v5592_v16 = vrot.slane %v8910_v17, 4 }
 0x1c4   : > { %3086 = vxpose.xlu0.c.b16.start.end [1/1] (short) %v3082_v19, 128 }
 0x1c5   : > { %7372 = vmatmul.mubr.msk.bf16.gmra.mrb[64].mxu1 %vm17883_vm2, %v602_v35 }
 0x1c6   : > { %806 = vmatprep.mubr.bf16.mxu1 %v17859_v0 }
 0x1cd   : > { %7373 = vmatmul.mubr.msk.bf16.gmra.mrb[68].mxu1 %vm17883_vm2, %v603_v37  ;;  %v6426_v37 = vrot.slane %v8910_v17, 6 }
 0x1ce   : > { %816 = vmatprep.mubr.bf16.mxu1 %v17859_v0 }
 0x1cf   : > { %v9017_v49 = vpop.permute.xlu0 %258 }
 0x1d3   : > { %v9021_v51 = vpop.permute.xlu0 %288 }
 0x1d5   : > { %7374 = vmatmul.mubr.msk.bf16.gmra.mrb[72].mxu1 %vm17883_vm2, %v604_v39  ;;  %v326_v39 = vlaneseq }
 0x1d6   : > { %826 = vmatprep.mubr.bf16.mxu1 %v17859_v0 }
 0x1d7   : > { %v9025_v57 = vpop.permute.xlu0 %294 }
 0x1db   : > { %v9027_v58 = vpop.permute.xlu0 %300 }
 0x1dd   : > { %7375 = vmatmul.mubr.msk.bf16.gmra.mrb[76].mxu1 %vm17883_vm2, %v605_v41  ;;  %v327_v41 = vshrl.u32 %v326_v39, 7  ;;  %v18552_v39 = vmov 0 }
 0x1de   : > { %836 = vmatprep.mubr.bf16.mxu1 %v17859_v0 }
 0x1df   : > { %v9030_v63 = vpop.permute.xlu0 %306 }
 0x1e1   : > { %3922 = vxpose.xlu0.c.b16.start.end [1/1] (short) %v8910_v17, 128  ;;  %v18546_v17 = vmov 0 }
 0x1e3   : > { %v9032_v7 = vpop.permute.xlu0 %312 }
 0x1e5   : > { %7376 = vmatmul.mubr.msk.bf16.gmra.mrb[80].mxu1 %vm17883_vm2, %v606_v44  ;;  %v328_v44 = vsub.s32 0, %v327_v41 }
 0x1e6   : > { %846 = vmatprep.mubr.bf16.mxu1 %v17859_v0 }
 0x1e7   : > { %v9034_v9 = vpop.permute.xlu0 %318 }
 0x1eb   : > { %v9036_v12 = vpop.permute.xlu0 %324 }
 0x1ed   : > { %7377 = vmatmul.mubr.msk.bf16.gmra.mrb[84].mxu1 %vm17883_vm2, %v607_v59  ;;  %v229_v59 = vld [vmem:[%s17857_s3] sm:$0x3] }
 0x1ee   : > { %2231 = vmatprep.mubr.bf16.mxu1 %v2196_v54  ;;  %v332_v54 = vsub.s32 1, %v327_v41  ;;  %v9057_v0 = vrot.slane %v229_v59, %v328_v44  ;;  %v18555_v41 = vmov 0  ;;  %v18558_v44 = vmov 0 }
 0x1f0   : > { %v9038_v15 = vpop.trf.xlu0  ;;  %v9059_v53 = vrot.slane %v229_v59, %v332_v54  ;;  %vm9063_vm3 = vcmp.eq.s32.totalorder %v8881_v1, %v9057_v0  ;;  %vm9069_vm4 = vcmp.eq.s32.totalorder %v8885_v3, %v9057_v0  ;;  %vm9087_vm7 = vcmp.eq.s32.totalorder %v8883_v2, %v9057_v0 }
 0x1f1   : > { %18539 = vst [vmem:[#allocation20_spill] sm:$0xff] %v9038_v15  ;;  %v18547_v17 = vsel %vm9063_vm3, 4294967295, %v18546_v17  ;;  %v18559_v44 = vsel %vm9087_vm7, 4294967295, %v18558_v44  ;;  %vm9093_vm8 = vcmp.eq.s32.totalorder %v8888_v5, %v9057_v0  ;;  %v18561_v59 = vmov 0 }
 0x1f2   : > { %18548 = vst [vmem:[#allocation27_spill] sm:$0xff] %v18547_v17  ;;  %vm9075_vm5 = vcmp.eq.s32.totalorder %v8881_v1, %v9059_v53  ;;  %vm9081_vm6 = vcmp.eq.s32.totalorder %v8885_v3, %v9059_v53  ;;  %18560 = vst [vmem:[#allocation31_spill] sm:$0xff] %v18559_v44  ;;  %v18562_v59 = vsel %vm9093_vm8, 4294967295, %v18561_v59  ;;  %vm9099_vm9 = vcmp.eq.s32.totalorder %v8883_v2, %v9059_v53 }
 0x1f3   : > { %v18553_v39 = vsel %vm9075_vm5, 4294967295, %v18552_v39  ;;  %v18556_v41 = vsel %vm9081_vm6, 4294967295, %v18555_v41  ;;  %18563 = vst [vmem:[#allocation32_spill] sm:$0xff] %v18562_v59  ;;  %v18564_v3 = vmov 0  ;;  %vm9105_vm10 = vcmp.eq.s32.totalorder %v8888_v5, %v9059_v53 }
 0x1f4   : > { %v9041_v21 = vpop.trf.xlu0  ;;  %18554 = vst [vmem:[#allocation29_spill] sm:$0xff] %v18553_v39  ;;  %18557 = vst [vmem:[#allocation30_spill] sm:$0xff] %v18556_v41  ;;  %v18565_v3 = vsel %vm9099_vm9, 4294967295, %v18564_v3  ;;  %v18567_v54 = vmov 0  ;;  %vm9151_vm11 = vcmp.eq.s32.totalorder %v8890_v6, %v9057_v0  ;;  %vm9157_vm12 = vcmp.eq.s32.totalorder %v8890_v6, %v9059_v53 }
 0x1f5   : > { %18540 = vst [vmem:[#allocation21_spill] sm:$0xff] %v9041_v21  ;;  %18566 = vst [vmem:[#allocation33_spill] sm:$0xff] %v18565_v3  ;;  %v18568_v54 = vsel %vm9105_vm10, 4294967295, %v18567_v54  ;;  %vm9163_vm13 = vcmp.eq.s32.totalorder %v8895_v8, %v9057_v0  ;;  %vm9169_vm14 = vcmp.eq.s32.totalorder %v8895_v8, %v9059_v53  ;;  %v18579_v3 = vmov 0 }
 0x1f6   : > { %18569 = vst [vmem:[#allocation34_spill] sm:$0xff] %v18568_v54  ;;  %v18580_v3 = vsel %vm9169_vm14, 4294967295, %v18579_v3  ;;  %vm9195_vm15 = vcmp.eq.s32.totalorder %v8900_v10, %v9057_v0  ;;  %vm9201_vm0 = vcmp.eq.s32.totalorder %v8900_v10, %v9059_v53  ;;  %vm9207_vm2 = vcmp.eq.s32.totalorder %v8905_v13, %v9057_v0 }
 0x1f7   : > { %18581 = vst [vmem:[#allocation38_spill] sm:$0xff] %v18580_v3  ;;  %vm9213_vm1 = vcmp.eq.s32.totalorder %v8905_v13, %v9059_v53 }
 0x1f8   : > { %v9043_v23 = vpop.trf.xlu0 }
 0x1f9   : > { %18541 = vst [vmem:[#allocation22_spill] sm:$0xff] %v9043_v23 }
 0x1fc   : > { %v9045_v25 = vpop.trf.xlu0 }
 0x1fd   : > { %18542 = vst [vmem:[#allocation23_spill] sm:$0xff] %v9045_v25 }
 0x1fe   : > { %4752 = vxpose.xlu0.c.b16.start.end [1/1] (short) %v4748_v62, 128 }
 0x200   : > { %v9047_v30 = vpop.trf.xlu0 }
 0x201   : > { %18543 = vst [vmem:[#allocation24_spill] sm:$0xff] %v9047_v30 }
 0x204   : > { %v9049_v35 = vpop.trf.xlu0 }
 0x205   : > { %18544 = vst [vmem:[#allocation25_spill] sm:$0xff] %v9049_v35 }
 0x208   : > { %v9051_v19 = vpop.trf.xlu0 }
 0x209   : > { %18545 = vst [vmem:[#allocation26_spill] sm:$0xff] %v9051_v19 }
 0x21b   : > { %5596 = vxpose.xlu0.c.b16.start.end [1/1] (short) %v5592_v16, 128 }
 0x238   : > { %6430 = vxpose.xlu0.c.b16.start.end [1/1] (short) %v6426_v37, 128  ;;  %v18549_v37 = vmov 0 }
 0x239   : > { %v18550_v37 = vsel %vm9069_vm4, 4294967295, %v18549_v37 }
 0x23a   : > { %18551 = vst [vmem:[#allocation28_spill] sm:$0xff] %v18550_v37 }
 0x248   : > { %v698_v62 = vpop.f32.mrb[24].mxu1 }
 0x249   : > { %v700_v16 = vpop.f32.mrb[25].mxu1  ;;  %v9111_v33 = vsel %vm9063_vm3, %v698_v62, -1e+30 }
 0x24a   : > { %v702_v27 = vpop.f32.mrb[26].mxu1  ;;  %v9119_v2 = vsel %vm9075_vm5, %v700_v16, -1e+30 }
 0x24b   : > { %v704_v55 = vpop.f32.mrb[27].mxu1  ;;  %v9129_v62 = vsel %vm9087_vm7, %v702_v27, -1e+30 }
 0x24c   : > { %v9139_v37 = vsel %vm9099_vm9, %v704_v55, -1e+30  ;;  %v18573_v55 = vmov 0 }
 0x24d   : > { %v18574_v55 = vsel %vm9157_vm12, 4294967295, %v18573_v55 }
 0x24e   : > { %18575 = vst [vmem:[#allocation36_spill] sm:$0xff] %v18574_v55 }
 0x250   : > { %v708_v1 = vpop.f32.mrb[28].mxu1 }
 0x251   : > { %v9115_v14 = vsel %vm9069_vm4, %v708_v1, -1e+30  ;;  %v710_v19 = vpop.f32.mrb[29].mxu1 }
 0x252   : > { %v921_v35 = vmax.f32 %v9111_v33, %v9115_v14  ;;  %v9125_v5 = vsel %vm9081_vm6, %v710_v19, -1e+30  ;;  %v712_v30 = vpop.f32.mrb[30].mxu1 }
 0x253   : > { %v958_v1 = vmax.f32 %v9119_v2, %v9125_v5  ;;  %v9135_v39 = vsel %vm9093_vm8, %v712_v30, -1e+30  ;;  %v714_v16 = vpop.f32.mrb[31].mxu1  ;;  %v18570_v30 = vmov 0 }
 0x254   : > { %v922_v19 = vmax.f32 %v9129_v62, %v9135_v39  ;;  %v9145_v44 = vsel %vm9105_vm10, %v714_v16, -1e+30  ;;  %v18571_v30 = vsel %vm9151_vm11, 4294967295, %v18570_v30  ;;  %v18576_v16 = vmov 0 }
 0x255   : > { %v959_v27 = vmax.f32 %v9139_v37, %v9145_v44  ;;  %18572 = vst [vmem:[#allocation35_spill] sm:$0xff] %v18571_v30  ;;  %v18577_v16 = vsel %vm9163_vm13, 4294967295, %v18576_v16 }
 0x256   : > { %18578 = vst [vmem:[#allocation37_spill] sm:$0xff] %v18577_v16 }
 0x258   : > { %v718_v54 = vpop.f32.mrb[32].mxu1 }
 0x259   : > { %v9175_v59 = vsel %vm9151_vm11, %v718_v54, -1e+30  ;;  %v720_v6 = vpop.f32.mrb[33].mxu1 }
 0x25a   : > { %v923_v41 = vmax.f32 %v921_v35, %v9175_v59  ;;  %v9180_v17 = vsel %vm9157_vm12, %v720_v6, -1e+30  ;;  %v722_v25 = vpop.f32.mrb[34].mxu1  ;;  %v18582_v6 = vmov 0 }
 0x25b   : > { %v960_v23 = vmax.f32 %v958_v1, %v9180_v17  ;;  %v9185_v8 = vsel %vm9163_vm13, %v722_v25, -1e+30  ;;  %v724_v21 = vpop.f32.mrb[35].mxu1  ;;  %v18583_v6 = vsel %vm9195_vm15, 4294967295, %v18582_v6  ;;  %v18585_v25 = vmov 0 }
 0x25c   : > { %v924_v15 = vmax.f32 %v922_v19, %v9185_v8  ;;  %v9190_v54 = vsel %vm9169_vm14, %v724_v21, -1e+30  ;;  %18584 = vst [vmem:[#allocation39_spill] sm:$0xff] %v18583_v6  ;;  %v18586_v25 = vsel %vm9201_vm0, 4294967295, %v18585_v25  ;;  %v18588_v1 = vmov 0 }
 0x25d   : > { %v961_v35 = vmax.f32 %v959_v27, %v9190_v54  ;;  %18587 = vst [vmem:[#allocation40_spill] sm:$0xff] %v18586_v25  ;;  %v18589_v1 = vsel %vm9207_vm2, 4294967295, %v18588_v1  ;;  %v18591_v19 = vmov 0  ;;  %vm9606_vm14 = vcmp.eq.s32.totalorder %v8959_v42, %v9059_v53 }
 0x25e   : > { %18590 = vst [vmem:[#allocation41_spill] sm:$0xff] %v18589_v1  ;;  %v18592_v19 = vsel %vm9213_vm1, 4294967295, %v18591_v19 }
 0x25f   : > { %18593 = vst [vmem:[#allocation42_spill] sm:$0xff] %v18592_v19 }
 0x260   : > { %v728_v21 = vpop.f32.mrb[36].mxu1 }
 0x261   : > { %v9219_v27 = vsel %vm9195_vm15, %v728_v21, -1e+30  ;;  %v730_v10 = vpop.f32.mrb[37].mxu1  ;;  %vm9257_vm15 = vcmp.eq.s32.totalorder %v9017_v49, %v9059_v53 }
 0x262   : > { %v9223_v3 = vsel %vm9201_vm0, %v730_v10, -1e+30  ;;  %v732_v16 = vpop.f32.mrb[38].mxu1  ;;  %v925_v55 = vmax.f32 %v923_v41, %v9219_v27  ;;  %vm9239_vm0 = vcmp.eq.s32.totalorder %v8914_v20, %v9057_v0  ;;  %v18594_v10 = vmov 0 }
 0x263   : > { %v9228_v30 = vsel %vm9207_vm2, %v732_v16, -1e+30  ;;  %v734_v13 = vpop.f32.mrb[39].mxu1  ;;  %v962_v18 = vmax.f32 %v960_v23, %v9223_v3  ;;  %v18595_v10 = vsel %vm9239_vm0, 4294967295, %v18594_v10  ;;  %vm9245_vm2 = vcmp.eq.s32.totalorder %v9017_v49, %v9057_v0 }
 0x264   : > { %v9233_v6 = vsel %vm9213_vm1, %v734_v13, -1e+30  ;;  %v926_v21 = vmax.f32 %v924_v15, %v9228_v30  ;;  %18596 = vst [vmem:[#allocation43_spill] sm:$0xff] %v18595_v10  ;;  %v18597_v41 = vmov 0  ;;  %vm9251_vm1 = vcmp.eq.s32.totalorder %v8914_v20, %v9059_v53 }
 0x265   : > { %v963_v25 = vmax.f32 %v961_v35, %v9233_v6  ;;  %v18598_v41 = vsel %vm9245_vm2, 4294967295, %v18597_v41  ;;  %v18600_v16 = vmov 0  ;;  %v18603_v15 = vmov 0 }
 0x266   : > { %18599 = vst [vmem:[#allocation44_spill] sm:$0xff] %v18598_v41  ;;  %v18601_v16 = vsel %vm9251_vm1, 4294967295, %v18600_v16  ;;  %v18604_v15 = vsel %vm9257_vm15, 4294967295, %v18603_v15 }
 0x267   : > { %18602 = vst [vmem:[#allocation45_spill] sm:$0xff] %v18601_v16  ;;  %18605 = vst [vmem:[#allocation46_spill] sm:$0xff] %v18604_v15 }
 0x268   : > { %v738_v23 = vpop.f32.mrb[40].mxu1 }
 0x269   : > { %v9263_v35 = vsel %vm9239_vm0, %v738_v23, -1e+30  ;;  %v740_v13 = vpop.f32.mrb[41].mxu1  ;;  %vm9310_vm0 = vcmp.eq.s32.totalorder %v8924_v24, %v9059_v53 }
 0x26a   : > { %v927_v19 = vmax.f32 %v925_v55, %v9263_v35  ;;  %v9268_v1 = vsel %vm9251_vm1, %v740_v13, -1e+30  ;;  %v742_v20 = vpop.f32.mrb[42].mxu1  ;;  %vm9283_vm1 = vcmp.eq.s32.totalorder %v8919_v22, %v9057_v0  ;;  %v18606_v13 = vmov 0 }
 0x26b   : > { %v964_v4 = vmax.f32 %v962_v18, %v9268_v1  ;;  %v9273_v49 = vsel %vm9245_vm2, %v742_v20, -1e+30  ;;  %v744_v61 = vpop.f32.mrb[43].mxu1  ;;  %v18607_v13 = vsel %vm9283_vm1, 4294967295, %v18606_v13  ;;  %vm9289_vm2 = vcmp.eq.s32.totalorder %v8919_v22, %v9059_v53 }
 0x26c   : > { %v928_v60 = vmax.f32 %v926_v21, %v9273_v49  ;;  %v9278_v23 = vsel %vm9257_vm15, %v744_v61, -1e+30  ;;  %18608 = vst [vmem:[#allocation47_spill] sm:$0xff] %v18607_v13  ;;  %v18609_v20 = vmov 0  ;;  %vm9299_vm15 = vcmp.eq.s32.totalorder %v8924_v24, %v9057_v0 }
 0x26d   : > { %v965_v55 = vmax.f32 %v963_v25, %v9278_v23  ;;  %v18610_v20 = vsel %vm9289_vm2, 4294967295, %v18609_v20  ;;  %v18612_v25 = vmov 0  ;;  %v18616_v13 = vmov 0 }
 0x26e   : > { %18611 = vst [vmem:[#allocation48_spill] sm:$0xff] %v18610_v20  ;;  %v18613_v25 = vsel %vm9299_vm15, 4294967295, %v18612_v25  ;;  %v18617_v13 = vsel %vm9310_vm0, 4294967295, %v18616_v13  ;;  %v18620_v24 = vmov 0 }
 0x26f   : > { %18614 = vst [vmem:[#allocation49_spill] sm:$0xff] %v18613_v25  ;;  %18618 = vst [vmem:[#allocation51_spill] sm:$0xff] %v18617_v13 }
 0x270   : > { %v748_v18 = vpop.f32.mrb[44].mxu1 }
 0x271   : > { %v9295_v21 = vsel %vm9283_vm1, %v748_v18, -1e+30  ;;  %v750_v61 = vpop.f32.mrb[45].mxu1  ;;  %vm9354_vm1 = vcmp.eq.s32.totalorder %v8935_v28, %v9059_v53 }
 0x272   : > { %v929_v15 = vmax.f32 %v927_v19, %v9295_v21  ;;  %v9306_v41 = vsel %vm9289_vm2, %v750_v61, -1e+30  ;;  %v752_v22 = vpop.f32.mrb[46].mxu1  ;;  %vm9327_vm2 = vcmp.eq.s32.totalorder %v8930_v26, %v9057_v0 }
 0x273   : > { %18615 = vst [vmem:[#allocation50_spill] sm:$0xff] %v9306_v41  ;;  %v966_v18 = vmax.f32 %v964_v4, %v9306_v41  ;;  %v9317_v16 = vsel %vm9299_vm15, %v752_v22, -1e+30  ;;  %v754_v10 = vpop.f32.mrb[47].mxu1  ;;  %v18621_v24 = vsel %vm9327_vm2, 4294967295, %v18620_v24  ;;  %vm9333_vm15 = vcmp.eq.s32.totalorder %v8930_v26, %v9059_v53 }
 0x274   : > { %v930_v19 = vmax.f32 %v928_v60, %v9317_v16  ;;  %v9322_v61 = vsel %vm9310_vm0, %v754_v10, -1e+30  ;;  %18622 = vst [vmem:[#allocation53_spill] sm:$0xff] %v18621_v24  ;;  %v18623_v22 = vmov 0  ;;  %vm9343_vm0 = vcmp.eq.s32.totalorder %v8935_v28, %v9057_v0 }
 0x275   : > { %18619 = vst [vmem:[#allocation52_spill] sm:$0xff] %v9322_v61  ;;  %v967_v20 = vmax.f32 %v965_v55, %v9322_v61  ;;  %v18624_v22 = vsel %vm9333_vm15, 4294967295, %v18623_v22  ;;  %v18626_v55 = vmov 0  ;;  %v18630_v24 = vmov 0 }
 0x276   : > { %18625 = vst [vmem:[#allocation54_spill] sm:$0xff] %v18624_v22  ;;  %v18627_v55 = vsel %vm9343_vm0, 4294967295, %v18626_v55  ;;  %v18631_v24 = vsel %vm9354_vm1, 4294967295, %v18630_v24  ;;  %v18634_v28 = vmov 0 }
 0x277   : > { %18628 = vst [vmem:[#allocation55_spill] sm:$0xff] %v18627_v55  ;;  %18632 = vst [vmem:[#allocation57_spill] sm:$0xff] %v18631_v24 }
 0x278   : > { %v758_v4 = vpop.f32.mrb[48].mxu1 }
 0x279   : > { %v9339_v60 = vsel %vm9327_vm2, %v758_v4, -1e+30  ;;  %v760_v10 = vpop.f32.mrb[49].mxu1  ;;  %vm9398_vm2 = vcmp.eq.s32.totalorder %v8939_v31, %v9059_v53 }
 0x27a   : > { %v931_v13 = vmax.f32 %v929_v15, %v9339_v60  ;;  %v9350_v25 = vsel %vm9333_vm15, %v760_v10, -1e+30  ;;  %v762_v26 = vpop.f32.mrb[50].mxu1  ;;  %vm9371_vm15 = vcmp.eq.s32.totalorder %v8937_v29, %v9057_v0 }
 0x27b   : > { %18629 = vst [vmem:[#allocation56_spill] sm:$0xff] %v9350_v25  ;;  %v968_v4 = vmax.f32 %v966_v18, %v9350_v25  ;;  %v9361_v56 = vsel %vm9343_vm0, %v762_v26, -1e+30  ;;  %v764_v52 = vpop.f32.mrb[51].mxu1  ;;  %v18635_v28 = vsel %vm9371_vm15, 4294967295, %v18634_v28  ;;  %vm9377_vm0 = vcmp.eq.s32.totalorder %v8937_v29, %v9059_v53 }
 0x27c   : > { %v932_v15 = vmax.f32 %v930_v19, %v9361_v56  ;;  %v9366_v10 = vsel %vm9354_vm1, %v764_v52, -1e+30  ;;  %18636 = vst [vmem:[#allocation59_spill] sm:$0xff] %v18635_v28  ;;  %v18637_v26 = vmov 0  ;;  %vm9387_vm1 = vcmp.eq.s32.totalorder %v8939_v31, %v9057_v0 }
 0x27d   : > { %18633 = vst [vmem:[#allocation58_spill] sm:$0xff] %v9366_v10  ;;  %v969_v22 = vmax.f32 %v967_v20, %v9366_v10  ;;  %v18638_v26 = vsel %vm9377_vm0, 4294967295, %v18637_v26  ;;  %v18640_v20 = vmov 0  ;;  %v18644_v28 = vmov 0 }
 0x27e   : > { %18639 = vst [vmem:[#allocation60_spill] sm:$0xff] %v18638_v26  ;;  %v18641_v20 = vsel %vm9387_vm1, 4294967295, %v18640_v20  ;;  %v18645_v28 = vsel %vm9398_vm2, 4294967295, %v18644_v28  ;;  %v18648_v31 = vmov 0  ;;  %v18692_v10 = vmov 0 }
 0x27f   : > { %18642 = vst [vmem:[#allocation61_spill] sm:$0xff] %v18641_v20  ;;  %18646 = vst [vmem:[#allocation63_spill] sm:$0xff] %v18645_v28 }
 0x280   : > { %v768_v18 = vpop.f32.mrb[52].mxu1 }
 0x281   : > { %v9383_v19 = vsel %vm9371_vm15, %v768_v18, -1e+30  ;;  %v770_v52 = vpop.f32.mrb[53].mxu1  ;;  %vm9442_vm15 = vcmp.eq.s32.totalorder %v8945_v34, %v9059_v53 }
 0x282   : > { %v933_v24 = vmax.f32 %v931_v13, %v9383_v19  ;;  %v9394_v55 = vsel %vm9377_vm0, %v770_v52, -1e+30  ;;  %v772_v29 = vpop.f32.mrb[54].mxu1  ;;  %vm9415_vm0 = vcmp.eq.s32.totalorder %v8943_v32, %v9057_v0 }
 0x283   : > { %18643 = vst [vmem:[#allocation62_spill] sm:$0xff] %v9394_v55  ;;  %v970_v18 = vmax.f32 %v968_v4, %v9394_v55  ;;  %v9405_v50 = vsel %vm9387_vm1, %v772_v29, -1e+30  ;;  %v774_v11 = vpop.f32.mrb[55].mxu1  ;;  %v18649_v31 = vsel %vm9415_vm0, 4294967295, %v18648_v31  ;;  %vm9421_vm1 = vcmp.eq.s32.totalorder %v8943_v32, %v9059_v53 }
 0x284   : > { %v934_v13 = vmax.f32 %v932_v15, %v9405_v50  ;;  %v9410_v52 = vsel %vm9398_vm2, %v774_v11, -1e+30  ;;  %18650 = vst [vmem:[#allocation65_spill] sm:$0xff] %v18649_v31  ;;  %v18651_v29 = vmov 0  ;;  %vm9431_vm2 = vcmp.eq.s32.totalorder %v8945_v34, %v9057_v0 }
 0x285   : > { %18647 = vst [vmem:[#allocation64_spill] sm:$0xff] %v9410_v52  ;;  %v971_v26 = vmax.f32 %v969_v22, %v9410_v52  ;;  %v18652_v29 = vsel %vm9421_vm1, 4294967295, %v18651_v29  ;;  %v18654_v22 = vmov 0  ;;  %v18658_v31 = vmov 0 }
 0x286   : > { %18653 = vst [vmem:[#allocation66_spill] sm:$0xff] %v18652_v29  ;;  %v18655_v22 = vsel %vm9431_vm2, 4294967295, %v18654_v22  ;;  %v18659_v31 = vsel %vm9442_vm15, 4294967295, %v18658_v31  ;;  %v18662_v34 = vmov 0 }
 0x287   : > { %18656 = vst [vmem:[#allocation67_spill] sm:$0xff] %v18655_v22  ;;  %18660 = vst [vmem:[#allocation69_spill] sm:$0xff] %v18659_v31 }
 0x288   : > { %v778_v4 = vpop.f32.mrb[56].mxu1 }
 0x289   : > { %v9427_v15 = vsel %vm9415_vm0, %v778_v4, -1e+30  ;;  %v780_v11 = vpop.f32.mrb[57].mxu1  ;;  %vm9465_vm0 = vcmp.eq.s32.totalorder %v9021_v51, %v9057_v0 }
 0x28a   : > { %v935_v28 = vmax.f32 %v933_v24, %v9427_v15  ;;  %v9438_v20 = vsel %vm9421_vm1, %v780_v11, -1e+30  ;;  %v782_v32 = vpop.f32.mrb[58].mxu1  ;;  %vm9459_vm1 = vcmp.eq.s32.totalorder %v8950_v36, %v9057_v0 }
 0x28b   : > { %18657 = vst [vmem:[#allocation68_spill] sm:$0xff] %v9438_v20  ;;  %v972_v4 = vmax.f32 %v970_v18, %v9438_v20  ;;  %v9449_v46 = vsel %vm9431_vm2, %v782_v32, -1e+30  ;;  %v784_v48 = vpop.f32.mrb[59].mxu1  ;;  %v18663_v34 = vsel %vm9459_vm1, 4294967295, %v18662_v34  ;;  %v18665_v18 = vmov 0 }
 0x28c   : > { %v936_v24 = vmax.f32 %v934_v13, %v9449_v46  ;;  %v9454_v11 = vsel %vm9442_vm15, %v784_v48, -1e+30  ;;  %18664 = vst [vmem:[#allocation71_spill] sm:$0xff] %v18663_v34  ;;  %v18666_v18 = vsel %vm9465_vm0, 4294967295, %v18665_v18  ;;  %vm9471_vm2 = vcmp.eq.s32.totalorder %v8950_v36, %v9059_v53 }
 0x28d   : > { %18661 = vst [vmem:[#allocation70_spill] sm:$0xff] %v9454_v11  ;;  %v973_v29 = vmax.f32 %v971_v26, %v9454_v11  ;;  %18667 = vst [vmem:[#allocation72_spill] sm:$0xff] %v18666_v18  ;;  %v18668_v48 = vmov 0  ;;  %vm9477_vm15 = vcmp.eq.s32.totalorder %v9021_v51, %v9059_v53  ;;  %v18671_v26 = vmov 0 }
 0x28e   : > { %v18669_v48 = vsel %vm9471_vm2, 4294967295, %v18668_v48  ;;  %v18672_v26 = vsel %vm9477_vm15, 4294967295, %v18671_v26 }
 0x28f   : > { %18670 = vst [vmem:[#allocation73_spill] sm:$0xff] %v18669_v48  ;;  %18673 = vst [vmem:[#allocation74_spill] sm:$0xff] %v18672_v26 }
 0x290   : > { %v788_v32 = vpop.f32.mrb[60].mxu1 }
 0x291   : > { %v9483_v13 = vsel %vm9459_vm1, %v788_v32, -1e+30  ;;  %v790_v31 = vpop.f32.mrb[61].mxu1  ;;  %vm9509_vm1 = vcmp.eq.s32.totalorder %v9025_v57, %v9057_v0 }
 0x292   : > { %v937_v22 = vmax.f32 %v935_v28, %v9483_v13  ;;  %v9488_v11 = vsel %vm9471_vm2, %v790_v31, -1e+30  ;;  %v792_v36 = vpop.f32.mrb[62].mxu1  ;;  %vm9503_vm2 = vcmp.eq.s32.totalorder %v8952_v38, %v9057_v0  ;;  %v18676_v31 = vmov 0 }
 0x293   : > { %18674 = vst [vmem:[#allocation75_spill] sm:$0xff] %v9488_v11  ;;  %v974_v20 = vmax.f32 %v972_v4, %v9488_v11  ;;  %v9493_v51 = vsel %vm9465_vm0, %v792_v36, -1e+30  ;;  %v794_v52 = vpop.f32.mrb[63].mxu1  ;;  %v18677_v31 = vsel %vm9503_vm2, 4294967295, %v18676_v31  ;;  %v18679_v4 = vmov 0 }
 0x294   : > { %v938_v55 = vmax.f32 %v936_v24, %v9493_v51  ;;  %v9498_v32 = vsel %vm9477_vm15, %v794_v52, -1e+30  ;;  %18678 = vst [vmem:[#allocation77_spill] sm:$0xff] %v18677_v31  ;;  %v18680_v4 = vsel %vm9509_vm1, 4294967295, %v18679_v4  ;;  %vm9515_vm0 = vcmp.eq.s32.totalorder %v8952_v38, %v9059_v53 }
 0x295   : > { %18675 = vst [vmem:[#allocation76_spill] sm:$0xff] %v9498_v32  ;;  %v975_v28 = vmax.f32 %v973_v29, %v9498_v32  ;;  %18681 = vst [vmem:[#allocation78_spill] sm:$0xff] %v18680_v4  ;;  %v18682_v52 = vmov 0  ;;  %vm9581_vm15 = vcmp.eq.s32.totalorder %v8957_v40, %v9059_v53 }
 0x296   : > { %v18683_v52 = vsel %vm9515_vm0, 4294967295, %v18682_v52 }
 0x297   : > { %18684 = vst [vmem:[#allocation79_spill] sm:$0xff] %v18683_v52 }
 0x298   : > { %v798_v36 = vpop.f32.mrb[64].mxu1 }
 0x299   : > { %v9521_v29 = vsel %vm9503_vm2, %v798_v36, -1e+30  ;;  %v800_v24 = vpop.f32.mrb[65].mxu1  ;;  %vm9536_vm2 = vcmp.eq.s32.totalorder %v8957_v40, %v9057_v0  ;;  %v18686_v36 = vmov 0 }
 0x29a   : > { %v939_v26 = vmax.f32 %v937_v22, %v9521_v29  ;;  %v9526_v18 = vsel %vm9515_vm0, %v800_v24, -1e+30  ;;  %v802_v48 = vpop.f32.mrb[66].mxu1  ;;  %v18687_v36 = vsel %vm9536_vm2, 4294967295, %v18686_v36  ;;  %vm9542_vm0 = vcmp.eq.s32.totalorder %v9027_v58, %v9057_v0 }
 0x29b   : > { %18685 = vst [vmem:[#allocation80_spill] sm:$0xff] %v9526_v18  ;;  %v976_v34 = vmax.f32 %v974_v20, %v9526_v18  ;;  %v9531_v38 = vsel %vm9509_vm1, %v802_v48, -1e+30  ;;  %v804_v32 = vpop.f32.mrb[67].mxu1  ;;  %18688 = vst [vmem:[#allocation81_spill] sm:$0xff] %v18687_v36  ;;  %v18689_v22 = vmov 0  ;;  %vm9558_vm1 = vcmp.eq.s32.totalorder %v8959_v42, %v9057_v0 }
 0x29c   : > { %v940_v11 = vmax.f32 %v938_v55, %v9531_v38  ;;  %v18690_v22 = vsel %vm9542_vm0, 4294967295, %v18689_v22  ;;  %v18693_v10 = vsel %vm9558_vm1, 4294967295, %v18692_v10 }
 0x29d   : > { %18691 = vst [vmem:[#allocation82_spill] sm:$0xff] %v18690_v22  ;;  %18694 = vst [vmem:[#allocation83_spill] sm:$0xff] %v18693_v10 }
 0x2a0   : > { %v808_v20 = vpop.f32.mrb[68].mxu1 }
 0x2a1   : > { %v9548_v48 = vsel %vm9536_vm2, %v808_v20, -1e+30  ;;  %v810_v24 = vpop.f32.mrb[69].mxu1  ;;  %vm9564_vm2 = vcmp.eq.s32.totalorder %v9025_v57, %v9059_v53  ;;  %v18695_v20 = vmov 0  ;;  %v18701_v57 = vmov 0 }
 0x2a2   : > { %v941_v55 = vmax.f32 %v939_v26, %v9548_v48  ;;  %v812_v4 = vpop.f32.mrb[70].mxu1  ;;  %v18696_v20 = vsel %vm9564_vm2, 4294967295, %v18695_v20  ;;  %v18702_v57 = vsel %vm9581_vm15, 4294967295, %v18701_v57  ;;  %v9601_v40 = vsel %vm9581_vm15, %v810_v24, -1e+30 }
 0x2a3   : > { %v9553_v52 = vsel %vm9542_vm0, %v812_v4, -1e+30  ;;  %v814_v31 = vpop.f32.mrb[71].mxu1  ;;  %18697 = vst [vmem:[#allocation84_spill] sm:$0xff] %v18696_v20  ;;  %vm9574_vm0 = vcmp.eq.s32.totalorder %v9030_v63, %v9057_v0  ;;  %18703 = vst [vmem:[#allocation86_spill] sm:$0xff] %v18702_v57  ;;  %vm9620_vm15 = vcmp.eq.s32.totalorder %v9030_v63, %v9059_v53  ;;  %v18714_v24 = vmov 0 }
 0x2a4   : > { %v942_v18 = vmax.f32 %v940_v11, %v9553_v52  ;;  %v18698_v11 = vmov 0  ;;  %18708 = vst [vmem:[#allocation89_spill] sm:$0xff] %v9601_v40  ;;  %v18715_v24 = vsel %vm9620_vm15, 4294967295, %v18714_v24  ;;  %v978_v42 = vmax.f32 %v976_v34, %v9601_v40 }
 0x2a5   : > { %v18699_v11 = vsel %vm9574_vm0, 4294967295, %v18698_v11  ;;  %18716 = vst [vmem:[#allocation93_spill] sm:$0xff] %v18715_v24  ;;  %v18721_v63 = vmov 0 }
 0x2a6   : > { %18700 = vst [vmem:[#allocation85_spill] sm:$0xff] %v18699_v11  ;;  %v18732_v11 = vmov 0 }
 0x2a8   : > { %v818_v36 = vpop.f32.mrb[72].mxu1 }
 0x2a9   : > { %v9570_v26 = vsel %vm9558_vm1, %v818_v36, -1e+30  ;;  %v820_v4 = vpop.f32.mrb[73].mxu1  ;;  %vm9587_vm1 = vcmp.eq.s32.totalorder %v9027_v58, %v9059_v53  ;;  %v18704_v36 = vmov 0  ;;  %v18709_v58 = vmov 0 }
 0x2aa   : > { %v943_v22 = vmax.f32 %v941_v55, %v9570_v26  ;;  %v822_v25 = vpop.f32.mrb[74].mxu1  ;;  %v18705_v36 = vsel %vm9587_vm1, 4294967295, %v18704_v36  ;;  %v9597_v55 = vsel %vm9564_vm2, %v804_v32, -1e+30  ;;  %v18710_v58 = vsel %vm9606_vm14, 4294967295, %v18709_v58 }
 0x2ab   : > { %18706 = vst [vmem:[#allocation87_spill] sm:$0xff] %v18705_v36  ;;  %v9593_v10 = vsel %vm9574_vm0, %v822_v25, -1e+30  ;;  %v824_v61 = vpop.f32.mrb[75].mxu1  ;;  %18707 = vst [vmem:[#allocation88_spill] sm:$0xff] %v9597_v55  ;;  %vm9628_vm2 = vcmp.eq.s32.totalorder %v8963_v43, %v9057_v0  ;;  %v18717_v36 = vmov 0 }
 0x2ac   : > { %v944_v41 = vmax.f32 %v942_v18, %v9593_v10  ;;  %18711 = vst [vmem:[#allocation90_spill] sm:$0xff] %v18710_v58  ;;  %v9612_v25 = vsel %vm9587_vm1, %v814_v31, -1e+30  ;;  %v9616_v32 = vsel %vm9606_vm14, %v820_v4, -1e+30  ;;  %v977_v18 = vmax.f32 %v975_v28, %v9597_v55 }
 0x2ad   : > { %18712 = vst [vmem:[#allocation91_spill] sm:$0xff] %v9612_v25  ;;  %18713 = vst [vmem:[#allocation92_spill] sm:$0xff] %v9616_v32  ;;  %v18718_v36 = vsel %vm9628_vm2, 4294967295, %v18717_v36  ;;  %v9634_v31 = vsel %vm9620_vm15, %v824_v61, -1e+30  ;;  %vm9638_vm14 = vcmp.eq.s32.totalorder %v8963_v43, %v9059_v53  ;;  %v980_v34 = vmax.f32 %v978_v42, %v9616_v32 }
 0x2ae   : > { %18719 = vst [vmem:[#allocation94_spill] sm:$0xff] %v18718_v36  ;;  %18720 = vst [vmem:[#allocation95_spill] sm:$0xff] %v9634_v31  ;;  %v18722_v63 = vsel %vm9638_vm14, 4294967295, %v18721_v63  ;;  %v979_v28 = vmax.f32 %v977_v18, %v9612_v25  ;;  %vm9650_vm15 = vcmp.eq.s32.totalorder %v9032_v7, %v9057_v0  ;;  %v18724_v61 = vmov 0 }
 0x2af   : > { %18723 = vst [vmem:[#allocation96_spill] sm:$0xff] %v18722_v63  ;;  %v18725_v61 = vsel %vm9650_vm15, 4294967295, %v18724_v61  ;;  %vm9661_vm1 = vcmp.eq.s32.totalorder %v9032_v7, %v9059_v53  ;;  %v18728_v42 = vmov 0 }
 0x2b0   : > { %v828_v4 = vpop.f32.mrb[76].mxu1  ;;  %18726 = vst [vmem:[#allocation97_spill] sm:$0xff] %v18725_v61  ;;  %v18729_v42 = vsel %vm9661_vm1, 4294967295, %v18728_v42 }
 0x2b1   : > { %v9646_v58 = vsel %vm9628_vm2, %v828_v4, -1e+30  ;;  %v830_v57 = vpop.f32.mrb[77].mxu1  ;;  %18730 = vst [vmem:[#allocation99_spill] sm:$0xff] %v18729_v42  ;;  %v981_v4 = vmax.f32 %v979_v28, %v9634_v31  ;;  %vm9706_vm2 = vcmp.eq.s32.totalorder %v9034_v9, %v9059_v53 }
 0x2b2   : > { %v945_v43 = vmax.f32 %v943_v22, %v9646_v58  ;;  %v9657_v24 = vsel %vm9638_vm14, %v830_v57, -1e+30  ;;  %v832_v18 = vpop.f32.mrb[78].mxu1  ;;  %vm9679_vm14 = vcmp.eq.s32.totalorder %v8965_v45, %v9057_v0 }
 0x2b3   : > { %18727 = vst [vmem:[#allocation98_spill] sm:$0xff] %v9657_v24  ;;  %v982_v36 = vmax.f32 %v980_v34, %v9657_v24  ;;  %v9669_v20 = vsel %vm9650_vm15, %v832_v18, -1e+30  ;;  %v834_v22 = vpop.f32.mrb[79].mxu1  ;;  %v18733_v11 = vsel %vm9679_vm14, 4294967295, %v18732_v11  ;;  %vm9685_vm15 = vcmp.eq.s32.totalorder %v8965_v45, %v9059_v53 }
 0x2b4   : > { %v946_v63 = vmax.f32 %v944_v41, %v9669_v20  ;;  %v9674_v57 = vsel %vm9661_vm1, %v834_v22, -1e+30  ;;  %18734 = vst [vmem:[#allocation101_spill] sm:$0xff] %v18733_v11  ;;  %v18735_v34 = vmov 0  ;;  %vm9695_vm1 = vcmp.eq.s32.totalorder %v9034_v9, %v9057_v0 }
 0x2b5   : > { %18731 = vst [vmem:[#allocation100_spill] sm:$0xff] %v9674_v57  ;;  %v983_v7 = vmax.f32 %v981_v4, %v9674_v57  ;;  %v18736_v34 = vsel %vm9685_vm15, 4294967295, %v18735_v34  ;;  %v18738_v4 = vmov 0  ;;  %v18742_v11 = vmov 0 }
 0x2b6   : > { %18737 = vst [vmem:[#allocation102_spill] sm:$0xff] %v18736_v34  ;;  %v18739_v4 = vsel %vm9695_vm1, 4294967295, %v18738_v4  ;;  %v18743_v11 = vsel %vm9706_vm2, 4294967295, %v18742_v11  ;;  %v18746_v9 = vmov 0 }
 0x2b7   : > { %18740 = vst [vmem:[#allocation103_spill] sm:$0xff] %v18739_v4  ;;  %18744 = vst [vmem:[#allocation105_spill] sm:$0xff] %v18743_v11 }
 0x2b8   : > { %v838_v28 = vpop.f32.mrb[80].mxu1 }
 0x2b9   : > { %v9691_v41 = vsel %vm9679_vm14, %v838_v28, -1e+30  ;;  %v840_v18 = vpop.f32.mrb[81].mxu1  ;;  %vm9750_vm14 = vcmp.eq.s32.totalorder %v9036_v12, %v9059_v53 }
 0x2ba   : > { %v947_v22 = vmax.f32 %v945_v43, %v9691_v41  ;;  %v9702_v42 = vsel %vm9685_vm15, %v840_v18, -1e+30  ;;  %v842_v45 = vpop.f32.mrb[82].mxu1  ;;  %vm9723_vm15 = vcmp.eq.s32.totalorder %v8969_v47, %v9057_v0 }
 0x2bb   : > { %18741 = vst [vmem:[#allocation104_spill] sm:$0xff] %v9702_v42  ;;  %v984_v28 = vmax.f32 %v982_v36, %v9702_v42  ;;  %v9713_v61 = vsel %vm9695_vm1, %v842_v45, -1e+30  ;;  %v844_v31 = vpop.f32.mrb[83].mxu1  ;;  %v18747_v9 = vsel %vm9723_vm15, 4294967295, %v18746_v9  ;;  %vm9729_vm1 = vcmp.eq.s32.totalorder %v8969_v47, %v9059_v53 }
 0x2bc   : > { %v948_v43 = vmax.f32 %v946_v63, %v9713_v61  ;;  %v9718_v18 = vsel %vm9706_vm2, %v844_v31, -1e+30  ;;  %18748 = vst [vmem:[#allocation107_spill] sm:$0xff] %v18747_v9  ;;  %v18749_v45 = vmov 0  ;;  %vm9739_vm2 = vcmp.eq.s32.totalorder %v9036_v12, %v9057_v0 }
 0x2bd   : > { %18745 = vst [vmem:[#allocation106_spill] sm:$0xff] %v9718_v18  ;;  %v985_v34 = vmax.f32 %v983_v7, %v9718_v18  ;;  %v18750_v45 = vsel %vm9729_vm1, 4294967295, %v18749_v45  ;;  %v18752_v7 = vmov 0  ;;  %v18756_v9 = vmov 0 }
 0x2be   : > { %18751 = vst [vmem:[#allocation108_spill] sm:$0xff] %v18750_v45  ;;  %v18753_v7 = vsel %vm9739_vm2, 4294967295, %v18752_v7  ;;  %v18757_v9 = vsel %vm9750_vm14, 4294967295, %v18756_v9 }
 0x2bf   : > { %18754 = vst [vmem:[#allocation109_spill] sm:$0xff] %v18753_v7  ;;  %18758 = vst [vmem:[#allocation111_spill] sm:$0xff] %v18757_v9 }
 0x2c0   : > { %v848_v36 = vpop.f32.mrb[84].mxu1 }
 0x2c1   : > { %v9735_v63 = vsel %vm9723_vm15, %v848_v36, -1e+30  ;;  %v850_v31 = vpop.f32.mrb[85].mxu1 }
 0x2c2   : > { %v949_v11 = vmax.f32 %v947_v22, %v9735_v63  ;;  %v9746_v4 = vsel %vm9729_vm1, %v850_v31, -1e+30  ;;  %v852_v47 = vpop.f32.mrb[86].mxu1  ;;  %vm18870_vm1 = vcmask 31744  }
 0x2c3   : > { %18755 = vst [vmem:[#allocation110_spill] sm:$0xff] %v9746_v4  ;;  %v986_v36 = vmax.f32 %v984_v28, %v9746_v4  ;;  %v9757_v0 = vsel %vm9739_vm2, %v852_v47, -1e+30  ;;  %v854_v32 = vpop.f32.mrb[87].mxu1  ;;  %vm18872_vm15 = vmmov %vm18870_vm1 }
 0x2c4   : > { %v950_v22 = vmax.f32 %v948_v43, %v9757_v0  ;;  %v9762_v31 = vsel %vm9750_vm14, %v854_v32, -1e+30  ;;  %vm18865_vm14 = vcmask 1041408   ;;  %vm18874_vm0 = vmmov %vm18870_vm1 }
 0x2c5   : > { %v987_v45 = vmax.f32 %v985_v34, %v9762_v31  ;;  %vm18867_vm2 = vmmov %vm18865_vm14 }
 0x2c6   : > { %v951_v25 = vmax.f32 %v949_v11, %v950_v22 }
 0x2c7   : > { %v988_v53 = vmax.f32 %v986_v36, %v987_v45 }
 0x2c8   : > { %v952_v12 = vrot.slane %v951_v25, 4 }
 0x2c9   : > { %v989_v40 = vrot.slane %v988_v53, 4 }
 0x2ca   : > { %v953_v55 = vmax.f32 %v951_v25, %v952_v12 }
 0x2cb   : > { %v990_v18 = vmax.f32 %v988_v53, %v989_v40 }
 0x2cc   : > { %v954_v28 = vrot.slane %v953_v55, 2 }
 0x2cd   : > { %v991_v4 = vrot.slane %v990_v18, 2 }
 0x2ce   : > { %v955_v7 = vmax.f32 %v953_v55, %v954_v28  ;;  %v18767_v28 = vld [vmem:[#allocation70_spill] sm:$0xff] }
 0x2cf   : > { %v992_v47 = vmax.f32 %v990_v18, %v991_v4 }
 0x2d0   : > { %v956_v42 = vrot.slane %v955_v7, 1 }
 0x2d1   : > { %v993_v57 = vrot.slane %v992_v47, 1 }
 0x2d2   : > { %v9765_v24 = vmax.f32 %v955_v7, %v956_v42 }
 0x2d3   : > { %v9767_v43 = vmax.f32 %v992_v47, %v993_v57 }
 0x2d4   : > { %v995_v32 = vsub.f32 %v9111_v33, %v9765_v24  ;;  %v997_v11 = vsub.f32 %v9129_v62, %v9765_v24  ;;  %v999_v25 = vsub.f32 %v9115_v14, %v9765_v24  ;;  %v1001_v40 = vsub.f32 %v9135_v39, %v9765_v24 }
 0x2d5   : > { %v1003_v55 = vsub.f32 %v9175_v59, %v9765_v24  ;;  %v1005_v42 = vsub.f32 %v9185_v8, %v9765_v24  ;;  %v1007_v57 = vsub.f32 %v9219_v27, %v9765_v24  ;;  %v1009_v33 = vsub.f32 %v9228_v30, %v9765_v24  ;;  %v18774_v30 = vld [vmem:[#allocation100_spill] sm:$0xff] }
 0x2d6   : > { %v1011_v62 = vsub.f32 %v9263_v35, %v9765_v24  ;;  %v1013_v14 = vsub.f32 %v9273_v49, %v9765_v24  ;;  %v1015_v39 = vsub.f32 %v9295_v21, %v9765_v24  ;;  %v1017_v59 = vsub.f32 %v9317_v16, %v9765_v24  ;;  %v18768_v49 = vld [vmem:[#allocation75_spill] sm:$0xff]  ;;  %v18776_v16 = vld [vmem:[#allocation106_spill] sm:$0xff] }
 0x2d7   : > { %v1019_v8 = vsub.f32 %v9339_v60, %v9765_v24  ;;  %v1059_v45 = vmul.f32 1.442695, %v995_v32  ;;  %v1063_v12 = vmul.f32 1.442695, %v997_v11  ;;  %v1067_v18 = vmul.f32 1.442695, %v999_v25 }
 0x2d8   : > { %v1071_v7 = vmul.f32 1.442695, %v1001_v40  ;;  %v1075_v36 = vmul.f32 1.442695, %v1003_v55  ;;  %v1079_v4 = vmul.f32 1.442695, %v1005_v42  ;;  %v18778_v9 = vsub.f32 %v9361_v56, %v9765_v24 }
 0x2d9   : > { %7554 = vpow2.f32 %v1059_v45  ;;  %v1083_v22 = vmul.f32 1.442695, %v1007_v57  ;;  %v1087_v34 = vmul.f32 1.442695, %v1009_v33  ;;  %v1091_v55 = vmul.f32 1.442695, %v1011_v62 }
 0x2da   : > { %7556 = vpow2.f32 %v1063_v12  ;;  %v18760_v62 = vld [vmem:[#allocation52_spill] sm:$0xff]  ;;  %v1095_v53 = vmul.f32 1.442695, %v1013_v14  ;;  %v18762_v33 = vld [vmem:[#allocation58_spill] sm:$0xff]  ;;  %v1103_v25 = vmul.f32 1.442695, %v1017_v59  ;;  %v18781_v56 = vsub.f32 %v9427_v15, %v9765_v24 }
 0x2db   : > { %7558 = vpow2.f32 %v1067_v18  ;;  %v18761_v57 = vld [vmem:[#allocation56_spill] sm:$0xff]  ;;  %v18764_v45 = vld [vmem:[#allocation62_spill] sm:$0xff]  ;;  %v1107_v21 = vmul.f32 1.442695, %v1019_v8  ;;  %v1111_v11 = vmul.f32 1.442695, %v18778_v9  ;;  %v18785_v15 = vsub.f32 %v9139_v37, %v9767_v43 }
 0x2dc   : > { %7560 = vpow2.f32 %v1071_v7  ;;  %v18759_v7 = vld [vmem:[#allocation50_spill] sm:$0xff]  ;;  %v18766_v14 = vld [vmem:[#allocation68_spill] sm:$0xff]  ;;  %v1123_v9 = vmul.f32 1.442695, %v18781_v56 }
 0x2dd   : > { %7562 = vpow2.f32 %v1075_v36  ;;  %v18765_v36 = vld [vmem:[#allocation64_spill] sm:$0xff]  ;;  %v18777_v40 = vld [vmem:[#allocation110_spill] sm:$0xff] }
 0x2de   : > { %7564 = vpow2.f32 %v1079_v4  ;;  %v18770_v32 = vld [vmem:[#allocation76_spill] sm:$0xff] }
 0x2df   : > { %7566 = vpow2.f32 %v1083_v22  ;;  %v18771_v12 = vld [vmem:[#allocation80_spill] sm:$0xff] }
 0x2e0   : > { %7568 = vpow2.f32 %v1087_v34  ;;  %v1099_v34 = vmul.f32 1.442695, %v1015_v39 }
 0x2e1   : > { %7570 = vpow2.f32 %v1091_v55  ;;  %v18773_v55 = vld [vmem:[#allocation98_spill] sm:$0xff] }
 0x2e2   : > { %7572 = vpow2.f32 %v1095_v53 }
 0x2e3   : > { %v9845_v18 = vpop.eup %7554  ;;  %7574 = vpow2.f32 %v1099_v34 }
 0x2e4   : > { %v9853_v4 = vpop.eup %7556  ;;  %7576 = vpow2.f32 %v1103_v25  ;;  %v18780_v25 = vsub.f32 %v9405_v50, %v9765_v24 }
 0x2e5   : > { %v1187_v42 = vadd.f32 %v9853_v4, %v9845_v18  ;;  %v9867_v22 = vpop.eup %7558  ;;  %7578 = vpow2.f32 %v1107_v21 }
 0x2e6   : > { %18763 = vst [vmem:[#allocation50_spill] sm:$0xff] %v9867_v22  ;;  %v9880_v35 = vpop.eup %7560  ;;  %7580 = vpow2.f32 %v1111_v11  ;;  %v18783_v11 = vsub.f32 %v9119_v2, %v9767_v43  ;;  %v18788_v2 = vsub.f32 %v9125_v5, %v9767_v43 }
 0x2e7   : > { %v1188_v47 = vadd.f32 %v9867_v22, %v1187_v42  ;;  %18769 = vst [vmem:[#allocation52_spill] sm:$0xff] %v9880_v35  ;;  %v9890_v27 = vpop.eup %7562 }
 0x2e8   : > { %18772 = vst [vmem:[#allocation56_spill] sm:$0xff] %v9890_v27  ;;  %v9905_v53 = vpop.eup %7564  ;;  %v1061_v50 = vmul.f32 1.442695, %v18783_v11 }
 0x2e9   : > { %v1189_v42 = vadd.f32 %v9880_v35, %v1188_v47  ;;  %v18775_v47 = vld [vmem:[#allocation104_spill] sm:$0xff]  ;;  %v18779_v35 = vsub.f32 %v9383_v19, %v9765_v24  ;;  %v18782_v19 = vsub.f32 %v9449_v46, %v9765_v24 }
 0x2eb   : > { %v1190_v39 = vadd.f32 %v9890_v27, %v1189_v42  ;;  %v9914_v42 = vpop.eup %7566  ;;  %v1115_v59 = vmul.f32 1.442695, %v18779_v35  ;;  %v1127_v35 = vmul.f32 1.442695, %v18782_v19 }
 0x2ec   : > { %v9920_v27 = vpop.eup %7568 }
 0x2ed   : > { %v1191_v8 = vadd.f32 %v9905_v53, %v1190_v39  ;;  %v9926_v22 = vpop.eup %7570  ;;  %v1119_v39 = vmul.f32 1.442695, %v18780_v25  ;;  %7582 = vpow2.f32 %v1115_v59  ;;  %v18786_v59 = vsub.f32 %v9483_v13, %v9765_v24 }
 0x2ee   : > { %v9935_v21 = vpop.eup %7572  ;;  %v18791_v13 = vsub.f32 %v9145_v44, %v9767_v43 }
 0x2ef   : > { %v1192_v34 = vadd.f32 %v9914_v42, %v1191_v8  ;;  %v9944_v25 = vpop.eup %7574  ;;  %7584 = vpow2.f32 %v1119_v39  ;;  %v1131_v56 = vmul.f32 1.442695, %v18786_v59  ;;  %v18789_v39 = vsub.f32 %v9493_v51, %v9765_v24 }
 0x2f0   : > { %18784 = vst [vmem:[#allocation58_spill] sm:$0xff] %v9944_v25  ;;  %7586 = vpow2.f32 %v1123_v9  ;;  %v9953_v19 = vpop.eup %7576  ;;  %v18794_v51 = vsub.f32 %v9180_v17, %v9767_v43 }
 0x2f1   : > { %v1193_v60 = vadd.f32 %v9920_v27, %v1192_v34  ;;  %18787 = vst [vmem:[#allocation62_spill] sm:$0xff] %v9953_v19  ;;  %7588 = vpow2.f32 %v1127_v35  ;;  %v1135_v11 = vmul.f32 1.442695, %v18789_v39  ;;  %v9962_v9 = vpop.eup %7578  ;;  %v18792_v35 = vsub.f32 %v9521_v29, %v9765_v24 }
 0x2f2   : > { %7590 = vpow2.f32 %v1061_v50  ;;  %18790 = vst [vmem:[#allocation64_spill] sm:$0xff] %v9962_v9  ;;  %v9971_v59 = vpop.eup %7580  ;;  %v1077_v50 = vmul.f32 1.442695, %v18794_v51  ;;  %v18796_v29 = vsub.f32 %v9190_v54, %v9767_v43  ;;  %v18799_v54 = vsub.f32 %v9553_v52, %v9765_v24 }
 0x2f3   : > { %v1194_v8 = vadd.f32 %v9926_v22, %v1193_v60  ;;  %v1065_v60 = vmul.f32 1.442695, %v18785_v15  ;;  %v1139_v5 = vmul.f32 1.442695, %v18792_v35  ;;  %18793 = vst [vmem:[#allocation68_spill] sm:$0xff] %v9971_v59 }
 0x2f5   : > { %v1195_v34 = vadd.f32 %v9935_v21, %v1194_v8  ;;  %v1069_v8 = vmul.f32 1.442695, %v18788_v2  ;;  %7592 = vpow2.f32 %v1065_v60  ;;  %v18795_v60 = vsub.f32 %v9531_v38, %v9765_v24 }
 0x2f6   : > { %7594 = vpow2.f32 %v1131_v56  ;;  %v1081_v2 = vmul.f32 1.442695, %v18796_v29  ;;  %v18798_v38 = vsub.f32 %v9223_v3, %v9767_v43  ;;  %v18801_v3 = vsub.f32 %v9570_v26, %v9765_v24 }
 0x2f7   : > { %v1196_v46 = vadd.f32 %v9944_v25, %v1195_v34  ;;  %v1073_v34 = vmul.f32 1.442695, %v18791_v13  ;;  %7596 = vpow2.f32 %v1069_v8  ;;  %v1143_v44 = vmul.f32 1.442695, %v18795_v60 }
 0x2f8   : > { %7598 = vpow2.f32 %v1135_v11  ;;  %v18797_v8 = vsub.f32 %v9548_v48, %v9765_v24 }
 0x2f9   : > { %v1197_v37 = vadd.f32 %v9953_v19, %v1196_v46  ;;  %v9980_v46 = vpop.eup %7582  ;;  %7600 = vpow2.f32 %v1073_v34  ;;  %v1151_v34 = vmul.f32 1.442695, %v18799_v54 }
 0x2fa   : > { %7602 = vpow2.f32 %v1139_v5  ;;  %v1147_v17 = vmul.f32 1.442695, %v18797_v8  ;;  %v9989_v11 = vpop.eup %7584  ;;  %v18800_v5 = vsub.f32 %v9233_v6, %v9767_v43  ;;  %v18803_v6 = vsub.f32 %v9593_v10, %v9765_v24 }
 0x2fb   : > { %v1198_v15 = vadd.f32 %v9962_v9, %v1197_v37  ;;  %7604 = vpow2.f32 %v1077_v50  ;;  %v1085_v37 = vmul.f32 1.442695, %v18798_v38  ;;  %v9994_v13 = vpop.eup %7586  ;;  %v1155_v50 = vmul.f32 1.442695, %v18801_v3 }
 0x2fc   : > { %7606 = vpow2.f32 %v1143_v44  ;;  %v10000_v48 = vpop.eup %7588  ;;  %v18802_v44 = vsub.f32 %v9268_v1, %v9767_v43  ;;  %v18807_v3 = vsub.f32 %v9669_v20, %v9765_v24 }
 0x2fd   : > { %v1199_v56 = vadd.f32 %v9971_v59, %v1198_v15  ;;  %7608 = vpow2.f32 %v1081_v2  ;;  %v1089_v15 = vmul.f32 1.442695, %v18800_v5  ;;  %v10005_v51 = vpop.eup %7590  ;;  %v1159_v2 = vmul.f32 1.442695, %v18803_v6 }
 0x2fe   : > { %7610 = vpow2.f32 %v1147_v17  ;;  %v18806_v5 = vsub.f32 %v18759_v7, %v9767_v43 }
 0x2ff   : > { %v1200_v39 = vadd.f32 %v9980_v46, %v1199_v56  ;;  %v10011_v52 = vpop.eup %7592  ;;  %7612 = vpow2.f32 %v1085_v37  ;;  %v1093_v56 = vmul.f32 1.442695, %v18802_v44  ;;  %v18805_v37 = vsub.f32 %v9646_v58, %v9765_v24 }
 0x300   : > { %v10016_v29 = vpop.eup %7594  ;;  %7614 = vpow2.f32 %v1151_v34  ;;  %v1224_v26 = vadd.f32 %v10011_v52, %v10005_v51 }
 0x301   : > { %v1201_v35 = vadd.f32 %v9989_v11, %v1200_v39  ;;  %v10024_v17 = vpop.eup %7596  ;;  %7616 = vpow2.f32 %v1089_v15  ;;  %v18804_v39 = vsub.f32 %v9278_v23, %v9767_v43  ;;  %v1163_v10 = vmul.f32 1.442695, %v18805_v37 }
 0x302   : > { %v10029_v38 = vpop.eup %7598  ;;  %7618 = vpow2.f32 %v1155_v50  ;;  %v1225_v34 = vadd.f32 %v10024_v17, %v1224_v26  ;;  %v1101_v15 = vmul.f32 1.442695, %v18806_v5  ;;  %v1167_v50 = vmul.f32 1.442695, %v18807_v3 }
 0x303   : > { %v1202_v60 = vadd.f32 %v9994_v13, %v1201_v35  ;;  %v1097_v1 = vmul.f32 1.442695, %v18804_v39  ;;  %v10036_v35 = vpop.eup %7600  ;;  %7620 = vpow2.f32 %v1093_v56  ;;  %v18808_v56 = vsub.f32 %v18760_v62, %v9767_v43 }
 0x304   : > { %v10041_v23 = vpop.eup %7602  ;;  %7622 = vpow2.f32 %v1159_v2  ;;  %v18809_v2 = vsub.f32 %v9691_v41, %v9765_v24 }
 0x305   : > { %v1203_v8 = vadd.f32 %v10000_v48, %v1202_v60  ;;  %v1226_v60 = vadd.f32 %v10036_v35, %v1225_v34  ;;  %v10048_v44 = vpop.eup %7604  ;;  %7624 = vpow2.f32 %v1097_v1  ;;  %v1105_v6 = vmul.f32 1.442695, %v18808_v56 }
 0x306   : > { %v10053_v7 = vpop.eup %7606  ;;  %7626 = vpow2.f32 %v1163_v10  ;;  %v18810_v1 = vsub.f32 %v18761_v57, %v9767_v43  ;;  %v18811_v10 = vsub.f32 %v9713_v61, %v9765_v24 }
 0x307   : > { %v1204_v54 = vadd.f32 %v10016_v29, %v1203_v8  ;;  %v1171_v8 = vmul.f32 1.442695, %v18809_v2  ;;  %v1227_v26 = vadd.f32 %v10048_v44, %v1226_v60  ;;  %v10060_v39 = vpop.eup %7608  ;;  %7628 = vpow2.f32 %v1101_v15 }
 0x308   : > { %v1109_v37 = vmul.f32 1.442695, %v18810_v1  ;;  %v10065_v62 = vpop.eup %7610  ;;  %7630 = vpow2.f32 %v1167_v50  ;;  %v18812_v15 = vsub.f32 %v18762_v33, %v9767_v43  ;;  %v18813_v50 = vsub.f32 %v9735_v63, %v9765_v24 }
 0x309   : > { %v1205_v58 = vadd.f32 %v10029_v38, %v1204_v54  ;;  %v1175_v54 = vmul.f32 1.442695, %v18811_v10  ;;  %v1228_v34 = vadd.f32 %v10060_v39, %v1227_v26  ;;  %v10072_v5 = vpop.eup %7612  ;;  %7632 = vpow2.f32 %v1105_v6 }
 0x30a   : > { %v1113_v3 = vmul.f32 1.442695, %v18812_v15  ;;  %v10077_v57 = vpop.eup %7614  ;;  %7634 = vpow2.f32 %v1171_v8  ;;  %v18814_v6 = vsub.f32 %v18764_v45, %v9767_v43  ;;  %v18815_v8 = vsub.f32 %v9757_v0, %v9765_v24 }
 0x30b   : > { %v1206_v20 = vadd.f32 %v10041_v23, %v1205_v58  ;;  %v1179_v58 = vmul.f32 1.442695, %v18813_v50  ;;  %v1229_v60 = vadd.f32 %v10072_v5, %v1228_v34  ;;  %v10084_v56 = vpop.eup %7616  ;;  %7636 = vpow2.f32 %v1109_v37 }
 0x30c   : > { %v1117_v2 = vmul.f32 1.442695, %v18814_v6  ;;  %v10089_v33 = vpop.eup %7618  ;;  %7638 = vpow2.f32 %v1175_v54  ;;  %v18816_v37 = vsub.f32 %v18765_v36, %v9767_v43  ;;  %v18817_v0 = vsub.f32 %v18766_v14, %v9767_v43 }
 0x30d   : > { %v1207_v41 = vadd.f32 %v10053_v7, %v1206_v20  ;;  %v1183_v20 = vmul.f32 1.442695, %v18815_v8  ;;  %v1230_v26 = vadd.f32 %v10084_v56, %v1229_v60  ;;  %v10096_v1 = vpop.eup %7620  ;;  %7640 = vpow2.f32 %v1113_v3 }
 0x30e   : > { %v1121_v10 = vmul.f32 1.442695, %v18816_v37  ;;  %v10101_v45 = vpop.eup %7622  ;;  %7642 = vpow2.f32 %v1179_v58  ;;  %v1125_v34 = vmul.f32 1.442695, %v18817_v0  ;;  %v18819_v58 = vsub.f32 %v18767_v28, %v9767_v43 }
 0x30f   : > { %v1208_v61 = vadd.f32 %v10065_v62, %v1207_v41  ;;  %v1231_v41 = vadd.f32 %v10096_v1, %v1230_v26  ;;  %v10105_v24 = vpop.eup %7624  ;;  %7644 = vpow2.f32 %v1117_v2  ;;  %v18821_v8 = vsub.f32 %v18768_v49, %v9767_v43 }
 0x310   : > { %v10110_v15 = vpop.eup %7626  ;;  %7646 = vpow2.f32 %v1183_v20 }
 0x311   : > { %v1209_v63 = vadd.f32 %v10077_v57, %v1208_v61  ;;  %v1232_v3 = vadd.f32 %v10105_v24, %v1231_v41  ;;  %v10114_v50 = vpop.eup %7628  ;;  %7648 = vpow2.f32 %v1121_v10  ;;  %v1129_v61 = vmul.f32 1.442695, %v18819_v58  ;;  %v18823_v10 = vld [vmem:[#allocation88_spill] sm:$0xff]  ;;  %v18826_v58 = vld [vmem:[#allocation89_spill] sm:$0xff] }
 0x312   : > { %18818 = vst [vmem:[#allocation70_spill] sm:$0xff] %v10114_v50  ;;  %v10119_v60 = vpop.eup %7630  ;;  %7650 = vpow2.f32 %v1125_v34  ;;  %v1133_v20 = vmul.f32 1.442695, %v18821_v8  ;;  %v18824_v41 = vsub.f32 %v18770_v32, %v9767_v43 }
 0x313   : > { %v1210_v54 = vadd.f32 %v10089_v33, %v1209_v63  ;;  %v1233_v14 = vadd.f32 %v10114_v50, %v1232_v3  ;;  %v10123_v2 = vpop.eup %7632  ;;  %7652 = vpow2.f32 %v1129_v61 }
 0x314   : > { %18820 = vst [vmem:[#allocation75_spill] sm:$0xff] %v10123_v2  ;;  %v10128_v63 = vpop.eup %7634  ;;  %v1137_v0 = vmul.f32 1.442695, %v18824_v41  ;;  %7654 = vpow2.f32 %v1133_v20 }
 0x315   : > { %v1211_v36 = vadd.f32 %v10101_v45, %v1210_v54  ;;  %v1234_v28 = vadd.f32 %v10123_v2, %v1233_v14  ;;  %v10132_v37 = vpop.eup %7636  ;;  %v1038_v54 = vsub.f32 %v18823_v10, %v9767_v43  ;;  %v18827_v14 = vsub.f32 %v18771_v12, %v9767_v43 }
 0x316   : > { %18822 = vst [vmem:[#allocation76_spill] sm:$0xff] %v10132_v37  ;;  %v10139_v34 = vpop.eup %7638  ;;  %7656 = vpow2.f32 %v1137_v0 }
 0x317   : > { %v1212_v6 = vadd.f32 %v10110_v15, %v1211_v36  ;;  %v1235_v36 = vadd.f32 %v10132_v37, %v1234_v28  ;;  %v10143_v3 = vpop.eup %7640  ;;  %v1141_v61 = vmul.f32 1.442695, %v18827_v14  ;;  %v1145_v59 = vmul.f32 1.442695, %v1038_v54  ;;  %v18829_v14 = vld [vmem:[#allocation92_spill] sm:$0xff]  ;;  %v18830_v54 = vld [vmem:[#allocation95_spill] sm:$0xff] }
 0x318   : > { %18825 = vst [vmem:[#allocation80_spill] sm:$0xff] %v10143_v3  ;;  %v10150_v8 = vpop.eup %7642  ;;  %v1046_v0 = vsub.f32 %v18830_v54, %v9767_v43 }
 0x319   : > { %v1213_v26 = vadd.f32 %v10119_v60, %v1212_v6  ;;  %v1040_v6 = vsub.f32 %v18826_v58, %v9767_v43  ;;  %v1236_v10 = vadd.f32 %v10143_v3, %v1235_v36  ;;  %v10154_v41 = vpop.eup %7644  ;;  %7658 = vpow2.f32 %v1141_v61 }
 0x31a   : > { %v10158_v9 = vpop.eup %7646  ;;  %7660 = vpow2.f32 %v1145_v59  ;;  %v18831_v59 = vsub.f32 %v18773_v55, %v9767_v43  ;;  %v18833_v55 = vsub.f32 %v18775_v47, %v9767_v43 }
 0x31b   : > { %v1214_v49 = vadd.f32 %v10128_v63, %v1213_v26  ;;  %v18828_v26 = vld [vmem:[#allocation91_spill] sm:$0xff]  ;;  %v1237_v12 = vadd.f32 %v10154_v41, %v1236_v10  ;;  %v10162_v58 = vpop.eup %7648  ;;  %v1149_v36 = vmul.f32 1.442695, %v1040_v6 }
 0x31c   : > { %v1042_v28 = vsub.f32 %v18828_v26, %v9767_v43  ;;  %v10168_v26 = vpop.eup %7650 }
 0x31d   : > { %v1215_v32 = vadd.f32 %v10139_v34, %v1214_v49  ;;  %v1044_v49 = vsub.f32 %v18829_v14, %v9767_v43  ;;  %v1238_v37 = vadd.f32 %v10162_v58, %v1237_v12  ;;  %v10173_v25 = vpop.eup %7652  ;;  %7662 = vpow2.f32 %v1149_v36 }
 0x31e   : > { %v1161_v12 = vmul.f32 1.442695, %v1046_v0 }
 0x31f   : > { %v1216_v20 = vadd.f32 %v10150_v8, %v1215_v32  ;;  %v1153_v32 = vmul.f32 1.442695, %v1042_v28  ;;  %v1239_v10 = vadd.f32 %v10168_v26, %v1238_v37  ;;  %v1157_v14 = vmul.f32 1.442695, %v1044_v49 }
 0x320   : > { %v1165_v37 = vmul.f32 1.442695, %v18831_v59 }
 0x321   : > { %v1217_v3 = vadd.f32 %v10158_v9, %v1216_v20  ;;  %v1240_v6 = vadd.f32 %v10173_v25, %v1239_v10  ;;  %v10176_v20 = vpop.eup %7654  ;;  %7664 = vpow2.f32 %v1153_v32 }
 0x322   : > { %v10179_v54 = vpop.eup %7656  ;;  %7666 = vpow2.f32 %v1157_v14  ;;  %v1173_v14 = vmul.f32 1.442695, %v18833_v55 }
 0x323   : > { %v1218_v19 = vrot.slane %v1217_v3, 4  ;;  %v1241_v50 = vadd.f32 %v10176_v20, %v1240_v6  ;;  %7668 = vpow2.f32 %v1161_v12 }
 0x324   : > { %7670 = vpow2.f32 %v1165_v37  ;;  %v18835_v37 = vsub.f32 %v18777_v40, %v9767_v43 }
 0x325   : > { %v1219_v61 = vadd.f32 %v1218_v19, %v1217_v3  ;;  %v1242_v49 = vadd.f32 %v10179_v54, %v1241_v50  ;;  %v10185_v19 = vpop.eup %7658  ;;  %v18832_v3 = vsub.f32 %v18774_v30, %v9767_v43  ;;  %v18834_v50 = vsub.f32 %v18776_v16, %v9767_v43 }
 0x326   : > { %v10191_v10 = vpop.eup %7660  ;;  %v1181_v47 = vmul.f32 1.442695, %v18835_v37 }
 0x327   : > { %v1220_v2 = vrot.slane %v1219_v61, 2  ;;  %v1169_v36 = vmul.f32 1.442695, %v18832_v3  ;;  %v1243_v32 = vadd.f32 %v10185_v19, %v1242_v49  ;;  %v10200_v6 = vpop.eup %7662  ;;  %v18836_v3 = vsub.f32 %v9762_v31, %v9767_v43 }
 0x329   : > { %v1221_v28 = vadd.f32 %v1220_v2, %v1219_v61  ;;  %v1177_v2 = vmul.f32 1.442695, %v18834_v50  ;;  %v1244_v61 = vadd.f32 %v10191_v10, %v1243_v32  ;;  %7672 = vpow2.f32 %v1169_v36 }
 0x32a   : > { %7674 = vpow2.f32 %v1173_v14 }
 0x32b   : > { %v1222_v0 = vrot.slane %v1221_v28, 1  ;;  %v1245_v12 = vadd.f32 %v10200_v6, %v1244_v61  ;;  %v10203_v59 = vpop.eup %7664  ;;  %7676 = vpow2.f32 %v1177_v2 }
 0x32c   : > { %v10209_v16 = vpop.eup %7666 }
 0x32d   : > { %v1223_v30 = vadd.f32 %v1222_v0, %v1221_v28  ;;  %v1246_v49 = vadd.f32 %v10203_v59, %v1245_v12  ;;  %v1185_v28 = vmul.f32 1.442695, %v18836_v3  ;;  %v10215_v0 = vpop.eup %7668 }
 0x32e   : > { %v10218_v55 = vpop.eup %7670 }
 0x32f   : > { %7678 = vrcp.f32 %v1223_v30  ;;  %v1247_v36 = vadd.f32 %v10209_v16, %v1246_v49 }
 0x330   : > { %7680 = vpow2.f32 %v1181_v47 }
 0x331   : > { %v1248_v32 = vadd.f32 %v10215_v0, %v1247_v36  ;;  %7682 = vpow2.f32 %v1185_v28 }
 0x333   : > { %v1249_v40 = vadd.f32 %v10218_v55, %v1248_v32  ;;  %v10221_v14 = vpop.eup %7672 }
 0x334   : > { %v10224_v2 = vpop.eup %7674 }
 0x335   : > { %v1250_v50 = vadd.f32 %v10221_v14, %v1249_v40  ;;  %v10226_v31 = vpop.eup %7676 }
 0x337   : > { %v1251_v43 = vadd.f32 %v10224_v2, %v1250_v50 }
 0x339   : > { %v10229_v61 = vpop.eup %7678  ;;  %v1252_v30 = vadd.f32 %v10226_v31, %v1251_v43 }
 0x33a   : > { %v10232_v12 = vpop.eup %7680  ;;  %v10237_v47 = vmul.f32 %v10229_v61, %v9980_v46  ;;  %v10241_v49 = vmul.f32 %v10229_v61, %v9989_v11  ;;  %v10247_v28 = vmul.f32 %v10229_v61, %v9994_v13  ;;  %v10251_v36 = vmul.f32 %v10229_v61, %v10000_v48 }
 0x33b   : > { %v1253_v37 = vadd.f32 %v10232_v12, %v1252_v30  ;;  %v10243_v3 = vpop.eup %7682  ;;  %v10258_v40 = vmul.f32 %v10229_v61, %v10016_v29  ;;  %v10262_v11 = vmul.f32 %v10229_v61, %v10029_v38  ;;  %v10268_v48 = vmul.f32 %v10229_v61, %v10041_v23 }
 0x33c   : > { %v10272_v50 = vmul.f32 %v10229_v61, %v10053_v7  ;;  %v10276_v43 = vmul.f32 %v10229_v61, %v10065_v62  ;;  %v10282_v30 = vmul.f32 %v10229_v61, %v10077_v57  ;;  %v10286_v23 = vmul.f32 %v10229_v61, %v10089_v33 }
 0x33d   : > { %v1254_v32 = vadd.f32 %v10243_v3, %v1253_v37  ;;  %v10292_v37 = vmul.f32 %v10229_v61, %v10101_v45  ;;  %v10296_v62 = vmul.f32 %v10229_v61, %v10110_v15  ;;  %v10300_v38 = vmul.f32 %v10229_v61, %v10119_v60 }
 0x33e   : > { %18837 = vst [vmem:[#allocation98_spill] sm:$0xff] %v10286_v23  ;;  %v10306_v13 = vmul.f32 %v10229_v61, %v10128_v63  ;;  %v10310_v45 = vmul.f32 %v10229_v61, %v10139_v34  ;;  %v10318_v60 = vmul.f32 %v10229_v61, %v10150_v8  ;;  %v1262_v8 = vmul.f32 %v10229_v61, %v9845_v18  ;;  %v18841_v23 = vld [vmem:[#allocation52_spill] sm:$0xff] }
 0x33f   : > { %v1255_v29 = vrot.slane %v1254_v32, 4  ;;  %18838 = vst [vmem:[#allocation100_spill] sm:$0xff] %v10296_v62  ;;  %18839 = vst [vmem:[#allocation104_spill] sm:$0xff] %v10300_v38  ;;  %v18840_v62 = vld [vmem:[#allocation50_spill] sm:$0xff] }
 0x340   : > { %v1267_v38 = vmul.f32 %v10229_v61, %v18840_v62 }
 0x341   : > { %v1256_v57 = vadd.f32 %v1255_v29, %v1254_v32  ;;  %v10322_v32 = vmul.f32 %v10229_v61, %v10158_v9  ;;  %v1265_v9 = vmul.f32 %v10229_v61, %v9853_v4  ;;  %v1269_v29 = vmul.f32 %v10229_v61, %v18841_v23 }
 0x343   : > { %v1257_v63 = vrot.slane %v1256_v57, 2  ;;  %v1327_v23 = vpack.c.bf16 %v1265_v9, %v1262_v8 }
 0x345   : > { %v1258_v33 = vadd.f32 %v1257_v63, %v1256_v57  ;;  %v18842_v63 = vld [vmem:[#allocation56_spill] sm:$0xff] }
 0x347   : > { %v1259_v15 = vrot.slane %v1258_v33, 1 }
 0x349   : > { %v1260_v46 = vadd.f32 %v1259_v15, %v1258_v33 }
 0x34b   : > { %7684 = vrcp.f32 %v1260_v46 }
 0x355   : > { %v10328_v7 = vpop.eup %7684 }
 0x356   : > { %v1264_v57 = vmul.f32 %v10328_v7, %v10005_v51  ;;  %v1266_v46 = vmul.f32 %v10328_v7, %v10011_v52  ;;  %v1268_v33 = vmul.f32 %v10328_v7, %v10024_v17  ;;  %v1270_v18 = vmul.f32 %v10328_v7, %v10036_v35 }
 0x357   : > { %v1272_v4 = vmul.f32 %v10328_v7, %v10048_v44  ;;  %v1274_v62 = vmul.f32 %v10328_v7, %v10060_v39  ;;  %v1271_v51 = vmul.f32 %v10229_v61, %v18842_v63  ;;  %v1273_v52 = vmul.f32 %v10229_v61, %v9905_v53 }
 0x358   : > { %v1328_v15 = vpack.c.bf16 %v1266_v46, %v1264_v57  ;;  %v1275_v17 = vmul.f32 %v10229_v61, %v9914_v42  ;;  %v1330_v34 = vpack.c.bf16 %v1270_v18, %v1268_v33  ;;  %v1329_v35 = vpack.c.bf16 %v1269_v29, %v1267_v38 }
 0x359   : > { %v1276_v57 = vmul.f32 %v10328_v7, %v10072_v5  ;;  %v10360_v44 = vmul.f32 %v10328_v7, %v10154_v41  ;;  %v1278_v39 = vmul.f32 %v10328_v7, %v10084_v56  ;;  %v1294_v53 = vmul.f32 %v10328_v7, %v10162_v58 }
 0x35a   : > { %1359 = vmatprep.subr.bf16.mxu0 %v1328_v15  ;;  %v1296_v42 = vmul.f32 %v10328_v7, %v10168_v26  ;;  %v1298_v38 = vmul.f32 %v10328_v7, %v10173_v25  ;;  %v1332_v29 = vpack.c.bf16 %v1274_v62, %v1272_v4  ;;  %v1300_v5 = vmul.f32 %v10328_v7, %v10176_v20 }
 0x35b   : > { %1360 = vmatpush1.bf16.msra.mxu0 %v1327_v23  ;;  %v1302_v41 = vmul.f32 %v10328_v7, %v10179_v54  ;;  %v1304_v56 = vmul.f32 %v10328_v7, %v10185_v19  ;;  %v1342_v8 = vpack.c.bf16 %v1294_v53, %v10360_v44  ;;  %v1306_v26 = vmul.f32 %v10328_v7, %v10191_v10  ;;  %v18847_v53 = vld [vmem:[#allocation76_spill] sm:$0xff] }
 0x35c   : > { %1361 = vmatprep.subr.bf16.mxu0 %v1330_v34  ;;  %v1344_v58 = vpack.c.bf16 %v1298_v38, %v1296_v42  ;;  %v1308_v25 = vmul.f32 %v10328_v7, %v10200_v6  ;;  %v1310_v9 = vmul.f32 %v10328_v7, %v10203_v59  ;;  %v1312_v20 = vmul.f32 %v10328_v7, %v10209_v16  ;;  %v18848_v42 = vld [vmem:[#allocation80_spill] sm:$0xff] }
 0x35d   : > { %v1346_v34 = vpack.c.bf16 %v1302_v41, %v1300_v5  ;;  %v1314_v54 = vmul.f32 %v10328_v7, %v10215_v0  ;;  %v1348_v19 = vpack.c.bf16 %v1306_v26, %v1304_v56  ;;  %v1316_v46 = vmul.f32 %v10328_v7, %v10218_v55  ;;  %v18849_v5 = vld [vmem:[#allocation64_spill] sm:$0xff] }
 0x35e   : > { %v1318_v10 = vmul.f32 %v10328_v7, %v10221_v14  ;;  %v1320_v6 = vmul.f32 %v10328_v7, %v10224_v2  ;;  %v1350_v33 = vpack.c.bf16 %v1310_v9, %v1308_v25  ;;  %v1322_v16 = vmul.f32 %v10328_v7, %v10226_v31  ;;  %v18850_v56 = vld [vmem:[#allocation68_spill] sm:$0xff] }
 0x35f   : > { %1362 = vmatpush1.bf16.msra.mxu0 %v1329_v35  ;;  %v1352_v59 = vpack.c.bf16 %v1314_v54, %v1312_v20  ;;  %v1324_v0 = vmul.f32 %v10328_v7, %v10232_v12  ;;  %v1331_v18 = vpack.c.bf16 %v1273_v52, %v1271_v51  ;;  %v1277_v15 = vmul.f32 %v10229_v61, %v9920_v27  ;;  %v18844_v35 = vld [vmem:[#allocation75_spill] sm:$0xff] }
 0x360   : > { %1363 = vmatprep.subr.bf16.mxu0 %v1332_v29  ;;  %v1354_v55 = vpack.c.bf16 %v1318_v10, %v1316_v46  ;;  %v1326_v14 = vmul.f32 %v10328_v7, %v10243_v3  ;;  %v1334_v4 = vpack.c.bf16 %v1278_v39, %v1276_v57  ;;  %v1280_v2 = vmul.f32 %v10328_v7, %v10096_v1  ;;  %v18843_v3 = vld [vmem:[#allocation70_spill] sm:$0xff]  ;;  %v18877_v46 = vld [vmem:[#allocation13_spill] sm:$0xff] }
 0x361   : > { %v1282_v62 = vmul.f32 %v10328_v7, %v10105_v24  ;;  %v1356_v23 = vpack.c.bf16 %v1322_v16, %v1320_v6  ;;  %v1333_v12 = vpack.c.bf16 %v1277_v15, %v1275_v17  ;;  %v1279_v63 = vmul.f32 %v10229_v61, %v9926_v22  ;;  %v18845_v57 = vld [vmem:[#allocation58_spill] sm:$0xff]  ;;  %v18881_v6 = vld [vmem:[#allocation17_spill] sm:$0xff]  ;;  %v18891_v15 = vld [vmem:[#allocation24_spill] sm:$0xff] }
 0x362   : > { %v1358_v31 = vpack.c.bf16 %v1326_v14, %v1324_v0  ;;  %v1281_v27 = vmul.f32 %v10229_v61, %v9935_v21  ;;  %v1284_v52 = vmul.f32 %v10328_v7, %v18843_v3  ;;  %v1286_v1 = vmul.f32 %v10328_v7, %v18844_v35  ;;  %v18846_v17 = vld [vmem:[#allocation62_spill] sm:$0xff]  ;;  %v18885_v16 = vld [vmem:[#allocation21_spill] sm:$0xff] }
 0x363   : > { %1364 = vmatpush1.bf16.msra.mxu0 %v1331_v18  ;;  %v1336_v51 = vpack.c.bf16 %v1282_v62, %v1280_v2  ;;  %v1283_v44 = vmul.f32 %v10229_v61, %v18845_v57  ;;  %v1285_v39 = vmul.f32 %v10229_v61, %v18846_v17  ;;  %v1288_v21 = vmul.f32 %v10328_v7, %v18847_v53  ;;  %v18879_v10 = vld [vmem:[#allocation14_spill] sm:$0xff]  ;;  %v18889_v18 = vld [vmem:[#allocation23_spill] sm:$0xff]  ;;  %v18896_v2 = vld [vmem:[#allocation16_spill] sm:$0xff] }
 0x364   : > { %1365 = vmatprep.subr.bf16.mxu0 %v1334_v4  ;;  %v1335_v24 = vpack.c.bf16 %v1281_v27, %v1279_v63  ;;  %v1338_v22 = vpack.c.bf16 %v1286_v1, %v1284_v52  ;;  %v1290_v38 = vmul.f32 %v10328_v7, %v18848_v42  ;;  %v1287_v41 = vmul.f32 %v10229_v61, %v18849_v5  ;;  %v18887_v0 = vld [vmem:[#allocation22_spill] sm:$0xff]  ;;  %v1439_v4 = vpop.trf.xlu0 }
 0x365   : > { %v1337_v29 = vpack.c.bf16 %v1285_v39, %v1283_v44  ;;  %v1289_v26 = vmul.f32 %v10229_v61, %v18850_v56  ;;  %v18851_v20 = vpack.c.bf16 %v10241_v49, %v10237_v47  ;;  %v18852_v7 = vpack.c.bf16 %v10251_v36, %v10247_v28  ;;  %v18856_v49 = vld [vmem:[#allocation98_spill] sm:$0xff]  ;;  %v18858_v36 = vld [vmem:[#allocation104_spill] sm:$0xff] }
 0x366   : > { %v1340_v25 = vpack.c.bf16 %v1290_v38, %v1288_v21  ;;  %v18853_v54 = vpack.c.bf16 %v10262_v11, %v10258_v40  ;;  %v18854_v61 = vpack.c.bf16 %v10272_v50, %v10268_v48  ;;  %v18855_v47 = vpack.c.bf16 %v10282_v30, %v10276_v43  ;;  %v18862_v48 = vld [vmem:[#allocation6_spill] sm:$0xff]  ;;  %v18863_v43 = vld [vmem:[#allocation5_spill] sm:$0xff] }
 0x367   : > { %1366 = vmatpush1.bf16.msra.mxu0 %v1333_v12  ;;  %v1339_v9 = vpack.c.bf16 %v1289_v26, %v1287_v41  ;;  %v18857_v28 = vpack.c.bf16 %v10292_v37, %v18856_v49  ;;  %v18861_v11 = vpack.c.bf16 %v10310_v45, %v10306_v13  ;;  %v1443_v50 = vrot.slane %v18862_v48, 2  ;;  %v18866_v37 = vld [vmem:[#allocation15_spill] sm:$0xff]  ;;  %v18869_v13 = vld [vmem:[#allocation9_spill] sm:$0xff]  ;;  %v18871_v45 = vld [vmem:[#allocation10_spill] sm:$0xff] }
 0x368   : > { %1367 = vmatprep.subr.bf16.mxu0 %v1336_v51  ;;  %v1442_v30 = vrot.slane %v18863_v43, 2  ;;  %v18894_v14 = vld [vmem:[#allocation26_spill] sm:$0xff]  ;;  %v3036_v62 = vrot.slane %v18896_v2, 4  ;;  %v18990_v43 = vld [vmem:[#allocation85_spill] sm:$0xff] }
 0x369   : > { %v18986_v1 = vld [vmem:[#allocation82_spill] sm:$0xff] }
 0x36b   : > { %1368 = vmatpush1.bf16.msra.mxu0 %v1335_v24 }
 0x36c   : > { %1369 = vmatprep.subr.bf16.mxu0 %v1338_v22 }
 0x36f   : > { %1370 = vmatpush1.bf16.msra.mxu0 %v1337_v29 }
 0x370   : > { %1371 = vmatprep.subr.bf16.mxu0 %v1340_v25 }
 0x373   : > { %1372 = vmatpush1.bf16.msra.mxu0 %v1339_v9 }
 0x374   : > { %1373 = vmatprep.subr.bf16.mxu0 %v1342_v8  ;;  %v18859_v8 = vld [vmem:[#allocation100_spill] sm:$0xff] }
 0x375   : > { %v18860_v40 = vpack.c.bf16 %v18858_v36, %v18859_v8 }
 0x377   : > { %1374 = vmatpush1.bf16.msra.mxu0 %v18851_v20 }
 0x378   : > { %1375 = vmatprep.subr.bf16.mxu0 %v1344_v58  ;;  %v18864_v58 = vpack.c.bf16 %v10322_v32, %v10318_v60  ;;  %v18873_v60 = vld [vmem:[#allocation11_spill] sm:$0xff]  ;;  %v18875_v32 = vld [vmem:[#allocation12_spill] sm:$0xff] }
 0x37b   : > { %1376 = vmatpush1.bf16.msra.mxu0 %v18852_v7 }
 0x37c   : > { %1377 = vmatprep.subr.bf16.mxu0 %v1346_v34  ;;  %v1493_v34 = vsel %vm18867_vm2, %v1442_v30, 0  ;;  %vm18876_vm2 = vmmov %vm18874_vm0 }
 0x37f   : > { %1378 = vmatpush1.bf16.msra.mxu0 %v18853_v54 }
 0x380   : > { %1379 = vmatprep.subr.bf16.mxu0 %v1348_v19  ;;  %v18868_v19 = vmov 0  }
 0x383   : > { %1380 = vmatpush1.bf16.msra.mxu0 %v18854_v61 }
 0x384   : > { %1381 = vmatprep.subr.bf16.mxu0 %v1350_v33  ;;  %v1423_v33 = vpop.trf.xlu1 }
 0x387   : > { %1382 = vmatpush1.bf16.msra.mxu0 %v18855_v47 }
 0x388   : > { %1383 = vmatprep.subr.bf16.mxu0 %v1352_v59  ;;  %v18883_v59 = vld [vmem:[#allocation20_spill] sm:$0xff] }
 0x38b   : > { %1384 = vmatpush1.bf16.msra.mxu0 %v18857_v28 }
 0x38c   : > { %1385 = vmatprep.subr.bf16.mxu0 %v1354_v55  ;;  %v18892_v55 = vld [vmem:[#allocation25_spill] sm:$0xff] }
 0x38f   : > { %1386 = vmatpush1.bf16.msra.mxu0 %v18860_v40 }
 0x390   : > { %1387 = vmatprep.subr.bf16.mxu0 %v1356_v23 }
 0x393   : > { %1388 = vmatpush1.bf16.msra.mxu0 %v18861_v11 }
 0x394   : > { %1389 = vmatprep.subr.bf16.mxu0 %v1358_v31 }
 0x397   : > { %1390 = vmatpush1.bf16.msra.mxu0 %v18864_v58 }
 0x398   : > { %7378 = vmatprep.subr.msk.bf16.mxu0 %vm18865_vm14, %v1443_v50  ;;  %vm18878_vm14 = vmmov %vm18874_vm0 }
 0x39a   : > { %1392 = vmatmul.mubr.bf16.vlgmr.msra.gmra.mrb[0].mxu0 %v18866_v37 }
 0x39b   : > { %1499 = vmatpush1.bf16.msra.mxu0 %v1493_v34  ;;  %1530 = vmatprep.mubr.bf16.mxu0 %v18868_v19 }
 0x3a2   : > { %7379 = vmatmul.mubr.msk.bf16.vlgmr.msra.gmra.mrb[4].mxu0 %vm18870_vm1, %v18869_v13  ;;  %vm18880_vm1 = vmmov %vm18874_vm0 }
 0x3a3   : > { %1540 = vmatprep.mubr.bf16.mxu0 %v18868_v19 }
 0x3aa   : > { %7380 = vmatmul.mubr.msk.bf16.gmra.mrb[8].mxu0 %vm18872_vm15, %v18871_v45  ;;  %vm18882_vm15 = vmmov %vm18874_vm0 }
 0x3ab   : > { %1550 = vmatprep.mubr.bf16.mxu0 %v18868_v19 }
 0x3b2   : > { %7381 = vmatmul.mubr.msk.bf16.gmra.mrb[12].mxu0 %vm18874_vm0, %v18873_v60  ;;  %v18909_v60 = vld [vmem:[#allocation38_spill] sm:$0xff] }
 0x3b3   : > { %1560 = vmatprep.mubr.bf16.mxu0 %v18868_v19 }
 0x3ba   : > { %7382 = vmatmul.mubr.msk.bf16.gmra.mrb[16].mxu0 %vm18876_vm2, %v18875_v32  ;;  %vm18884_vm2 = vmmov %vm18874_vm0 }
 0x3bb   : > { %1570 = vmatprep.mubr.bf16.mxu0 %v18868_v19 }
 0x3c2   : > { %7383 = vmatmul.mubr.msk.bf16.gmra.mrb[20].mxu0 %vm18878_vm14, %v18877_v46  ;;  %vm18886_vm14 = vmmov %vm18874_vm0 }
 0x3c3   : > { %1580 = vmatprep.mubr.bf16.mxu0 %v18868_v19 }
 0x3ca   : > { %7384 = vmatmul.mubr.msk.bf16.gmra.mrb[24].mxu0 %vm18880_vm1, %v18879_v10  ;;  %vm18888_vm1 = vmmov %vm18874_vm0 }
 0x3cb   : > { %1590 = vmatprep.mubr.bf16.mxu0 %v18868_v19 }
 0x3d2   : > { %7385 = vmatmul.mubr.msk.bf16.gmra.mrb[28].mxu0 %vm18882_vm15, %v18881_v6  ;;  %vm18890_vm15 = vmmov %vm18874_vm0 }
 0x3d3   : > { %1600 = vmatprep.mubr.bf16.mxu0 %v18868_v19 }
 0x3da   : > { %7386 = vmatmul.mubr.msk.bf16.gmra.mrb[32].mxu0 %vm18874_vm0, %v1423_v33  ;;  %v18911_v33 = vld [vmem:[#allocation39_spill] sm:$0xff] }
 0x3db   : > { %1610 = vmatprep.mubr.bf16.mxu0 %v18868_v19 }
 0x3e2   : > { %7387 = vmatmul.mubr.msk.bf16.gmra.mrb[36].mxu0 %vm18884_vm2, %v18883_v59  ;;  %vm18893_vm2 = vmmov %vm18874_vm0 }
 0x3e3   : > { %1620 = vmatprep.mubr.bf16.mxu0 %v18868_v19 }
 0x3ea   : > { %7388 = vmatmul.mubr.msk.bf16.gmra.mrb[40].mxu0 %vm18886_vm14, %v18885_v16  ;;  %vm18895_vm14 = vmmov %vm18874_vm0 }
 0x3eb   : > { %1630 = vmatprep.mubr.bf16.mxu0 %v18868_v19 }
 0x3f2   : > { %7389 = vmatmul.mubr.msk.bf16.gmra.mrb[44].mxu0 %vm18888_vm1, %v18887_v0  ;;  %vm18897_vm1 = vmmov %vm18874_vm0 }
 0x3f3   : > { %1640 = vmatprep.mubr.bf16.mxu0 %v18868_v19 }
 0x3fa   : > { %7390 = vmatmul.mubr.msk.bf16.gmra.mrb[48].mxu0 %vm18890_vm15, %v18889_v18  ;;  %vm18910_vm15 = vnez %v18909_v60  ;;  %v18913_v18 = vld [vmem:[#allocation40_spill] sm:$0xff] }
 0x3fb   : > { %1650 = vmatprep.mubr.bf16.mxu0 %v18868_v19 }
 0x402   : > { %7391 = vmatmul.mubr.msk.bf16.gmra.mrb[52].mxu0 %vm18874_vm0, %v18891_v15  ;;  %vm18912_vm0 = vnez %v18911_v33 }
 0x403   : > { %1660 = vmatprep.mubr.bf16.mxu0 %v18868_v19 }
 0x40a   : > { %7392 = vmatmul.mubr.msk.bf16.gmra.mrb[56].mxu0 %vm18893_vm2, %v18892_v55  ;;  %vm18914_vm2 = vnez %v18913_v18 }
 0x40b   : > { %1670 = vmatprep.mubr.bf16.mxu0 %v18868_v19 }
 0x412   : > { %7393 = vmatmul.mubr.msk.bf16.gmra.mrb[60].mxu0 %vm18895_vm14, %v18894_v14 }
 0x413   : > { %1680 = vmatprep.mubr.bf16.mxu0 %v18868_v19  ;;  %v18988_v19 = vld [vmem:[#allocation83_spill] sm:$0xff] }
 0x41a   : > { %7394 = vmatmul.mubr.msk.bf16.gmra.mrb[64].mxu0 %vm18897_vm1, %v1439_v4  ;;  %v18915_v4 = vld [vmem:[#allocation41_spill] sm:$0xff] }
 0x41b   : > { %3071 = vmatprep.mubr.bf16.mxu0 %v3036_v62  ;;  %vm18916_vm14 = vnez %v18915_v4 }
 0x46d   : > { %v1393_v23 = vpop.f32.mrb[0].mxu0 }
 0x46e   : > { %1400 = vst [vmem:[%s10507_s27] sm:$0xf] %v1393_v23  ;;  %v1395_v31 = vpop.f32.mrb[1].mxu0 }
 0x46f   : > { %1401 = vst [vmem:[%s10507_s27 + $0x8] sm:$0xf] %v1395_v31  ;;  %v1397_v12 = vpop.f32.mrb[2].mxu0 }
 0x470   : > { %v1398_v63 = vpop.f32.mrb[3].mxu0  ;;  %v18917_v12 = vld [vmem:[#allocation42_spill] sm:$0xff] }
 0x471   : > { %vm18918_vm1 = vnez %v18917_v12 }
 0x475   : > { %v1532_v27 = vpop.f32.mrb[4].mxu0 }
 0x476   : > { %v1534_v51 = vpop.f32.mrb[5].mxu0  ;;  %v10513_v24 = vsel %vm9063_vm3, %v1532_v27, -1e+30 }
 0x477   : > { %v1536_v3 = vpop.f32.mrb[6].mxu0  ;;  %v10521_v22 = vsel %vm9075_vm5, %v1534_v51, -1e+30 }
 0x478   : > { %v1538_v52 = vpop.f32.mrb[7].mxu0  ;;  %v10531_v5 = vsel %vm9087_vm7, %v1536_v3, -1e+30  ;;  %v18919_v3 = vld [vmem:[#allocation43_spill] sm:$0xff] }
 0x479   : > { %v10541_v20 = vsel %vm9099_vm9, %v1538_v52, -1e+30 }
 0x47d   : > { %v1542_v35 = vpop.f32.mrb[8].mxu0 }
 0x47e   : > { %v10517_v44 = vsel %vm9069_vm4, %v1542_v35, -1e+30  ;;  %v1544_v17 = vpop.f32.mrb[9].mxu0 }
 0x47f   : > { %v1755_v53 = vmax.f32 %v10513_v24, %v10517_v44  ;;  %v10527_v42 = vsel %vm9081_vm6, %v1544_v17, -1e+30  ;;  %v1546_v38 = vpop.f32.mrb[10].mxu0 }
 0x480   : > { %v1792_v41 = vmax.f32 %v10521_v22, %v10527_v42  ;;  %v10537_v26 = vsel %vm9093_vm8, %v1546_v38, -1e+30  ;;  %v1548_v25 = vpop.f32.mrb[11].mxu0 }
 0x481   : > { %v1756_v7 = vmax.f32 %v10531_v5, %v10537_v26  ;;  %v10547_v61 = vsel %vm9105_vm10, %v1548_v25, -1e+30 }
 0x482   : > { %v1793_v47 = vmax.f32 %v10541_v20, %v10547_v61 }
 0x485   : > { %v1552_v49 = vpop.f32.mrb[12].mxu0 }
 0x486   : > { %v10553_v36 = vsel %vm9151_vm11, %v1552_v49, -1e+30  ;;  %v1554_v8 = vpop.f32.mrb[13].mxu0 }
 0x487   : > { %v10557_v11 = vsel %vm9157_vm12, %v1554_v8, -1e+30  ;;  %v1556_v50 = vpop.f32.mrb[14].mxu0  ;;  %v1757_v30 = vmax.f32 %v1755_v53, %v10553_v36  ;;  %v18921_v53 = vld [vmem:[#allocation45_spill] sm:$0xff] }
 0x488   : > { %v10562_v34 = vsel %vm9163_vm13, %v1556_v50, -1e+30  ;;  %v1558_v13 = vpop.f32.mrb[15].mxu0  ;;  %v1794_v45 = vmax.f32 %v1792_v41, %v10557_v11  ;;  %v18925_v50 = vld [vmem:[#allocation46_spill] sm:$0xff] }
 0x489   : > { %v10567_v32 = vsel %vm18910_vm15, %v1558_v13, -1e+30  ;;  %v1758_v46 = vmax.f32 %v1756_v7, %v10562_v34  ;;  %v18923_v7 = vld [vmem:[#allocation44_spill] sm:$0xff] }
 0x48a   : > { %v1795_v10 = vmax.f32 %v1793_v47, %v10567_v32 }
 0x48d   : > { %v1562_v6 = vpop.f32.mrb[16].mxu0 }
 0x48e   : > { %v10573_v59 = vsel %vm18912_vm0, %v1562_v6, -1e+30  ;;  %v1564_v16 = vpop.f32.mrb[17].mxu0 }
 0x48f   : > { %v1759_v0 = vmax.f32 %v1757_v30, %v10573_v59  ;;  %v10578_v15 = vsel %vm18914_vm2, %v1564_v16, -1e+30  ;;  %v1566_v55 = vpop.f32.mrb[18].mxu0  ;;  %vm18920_vm2 = vnez %v18919_v3 }
 0x490   : > { %v1796_v14 = vmax.f32 %v1794_v45, %v10578_v15  ;;  %v10583_v62 = vsel %vm18916_vm14, %v1566_v55, -1e+30  ;;  %v1568_v23 = vpop.f32.mrb[19].mxu0  ;;  %vm18922_vm14 = vnez %v18921_v53 }
 0x491   : > { %v1760_v31 = vmax.f32 %v1758_v46, %v10583_v62  ;;  %v10588_v63 = vsel %vm18918_vm1, %v1568_v23, -1e+30  ;;  %vm18924_vm1 = vnez %v18923_v7  ;;  %v18927_v46 = vld [vmem:[#allocation47_spill] sm:$0xff] }
 0x492   : > { %v1797_v27 = vmax.f32 %v1795_v10, %v10588_v63 }
 0x495   : > { %v1572_v51 = vpop.f32.mrb[20].mxu0 }
 0x496   : > { %v10593_v52 = vsel %vm18920_vm2, %v1572_v51, -1e+30  ;;  %v1574_v35 = vpop.f32.mrb[21].mxu0  ;;  %vm18926_vm2 = vnez %v18925_v50 }
 0x497   : > { %v1761_v17 = vmax.f32 %v1759_v0, %v10593_v52  ;;  %v10598_v38 = vsel %vm18922_vm14, %v1574_v35, -1e+30  ;;  %v1576_v41 = vpop.f32.mrb[22].mxu0  ;;  %vm18928_vm14 = vnez %v18927_v46  ;;  %v18929_v0 = vld [vmem:[#allocation48_spill] sm:$0xff] }
 0x498   : > { %v1798_v25 = vmax.f32 %v1796_v14, %v10598_v38  ;;  %v10603_v47 = vsel %vm18924_vm1, %v1576_v41, -1e+30  ;;  %v1578_v49 = vpop.f32.mrb[23].mxu0  ;;  %vm18930_vm1 = vnez %v18929_v0  ;;  %v18934_v41 = vld [vmem:[#allocation51_spill] sm:$0xff]  ;;  %v18937_v0 = vld [vmem:[#allocation53_spill] sm:$0xff] }
 0x499   : > { %v1762_v8 = vmax.f32 %v1760_v31, %v10603_v47  ;;  %v10608_v30 = vsel %vm18926_vm2, %v1578_v49, -1e+30  ;;  %v18932_v31 = vld [vmem:[#allocation49_spill] sm:$0xff] }
 0x49a   : > { %v1799_v13 = vmax.f32 %v1797_v27, %v10608_v30  ;;  %vm18933_vm2 = vnez %v18932_v31  ;;  %v18939_v31 = vld [vmem:[#allocation54_spill] sm:$0xff] }
 0x49d   : > { %v1582_v45 = vpop.f32.mrb[24].mxu0 }
 0x49e   : > { %v10613_v10 = vsel %vm18928_vm14, %v1582_v45, -1e+30  ;;  %v1584_v6 = vpop.f32.mrb[25].mxu0  ;;  %vm18935_vm14 = vnez %v18934_v41  ;;  %v18942_v41 = vld [vmem:[#allocation55_spill] sm:$0xff] }
 0x49f   : > { %v1763_v16 = vmax.f32 %v1761_v17, %v10613_v10  ;;  %v10618_v55 = vsel %vm18930_vm1, %v1584_v6, -1e+30  ;;  %v1586_v14 = vpop.f32.mrb[26].mxu0  ;;  %vm18938_vm1 = vnez %v18937_v0  ;;  %v18944_v0 = vld [vmem:[#allocation57_spill] sm:$0xff] }
 0x4a0   : > { %18931 = vst [vmem:[#allocation106_spill] sm:$0xff] %v10618_v55  ;;  %v1800_v23 = vmax.f32 %v1798_v25, %v10618_v55  ;;  %v10623_v51 = vsel %vm18933_vm2, %v1586_v14, -1e+30  ;;  %v1588_v27 = vpop.f32.mrb[27].mxu0  ;;  %vm18940_vm2 = vnez %v18939_v31  ;;  %v18947_v31 = vld [vmem:[#allocation59_spill] sm:$0xff] }
 0x4a1   : > { %v1764_v35 = vmax.f32 %v1762_v8, %v10623_v51  ;;  %v10628_v49 = vsel %vm18935_vm14, %v1588_v27, -1e+30  ;;  %vm18943_vm14 = vnez %v18942_v41  ;;  %v18949_v41 = vld [vmem:[#allocation60_spill] sm:$0xff] }
 0x4a2   : > { %18936 = vst [vmem:[#allocation110_spill] sm:$0xff] %v10628_v49  ;;  %v1801_v17 = vmax.f32 %v1799_v13, %v10628_v49 }
 0x4a5   : > { %v1592_v45 = vpop.f32.mrb[28].mxu0 }
 0x4a6   : > { %v10633_v6 = vsel %vm18938_vm1, %v1592_v45, -1e+30  ;;  %v1594_v46 = vpop.f32.mrb[29].mxu0  ;;  %vm18945_vm1 = vnez %v18944_v0  ;;  %v18952_v0 = vld [vmem:[#allocation61_spill] sm:$0xff] }
 0x4a7   : > { %v1765_v25 = vmax.f32 %v1763_v16, %v10633_v6  ;;  %v10638_v14 = vsel %vm18940_vm2, %v1594_v46, -1e+30  ;;  %v1596_v50 = vpop.f32.mrb[30].mxu0  ;;  %vm18948_vm2 = vnez %v18947_v31  ;;  %v18954_v31 = vld [vmem:[#allocation63_spill] sm:$0xff] }
 0x4a8   : > { %18941 = vst [vmem:[#allocation88_spill] sm:$0xff] %v10638_v14  ;;  %v1802_v8 = vmax.f32 %v1800_v23, %v10638_v14  ;;  %v10643_v27 = vsel %vm18943_vm14, %v1596_v50, -1e+30  ;;  %v1598_v13 = vpop.f32.mrb[31].mxu0  ;;  %vm18950_vm14 = vnez %v18949_v41  ;;  %v18957_v41 = vld [vmem:[#allocation65_spill] sm:$0xff] }
 0x4a9   : > { %v1766_v7 = vmax.f32 %v1764_v35, %v10643_v27  ;;  %v10648_v45 = vsel %vm18945_vm1, %v1598_v13, -1e+30  ;;  %vm18953_vm1 = vnez %v18952_v0  ;;  %v18959_v0 = vld [vmem:[#allocation66_spill] sm:$0xff] }
 0x4aa   : > { %18946 = vst [vmem:[#allocation89_spill] sm:$0xff] %v10648_v45  ;;  %v1803_v16 = vmax.f32 %v1801_v17, %v10648_v45 }
 0x4ad   : > { %v1602_v53 = vpop.f32.mrb[32].mxu0 }
 0x4ae   : > { %v10653_v46 = vsel %vm18948_vm2, %v1602_v53, -1e+30  ;;  %v1604_v3 = vpop.f32.mrb[33].mxu0  ;;  %vm18955_vm2 = vnez %v18954_v31  ;;  %v18962_v31 = vld [vmem:[#allocation67_spill] sm:$0xff] }
 0x4af   : > { %v1767_v23 = vmax.f32 %v1765_v25, %v10653_v46  ;;  %v10658_v50 = vsel %vm18950_vm14, %v1604_v3, -1e+30  ;;  %v1606_v12 = vpop.f32.mrb[34].mxu0  ;;  %vm18958_vm14 = vnez %v18957_v41  ;;  %v18964_v41 = vld [vmem:[#allocation69_spill] sm:$0xff] }
 0x4b0   : > { %18951 = vst [vmem:[#allocation91_spill] sm:$0xff] %v10658_v50  ;;  %v1804_v35 = vmax.f32 %v1802_v8, %v10658_v50  ;;  %v10663_v13 = vsel %vm18953_vm1, %v1606_v12, -1e+30  ;;  %v1608_v17 = vpop.f32.mrb[35].mxu0  ;;  %vm18960_vm1 = vnez %v18959_v0  ;;  %v18967_v0 = vld [vmem:[#allocation71_spill] sm:$0xff] }
 0x4b1   : > { %v1768_v4 = vmax.f32 %v1766_v7, %v10663_v13  ;;  %v10668_v53 = vsel %vm18955_vm2, %v1608_v17, -1e+30  ;;  %vm18963_vm2 = vnez %v18962_v31  ;;  %v18969_v31 = vld [vmem:[#allocation73_spill] sm:$0xff] }
 0x4b2   : > { %18956 = vst [vmem:[#allocation92_spill] sm:$0xff] %v10668_v53  ;;  %v1805_v25 = vmax.f32 %v1803_v16, %v10668_v53 }
 0x4b5   : > { %v1612_v18 = vpop.f32.mrb[36].mxu0 }
 0x4b6   : > { %v10673_v3 = vsel %vm18958_vm14, %v1612_v18, -1e+30  ;;  %v1614_v33 = vpop.f32.mrb[37].mxu0  ;;  %vm18965_vm14 = vnez %v18964_v41  ;;  %v18972_v41 = vld [vmem:[#allocation72_spill] sm:$0xff] }
 0x4b7   : > { %v1769_v8 = vmax.f32 %v1767_v23, %v10673_v3  ;;  %v10678_v12 = vsel %vm18960_vm1, %v1614_v33, -1e+30  ;;  %v1616_v60 = vpop.f32.mrb[38].mxu0  ;;  %vm18968_vm1 = vnez %v18967_v0  ;;  %v18974_v0 = vld [vmem:[#allocation74_spill] sm:$0xff] }
 0x4b8   : > { %18961 = vst [vmem:[#allocation95_spill] sm:$0xff] %v10678_v12  ;;  %v1806_v7 = vmax.f32 %v1804_v35, %v10678_v12  ;;  %v10683_v17 = vsel %vm18963_vm2, %v1616_v60, -1e+30  ;;  %v1618_v16 = vpop.f32.mrb[39].mxu0  ;;  %vm18970_vm2 = vnez %v18969_v31  ;;  %v18977_v31 = vld [vmem:[#allocation77_spill] sm:$0xff] }
 0x4b9   : > { %v1770_v58 = vmax.f32 %v1768_v4, %v10683_v17  ;;  %v10688_v18 = vsel %vm18965_vm14, %v1618_v16, -1e+30  ;;  %vm18973_vm14 = vnez %v18972_v41  ;;  %v18979_v41 = vld [vmem:[#allocation79_spill] sm:$0xff] }
 0x4ba   : > { %18966 = vst [vmem:[#allocation50_spill] sm:$0xff] %v10688_v18  ;;  %v1807_v23 = vmax.f32 %v1805_v25, %v10688_v18  ;;  %v19009_v18 = vld [vmem:[#allocation96_spill] sm:$0xff] }
 0x4bd   : > { %v1622_v40 = vpop.f32.mrb[40].mxu0 }
 0x4be   : > { %v10693_v33 = vsel %vm18968_vm1, %v1622_v40, -1e+30  ;;  %v1624_v28 = vpop.f32.mrb[41].mxu0  ;;  %vm18975_vm1 = vnez %v18974_v0  ;;  %v18982_v0 = vld [vmem:[#allocation78_spill] sm:$0xff] }
 0x4bf   : > { %v1771_v35 = vmax.f32 %v1769_v8, %v10693_v33  ;;  %v10698_v60 = vsel %vm18970_vm2, %v1624_v28, -1e+30  ;;  %v1626_v54 = vpop.f32.mrb[42].mxu0  ;;  %vm18978_vm2 = vnez %v18977_v31 }
 0x4c0   : > { %18971 = vst [vmem:[#allocation52_spill] sm:$0xff] %v10698_v60  ;;  %v1808_v4 = vmax.f32 %v1806_v7, %v10698_v60  ;;  %v10703_v16 = vsel %vm18973_vm14, %v1626_v54, -1e+30  ;;  %v1628_v25 = vpop.f32.mrb[43].mxu0  ;;  %vm18980_vm14 = vnez %v18979_v41 }
 0x4c1   : > { %v1772_v9 = vmax.f32 %v1770_v58, %v10703_v16  ;;  %v10708_v40 = vsel %vm18975_vm1, %v1628_v25, -1e+30  ;;  %vm18983_vm1 = vnez %v18982_v0 }
 0x4c2   : > { %18976 = vst [vmem:[#allocation56_spill] sm:$0xff] %v10708_v40  ;;  %v1809_v8 = vmax.f32 %v1807_v23, %v10708_v40 }
 0x4c5   : > { %v1632_v56 = vpop.f32.mrb[44].mxu0 }
 0x4c6   : > { %v10713_v28 = vsel %vm18978_vm2, %v1632_v56, -1e+30  ;;  %v1634_v29 = vpop.f32.mrb[45].mxu0  ;;  %v18984_v56 = vld [vmem:[#allocation81_spill] sm:$0xff] }
 0x4c7   : > { %v1773_v7 = vmax.f32 %v1771_v35, %v10713_v28  ;;  %v10718_v54 = vsel %vm18980_vm14, %v1634_v29, -1e+30  ;;  %v1636_v21 = vpop.f32.mrb[46].mxu0  ;;  %vm18985_vm2 = vnez %v18984_v56  ;;  %vm18987_vm14 = vnez %v18986_v1  ;;  %v18992_v1 = vld [vmem:[#allocation84_spill] sm:$0xff] }
 0x4c8   : > { %18981 = vst [vmem:[#allocation70_spill] sm:$0xff] %v10718_v54  ;;  %v1810_v58 = vmax.f32 %v1808_v4, %v10718_v54  ;;  %v10723_v25 = vsel %vm18983_vm1, %v1636_v21, -1e+30  ;;  %v1638_v23 = vpop.f32.mrb[47].mxu0  ;;  %vm18989_vm1 = vnez %v18988_v19  ;;  %v18995_v54 = vld [vmem:[#allocation86_spill] sm:$0xff]  ;;  %v18998_v19 = vld [vmem:[#allocation87_spill] sm:$0xff] }
 0x4c9   : > { %v1774_v39 = vmax.f32 %v1772_v9, %v10723_v25  ;;  %vm18996_vm0 = vnez %v18995_v54 }
 0x4cd   : > { %v1642_v31 = vpop.f32.mrb[48].mxu0 }
 0x4ce   : > { %v10728_v57 = vsel %vm18985_vm2, %v1642_v31, -1e+30  ;;  %v1644_v35 = vpop.f32.mrb[49].mxu0  ;;  %vm18991_vm2 = vnez %v18990_v43 }
 0x4cf   : > { %v1775_v41 = vmax.f32 %v1773_v7, %v10728_v57  ;;  %v1646_v29 = vpop.f32.mrb[50].mxu0 }
 0x4d0   : > { %v10733_v2 = vsel %vm18987_vm14, %v1646_v29, -1e+30  ;;  %v1648_v4 = vpop.f32.mrb[51].mxu0  ;;  %vm18993_vm14 = vnez %v18992_v1 }
 0x4d1   : > { %v1776_v21 = vmax.f32 %v1774_v39, %v10733_v2  ;;  %v10747_v29 = vsel %vm18993_vm14, %v1638_v23, -1e+30  ;;  %v10751_v39 = vsel %vm18996_vm0, %v1644_v35, -1e+30  ;;  %v19004_v23 = vld [vmem:[#allocation93_spill] sm:$0xff] }
 0x4d2   : > { %18994 = vst [vmem:[#allocation75_spill] sm:$0xff] %v10747_v29  ;;  %18997 = vst [vmem:[#allocation58_spill] sm:$0xff] %v10751_v39  ;;  %v1812_v1 = vmax.f32 %v1810_v58, %v10751_v39  ;;  %vm19005_vm14 = vnez %v19004_v23  ;;  %v19012_v39 = vld [vmem:[#allocation97_spill] sm:$0xff] }
 0x4d5   : > { %v1652_v0 = vpop.f32.mrb[52].mxu0 }
 0x4d6   : > { %v10738_v9 = vsel %vm18989_vm1, %v1652_v0, -1e+30  ;;  %v1654_v37 = vpop.f32.mrb[53].mxu0  ;;  %vm18999_vm1 = vnez %v18998_v19  ;;  %v19007_v19 = vld [vmem:[#allocation94_spill] sm:$0xff] }
 0x4d7   : > { %v1777_v31 = vmax.f32 %v1775_v41, %v10738_v9  ;;  %v1656_v56 = vpop.f32.mrb[54].mxu0  ;;  %v10756_v40 = vsel %vm18999_vm1, %v1648_v4, -1e+30  ;;  %v19001_v41 = vld [vmem:[#allocation90_spill] sm:$0xff]  ;;  %vm19008_vm1 = vnez %v19007_v19  ;;  %v19014_v19 = vld [vmem:[#allocation99_spill] sm:$0xff] }
 0x4d8   : > { %v10743_v7 = vsel %vm18991_vm2, %v1656_v56, -1e+30  ;;  %v1658_v48 = vpop.f32.mrb[55].mxu0  ;;  %19000 = vst [vmem:[#allocation62_spill] sm:$0xff] %v10756_v40  ;;  %vm19002_vm15 = vnez %v19001_v41  ;;  %v1811_v56 = vmax.f32 %v1809_v8, %v10747_v29 }
 0x4d9   : > { %v1778_v0 = vmax.f32 %v1776_v21, %v10743_v7  ;;  %v10760_v43 = vsel %vm19002_vm15, %v1654_v37, -1e+30  ;;  %v10766_v60 = vsel %vm19005_vm14, %v1658_v48, -1e+30  ;;  %vm19010_vm15 = vnez %v19009_v18  ;;  %v19017_v18 = vld [vmem:[#allocation101_spill] sm:$0xff] }
 0x4da   : > { %19003 = vst [vmem:[#allocation76_spill] sm:$0xff] %v10760_v43  ;;  %19006 = vst [vmem:[#allocation80_spill] sm:$0xff] %v10766_v60  ;;  %v1813_v54 = vmax.f32 %v1811_v56, %v10756_v40  ;;  %v1814_v21 = vmax.f32 %v1812_v1, %v10760_v43  ;;  %vm19013_vm14 = vnez %v19012_v39  ;;  %v19019_v39 = vld [vmem:[#allocation102_spill] sm:$0xff] }
 0x4dc   : > { %v1815_v48 = vmax.f32 %v1813_v54, %v10766_v60 }
 0x4dd   : > { %v1662_v35 = vpop.f32.mrb[56].mxu0 }
 0x4de   : > { %v10772_v4 = vsel %vm19008_vm1, %v1662_v35, -1e+30  ;;  %v1664_v41 = vpop.f32.mrb[57].mxu0  ;;  %vm19015_vm1 = vnez %v19014_v19  ;;  %v19022_v19 = vld [vmem:[#allocation103_spill] sm:$0xff] }
 0x4df   : > { %v1779_v37 = vmax.f32 %v1777_v31, %v10772_v4  ;;  %v10777_v8 = vsel %vm19010_vm15, %v1664_v41, -1e+30  ;;  %v1666_v58 = vpop.f32.mrb[58].mxu0  ;;  %vm19018_vm15 = vnez %v19017_v18  ;;  %v19024_v18 = vld [vmem:[#allocation105_spill] sm:$0xff] }
 0x4e0   : > { %19011 = vst [vmem:[#allocation64_spill] sm:$0xff] %v10777_v8  ;;  %v1816_v23 = vmax.f32 %v1814_v21, %v10777_v8  ;;  %v10783_v56 = vsel %vm19013_vm14, %v1666_v58, -1e+30  ;;  %v1668_v1 = vpop.f32.mrb[59].mxu0  ;;  %vm19020_vm14 = vnez %v19019_v39  ;;  %v19027_v39 = vld [vmem:[#allocation107_spill] sm:$0xff] }
 0x4e1   : > { %v1780_v35 = vmax.f32 %v1778_v0, %v10783_v56  ;;  %v10788_v43 = vsel %vm19015_vm1, %v1668_v1, -1e+30  ;;  %vm19023_vm1 = vnez %v19022_v19  ;;  %v19029_v19 = vld [vmem:[#allocation108_spill] sm:$0xff] }
 0x4e2   : > { %19016 = vst [vmem:[#allocation68_spill] sm:$0xff] %v10788_v43  ;;  %v1817_v31 = vmax.f32 %v1815_v48, %v10788_v43 }
 0x4e5   : > { %v1672_v41 = vpop.f32.mrb[60].mxu0 }
 0x4e6   : > { %v10793_v40 = vsel %vm19018_vm15, %v1672_v41, -1e+30  ;;  %v1674_v54 = vpop.f32.mrb[61].mxu0  ;;  %vm19025_vm15 = vnez %v19024_v18  ;;  %v19032_v18 = vld [vmem:[#allocation109_spill] sm:$0xff] }
 0x4e7   : > { %v1781_v21 = vmax.f32 %v1779_v37, %v10793_v40  ;;  %v10798_v58 = vsel %vm19020_vm14, %v1674_v54, -1e+30  ;;  %v1676_v60 = vpop.f32.mrb[62].mxu0  ;;  %vm19028_vm14 = vnez %v19027_v39  ;;  %v19034_v39 = vld [vmem:[#allocation111_spill] sm:$0xff] }
 0x4e8   : > { %19021 = vst [vmem:[#allocation98_spill] sm:$0xff] %v10798_v58  ;;  %v1818_v0 = vmax.f32 %v1816_v23, %v10798_v58  ;;  %v10803_v1 = vsel %vm19023_vm1, %v1676_v60, -1e+30  ;;  %v1678_v48 = vpop.f32.mrb[63].mxu0  ;;  %vm19030_vm1 = vnez %v19029_v19 }
 0x4e9   : > { %v1782_v29 = vmax.f32 %v1780_v35, %v10803_v1  ;;  %v10808_v41 = vsel %vm19025_vm15, %v1678_v48, -1e+30  ;;  %vm19033_vm15 = vnez %v19032_v18 }
 0x4ea   : > { %19026 = vst [vmem:[#allocation104_spill] sm:$0xff] %v10808_v41  ;;  %v1819_v37 = vmax.f32 %v1817_v31, %v10808_v41 }
 0x4ed   : > { %v1682_v43 = vpop.f32.mrb[64].mxu0 }
 0x4ee   : > { %v10813_v54 = vsel %vm19028_vm14, %v1682_v43, -1e+30  ;;  %v1684_v8 = vpop.f32.mrb[65].mxu0  ;;  %vm19035_vm14 = vnez %v19034_v39 }
 0x4ef   : > { %v1783_v23 = vmax.f32 %v1781_v21, %v10813_v54  ;;  %v10818_v60 = vsel %vm19030_vm1, %v1684_v8, -1e+30  ;;  %v1686_v58 = vpop.f32.mrb[66].mxu0  ;;  %vm19146_vm1 = vcmask 31744  }
 0x4f0   : > { %19031 = vst [vmem:[#allocation100_spill] sm:$0xff] %v10818_v60  ;;  %v1820_v35 = vmax.f32 %v1818_v0, %v10818_v60  ;;  %v10823_v48 = vsel %vm19033_vm15, %v1686_v58, -1e+30  ;;  %v1688_v31 = vpop.f32.mrb[67].mxu0  ;;  %vm19147_vm0 = vmmov %vm19146_vm1 }
 0x4f1   : > { %v1784_v41 = vmax.f32 %v1782_v29, %v10823_v48  ;;  %v10828_v43 = vsel %vm19035_vm14, %v1688_v31, -1e+30  ;;  %vm19143_vm14 = vcmask 1041408   ;;  %vm19148_vm2 = vmmov %vm19147_vm0 }
 0x4f2   : > { %v1821_v21 = vmax.f32 %v1819_v37, %v10828_v43  ;;  %vm19144_vm15 = vmmov %vm19143_vm14 }
 0x4f3   : > { %v1785_v12 = vmax.f32 %v1783_v23, %v1784_v41 }
 0x4f4   : > { %v1822_v19 = vmax.f32 %v1820_v35, %v1821_v21 }
 0x4f5   : > { %v1786_v8 = vrot.slane %v1785_v12, 4 }
 0x4f6   : > { %v1823_v53 = vrot.slane %v1822_v19, 4 }
 0x4f7   : > { %v1787_v50 = vmax.f32 %v1785_v12, %v1786_v8 }
 0x4f8   : > { %v1824_v45 = vmax.f32 %v1822_v19, %v1823_v53 }
 0x4f9   : > { %v1788_v0 = vrot.slane %v1787_v50, 2 }
 0x4fa   : > { %v1825_v60 = vrot.slane %v1824_v45, 2 }
 0x4fb   : > { %v1789_v18 = vmax.f32 %v1787_v50, %v1788_v0  ;;  %v19044_v0 = vld [vmem:[#allocation50_spill] sm:$0xff] }
 0x4fc   : > { %v1826_v58 = vmax.f32 %v1824_v45, %v1825_v60 }
 0x4fd   : > { %v1790_v14 = vrot.slane %v1789_v18, 1 }
 0x4fe   : > { %v1827_v49 = vrot.slane %v1826_v58, 1 }
 0x4ff   : > { %v10831_v55 = vmax.f32 %v1789_v18, %v1790_v14 }
 0x500   : > { %v10833_v29 = vmax.f32 %v1826_v58, %v1827_v49 }
 0x501   : > { %v1829_v31 = vsub.f32 %v10513_v24, %v10831_v55  ;;  %v1831_v41 = vsub.f32 %v10531_v5, %v10831_v55  ;;  %v1833_v12 = vsub.f32 %v10517_v44, %v10831_v55  ;;  %v1835_v19 = vsub.f32 %v10537_v26, %v10831_v55 }
 0x502   : > { %v1837_v45 = vsub.f32 %v10553_v36, %v10831_v55  ;;  %v1839_v14 = vsub.f32 %v10562_v34, %v10831_v55  ;;  %v1841_v49 = vsub.f32 %v10573_v59, %v10831_v55  ;;  %v1843_v24 = vsub.f32 %v10583_v62, %v10831_v55  ;;  %v19051_v62 = vld [vmem:[#allocation68_spill] sm:$0xff] }
 0x503   : > { %v1845_v5 = vsub.f32 %v10593_v52, %v10831_v55  ;;  %v1847_v44 = vsub.f32 %v10603_v47, %v10831_v55  ;;  %v1849_v26 = vsub.f32 %v10613_v10, %v10831_v55  ;;  %v1851_v36 = vsub.f32 %v10623_v51, %v10831_v55  ;;  %v19045_v47 = vld [vmem:[#allocation52_spill] sm:$0xff] }
 0x504   : > { %v1853_v34 = vsub.f32 %v10633_v6, %v10831_v55  ;;  %v1893_v37 = vmul.f32 1.442695, %v1829_v31  ;;  %v1897_v8 = vmul.f32 1.442695, %v1831_v41  ;;  %v1901_v18 = vmul.f32 1.442695, %v1833_v12 }
 0x505   : > { %v1905_v23 = vmul.f32 1.442695, %v1835_v19  ;;  %v1909_v60 = vmul.f32 1.442695, %v1837_v45  ;;  %v1913_v53 = vmul.f32 1.442695, %v1839_v14  ;;  %v19055_v39 = vsub.f32 %v10643_v27, %v10831_v55 }
 0x506   : > { %7686 = vpow2.f32 %v1893_v37  ;;  %v1917_v35 = vmul.f32 1.442695, %v1841_v49  ;;  %v1921_v50 = vmul.f32 1.442695, %v1843_v24  ;;  %v1925_v45 = vmul.f32 1.442695, %v1845_v5 }
 0x507   : > { %7688 = vpow2.f32 %v1897_v8  ;;  %v19037_v5 = vld [vmem:[#allocation110_spill] sm:$0xff]  ;;  %v1929_v21 = vmul.f32 1.442695, %v1847_v44  ;;  %v19038_v49 = vld [vmem:[#allocation88_spill] sm:$0xff]  ;;  %v19039_v24 = vld [vmem:[#allocation89_spill] sm:$0xff]  ;;  %v19058_v27 = vsub.f32 %v10673_v3, %v10831_v55  ;;  %v19062_v3 = vsub.f32 %v10541_v20, %v10833_v29 }
 0x508   : > { %7690 = vpow2.f32 %v1901_v18  ;;  %v19041_v37 = vld [vmem:[#allocation91_spill] sm:$0xff]  ;;  %v19047_v31 = vld [vmem:[#allocation56_spill] sm:$0xff]  ;;  %v19048_v8 = vld [vmem:[#allocation70_spill] sm:$0xff]  ;;  %v1937_v12 = vmul.f32 1.442695, %v1851_v36 }
 0x509   : > { %7692 = vpow2.f32 %v1905_v23  ;;  %v19036_v23 = vld [vmem:[#allocation106_spill] sm:$0xff]  ;;  %v19043_v44 = vld [vmem:[#allocation95_spill] sm:$0xff]  ;;  %v1941_v10 = vmul.f32 1.442695, %v1853_v34  ;;  %v19053_v51 = vld [vmem:[#allocation104_spill] sm:$0xff] }
 0x50a   : > { %7694 = vpow2.f32 %v1909_v60  ;;  %v19042_v60 = vld [vmem:[#allocation92_spill] sm:$0xff]  ;;  %v1945_v41 = vmul.f32 1.442695, %v19055_v39  ;;  %v1957_v39 = vmul.f32 1.442695, %v19058_v27 }
 0x50b   : > { %7696 = vpow2.f32 %v1913_v53  ;;  %v19054_v19 = vld [vmem:[#allocation100_spill] sm:$0xff] }
 0x50c   : > { %7698 = vpow2.f32 %v1917_v35 }
 0x50d   : > { %7700 = vpow2.f32 %v1921_v50  ;;  %v1933_v50 = vmul.f32 1.442695, %v1849_v26 }
 0x50e   : > { %7702 = vpow2.f32 %v1925_v45  ;;  %v19050_v45 = vld [vmem:[#allocation64_spill] sm:$0xff] }
 0x50f   : > { %7704 = vpow2.f32 %v1929_v21 }
 0x510   : > { %v10911_v18 = vpop.eup %7686  ;;  %7706 = vpow2.f32 %v1933_v50 }
 0x511   : > { %v10919_v53 = vpop.eup %7688  ;;  %7708 = vpow2.f32 %v1937_v12  ;;  %v19057_v12 = vsub.f32 %v10663_v13, %v10831_v55 }
 0x512   : > { %v2021_v14 = vadd.f32 %v10919_v53, %v10911_v18  ;;  %v10933_v35 = vpop.eup %7690  ;;  %7710 = vpow2.f32 %v1941_v10 }
 0x513   : > { %19040 = vst [vmem:[#allocation9_spill] sm:$0xff] %v10933_v35  ;;  %v10946_v52 = vpop.eup %7692  ;;  %7712 = vpow2.f32 %v1945_v41  ;;  %v19060_v41 = vsub.f32 %v10521_v22, %v10833_v29  ;;  %v19065_v22 = vsub.f32 %v10527_v42, %v10833_v29 }
 0x514   : > { %v2022_v58 = vadd.f32 %v10933_v35, %v2021_v14  ;;  %19046 = vst [vmem:[#allocation10_spill] sm:$0xff] %v10946_v52  ;;  %v10956_v59 = vpop.eup %7694 }
 0x515   : > { %19049 = vst [vmem:[#allocation11_spill] sm:$0xff] %v10956_v59  ;;  %v10971_v21 = vpop.eup %7696  ;;  %v1895_v13 = vmul.f32 1.442695, %v19060_v41 }
 0x516   : > { %v2023_v14 = vadd.f32 %v10946_v52, %v2022_v58  ;;  %v19052_v58 = vld [vmem:[#allocation98_spill] sm:$0xff]  ;;  %v19056_v52 = vsub.f32 %v10653_v46, %v10831_v55  ;;  %v19059_v46 = vsub.f32 %v10683_v17, %v10831_v55 }
 0x518   : > { %v2024_v26 = vadd.f32 %v10956_v59, %v2023_v14  ;;  %v10980_v14 = vpop.eup %7698  ;;  %v1949_v36 = vmul.f32 1.442695, %v19056_v52  ;;  %v1961_v52 = vmul.f32 1.442695, %v19059_v46 }
 0x519   : > { %v10986_v59 = vpop.eup %7700 }
 0x51a   : > { %v2025_v34 = vadd.f32 %v10971_v21, %v2024_v26  ;;  %v10992_v35 = vpop.eup %7702  ;;  %v1953_v26 = vmul.f32 1.442695, %v19057_v12  ;;  %7714 = vpow2.f32 %v1949_v36  ;;  %v19063_v36 = vsub.f32 %v10693_v33, %v10831_v55 }
 0x51b   : > { %v11001_v10 = vpop.eup %7704  ;;  %v19068_v33 = vsub.f32 %v10547_v61, %v10833_v29 }
 0x51c   : > { %v2026_v50 = vadd.f32 %v10980_v14, %v2025_v34  ;;  %v11010_v12 = vpop.eup %7706  ;;  %7716 = vpow2.f32 %v1953_v26  ;;  %v1965_v27 = vmul.f32 1.442695, %v19063_v36  ;;  %v19066_v26 = vsub.f32 %v10703_v16, %v10831_v55 }
 0x51d   : > { %19061 = vst [vmem:[#allocation12_spill] sm:$0xff] %v11010_v12  ;;  %7718 = vpow2.f32 %v1957_v39  ;;  %v11019_v46 = vpop.eup %7708  ;;  %v19071_v16 = vsub.f32 %v10557_v11, %v10833_v29 }
 0x51e   : > { %v2027_v6 = vadd.f32 %v10986_v59, %v2026_v50  ;;  %19064 = vst [vmem:[#allocation13_spill] sm:$0xff] %v11019_v46  ;;  %7720 = vpow2.f32 %v1961_v52  ;;  %v1969_v41 = vmul.f32 1.442695, %v19066_v26  ;;  %v11028_v39 = vpop.eup %7710  ;;  %v19069_v52 = vsub.f32 %v10713_v28, %v10831_v55 }
 0x51f   : > { %7722 = vpow2.f32 %v1895_v13  ;;  %19067 = vst [vmem:[#allocation14_spill] sm:$0xff] %v11028_v39  ;;  %v11037_v36 = vpop.eup %7712  ;;  %v1911_v13 = vmul.f32 1.442695, %v19071_v16  ;;  %v19073_v28 = vsub.f32 %v10567_v32, %v10833_v29  ;;  %v19076_v32 = vsub.f32 %v10733_v2, %v10831_v55 }
 0x520   : > { %v2028_v34 = vadd.f32 %v10992_v35, %v2027_v6  ;;  %v1899_v6 = vmul.f32 1.442695, %v19062_v3  ;;  %v1973_v42 = vmul.f32 1.442695, %v19069_v52  ;;  %19070 = vst [vmem:[#allocation17_spill] sm:$0xff] %v11037_v36 }
 0x522   : > { %v2029_v50 = vadd.f32 %v11001_v10, %v2028_v34  ;;  %v1903_v34 = vmul.f32 1.442695, %v19065_v22  ;;  %7724 = vpow2.f32 %v1899_v6  ;;  %v19072_v6 = vsub.f32 %v10723_v25, %v10831_v55 }
 0x523   : > { %7726 = vpow2.f32 %v1965_v27  ;;  %v1915_v22 = vmul.f32 1.442695, %v19073_v28  ;;  %v19075_v25 = vsub.f32 %v10578_v15, %v10833_v29  ;;  %v19078_v15 = vsub.f32 %v10738_v9, %v10831_v55 }
 0x524   : > { %v2030_v17 = vadd.f32 %v11010_v12, %v2029_v50  ;;  %v1907_v50 = vmul.f32 1.442695, %v19068_v33  ;;  %7728 = vpow2.f32 %v1903_v34  ;;  %v1977_v61 = vmul.f32 1.442695, %v19072_v6 }
 0x525   : > { %7730 = vpow2.f32 %v1969_v41  ;;  %v19074_v34 = vsub.f32 %v10728_v57, %v10831_v55 }
 0x526   : > { %v2031_v20 = vadd.f32 %v11019_v46, %v2030_v17  ;;  %v11046_v17 = vpop.eup %7714  ;;  %7732 = vpow2.f32 %v1907_v50  ;;  %v1985_v50 = vmul.f32 1.442695, %v19076_v32 }
 0x527   : > { %7734 = vpow2.f32 %v1973_v42  ;;  %v1981_v11 = vmul.f32 1.442695, %v19074_v34  ;;  %v11055_v41 = vpop.eup %7716  ;;  %v19077_v42 = vsub.f32 %v10588_v63, %v10833_v29  ;;  %v19080_v63 = vsub.f32 %v10743_v7, %v10831_v55 }
 0x528   : > { %v2032_v3 = vadd.f32 %v11028_v39, %v2031_v20  ;;  %7736 = vpow2.f32 %v1911_v13  ;;  %v1919_v20 = vmul.f32 1.442695, %v19075_v25  ;;  %v11060_v33 = vpop.eup %7718  ;;  %v1989_v13 = vmul.f32 1.442695, %v19078_v15 }
 0x529   : > { %7738 = vpow2.f32 %v1977_v61  ;;  %v11066_v57 = vpop.eup %7720  ;;  %v19079_v61 = vsub.f32 %v10598_v38, %v10833_v29  ;;  %v19084_v15 = vsub.f32 %v10783_v56, %v10831_v55 }
 0x52a   : > { %v2033_v27 = vadd.f32 %v11037_v36, %v2032_v3  ;;  %7740 = vpow2.f32 %v1915_v22  ;;  %v1923_v3 = vmul.f32 1.442695, %v19077_v42  ;;  %v11071_v16 = vpop.eup %7722  ;;  %v1993_v22 = vmul.f32 1.442695, %v19080_v63 }
 0x52b   : > { %7742 = vpow2.f32 %v1981_v11  ;;  %v19083_v42 = vsub.f32 %v19036_v23, %v10833_v29 }
 0x52c   : > { %v2034_v26 = vadd.f32 %v11046_v17, %v2033_v27  ;;  %v11077_v2 = vpop.eup %7724  ;;  %7744 = vpow2.f32 %v1919_v20  ;;  %v1927_v27 = vmul.f32 1.442695, %v19079_v61  ;;  %v19082_v20 = vsub.f32 %v10772_v4, %v10831_v55 }
 0x52d   : > { %v11082_v28 = vpop.eup %7726  ;;  %7746 = vpow2.f32 %v1985_v50  ;;  %v2058_v9 = vadd.f32 %v11077_v2, %v11071_v16 }
 0x52e   : > { %v2035_v52 = vadd.f32 %v11055_v41, %v2034_v26  ;;  %v11090_v11 = vpop.eup %7728  ;;  %7748 = vpow2.f32 %v1923_v3  ;;  %v19081_v26 = vsub.f32 %v10608_v30, %v10833_v29  ;;  %v1997_v7 = vmul.f32 1.442695, %v19082_v20 }
 0x52f   : > { %v11095_v25 = vpop.eup %7730  ;;  %7750 = vpow2.f32 %v1989_v13  ;;  %v2059_v50 = vadd.f32 %v11090_v11, %v2058_v9  ;;  %v1935_v3 = vmul.f32 1.442695, %v19083_v42  ;;  %v2001_v13 = vmul.f32 1.442695, %v19084_v15 }
 0x530   : > { %v2036_v6 = vadd.f32 %v11060_v33, %v2035_v52  ;;  %v1931_v38 = vmul.f32 1.442695, %v19081_v26  ;;  %v11102_v52 = vpop.eup %7732  ;;  %7752 = vpow2.f32 %v1927_v27  ;;  %v19085_v27 = vsub.f32 %v19037_v5, %v10833_v29 }
 0x531   : > { %v11107_v30 = vpop.eup %7734  ;;  %7754 = vpow2.f32 %v1993_v22  ;;  %v19086_v22 = vsub.f32 %v10793_v40, %v10831_v55 }
 0x532   : > { %v2037_v34 = vadd.f32 %v11066_v57, %v2036_v6  ;;  %v2060_v6 = vadd.f32 %v11102_v52, %v2059_v50  ;;  %v11114_v61 = vpop.eup %7736  ;;  %7756 = vpow2.f32 %v1931_v38  ;;  %v1939_v63 = vmul.f32 1.442695, %v19085_v27 }
 0x533   : > { %v11119_v23 = vpop.eup %7738  ;;  %7758 = vpow2.f32 %v1997_v7  ;;  %v19087_v38 = vsub.f32 %v19038_v49, %v10833_v29  ;;  %v19088_v7 = vsub.f32 %v10803_v1, %v10831_v55 }
 0x534   : > { %v2038_v32 = vadd.f32 %v11082_v28, %v2037_v34  ;;  %v2005_v34 = vmul.f32 1.442695, %v19086_v22  ;;  %v2061_v9 = vadd.f32 %v11114_v61, %v2060_v6  ;;  %v11126_v26 = vpop.eup %7740  ;;  %7760 = vpow2.f32 %v1935_v3 }
 0x535   : > { %v1943_v20 = vmul.f32 1.442695, %v19087_v38  ;;  %v11131_v5 = vpop.eup %7742  ;;  %7762 = vpow2.f32 %v2001_v13  ;;  %v19089_v3 = vsub.f32 %v19039_v24, %v10833_v29  ;;  %v19090_v13 = vsub.f32 %v10813_v54, %v10831_v55 }
 0x536   : > { %v2039_v4 = vadd.f32 %v11095_v25, %v2038_v32  ;;  %v2009_v32 = vmul.f32 1.442695, %v19088_v7  ;;  %v2062_v50 = vadd.f32 %v11126_v26, %v2061_v9  ;;  %v11138_v42 = vpop.eup %7744  ;;  %7764 = vpow2.f32 %v1939_v63 }
 0x537   : > { %v1947_v15 = vmul.f32 1.442695, %v19089_v3  ;;  %v11143_v49 = vpop.eup %7746  ;;  %7766 = vpow2.f32 %v2005_v34  ;;  %v19091_v63 = vsub.f32 %v19041_v37, %v10833_v29  ;;  %v19092_v34 = vsub.f32 %v10823_v48, %v10831_v55 }
 0x538   : > { %v2040_v56 = vadd.f32 %v11107_v30, %v2039_v4  ;;  %v2013_v4 = vmul.f32 1.442695, %v19090_v13  ;;  %v2063_v6 = vadd.f32 %v11138_v42, %v2062_v50  ;;  %v11150_v27 = vpop.eup %7748  ;;  %7768 = vpow2.f32 %v1943_v20 }
 0x539   : > { %v1951_v22 = vmul.f32 1.442695, %v19091_v63  ;;  %v11155_v24 = vpop.eup %7750  ;;  %7770 = vpow2.f32 %v2009_v32  ;;  %v19093_v20 = vsub.f32 %v19042_v60, %v10833_v29  ;;  %v19094_v48 = vsub.f32 %v19043_v44, %v10833_v29 }
 0x53a   : > { %v2041_v40 = vadd.f32 %v11119_v23, %v2040_v56  ;;  %v2017_v56 = vmul.f32 1.442695, %v19092_v34  ;;  %v2064_v9 = vadd.f32 %v11150_v27, %v2063_v6  ;;  %v11162_v38 = vpop.eup %7752  ;;  %7772 = vpow2.f32 %v1947_v15 }
 0x53b   : > { %v1955_v7 = vmul.f32 1.442695, %v19093_v20  ;;  %v11167_v37 = vpop.eup %7754  ;;  %7774 = vpow2.f32 %v2013_v4  ;;  %v1959_v50 = vmul.f32 1.442695, %v19094_v48  ;;  %v19096_v4 = vsub.f32 %v19044_v0, %v10833_v29 }
 0x53c   : > { %v2042_v1 = vadd.f32 %v11131_v5, %v2041_v40  ;;  %v2065_v40 = vadd.f32 %v11162_v38, %v2064_v9  ;;  %v11171_v55 = vpop.eup %7756  ;;  %7776 = vpow2.f32 %v1951_v22  ;;  %v19098_v34 = vsub.f32 %v19045_v47, %v10833_v29 }
 0x53d   : > { %v11176_v3 = vpop.eup %7758  ;;  %7778 = vpow2.f32 %v2017_v56 }
 0x53e   : > { %v2043_v54 = vadd.f32 %v11143_v49, %v2042_v1  ;;  %v2066_v15 = vadd.f32 %v11171_v55, %v2065_v40  ;;  %v11180_v13 = vpop.eup %7760  ;;  %7780 = vpow2.f32 %v1955_v7  ;;  %v1963_v1 = vmul.f32 1.442695, %v19096_v4  ;;  %v19100_v7 = vld [vmem:[#allocation75_spill] sm:$0xff]  ;;  %v19103_v4 = vld [vmem:[#allocation58_spill] sm:$0xff] }
 0x53f   : > { %19095 = vst [vmem:[#allocation20_spill] sm:$0xff] %v11180_v13  ;;  %v11185_v6 = vpop.eup %7762  ;;  %7782 = vpow2.f32 %v1959_v50  ;;  %v1967_v56 = vmul.f32 1.442695, %v19098_v34  ;;  %v19101_v40 = vsub.f32 %v19047_v31, %v10833_v29 }
 0x540   : > { %v2044_v32 = vadd.f32 %v11155_v24, %v2043_v54  ;;  %v2067_v44 = vadd.f32 %v11180_v13, %v2066_v15  ;;  %v11189_v22 = vpop.eup %7764  ;;  %7784 = vpow2.f32 %v1963_v1 }
 0x541   : > { %19097 = vst [vmem:[#allocation21_spill] sm:$0xff] %v11189_v22  ;;  %v11194_v54 = vpop.eup %7766  ;;  %v1971_v48 = vmul.f32 1.442695, %v19101_v40  ;;  %7786 = vpow2.f32 %v1967_v56 }
 0x542   : > { %v2045_v60 = vadd.f32 %v11167_v37, %v2044_v32  ;;  %v2068_v0 = vadd.f32 %v11189_v22, %v2067_v44  ;;  %v11198_v20 = vpop.eup %7768  ;;  %v1872_v32 = vsub.f32 %v19100_v7, %v10833_v29  ;;  %v19104_v44 = vsub.f32 %v19048_v8, %v10833_v29 }
 0x543   : > { %19099 = vst [vmem:[#allocation22_spill] sm:$0xff] %v11198_v20  ;;  %v11205_v50 = vpop.eup %7770  ;;  %7788 = vpow2.f32 %v1971_v48 }
 0x544   : > { %v2046_v63 = vadd.f32 %v11176_v3, %v2045_v60  ;;  %v2069_v60 = vadd.f32 %v11198_v20, %v2068_v0  ;;  %v11209_v15 = vpop.eup %7772  ;;  %v1975_v1 = vmul.f32 1.442695, %v19104_v44  ;;  %v1979_v36 = vmul.f32 1.442695, %v1872_v32  ;;  %v19106_v44 = vld [vmem:[#allocation76_spill] sm:$0xff] }
 0x545   : > { %19102 = vst [vmem:[#allocation23_spill] sm:$0xff] %v11209_v15  ;;  %v11216_v34 = vpop.eup %7774  ;;  %v19107_v32 = vld [vmem:[#allocation80_spill] sm:$0xff] }
 0x546   : > { %v2047_v9 = vadd.f32 %v11185_v6, %v2046_v63  ;;  %v1874_v63 = vsub.f32 %v19103_v4, %v10833_v29  ;;  %v2070_v7 = vadd.f32 %v11209_v15, %v2069_v60  ;;  %v11220_v40 = vpop.eup %7776  ;;  %7790 = vpow2.f32 %v1975_v1 }
 0x547   : > { %v11224_v39 = vpop.eup %7778  ;;  %v1880_v48 = vsub.f32 %v19107_v32, %v10833_v29  ;;  %7792 = vpow2.f32 %v1979_v36  ;;  %v19108_v36 = vsub.f32 %v19050_v45, %v10833_v29  ;;  %v19110_v45 = vsub.f32 %v19052_v58, %v10833_v29 }
 0x548   : > { %v2048_v47 = vadd.f32 %v11194_v54, %v2047_v9  ;;  %v19105_v9 = vld [vmem:[#allocation62_spill] sm:$0xff]  ;;  %v2071_v8 = vadd.f32 %v11220_v40, %v2070_v7  ;;  %v11228_v4 = vpop.eup %7780  ;;  %v1983_v60 = vmul.f32 1.442695, %v1874_v63 }
 0x549   : > { %v1876_v0 = vsub.f32 %v19105_v9, %v10833_v29  ;;  %v11234_v9 = vpop.eup %7782 }
 0x54a   : > { %v2049_v31 = vadd.f32 %v11205_v50, %v2048_v47  ;;  %v1878_v47 = vsub.f32 %v19106_v44, %v10833_v29  ;;  %v2072_v20 = vadd.f32 %v11228_v4, %v2071_v8  ;;  %v11239_v12 = vpop.eup %7784  ;;  %7794 = vpow2.f32 %v1983_v60 }
 0x54b   : > { %v1995_v8 = vmul.f32 1.442695, %v1880_v48 }
 0x54c   : > { %v2050_v56 = vadd.f32 %v11216_v34, %v2049_v31  ;;  %v1987_v31 = vmul.f32 1.442695, %v1876_v0  ;;  %v2073_v7 = vadd.f32 %v11234_v9, %v2072_v20  ;;  %v1991_v44 = vmul.f32 1.442695, %v1878_v47 }
 0x54d   : > { %v1999_v20 = vmul.f32 1.442695, %v19108_v36 }
 0x54e   : > { %v2051_v15 = vadd.f32 %v11224_v39, %v2050_v56  ;;  %v2074_v63 = vadd.f32 %v11239_v12, %v2073_v7  ;;  %v11242_v56 = vpop.eup %7786  ;;  %7796 = vpow2.f32 %v1987_v31 }
 0x54f   : > { %v11245_v32 = vpop.eup %7788  ;;  %7798 = vpow2.f32 %v1991_v44  ;;  %v2007_v44 = vmul.f32 1.442695, %v19110_v45 }
 0x550   : > { %v2052_v46 = vrot.slane %v2051_v15, 4  ;;  %v2075_v13 = vadd.f32 %v11242_v56, %v2074_v63  ;;  %7800 = vpow2.f32 %v1995_v8 }
 0x551   : > { %7802 = vpow2.f32 %v1999_v20  ;;  %v19112_v20 = vsub.f32 %v19054_v19, %v10833_v29 }
 0x552   : > { %v2053_v1 = vadd.f32 %v2052_v46, %v2051_v15  ;;  %v2076_v47 = vadd.f32 %v11245_v32, %v2075_v13  ;;  %v11251_v46 = vpop.eup %7790  ;;  %v19109_v15 = vsub.f32 %v19051_v62, %v10833_v29  ;;  %v19111_v13 = vsub.f32 %v19053_v51, %v10833_v29 }
 0x553   : > { %v11257_v7 = vpop.eup %7792  ;;  %v2015_v58 = vmul.f32 1.442695, %v19112_v20 }
 0x554   : > { %v2054_v22 = vrot.slane %v2053_v1, 2  ;;  %v2003_v60 = vmul.f32 1.442695, %v19109_v15  ;;  %v2077_v31 = vadd.f32 %v11251_v46, %v2076_v47  ;;  %v11266_v63 = vpop.eup %7794  ;;  %v19113_v15 = vsub.f32 %v10828_v43, %v10833_v29 }
 0x556   : > { %v2055_v0 = vadd.f32 %v2054_v22, %v2053_v1  ;;  %v2011_v22 = vmul.f32 1.442695, %v19111_v13  ;;  %v2078_v1 = vadd.f32 %v11257_v7, %v2077_v31  ;;  %7804 = vpow2.f32 %v2003_v60 }
 0x557   : > { %7806 = vpow2.f32 %v2007_v44 }
 0x558   : > { %v2056_v48 = vrot.slane %v2055_v0, 1  ;;  %v2079_v8 = vadd.f32 %v11266_v63, %v2078_v1  ;;  %v11269_v36 = vpop.eup %7796  ;;  %7808 = vpow2.f32 %v2011_v22 }
 0x559   : > { %v11275_v51 = vpop.eup %7798 }
 0x55a   : > { %v2057_v62 = vadd.f32 %v2056_v48, %v2055_v0  ;;  %v2080_v47 = vadd.f32 %v11269_v36, %v2079_v8  ;;  %v2019_v0 = vmul.f32 1.442695, %v19113_v15  ;;  %v11281_v48 = vpop.eup %7800 }
 0x55b   : > { %v11284_v45 = vpop.eup %7802 }
 0x55c   : > { %7810 = vrcp.f32 %v2057_v62  ;;  %v2081_v60 = vadd.f32 %v11275_v51, %v2080_v47 }
 0x55d   : > { %7812 = vpow2.f32 %v2015_v58 }
 0x55e   : > { %v2082_v31 = vadd.f32 %v11281_v48, %v2081_v60  ;;  %7814 = vpow2.f32 %v2019_v0 }
 0x560   : > { %v2083_v19 = vadd.f32 %v11284_v45, %v2082_v31  ;;  %v11287_v44 = vpop.eup %7804 }
 0x561   : > { %v11290_v22 = vpop.eup %7806 }
 0x562   : > { %v2084_v13 = vadd.f32 %v11287_v44, %v2083_v19  ;;  %v11292_v43 = vpop.eup %7808 }
 0x564   : > { %v2085_v29 = vadd.f32 %v11290_v22, %v2084_v13 }
 0x566   : > { %v11295_v1 = vpop.eup %7810  ;;  %v2086_v62 = vadd.f32 %v11292_v43, %v2085_v29 }
 0x567   : > { %v11298_v8 = vpop.eup %7812  ;;  %v11303_v58 = vmul.f32 %v11295_v1, %v11046_v17  ;;  %v11307_v47 = vmul.f32 %v11295_v1, %v11055_v41  ;;  %v11313_v0 = vmul.f32 %v11295_v1, %v11060_v33  ;;  %v11317_v60 = vmul.f32 %v11295_v1, %v11066_v57 }
 0x568   : > { %v2087_v20 = vadd.f32 %v11298_v8, %v2086_v62  ;;  %v11309_v15 = vpop.eup %7814  ;;  %v11324_v19 = vmul.f32 %v11295_v1, %v11082_v28  ;;  %v11328_v41 = vmul.f32 %v11295_v1, %v11095_v25  ;;  %v11334_v57 = vmul.f32 %v11295_v1, %v11107_v30 }
 0x569   : > { %v11338_v13 = vmul.f32 %v11295_v1, %v11119_v23  ;;  %v11342_v29 = vmul.f32 %v11295_v1, %v11131_v5  ;;  %v11348_v62 = vmul.f32 %v11295_v1, %v11143_v49  ;;  %v11352_v30 = vmul.f32 %v11295_v1, %v11155_v24 }
 0x56a   : > { %v2088_v31 = vadd.f32 %v11309_v15, %v2087_v20  ;;  %v11358_v20 = vmul.f32 %v11295_v1, %v11167_v37  ;;  %v11362_v5 = vmul.f32 %v11295_v1, %v11176_v3  ;;  %v11366_v25 = vmul.f32 %v11295_v1, %v11185_v6 }
 0x56b   : > { %19114 = vst [vmem:[#allocation24_spill] sm:$0xff] %v11352_v30  ;;  %v11372_v33 = vmul.f32 %v11295_v1, %v11194_v54  ;;  %v11376_v37 = vmul.f32 %v11295_v1, %v11205_v50  ;;  %v11384_v6 = vmul.f32 %v11295_v1, %v11216_v34  ;;  %v2096_v34 = vmul.f32 %v11295_v1, %v10911_v18  ;;  %v19118_v30 = vld [vmem:[#allocation10_spill] sm:$0xff] }
 0x56c   : > { %v2089_v28 = vrot.slane %v2088_v31, 4  ;;  %19115 = vst [vmem:[#allocation25_spill] sm:$0xff] %v11362_v5  ;;  %19116 = vst [vmem:[#allocation26_spill] sm:$0xff] %v11366_v25  ;;  %v19117_v5 = vld [vmem:[#allocation9_spill] sm:$0xff] }
 0x56d   : > { %v2101_v25 = vmul.f32 %v11295_v1, %v19117_v5 }
 0x56e   : > { %v2090_v49 = vadd.f32 %v2089_v28, %v2088_v31  ;;  %v11388_v31 = vmul.f32 %v11295_v1, %v11224_v39  ;;  %v2099_v39 = vmul.f32 %v11295_v1, %v10919_v53  ;;  %v2103_v28 = vmul.f32 %v11295_v1, %v19118_v30 }
 0x570   : > { %v2091_v54 = vrot.slane %v2090_v49, 2  ;;  %v2161_v30 = vpack.c.bf16 %v2099_v39, %v2096_v34 }
 0x572   : > { %v2092_v24 = vadd.f32 %v2091_v54, %v2090_v49  ;;  %v19119_v54 = vld [vmem:[#allocation11_spill] sm:$0xff] }
 0x574   : > { %v2093_v3 = vrot.slane %v2092_v24, 1 }
 0x576   : > { %v2094_v17 = vadd.f32 %v2093_v3, %v2092_v24 }
 0x578   : > { %7816 = vrcp.f32 %v2094_v17 }
 0x582   : > { %v11394_v23 = vpop.eup %7816 }
 0x583   : > { %v2098_v49 = vmul.f32 %v11394_v23, %v11071_v16  ;;  %v2100_v17 = vmul.f32 %v11394_v23, %v11077_v2  ;;  %v2102_v24 = vmul.f32 %v11394_v23, %v11090_v11  ;;  %v2104_v18 = vmul.f32 %v11394_v23, %v11102_v52 }
 0x584   : > { %v2106_v53 = vmul.f32 %v11394_v23, %v11114_v61  ;;  %v2108_v5 = vmul.f32 %v11394_v23, %v11126_v26  ;;  %v2105_v16 = vmul.f32 %v11295_v1, %v19119_v54  ;;  %v2107_v2 = vmul.f32 %v11295_v1, %v10971_v21 }
 0x585   : > { %v2162_v3 = vpack.c.bf16 %v2100_v17, %v2098_v49  ;;  %v2109_v11 = vmul.f32 %v11295_v1, %v10980_v14  ;;  %v2164_v50 = vpack.c.bf16 %v2104_v18, %v2102_v24  ;;  %v2163_v52 = vpack.c.bf16 %v2103_v28, %v2101_v25 }
 0x586   : > { %v2110_v49 = vmul.f32 %v11394_v23, %v11138_v42  ;;  %v11426_v61 = vmul.f32 %v11394_v23, %v11220_v40  ;;  %v2112_v26 = vmul.f32 %v11394_v23, %v11150_v27  ;;  %v2128_v21 = vmul.f32 %v11394_v23, %v11228_v4 }
 0x587   : > { %2199 = vmatprep.subr.bf16.mxu1 %v2162_v3  ;;  %v2130_v14 = vmul.f32 %v11394_v23, %v11234_v9  ;;  %v2132_v25 = vmul.f32 %v11394_v23, %v11239_v12  ;;  %v2166_v28 = vpack.c.bf16 %v2108_v5, %v2106_v53  ;;  %v2134_v42 = vmul.f32 %v11394_v23, %v11242_v56 }
 0x588   : > { %2200 = vmatpush1.bf16.msra.mxu1 %v2161_v30  ;;  %v2136_v40 = vmul.f32 %v11394_v23, %v11245_v32  ;;  %v2138_v27 = vmul.f32 %v11394_v23, %v11251_v46  ;;  %v2176_v34 = vpack.c.bf16 %v2128_v21, %v11426_v61  ;;  %v2140_v9 = vmul.f32 %v11394_v23, %v11257_v7  ;;  %v19124_v21 = vld [vmem:[#allocation22_spill] sm:$0xff] }
 0x589   : > { %2201 = vmatprep.subr.bf16.mxu1 %v2164_v50  ;;  %v2178_v4 = vpack.c.bf16 %v2132_v25, %v2130_v14  ;;  %v2142_v12 = vmul.f32 %v11394_v23, %v11266_v63  ;;  %v2144_v39 = vmul.f32 %v11394_v23, %v11269_v36  ;;  %v2146_v56 = vmul.f32 %v11394_v23, %v11275_v51  ;;  %v19125_v14 = vld [vmem:[#allocation23_spill] sm:$0xff] }
 0x58a   : > { %v2180_v50 = vpack.c.bf16 %v2136_v40, %v2134_v42  ;;  %v2148_v32 = vmul.f32 %v11394_v23, %v11281_v48  ;;  %v2182_v46 = vpack.c.bf16 %v2140_v9, %v2138_v27  ;;  %v2150_v17 = vmul.f32 %v11394_v23, %v11284_v45  ;;  %v19126_v42 = vld [vmem:[#allocation14_spill] sm:$0xff]  ;;  %v19127_v27 = vld [vmem:[#allocation17_spill] sm:$0xff] }
 0x58b   : > { %v2152_v7 = vmul.f32 %v11394_v23, %v11287_v44  ;;  %v2154_v63 = vmul.f32 %v11394_v23, %v11290_v22  ;;  %v2184_v24 = vpack.c.bf16 %v2144_v39, %v2142_v12  ;;  %v2156_v51 = vmul.f32 %v11394_v23, %v11292_v43 }
 0x58c   : > { %2202 = vmatpush1.bf16.msra.mxu1 %v2163_v52  ;;  %v2186_v36 = vpack.c.bf16 %v2148_v32, %v2146_v56  ;;  %v2158_v48 = vmul.f32 %v11394_v23, %v11298_v8  ;;  %v2165_v18 = vpack.c.bf16 %v2107_v2, %v2105_v16  ;;  %v2111_v3 = vmul.f32 %v11295_v1, %v10986_v59  ;;  %v19121_v52 = vld [vmem:[#allocation21_spill] sm:$0xff] }
 0x58d   : > { %2203 = vmatprep.subr.bf16.mxu1 %v2166_v28  ;;  %v2188_v45 = vpack.c.bf16 %v2152_v7, %v2150_v17  ;;  %v2160_v44 = vmul.f32 %v11394_v23, %v11309_v15  ;;  %v2168_v53 = vpack.c.bf16 %v2112_v26, %v2110_v49  ;;  %v2114_v22 = vmul.f32 %v11394_v23, %v11162_v38  ;;  %v19120_v15 = vld [vmem:[#allocation20_spill] sm:$0xff] }
 0x58e   : > { %v2116_v5 = vmul.f32 %v11394_v23, %v11171_v55  ;;  %v2190_v30 = vpack.c.bf16 %v2156_v51, %v2154_v63  ;;  %v2167_v8 = vpack.c.bf16 %v2111_v3, %v2109_v11  ;;  %v2113_v54 = vmul.f32 %v11295_v1, %v10992_v35  ;;  %v19122_v49 = vld [vmem:[#allocation12_spill] sm:$0xff]  ;;  %v19123_v11 = vld [vmem:[#allocation13_spill] sm:$0xff]  ;;  %v2276_v51 = vpop.trf.xlu1 }
 0x58f   : > { %v2192_v43 = vpack.c.bf16 %v2160_v44, %v2158_v48  ;;  %v2115_v59 = vmul.f32 %v11295_v1, %v11001_v10  ;;  %v2118_v2 = vmul.f32 %v11394_v23, %v19120_v15  ;;  %v2120_v38 = vmul.f32 %v11394_v23, %v19121_v52 }
 0x590   : > { %2204 = vmatpush1.bf16.msra.mxu1 %v2165_v18  ;;  %v2170_v16 = vpack.c.bf16 %v2116_v5, %v2114_v22  ;;  %v2117_v61 = vmul.f32 %v11295_v1, %v19122_v49  ;;  %v2119_v26 = vmul.f32 %v11295_v1, %v19123_v11  ;;  %v2122_v10 = vmul.f32 %v11394_v23, %v19124_v21  ;;  %v19159_v5 = vld [vmem:[#allocation16_spill] sm:$0xff] }
 0x591   : > { %2205 = vmatprep.subr.bf16.mxu1 %v2168_v53  ;;  %v2169_v55 = vpack.c.bf16 %v2115_v59, %v2113_v54  ;;  %v2172_v35 = vpack.c.bf16 %v2120_v38, %v2118_v2  ;;  %v2124_v25 = vmul.f32 %v11394_v23, %v19125_v14  ;;  %v2121_v40 = vmul.f32 %v11295_v1, %v19126_v42 }
 0x592   : > { %v2171_v28 = vpack.c.bf16 %v2119_v26, %v2117_v61  ;;  %v2123_v9 = vmul.f32 %v11295_v1, %v19127_v27  ;;  %v19128_v56 = vpack.c.bf16 %v11307_v47, %v11303_v58  ;;  %v19129_v23 = vpack.c.bf16 %v11317_v60, %v11313_v0  ;;  %v19133_v47 = vld [vmem:[#allocation24_spill] sm:$0xff]  ;;  %v19135_v60 = vld [vmem:[#allocation26_spill] sm:$0xff]  ;;  %v2277_v48 = vpop.trf.xlu1 }
 0x593   : > { %v2174_v12 = vpack.c.bf16 %v2124_v25, %v2122_v10  ;;  %v19130_v32 = vpack.c.bf16 %v11328_v41, %v11324_v19  ;;  %v19131_v1 = vpack.c.bf16 %v11338_v13, %v11334_v57  ;;  %v19132_v58 = vpack.c.bf16 %v11348_v62, %v11342_v29  ;;  %v19139_v57 = vld [vmem:[#allocation6_spill] sm:$0xff]  ;;  %v19140_v29 = vld [vmem:[#allocation5_spill] sm:$0xff] }
 0x594   : > { %2206 = vmatpush1.bf16.msra.mxu1 %v2167_v8  ;;  %v2173_v39 = vpack.c.bf16 %v2123_v9, %v2121_v40  ;;  %v19134_v0 = vpack.c.bf16 %v11358_v20, %v19133_v47  ;;  %v19138_v41 = vpack.c.bf16 %v11376_v37, %v11372_v33  ;;  %v2285_v13 = vrot.slane %v19139_v57, 4  ;;  %v19142_v20 = vld [vmem:[#allocation15_spill] sm:$0xff]  ;;  %v2260_v33 = vpop.trf.xlu0  ;;  %v19249_v26 = vld [vmem:[#allocation82_spill] sm:$0xff] }
 0x595   : > { %2207 = vmatprep.subr.bf16.mxu1 %v2170_v16  ;;  %v2284_v62 = vrot.slane %v19140_v29, 4  ;;  %v19145_v17 = vmov 0   ;;  %v19253_v29 = vld [vmem:[#allocation85_spill] sm:$0xff] }
 0x596   : > { %v2278_v18 = vpop.trf.xlu1 }
 0x598   : > { %2208 = vmatpush1.bf16.msra.mxu1 %v2169_v55  ;;  %v2261_v37 = vpop.trf.xlu0 }
 0x599   : > { %2209 = vmatprep.subr.bf16.mxu1 %v2172_v35 }
 0x59a   : > { %v2279_v3 = vpop.trf.xlu1 }
 0x59c   : > { %2210 = vmatpush1.bf16.msra.mxu1 %v2171_v28 }
 0x59d   : > { %2211 = vmatprep.subr.bf16.mxu1 %v2174_v12 }
 0x5a0   : > { %2212 = vmatpush1.bf16.msra.mxu1 %v2173_v39 }
 0x5a1   : > { %2213 = vmatprep.subr.bf16.mxu1 %v2176_v34  ;;  %v19136_v34 = vld [vmem:[#allocation25_spill] sm:$0xff] }
 0x5a2   : > { %v19137_v19 = vpack.c.bf16 %v19135_v60, %v19136_v34 }
 0x5a4   : > { %2214 = vmatpush1.bf16.msra.mxu1 %v19128_v56 }
 0x5a5   : > { %2215 = vmatprep.subr.bf16.mxu1 %v2178_v4  ;;  %v19141_v4 = vpack.c.bf16 %v11388_v31, %v11384_v6  ;;  %v2262_v6 = vpop.trf.xlu0 }
 0x5a8   : > { %2216 = vmatpush1.bf16.msra.mxu1 %v19129_v23 }
 0x5a9   : > { %2217 = vmatprep.subr.bf16.mxu1 %v2180_v50  ;;  %v2195_v50 = vrot.slane %v19142_v20, 2  ;;  %v2263_v31 = vpop.trf.xlu0 }
 0x5ac   : > { %2218 = vmatpush1.bf16.msra.mxu1 %v19130_v32 }
 0x5ad   : > { %2219 = vmatprep.subr.bf16.mxu1 %v2182_v46  ;;  %v2335_v46 = vsel %vm19144_vm15, %v2284_v62, 0  ;;  %vm19149_vm15 = vmmov %vm19147_vm0  ;;  %v2264_v7 = vpop.trf.xlu0 }
 0x5b0   : > { %2220 = vmatpush1.bf16.msra.mxu1 %v19131_v1 }
 0x5b1   : > { %2221 = vmatprep.subr.bf16.mxu1 %v2184_v24  ;;  %v2265_v63 = vpop.trf.xlu0 }
 0x5b4   : > { %2222 = vmatpush1.bf16.msra.mxu1 %v19132_v58 }
 0x5b5   : > { %2223 = vmatprep.subr.bf16.mxu1 %v2186_v36  ;;  %v2266_v24 = vpop.trf.xlu0 }
 0x5b8   : > { %2224 = vmatpush1.bf16.msra.mxu1 %v19134_v0 }
 0x5b9   : > { %2225 = vmatprep.subr.bf16.mxu1 %v2188_v45  ;;  %v2267_v36 = vpop.trf.xlu0  ;;  %v2280_v45 = vpop.trf.xlu1 }
 0x5bc   : > { %2226 = vmatpush1.bf16.msra.mxu1 %v19137_v19 }
 0x5bd   : > { %2227 = vmatprep.subr.bf16.mxu1 %v2190_v30  ;;  %v2281_v44 = vpop.trf.xlu1  ;;  %v3870_v30 = vrot.slane %v19159_v5, 6 }
 0x5c0   : > { %2228 = vmatpush1.bf16.msra.mxu1 %v19138_v41 }
 0x5c1   : > { %2229 = vmatprep.subr.bf16.mxu1 %v2192_v43  ;;  %v2282_v53 = vpop.trf.xlu1 }
 0x5c4   : > { %2230 = vmatpush1.bf16.msra.mxu1 %v19141_v4 }
 0x5c5   : > { %7395 = vmatprep.subr.msk.bf16.mxu1 %vm19143_vm14, %v2285_v13  ;;  %vm19150_vm14 = vmmov %vm19147_vm0  ;;  %v2283_v22 = vpop.trf.xlu1 }
 0x5c7   : > { %2232 = vmatmul.mubr.bf16.vlgmr.msra.gmra.mrb[88].mxu1 %v2195_v50 }
 0x5c8   : > { %2341 = vmatpush1.bf16.msra.mxu1 %v2335_v46  ;;  %2372 = vmatprep.mubr.bf16.mxu1 %v19145_v17 }
 0x5cf   : > { %7396 = vmatmul.mubr.msk.bf16.vlgmr.msra.gmra.mrb[92].mxu1 %vm19146_vm1, %v2260_v33  ;;  %vm19151_vm1 = vmmov %vm19147_vm0 }
 0x5d0   : > { %2382 = vmatprep.mubr.bf16.mxu1 %v19145_v17 }
 0x5d7   : > { %7397 = vmatmul.mubr.msk.bf16.gmra.mrb[96].mxu1 %vm19147_vm0, %v2261_v37 }
 0x5d8   : > { %2392 = vmatprep.mubr.bf16.mxu1 %v19145_v17 }
 0x5df   : > { %7398 = vmatmul.mubr.msk.bf16.gmra.mrb[100].mxu1 %vm19148_vm2, %v2262_v6  ;;  %vm19152_vm2 = vmmov %vm19147_vm0 }
 0x5e0   : > { %2402 = vmatprep.mubr.bf16.mxu1 %v19145_v17 }
 0x5e7   : > { %7399 = vmatmul.mubr.msk.bf16.gmra.mrb[104].mxu1 %vm19149_vm15, %v2263_v31  ;;  %vm19153_vm15 = vmmov %vm19147_vm0 }
 0x5e8   : > { %2412 = vmatprep.mubr.bf16.mxu1 %v19145_v17 }
 0x5ef   : > { %7400 = vmatmul.mubr.msk.bf16.gmra.mrb[108].mxu1 %vm19150_vm14, %v2264_v7  ;;  %vm19154_vm14 = vmmov %vm19147_vm0 }
 0x5f0   : > { %2422 = vmatprep.mubr.bf16.mxu1 %v19145_v17 }
 0x5f7   : > { %7401 = vmatmul.mubr.msk.bf16.gmra.mrb[112].mxu1 %vm19151_vm1, %v2265_v63  ;;  %vm19155_vm1 = vmmov %vm19147_vm0  ;;  %v19172_v63 = vld [vmem:[#allocation38_spill] sm:$0xff] }
 0x5f8   : > { %2432 = vmatprep.mubr.bf16.mxu1 %v19145_v17 }
 0x5ff   : > { %7402 = vmatmul.mubr.msk.bf16.gmra.mrb[116].mxu1 %vm19147_vm0, %v2266_v24 }
 0x600   : > { %2442 = vmatprep.mubr.bf16.mxu1 %v19145_v17 }
 0x607   : > { %7403 = vmatmul.mubr.msk.bf16.gmra.mrb[120].mxu1 %vm19152_vm2, %v2267_v36  ;;  %vm19156_vm2 = vmmov %vm19147_vm0 }
 0x608   : > { %2452 = vmatprep.mubr.bf16.mxu1 %v19145_v17 }
 0x60f   : > { %7404 = vmatmul.mubr.msk.bf16.gmra.mrb[124].mxu1 %vm19153_vm15, %v2276_v51  ;;  %vm19157_vm15 = vmmov %vm19147_vm0 }
 0x610   : > { %2462 = vmatprep.mubr.bf16.mxu1 %v19145_v17 }
 0x617   : > { %7405 = vmatmul.mubr.msk.bf16.gmra.mrb[128].mxu1 %vm19154_vm14, %v2277_v48  ;;  %vm19158_vm14 = vmmov %vm19147_vm0  ;;  %v19174_v48 = vld [vmem:[#allocation39_spill] sm:$0xff] }
 0x618   : > { %2472 = vmatprep.mubr.bf16.mxu1 %v19145_v17 }
 0x61f   : > { %7406 = vmatmul.mubr.msk.bf16.gmra.mrb[132].mxu1 %vm19155_vm1, %v2278_v18  ;;  %vm19160_vm1 = vmmov %vm19147_vm0 }
 0x620   : > { %2482 = vmatprep.mubr.bf16.mxu1 %v19145_v17 }
 0x627   : > { %7407 = vmatmul.mubr.msk.bf16.gmra.mrb[136].mxu1 %vm19147_vm0, %v2279_v3  ;;  %vm19173_vm0 = vnez %v19172_v63 }
 0x628   : > { %2492 = vmatprep.mubr.bf16.mxu1 %v19145_v17 }
 0x62f   : > { %7408 = vmatmul.mubr.msk.bf16.gmra.mrb[140].mxu1 %vm19156_vm2, %v2280_v45  ;;  %vm19175_vm2 = vnez %v19174_v48 }
 0x630   : > { %2502 = vmatprep.mubr.bf16.mxu1 %v19145_v17 }
 0x637   : > { %7409 = vmatmul.mubr.msk.bf16.gmra.mrb[144].mxu1 %vm19157_vm15, %v2281_v44  ;;  %v19176_v44 = vld [vmem:[#allocation40_spill] sm:$0xff] }
 0x638   : > { %2512 = vmatprep.mubr.bf16.mxu1 %v19145_v17  ;;  %vm19177_vm15 = vnez %v19176_v44 }
 0x63f   : > { %7410 = vmatmul.mubr.msk.bf16.gmra.mrb[148].mxu1 %vm19158_vm14, %v2282_v53 }
 0x640   : > { %2522 = vmatprep.mubr.bf16.mxu1 %v19145_v17  ;;  %v19251_v17 = vld [vmem:[#allocation83_spill] sm:$0xff] }
 0x647   : > { %7411 = vmatmul.mubr.msk.bf16.gmra.mrb[152].mxu1 %vm19160_vm1, %v2283_v22 }
 0x648   : > { %3905 = vmatprep.mubr.bf16.mxu1 %v3870_v30  ;;  %v19178_v30 = vld [vmem:[#allocation41_spill] sm:$0xff] }
 0x649   : > { %vm19179_vm14 = vnez %v19178_v30 }
 0x69a   : > { %v2233_v43 = vpop.f32.mrb[88].mxu1 }
 0x69b   : > { %v2242_v8 = vrot.slane %v2233_v43, 4  ;;  %v2235_v54 = vpop.f32.mrb[89].mxu1 }
 0x69c   : > { %v2243_v59 = vrot.slane %v2235_v54, 4  ;;  %v2237_v16 = vpop.f32.mrb[90].mxu1 }
 0x69d   : > { %2246 = vst [vmem:[%s10507_s27] sm:$0xf0] %v2242_v8  ;;  %v2238_v15 = vpop.f32.mrb[91].mxu1 }
 0x69e   : > { %2247 = vst [vmem:[%s10507_s27 + $0x8] sm:$0xf0] %v2243_v59  ;;  %v19180_v59 = vld [vmem:[#allocation42_spill] sm:$0xff] }
 0x69f   : > { %vm19181_vm1 = vnez %v19180_v59 }
 0x6a2   : > { %v2374_v2 = vpop.f32.mrb[92].mxu1 }
 0x6a3   : > { %v2376_v52 = vpop.f32.mrb[93].mxu1  ;;  %v11560_v11 = vsel %vm9063_vm3, %v2374_v2, -1e+30 }
 0x6a4   : > { %v2378_v38 = vpop.f32.mrb[94].mxu1  ;;  %v11568_v14 = vsel %vm9075_vm5, %v2376_v52, -1e+30  ;;  %v19182_v52 = vld [vmem:[#allocation43_spill] sm:$0xff] }
 0x6a5   : > { %v2380_v55 = vpop.f32.mrb[95].mxu1  ;;  %v11578_v9 = vsel %vm9087_vm7, %v2378_v38, -1e+30 }
 0x6a6   : > { %v11588_v1 = vsel %vm9099_vm9, %v2380_v55, -1e+30 }
 0x6aa   : > { %v2384_v49 = vpop.f32.mrb[96].mxu1 }
 0x6ab   : > { %v11564_v35 = vsel %vm9069_vm4, %v2384_v49, -1e+30  ;;  %v2386_v21 = vpop.f32.mrb[97].mxu1 }
 0x6ac   : > { %v2597_v25 = vmax.f32 %v11560_v11, %v11564_v35  ;;  %v11574_v42 = vsel %vm9081_vm6, %v2386_v21, -1e+30  ;;  %v2388_v40 = vpop.f32.mrb[98].mxu1  ;;  %v19184_v21 = vld [vmem:[#allocation45_spill] sm:$0xff] }
 0x6ad   : > { %v2634_v12 = vmax.f32 %v11568_v14, %v11574_v42  ;;  %v11584_v56 = vsel %vm9093_vm8, %v2388_v40, -1e+30  ;;  %v2390_v23 = vpop.f32.mrb[99].mxu1 }
 0x6ae   : > { %v2598_v58 = vmax.f32 %v11578_v9, %v11584_v56  ;;  %v11594_v0 = vsel %vm9105_vm10, %v2390_v23, -1e+30  ;;  %v19186_v23 = vld [vmem:[#allocation44_spill] sm:$0xff] }
 0x6af   : > { %v2635_v60 = vmax.f32 %v11588_v1, %v11594_v0 }
 0x6b2   : > { %v2394_v34 = vpop.f32.mrb[100].mxu1 }
 0x6b3   : > { %v11600_v41 = vsel %vm9151_vm11, %v2394_v34, -1e+30  ;;  %v2396_v13 = vpop.f32.mrb[101].mxu1 }
 0x6b4   : > { %v2599_v62 = vmax.f32 %v2597_v25, %v11600_v41  ;;  %v11605_v50 = vsel %vm9157_vm12, %v2396_v13, -1e+30  ;;  %v2398_v46 = vpop.f32.mrb[102].mxu1  ;;  %v19188_v13 = vld [vmem:[#allocation46_spill] sm:$0xff] }
 0x6b5   : > { %v2636_v33 = vmax.f32 %v2634_v12, %v11605_v50  ;;  %v11610_v6 = vsel %vm9163_vm13, %v2398_v46, -1e+30  ;;  %v2400_v31 = vpop.f32.mrb[103].mxu1 }
 0x6b6   : > { %v2600_v7 = vmax.f32 %v2598_v58, %v11610_v6  ;;  %v11615_v24 = vsel %vm19173_vm0, %v2400_v31, -1e+30  ;;  %v19190_v31 = vld [vmem:[#allocation47_spill] sm:$0xff] }
 0x6b7   : > { %v2637_v36 = vmax.f32 %v2635_v60, %v11615_v24 }
 0x6ba   : > { %v2404_v51 = vpop.f32.mrb[104].mxu1 }
 0x6bb   : > { %v11620_v18 = vsel %vm19175_vm2, %v2404_v51, -1e+30  ;;  %v2406_v3 = vpop.f32.mrb[105].mxu1 }
 0x6bc   : > { %v2601_v45 = vmax.f32 %v2599_v62, %v11620_v18  ;;  %v11625_v53 = vsel %vm19177_vm15, %v2406_v3, -1e+30  ;;  %v2408_v22 = vpop.f32.mrb[106].mxu1  ;;  %vm19183_vm15 = vnez %v19182_v52  ;;  %v19192_v3 = vld [vmem:[#allocation48_spill] sm:$0xff] }
 0x6bd   : > { %v2638_v5 = vmax.f32 %v2636_v33, %v11625_v53  ;;  %v11630_v43 = vsel %vm19179_vm14, %v2408_v22, -1e+30  ;;  %v2410_v8 = vpop.f32.mrb[107].mxu1  ;;  %vm19185_vm14 = vnez %v19184_v21 }
 0x6be   : > { %v2602_v54 = vmax.f32 %v2600_v7, %v11630_v43  ;;  %v11635_v16 = vsel %vm19181_vm1, %v2410_v8, -1e+30  ;;  %vm19187_vm1 = vnez %v19186_v23  ;;  %v19195_v8 = vld [vmem:[#allocation49_spill] sm:$0xff] }
 0x6bf   : > { %v2639_v15 = vmax.f32 %v2637_v36, %v11635_v16 }
 0x6c2   : > { %v2414_v2 = vpop.f32.mrb[108].mxu1 }
 0x6c3   : > { %v11640_v38 = vsel %vm19183_vm15, %v2414_v2, -1e+30  ;;  %v2416_v55 = vpop.f32.mrb[109].mxu1  ;;  %vm19189_vm15 = vnez %v19188_v13 }
 0x6c4   : > { %v2603_v49 = vmax.f32 %v2601_v45, %v11640_v38  ;;  %v11645_v25 = vsel %vm19185_vm14, %v2416_v55, -1e+30  ;;  %v2418_v40 = vpop.f32.mrb[110].mxu1  ;;  %vm19191_vm14 = vnez %v19190_v31  ;;  %v19197_v55 = vld [vmem:[#allocation51_spill] sm:$0xff] }
 0x6c5   : > { %v2640_v12 = vmax.f32 %v2638_v5, %v11645_v25  ;;  %v11650_v58 = vsel %vm19187_vm1, %v2418_v40, -1e+30  ;;  %v2420_v60 = vpop.f32.mrb[111].mxu1  ;;  %vm19193_vm1 = vnez %v19192_v3 }
 0x6c6   : > { %v2604_v34 = vmax.f32 %v2602_v54, %v11650_v58  ;;  %v11655_v62 = vsel %vm19189_vm15, %v2420_v60, -1e+30  ;;  %vm19196_vm15 = vnez %v19195_v8  ;;  %v19202_v8 = vld [vmem:[#allocation54_spill] sm:$0xff] }
 0x6c7   : > { %v2641_v46 = vmax.f32 %v2639_v15, %v11655_v62 }
 0x6ca   : > { %v2424_v33 = vpop.f32.mrb[112].mxu1 }
 0x6cb   : > { %v11660_v7 = vsel %vm19191_vm14, %v2424_v33, -1e+30  ;;  %v2426_v36 = vpop.f32.mrb[113].mxu1  ;;  %vm19198_vm14 = vnez %v19197_v55  ;;  %v19200_v33 = vld [vmem:[#allocation53_spill] sm:$0xff]  ;;  %v19205_v55 = vld [vmem:[#allocation55_spill] sm:$0xff] }
 0x6cc   : > { %v2605_v51 = vmax.f32 %v2603_v49, %v11660_v7  ;;  %v11665_v45 = vsel %vm19193_vm1, %v2426_v36, -1e+30  ;;  %v2428_v22 = vpop.f32.mrb[114].mxu1  ;;  %vm19201_vm1 = vnez %v19200_v33  ;;  %v19207_v33 = vld [vmem:[#allocation57_spill] sm:$0xff] }
 0x6cd   : > { %19194 = vst [vmem:[#allocation106_spill] sm:$0xff] %v11665_v45  ;;  %v2642_v5 = vmax.f32 %v2640_v12, %v11665_v45  ;;  %v11670_v54 = vsel %vm19196_vm15, %v2428_v22, -1e+30  ;;  %v2430_v15 = vpop.f32.mrb[115].mxu1  ;;  %vm19203_vm15 = vnez %v19202_v8  ;;  %v19210_v8 = vld [vmem:[#allocation59_spill] sm:$0xff] }
 0x6ce   : > { %v2606_v2 = vmax.f32 %v2604_v34, %v11670_v54  ;;  %v11675_v40 = vsel %vm19198_vm14, %v2430_v15, -1e+30  ;;  %vm19206_vm14 = vnez %v19205_v55  ;;  %v19212_v55 = vld [vmem:[#allocation60_spill] sm:$0xff] }
 0x6cf   : > { %19199 = vst [vmem:[#allocation110_spill] sm:$0xff] %v11675_v40  ;;  %v2643_v49 = vmax.f32 %v2641_v46, %v11675_v40 }
 0x6d2   : > { %v2434_v60 = vpop.f32.mrb[116].mxu1 }
 0x6d3   : > { %v11680_v36 = vsel %vm19201_vm1, %v2434_v60, -1e+30  ;;  %v2436_v3 = vpop.f32.mrb[117].mxu1  ;;  %vm19208_vm1 = vnez %v19207_v33  ;;  %v19215_v33 = vld [vmem:[#allocation61_spill] sm:$0xff] }
 0x6d4   : > { %v2607_v12 = vmax.f32 %v2605_v51, %v11680_v36  ;;  %v11685_v22 = vsel %vm19203_vm15, %v2436_v3, -1e+30  ;;  %v2438_v31 = vpop.f32.mrb[118].mxu1  ;;  %vm19211_vm15 = vnez %v19210_v8  ;;  %v19217_v8 = vld [vmem:[#allocation63_spill] sm:$0xff] }
 0x6d5   : > { %19204 = vst [vmem:[#allocation88_spill] sm:$0xff] %v11685_v22  ;;  %v2644_v34 = vmax.f32 %v2642_v5, %v11685_v22  ;;  %v11690_v15 = vsel %vm19206_vm14, %v2438_v31, -1e+30  ;;  %v2440_v46 = vpop.f32.mrb[119].mxu1  ;;  %vm19213_vm14 = vnez %v19212_v55  ;;  %v19220_v55 = vld [vmem:[#allocation65_spill] sm:$0xff] }
 0x6d6   : > { %v2608_v13 = vmax.f32 %v2606_v2, %v11690_v15  ;;  %v11695_v60 = vsel %vm19208_vm1, %v2440_v46, -1e+30  ;;  %vm19216_vm1 = vnez %v19215_v33  ;;  %v19222_v33 = vld [vmem:[#allocation66_spill] sm:$0xff] }
 0x6d7   : > { %19209 = vst [vmem:[#allocation89_spill] sm:$0xff] %v11695_v60  ;;  %v2645_v51 = vmax.f32 %v2643_v49, %v11695_v60 }
 0x6da   : > { %v2444_v23 = vpop.f32.mrb[120].mxu1 }
 0x6db   : > { %v11700_v3 = vsel %vm19211_vm15, %v2444_v23, -1e+30  ;;  %v2446_v21 = vpop.f32.mrb[121].mxu1  ;;  %vm19218_vm15 = vnez %v19217_v8  ;;  %v19225_v8 = vld [vmem:[#allocation67_spill] sm:$0xff] }
 0x6dc   : > { %v2609_v5 = vmax.f32 %v2607_v12, %v11700_v3  ;;  %v11705_v31 = vsel %vm19213_vm14, %v2446_v21, -1e+30  ;;  %v2448_v52 = vpop.f32.mrb[122].mxu1  ;;  %vm19221_vm14 = vnez %v19220_v55  ;;  %v19227_v55 = vld [vmem:[#allocation69_spill] sm:$0xff] }
 0x6dd   : > { %19214 = vst [vmem:[#allocation91_spill] sm:$0xff] %v11705_v31  ;;  %v2646_v2 = vmax.f32 %v2644_v34, %v11705_v31  ;;  %v11710_v46 = vsel %vm19216_vm1, %v2448_v52, -1e+30  ;;  %v2450_v49 = vpop.f32.mrb[123].mxu1  ;;  %vm19223_vm1 = vnez %v19222_v33  ;;  %v19230_v33 = vld [vmem:[#allocation71_spill] sm:$0xff] }
 0x6de   : > { %v2610_v59 = vmax.f32 %v2608_v13, %v11710_v46  ;;  %v11715_v23 = vsel %vm19218_vm15, %v2450_v49, -1e+30  ;;  %vm19226_vm15 = vnez %v19225_v8  ;;  %v19232_v8 = vld [vmem:[#allocation73_spill] sm:$0xff] }
 0x6df   : > { %19219 = vst [vmem:[#allocation92_spill] sm:$0xff] %v11715_v23  ;;  %v2647_v12 = vmax.f32 %v2645_v51, %v11715_v23 }
 0x6e2   : > { %v2454_v30 = vpop.f32.mrb[124].mxu1 }
 0x6e3   : > { %v11720_v21 = vsel %vm19221_vm14, %v2454_v30, -1e+30  ;;  %v2456_v44 = vpop.f32.mrb[125].mxu1  ;;  %vm19228_vm14 = vnez %v19227_v55  ;;  %v19235_v55 = vld [vmem:[#allocation72_spill] sm:$0xff] }
 0x6e4   : > { %v2611_v34 = vmax.f32 %v2609_v5, %v11720_v21  ;;  %v11725_v52 = vsel %vm19223_vm1, %v2456_v44, -1e+30  ;;  %v2458_v48 = vpop.f32.mrb[126].mxu1  ;;  %vm19231_vm1 = vnez %v19230_v33  ;;  %v19237_v33 = vld [vmem:[#allocation74_spill] sm:$0xff] }
 0x6e5   : > { %19224 = vst [vmem:[#allocation95_spill] sm:$0xff] %v11725_v52  ;;  %v2648_v13 = vmax.f32 %v2646_v2, %v11725_v52  ;;  %v11730_v49 = vsel %vm19226_vm15, %v2458_v48, -1e+30  ;;  %v2460_v51 = vpop.f32.mrb[127].mxu1  ;;  %vm19233_vm15 = vnez %v19232_v8  ;;  %v19240_v8 = vld [vmem:[#allocation77_spill] sm:$0xff] }
 0x6e6   : > { %v2612_v63 = vmax.f32 %v2610_v59, %v11730_v49  ;;  %v11735_v30 = vsel %vm19228_vm14, %v2460_v51, -1e+30  ;;  %vm19236_vm14 = vnez %v19235_v55  ;;  %v19242_v55 = vld [vmem:[#allocation79_spill] sm:$0xff] }
 0x6e7   : > { %19229 = vst [vmem:[#allocation50_spill] sm:$0xff] %v11735_v30  ;;  %v2649_v5 = vmax.f32 %v2647_v12, %v11735_v30  ;;  %v19272_v30 = vld [vmem:[#allocation96_spill] sm:$0xff] }
 0x6ea   : > { %v2464_v37 = vpop.f32.mrb[128].mxu1 }
 0x6eb   : > { %v11740_v44 = vsel %vm19231_vm1, %v2464_v37, -1e+30  ;;  %v2466_v4 = vpop.f32.mrb[129].mxu1  ;;  %vm19238_vm1 = vnez %v19237_v33  ;;  %v19245_v33 = vld [vmem:[#allocation78_spill] sm:$0xff] }
 0x6ec   : > { %v2613_v2 = vmax.f32 %v2611_v34, %v11740_v44  ;;  %v11745_v48 = vsel %vm19233_vm15, %v2466_v4, -1e+30  ;;  %v2468_v19 = vpop.f32.mrb[130].mxu1  ;;  %vm19241_vm15 = vnez %v19240_v8 }
 0x6ed   : > { %19234 = vst [vmem:[#allocation52_spill] sm:$0xff] %v11745_v48  ;;  %v2650_v59 = vmax.f32 %v2648_v13, %v11745_v48  ;;  %v11750_v51 = vsel %vm19236_vm14, %v2468_v19, -1e+30  ;;  %v2470_v12 = vpop.f32.mrb[131].mxu1  ;;  %vm19243_vm14 = vnez %v19242_v55 }
 0x6ee   : > { %v2614_v47 = vmax.f32 %v2612_v63, %v11750_v51  ;;  %v11755_v37 = vsel %vm19238_vm1, %v2470_v12, -1e+30  ;;  %vm19246_vm1 = vnez %v19245_v33 }
 0x6ef   : > { %19239 = vst [vmem:[#allocation56_spill] sm:$0xff] %v11755_v37  ;;  %v2651_v34 = vmax.f32 %v2649_v5, %v11755_v37 }
 0x6f2   : > { %v2474_v32 = vpop.f32.mrb[132].mxu1 }
 0x6f3   : > { %v11760_v4 = vsel %vm19241_vm15, %v2474_v32, -1e+30  ;;  %v2476_v39 = vpop.f32.mrb[133].mxu1  ;;  %v19247_v32 = vld [vmem:[#allocation81_spill] sm:$0xff] }
 0x6f4   : > { %v2615_v13 = vmax.f32 %v2613_v2, %v11760_v4  ;;  %v11765_v19 = vsel %vm19243_vm14, %v2476_v39, -1e+30  ;;  %v2478_v27 = vpop.f32.mrb[134].mxu1  ;;  %vm19248_vm15 = vnez %v19247_v32  ;;  %vm19250_vm14 = vnez %v19249_v26  ;;  %v19255_v26 = vld [vmem:[#allocation84_spill] sm:$0xff] }
 0x6f5   : > { %19244 = vst [vmem:[#allocation70_spill] sm:$0xff] %v11765_v19  ;;  %v2652_v63 = vmax.f32 %v2650_v59, %v11765_v19  ;;  %v11770_v12 = vsel %vm19246_vm1, %v2478_v27, -1e+30  ;;  %v2480_v5 = vpop.f32.mrb[135].mxu1  ;;  %vm19252_vm1 = vnez %v19251_v17  ;;  %v19258_v19 = vld [vmem:[#allocation86_spill] sm:$0xff]  ;;  %v19261_v17 = vld [vmem:[#allocation87_spill] sm:$0xff] }
 0x6f6   : > { %v2616_v28 = vmax.f32 %v2614_v47, %v11770_v12  ;;  %vm19259_vm2 = vnez %v19258_v19 }
 0x6fa   : > { %v2484_v8 = vpop.f32.mrb[136].mxu1 }
 0x6fb   : > { %v11775_v10 = vsel %vm19248_vm15, %v2484_v8, -1e+30  ;;  %v2486_v2 = vpop.f32.mrb[137].mxu1  ;;  %vm19254_vm15 = vnez %v19253_v29 }
 0x6fc   : > { %v2617_v55 = vmax.f32 %v2615_v13, %v11775_v10  ;;  %v2488_v39 = vpop.f32.mrb[138].mxu1 }
 0x6fd   : > { %v11780_v61 = vsel %vm19250_vm14, %v2488_v39, -1e+30  ;;  %v2490_v59 = vpop.f32.mrb[139].mxu1  ;;  %vm19256_vm14 = vnez %v19255_v26 }
 0x6fe   : > { %v2618_v27 = vmax.f32 %v2616_v28, %v11780_v61  ;;  %v11794_v39 = vsel %vm19256_vm14, %v2480_v5, -1e+30  ;;  %v11798_v28 = vsel %vm19259_vm2, %v2486_v2, -1e+30  ;;  %v19267_v5 = vld [vmem:[#allocation93_spill] sm:$0xff] }
 0x6ff   : > { %19257 = vst [vmem:[#allocation64_spill] sm:$0xff] %v11794_v39  ;;  %19260 = vst [vmem:[#allocation68_spill] sm:$0xff] %v11798_v28  ;;  %v2654_v26 = vmax.f32 %v2652_v63, %v11798_v28  ;;  %vm19268_vm14 = vnez %v19267_v5  ;;  %v19275_v28 = vld [vmem:[#allocation97_spill] sm:$0xff] }
 0x702   : > { %v2494_v33 = vpop.f32.mrb[140].mxu1 }
 0x703   : > { %v11785_v47 = vsel %vm19252_vm1, %v2494_v33, -1e+30  ;;  %v2496_v20 = vpop.f32.mrb[141].mxu1  ;;  %vm19262_vm1 = vnez %v19261_v17  ;;  %v19270_v17 = vld [vmem:[#allocation94_spill] sm:$0xff] }
 0x704   : > { %v2619_v8 = vmax.f32 %v2617_v55, %v11785_v47  ;;  %v2498_v32 = vpop.f32.mrb[142].mxu1  ;;  %v11803_v37 = vsel %vm19262_vm1, %v2490_v59, -1e+30  ;;  %v19264_v55 = vld [vmem:[#allocation90_spill] sm:$0xff]  ;;  %vm19271_vm1 = vnez %v19270_v17  ;;  %v19277_v17 = vld [vmem:[#allocation99_spill] sm:$0xff] }
 0x705   : > { %v11790_v13 = vsel %vm19254_vm15, %v2498_v32, -1e+30  ;;  %v2500_v57 = vpop.f32.mrb[143].mxu1  ;;  %19263 = vst [vmem:[#allocation98_spill] sm:$0xff] %v11803_v37  ;;  %vm19265_vm0 = vnez %v19264_v55  ;;  %v2653_v32 = vmax.f32 %v2651_v34, %v11794_v39 }
 0x706   : > { %v2620_v33 = vmax.f32 %v2618_v27, %v11790_v13  ;;  %v11807_v29 = vsel %vm19265_vm0, %v2496_v20, -1e+30  ;;  %v11813_v48 = vsel %vm19268_vm14, %v2500_v57, -1e+30  ;;  %vm19273_vm0 = vnez %v19272_v30  ;;  %v19280_v30 = vld [vmem:[#allocation101_spill] sm:$0xff] }
 0x707   : > { %19266 = vst [vmem:[#allocation104_spill] sm:$0xff] %v11807_v29  ;;  %19269 = vst [vmem:[#allocation100_spill] sm:$0xff] %v11813_v48  ;;  %v2655_v19 = vmax.f32 %v2653_v32, %v11803_v37  ;;  %v2656_v27 = vmax.f32 %v2654_v26, %v11807_v29  ;;  %vm19276_vm14 = vnez %v19275_v28  ;;  %v19282_v28 = vld [vmem:[#allocation102_spill] sm:$0xff] }
 0x709   : > { %v2657_v57 = vmax.f32 %v2655_v19, %v11813_v48 }
 0x70a   : > { %v2504_v2 = vpop.f32.mrb[144].mxu1 }
 0x70b   : > { %v11819_v59 = vsel %vm19271_vm1, %v2504_v2, -1e+30  ;;  %v2506_v55 = vpop.f32.mrb[145].mxu1  ;;  %vm19278_vm1 = vnez %v19277_v17  ;;  %v19285_v17 = vld [vmem:[#allocation103_spill] sm:$0xff] }
 0x70c   : > { %v2621_v20 = vmax.f32 %v2619_v8, %v11819_v59  ;;  %v11824_v34 = vsel %vm19273_vm0, %v2506_v55, -1e+30  ;;  %v2508_v63 = vpop.f32.mrb[146].mxu1  ;;  %vm19281_vm0 = vnez %v19280_v30  ;;  %v19287_v30 = vld [vmem:[#allocation105_spill] sm:$0xff] }
 0x70d   : > { %19274 = vst [vmem:[#allocation75_spill] sm:$0xff] %v11824_v34  ;;  %v2658_v5 = vmax.f32 %v2656_v27, %v11824_v34  ;;  %v11830_v32 = vsel %vm19276_vm14, %v2508_v63, -1e+30  ;;  %v2510_v26 = vpop.f32.mrb[147].mxu1  ;;  %vm19283_vm14 = vnez %v19282_v28  ;;  %v19290_v28 = vld [vmem:[#allocation107_spill] sm:$0xff] }
 0x70e   : > { %v2622_v2 = vmax.f32 %v2620_v33, %v11830_v32  ;;  %v11835_v29 = vsel %vm19278_vm1, %v2510_v26, -1e+30  ;;  %vm19286_vm1 = vnez %v19285_v17  ;;  %v19292_v17 = vld [vmem:[#allocation108_spill] sm:$0xff] }
 0x70f   : > { %19279 = vst [vmem:[#allocation58_spill] sm:$0xff] %v11835_v29  ;;  %v2659_v8 = vmax.f32 %v2657_v57, %v11835_v29 }
 0x712   : > { %v2514_v55 = vpop.f32.mrb[148].mxu1 }
 0x713   : > { %v11840_v37 = vsel %vm19281_vm0, %v2514_v55, -1e+30  ;;  %v2516_v19 = vpop.f32.mrb[149].mxu1  ;;  %vm19288_vm0 = vnez %v19287_v30  ;;  %v19295_v30 = vld [vmem:[#allocation109_spill] sm:$0xff] }
 0x714   : > { %v2623_v27 = vmax.f32 %v2621_v20, %v11840_v37  ;;  %v11845_v63 = vsel %vm19283_vm14, %v2516_v19, -1e+30  ;;  %v2518_v48 = vpop.f32.mrb[150].mxu1  ;;  %vm19291_vm14 = vnez %v19290_v28  ;;  %v19297_v28 = vld [vmem:[#allocation111_spill] sm:$0xff] }
 0x715   : > { %19284 = vst [vmem:[#allocation62_spill] sm:$0xff] %v11845_v63  ;;  %v2660_v33 = vmax.f32 %v2658_v5, %v11845_v63  ;;  %v11850_v26 = vsel %vm19286_vm1, %v2518_v48, -1e+30  ;;  %v2520_v57 = vpop.f32.mrb[151].mxu1  ;;  %vm19293_vm1 = vnez %v19292_v17 }
 0x716   : > { %v2624_v39 = vmax.f32 %v2622_v2, %v11850_v26  ;;  %v11855_v55 = vsel %vm19288_vm0, %v2520_v57, -1e+30  ;;  %vm19296_vm0 = vnez %v19295_v30 }
 0x717   : > { %19289 = vst [vmem:[#allocation76_spill] sm:$0xff] %v11855_v55  ;;  %v2661_v20 = vmax.f32 %v2659_v8, %v11855_v55 }
 0x71a   : > { %v2524_v29 = vpop.f32.mrb[152].mxu1 }
 0x71b   : > { %v11860_v19 = vsel %vm19291_vm14, %v2524_v29, -1e+30  ;;  %v2526_v34 = vpop.f32.mrb[153].mxu1  ;;  %vm19298_vm14 = vnez %v19297_v28 }
 0x71c   : > { %v2625_v5 = vmax.f32 %v2623_v27, %v11860_v19  ;;  %v11865_v48 = vsel %vm19293_vm1, %v2526_v34, -1e+30  ;;  %v2528_v63 = vpop.f32.mrb[154].mxu1  ;;  %vm19409_vm1 = vcmask 31744  }
 0x71d   : > { %19294 = vst [vmem:[#allocation80_spill] sm:$0xff] %v11865_v48  ;;  %v2662_v2 = vmax.f32 %v2660_v33, %v11865_v48  ;;  %v11870_v57 = vsel %vm19296_vm0, %v2528_v63, -1e+30  ;;  %v2530_v8 = vpop.f32.mrb[155].mxu1  ;;  %vm19410_vm2 = vmmov %vm19409_vm1 }
 0x71e   : > { %v2626_v55 = vmax.f32 %v2624_v39, %v11870_v57  ;;  %v11875_v29 = vsel %vm19298_vm14, %v2530_v8, -1e+30  ;;  %vm19406_vm14 = vcmask 1041408   ;;  %vm19411_vm15 = vmmov %vm19409_vm1 }
 0x71f   : > { %v2663_v27 = vmax.f32 %v2661_v20, %v11875_v29  ;;  %vm19407_vm0 = vmmov %vm19406_vm14 }
 0x720   : > { %v2627_v52 = vmax.f32 %v2625_v5, %v2626_v55 }
 0x721   : > { %v2664_v17 = vmax.f32 %v2662_v2, %v2663_v27 }
 0x722   : > { %v2628_v34 = vrot.slane %v2627_v52, 4 }
 0x723   : > { %v2665_v23 = vrot.slane %v2664_v17, 4 }
 0x724   : > { %v2629_v31 = vmax.f32 %v2627_v52, %v2628_v34 }
 0x725   : > { %v2666_v60 = vmax.f32 %v2664_v17, %v2665_v23 }
 0x726   : > { %v2630_v33 = vrot.slane %v2629_v31, 2 }
 0x727   : > { %v2667_v48 = vrot.slane %v2666_v60, 2 }
 0x728   : > { %v2631_v30 = vmax.f32 %v2629_v31, %v2630_v33  ;;  %v19307_v33 = vld [vmem:[#allocation50_spill] sm:$0xff] }
 0x729   : > { %v2668_v63 = vmax.f32 %v2666_v60, %v2667_v48 }
 0x72a   : > { %v2632_v22 = vrot.slane %v2631_v30, 1 }
 0x72b   : > { %v2669_v40 = vrot.slane %v2668_v63, 1 }
 0x72c   : > { %v11878_v45 = vmax.f32 %v2631_v30, %v2632_v22 }
 0x72d   : > { %v11880_v39 = vmax.f32 %v2668_v63, %v2669_v40 }
 0x72e   : > { %v2671_v8 = vsub.f32 %v11560_v11, %v11878_v45  ;;  %v2673_v55 = vsub.f32 %v11578_v9, %v11878_v45  ;;  %v2675_v52 = vsub.f32 %v11564_v35, %v11878_v45  ;;  %v2677_v17 = vsub.f32 %v11584_v56, %v11878_v45 }
 0x72f   : > { %v2679_v60 = vsub.f32 %v11600_v41, %v11878_v45  ;;  %v2681_v22 = vsub.f32 %v11610_v6, %v11878_v45  ;;  %v2683_v40 = vsub.f32 %v11620_v18, %v11878_v45  ;;  %v2685_v11 = vsub.f32 %v11630_v43, %v11878_v45  ;;  %v19314_v43 = vld [vmem:[#allocation58_spill] sm:$0xff] }
 0x730   : > { %v2687_v9 = vsub.f32 %v11640_v38, %v11878_v45  ;;  %v2689_v35 = vsub.f32 %v11650_v58, %v11878_v45  ;;  %v2691_v56 = vsub.f32 %v11660_v7, %v11878_v45  ;;  %v2693_v41 = vsub.f32 %v11670_v54, %v11878_v45  ;;  %v19308_v58 = vld [vmem:[#allocation52_spill] sm:$0xff] }
 0x731   : > { %v2695_v6 = vsub.f32 %v11680_v36, %v11878_v45  ;;  %v2735_v20 = vmul.f32 1.442695, %v2671_v8  ;;  %v2739_v34 = vmul.f32 1.442695, %v2673_v55  ;;  %v2743_v30 = vmul.f32 1.442695, %v2675_v52 }
 0x732   : > { %v2747_v5 = vmul.f32 1.442695, %v2677_v17  ;;  %v2751_v48 = vmul.f32 1.442695, %v2679_v60  ;;  %v2755_v23 = vmul.f32 1.442695, %v2681_v22  ;;  %v19318_v28 = vsub.f32 %v11690_v15, %v11878_v45 }
 0x733   : > { %7818 = vpow2.f32 %v2735_v20  ;;  %v2759_v2 = vmul.f32 1.442695, %v2683_v40  ;;  %v2763_v31 = vmul.f32 1.442695, %v2685_v11  ;;  %v2767_v60 = vmul.f32 1.442695, %v2687_v9 }
 0x734   : > { %7820 = vpow2.f32 %v2739_v34  ;;  %v19300_v9 = vld [vmem:[#allocation110_spill] sm:$0xff]  ;;  %v2771_v27 = vmul.f32 1.442695, %v2689_v35  ;;  %v19301_v40 = vld [vmem:[#allocation88_spill] sm:$0xff]  ;;  %v19302_v11 = vld [vmem:[#allocation89_spill] sm:$0xff]  ;;  %v19321_v15 = vsub.f32 %v11720_v21, %v11878_v45  ;;  %v19325_v21 = vsub.f32 %v11588_v1, %v11880_v39 }
 0x735   : > { %7822 = vpow2.f32 %v2743_v30  ;;  %v19304_v20 = vld [vmem:[#allocation91_spill] sm:$0xff]  ;;  %v19310_v8 = vld [vmem:[#allocation56_spill] sm:$0xff]  ;;  %v19311_v34 = vld [vmem:[#allocation70_spill] sm:$0xff]  ;;  %v2779_v52 = vmul.f32 1.442695, %v2693_v41 }
 0x736   : > { %7824 = vpow2.f32 %v2747_v5  ;;  %v19299_v5 = vld [vmem:[#allocation106_spill] sm:$0xff]  ;;  %v19306_v35 = vld [vmem:[#allocation95_spill] sm:$0xff]  ;;  %v2783_v7 = vmul.f32 1.442695, %v2695_v6  ;;  %v19316_v54 = vld [vmem:[#allocation76_spill] sm:$0xff] }
 0x737   : > { %7826 = vpow2.f32 %v2751_v48  ;;  %v19305_v48 = vld [vmem:[#allocation92_spill] sm:$0xff]  ;;  %v2787_v55 = vmul.f32 1.442695, %v19318_v28  ;;  %v2799_v28 = vmul.f32 1.442695, %v19321_v15 }
 0x738   : > { %7828 = vpow2.f32 %v2755_v23  ;;  %v19317_v17 = vld [vmem:[#allocation80_spill] sm:$0xff] }
 0x739   : > { %7830 = vpow2.f32 %v2759_v2 }
 0x73a   : > { %7832 = vpow2.f32 %v2763_v31  ;;  %v2775_v31 = vmul.f32 1.442695, %v2691_v56 }
 0x73b   : > { %7834 = vpow2.f32 %v2767_v60  ;;  %v19313_v60 = vld [vmem:[#allocation75_spill] sm:$0xff] }
 0x73c   : > { %7836 = vpow2.f32 %v2771_v27 }
 0x73d   : > { %v11958_v30 = vpop.eup %7818  ;;  %7838 = vpow2.f32 %v2775_v31 }
 0x73e   : > { %v11966_v23 = vpop.eup %7820  ;;  %7840 = vpow2.f32 %v2779_v52  ;;  %v19320_v52 = vsub.f32 %v11710_v46, %v11878_v45 }
 0x73f   : > { %v2863_v22 = vadd.f32 %v11966_v23, %v11958_v30  ;;  %v11980_v2 = vpop.eup %7822  ;;  %7842 = vpow2.f32 %v2783_v7 }
 0x740   : > { %19303 = vst [vmem:[#allocation9_spill] sm:$0xff] %v11980_v2  ;;  %v11993_v38 = vpop.eup %7824  ;;  %7844 = vpow2.f32 %v2787_v55  ;;  %v19323_v55 = vsub.f32 %v11568_v14, %v11880_v39  ;;  %v19328_v14 = vsub.f32 %v11574_v42, %v11880_v39 }
 0x741   : > { %v2864_v63 = vadd.f32 %v11980_v2, %v2863_v22  ;;  %19309 = vst [vmem:[#allocation10_spill] sm:$0xff] %v11993_v38  ;;  %v12003_v18 = vpop.eup %7826 }
 0x742   : > { %19312 = vst [vmem:[#allocation11_spill] sm:$0xff] %v12003_v18  ;;  %v12018_v27 = vpop.eup %7828  ;;  %v2737_v46 = vmul.f32 1.442695, %v19323_v55 }
 0x743   : > { %v2865_v22 = vadd.f32 %v11993_v38, %v2864_v63  ;;  %v19315_v63 = vld [vmem:[#allocation62_spill] sm:$0xff]  ;;  %v19319_v38 = vsub.f32 %v11700_v3, %v11878_v45  ;;  %v19322_v3 = vsub.f32 %v11730_v49, %v11878_v45 }
 0x745   : > { %v2866_v56 = vadd.f32 %v12003_v18, %v2865_v22  ;;  %v12027_v22 = vpop.eup %7830  ;;  %v2791_v41 = vmul.f32 1.442695, %v19319_v38  ;;  %v2803_v38 = vmul.f32 1.442695, %v19322_v3 }
 0x746   : > { %v12033_v18 = vpop.eup %7832 }
 0x747   : > { %v2867_v6 = vadd.f32 %v12018_v27, %v2866_v56  ;;  %v12039_v2 = vpop.eup %7834  ;;  %v2795_v56 = vmul.f32 1.442695, %v19320_v52  ;;  %7846 = vpow2.f32 %v2791_v41  ;;  %v19326_v41 = vsub.f32 %v11740_v44, %v11878_v45 }
 0x748   : > { %v12048_v7 = vpop.eup %7836  ;;  %v19331_v44 = vsub.f32 %v11594_v0, %v11880_v39 }
 0x749   : > { %v2868_v31 = vadd.f32 %v12027_v22, %v2867_v6  ;;  %v12057_v52 = vpop.eup %7838  ;;  %7848 = vpow2.f32 %v2795_v56  ;;  %v2807_v15 = vmul.f32 1.442695, %v19326_v41  ;;  %v19329_v56 = vsub.f32 %v11750_v51, %v11878_v45 }
 0x74a   : > { %19324 = vst [vmem:[#allocation20_spill] sm:$0xff] %v12057_v52  ;;  %7850 = vpow2.f32 %v2799_v28  ;;  %v12066_v3 = vpop.eup %7840  ;;  %v19334_v51 = vsub.f32 %v11605_v50, %v11880_v39 }
 0x74b   : > { %v2869_v36 = vadd.f32 %v12033_v18, %v2868_v31  ;;  %19327 = vst [vmem:[#allocation21_spill] sm:$0xff] %v12066_v3  ;;  %7852 = vpow2.f32 %v2803_v38  ;;  %v2811_v55 = vmul.f32 1.442695, %v19329_v56  ;;  %v12075_v28 = vpop.eup %7842  ;;  %v19332_v38 = vsub.f32 %v11760_v4, %v11878_v45 }
 0x74c   : > { %7854 = vpow2.f32 %v2737_v46  ;;  %19330 = vst [vmem:[#allocation12_spill] sm:$0xff] %v12075_v28  ;;  %v12084_v41 = vpop.eup %7844  ;;  %v2753_v46 = vmul.f32 1.442695, %v19334_v51  ;;  %v19336_v4 = vsub.f32 %v11615_v24, %v11880_v39  ;;  %v19339_v24 = vsub.f32 %v11780_v61, %v11878_v45 }
 0x74d   : > { %v2870_v6 = vadd.f32 %v12039_v2, %v2869_v36  ;;  %v2741_v36 = vmul.f32 1.442695, %v19325_v21  ;;  %v2815_v42 = vmul.f32 1.442695, %v19332_v38  ;;  %19333 = vst [vmem:[#allocation13_spill] sm:$0xff] %v12084_v41 }
 0x74f   : > { %v2871_v31 = vadd.f32 %v12048_v7, %v2870_v6  ;;  %v2745_v6 = vmul.f32 1.442695, %v19328_v14  ;;  %7856 = vpow2.f32 %v2741_v36  ;;  %v19335_v36 = vsub.f32 %v11770_v12, %v11878_v45 }
 0x750   : > { %7858 = vpow2.f32 %v2807_v15  ;;  %v2757_v14 = vmul.f32 1.442695, %v19336_v4  ;;  %v19338_v12 = vsub.f32 %v11625_v53, %v11880_v39  ;;  %v19341_v53 = vsub.f32 %v11785_v47, %v11878_v45 }
 0x751   : > { %v2872_v49 = vadd.f32 %v12057_v52, %v2871_v31  ;;  %v2749_v31 = vmul.f32 1.442695, %v19331_v44  ;;  %7860 = vpow2.f32 %v2745_v6  ;;  %v2819_v0 = vmul.f32 1.442695, %v19335_v36 }
 0x752   : > { %7862 = vpow2.f32 %v2811_v55  ;;  %v19337_v6 = vsub.f32 %v11775_v10, %v11878_v45 }
 0x753   : > { %v2873_v1 = vadd.f32 %v12066_v3, %v2872_v49  ;;  %v12093_v49 = vpop.eup %7846  ;;  %7864 = vpow2.f32 %v2749_v31  ;;  %v2827_v31 = vmul.f32 1.442695, %v19339_v24 }
 0x754   : > { %7866 = vpow2.f32 %v2815_v42  ;;  %v2823_v50 = vmul.f32 1.442695, %v19337_v6  ;;  %v12102_v55 = vpop.eup %7848  ;;  %v19340_v42 = vsub.f32 %v11635_v16, %v11880_v39  ;;  %v19343_v16 = vsub.f32 %v11790_v13, %v11878_v45 }
 0x755   : > { %v2874_v21 = vadd.f32 %v12075_v28, %v2873_v1  ;;  %7868 = vpow2.f32 %v2753_v46  ;;  %v2761_v1 = vmul.f32 1.442695, %v19338_v12  ;;  %v12107_v44 = vpop.eup %7850  ;;  %v2831_v46 = vmul.f32 1.442695, %v19341_v53 }
 0x756   : > { %7870 = vpow2.f32 %v2819_v0  ;;  %v12113_v10 = vpop.eup %7852  ;;  %v19342_v0 = vsub.f32 %v11645_v25, %v11880_v39  ;;  %v19347_v53 = vsub.f32 %v11830_v32, %v11878_v45 }
 0x757   : > { %v2875_v15 = vadd.f32 %v12084_v41, %v2874_v21  ;;  %7872 = vpow2.f32 %v2757_v14  ;;  %v2765_v21 = vmul.f32 1.442695, %v19340_v42  ;;  %v12118_v51 = vpop.eup %7854  ;;  %v2835_v14 = vmul.f32 1.442695, %v19343_v16 }
 0x758   : > { %7874 = vpow2.f32 %v2823_v50  ;;  %v19346_v42 = vsub.f32 %v19299_v5, %v11880_v39 }
 0x759   : > { %v2876_v56 = vadd.f32 %v12093_v49, %v2875_v15  ;;  %v12124_v61 = vpop.eup %7856  ;;  %7876 = vpow2.f32 %v2761_v1  ;;  %v2769_v15 = vmul.f32 1.442695, %v19342_v0  ;;  %v19345_v1 = vsub.f32 %v11819_v59, %v11878_v45 }
 0x75a   : > { %v12129_v4 = vpop.eup %7858  ;;  %7878 = vpow2.f32 %v2827_v31  ;;  %v2900_v47 = vadd.f32 %v12124_v61, %v12118_v51 }
 0x75b   : > { %v2877_v38 = vadd.f32 %v12102_v55, %v2876_v56  ;;  %v12137_v50 = vpop.eup %7860  ;;  %7880 = vpow2.f32 %v2765_v21  ;;  %v19344_v56 = vsub.f32 %v11655_v62, %v11880_v39  ;;  %v2839_v13 = vmul.f32 1.442695, %v19345_v1 }
 0x75c   : > { %v12142_v12 = vpop.eup %7862  ;;  %7882 = vpow2.f32 %v2831_v46  ;;  %v2901_v31 = vadd.f32 %v12137_v50, %v2900_v47  ;;  %v2777_v21 = vmul.f32 1.442695, %v19346_v42  ;;  %v2843_v46 = vmul.f32 1.442695, %v19347_v53 }
 0x75d   : > { %v2878_v36 = vadd.f32 %v12107_v44, %v2877_v38  ;;  %v2773_v25 = vmul.f32 1.442695, %v19344_v56  ;;  %v12149_v38 = vpop.eup %7864  ;;  %7884 = vpow2.f32 %v2769_v15  ;;  %v19348_v15 = vsub.f32 %v19300_v9, %v11880_v39 }
 0x75e   : > { %v12154_v62 = vpop.eup %7866  ;;  %7886 = vpow2.f32 %v2835_v14  ;;  %v19349_v14 = vsub.f32 %v11840_v37, %v11878_v45 }
 0x75f   : > { %v2879_v6 = vadd.f32 %v12113_v10, %v2878_v36  ;;  %v2902_v36 = vadd.f32 %v12149_v38, %v2901_v31  ;;  %v12161_v0 = vpop.eup %7868  ;;  %7888 = vpow2.f32 %v2773_v25  ;;  %v2781_v16 = vmul.f32 1.442695, %v19348_v15 }
 0x760   : > { %v12166_v5 = vpop.eup %7870  ;;  %7890 = vpow2.f32 %v2839_v13  ;;  %v19350_v25 = vsub.f32 %v19301_v40, %v11880_v39  ;;  %v19351_v13 = vsub.f32 %v11850_v26, %v11878_v45 }
 0x761   : > { %v2880_v24 = vadd.f32 %v12129_v4, %v2879_v6  ;;  %v2847_v6 = vmul.f32 1.442695, %v19349_v14  ;;  %v2903_v47 = vadd.f32 %v12161_v0, %v2902_v36  ;;  %v12173_v56 = vpop.eup %7872  ;;  %7892 = vpow2.f32 %v2777_v21 }
 0x762   : > { %v2785_v1 = vmul.f32 1.442695, %v19350_v25  ;;  %v12178_v9 = vpop.eup %7874  ;;  %7894 = vpow2.f32 %v2843_v46  ;;  %v19352_v21 = vsub.f32 %v19302_v11, %v11880_v39  ;;  %v19353_v46 = vsub.f32 %v11860_v19, %v11878_v45 }
 0x763   : > { %v2881_v59 = vadd.f32 %v12142_v12, %v2880_v24  ;;  %v2851_v24 = vmul.f32 1.442695, %v19351_v13  ;;  %v2904_v31 = vadd.f32 %v12173_v56, %v2903_v47  ;;  %v12185_v42 = vpop.eup %7876  ;;  %7896 = vpow2.f32 %v2781_v16 }
 0x764   : > { %v2789_v53 = vmul.f32 1.442695, %v19352_v21  ;;  %v12190_v40 = vpop.eup %7878  ;;  %7898 = vpow2.f32 %v2847_v6  ;;  %v19354_v16 = vsub.f32 %v19304_v20, %v11880_v39  ;;  %v19355_v6 = vsub.f32 %v11870_v57, %v11878_v45 }
 0x765   : > { %v2882_v32 = vadd.f32 %v12154_v62, %v2881_v59  ;;  %v2855_v59 = vmul.f32 1.442695, %v19353_v46  ;;  %v2905_v36 = vadd.f32 %v12185_v42, %v2904_v31  ;;  %v12197_v15 = vpop.eup %7880  ;;  %7900 = vpow2.f32 %v2785_v1 }
 0x766   : > { %v2793_v14 = vmul.f32 1.442695, %v19354_v16  ;;  %v12202_v11 = vpop.eup %7882  ;;  %7902 = vpow2.f32 %v2851_v24  ;;  %v19356_v1 = vsub.f32 %v19305_v48, %v11880_v39  ;;  %v19357_v57 = vsub.f32 %v19306_v35, %v11880_v39 }
 0x767   : > { %v2883_v37 = vadd.f32 %v12166_v5, %v2882_v32  ;;  %v2859_v32 = vmul.f32 1.442695, %v19355_v6  ;;  %v2906_v47 = vadd.f32 %v12197_v15, %v2905_v36  ;;  %v12209_v25 = vpop.eup %7884  ;;  %7904 = vpow2.f32 %v2789_v53 }
 0x768   : > { %v2797_v13 = vmul.f32 1.442695, %v19356_v1  ;;  %v12214_v20 = vpop.eup %7886  ;;  %7906 = vpow2.f32 %v2855_v59  ;;  %v2801_v31 = vmul.f32 1.442695, %v19357_v57  ;;  %v19359_v59 = vsub.f32 %v19307_v33, %v11880_v39 }
 0x769   : > { %v2884_v26 = vadd.f32 %v12178_v9, %v2883_v37  ;;  %v2907_v37 = vadd.f32 %v12209_v25, %v2906_v47  ;;  %v12218_v45 = vpop.eup %7888  ;;  %7908 = vpow2.f32 %v2793_v14  ;;  %v19361_v6 = vsub.f32 %v19308_v58, %v11880_v39 }
 0x76a   : > { %v12223_v21 = vpop.eup %7890  ;;  %7910 = vpow2.f32 %v2859_v32 }
 0x76b   : > { %v2885_v19 = vadd.f32 %v12190_v40, %v2884_v26  ;;  %v2908_v53 = vadd.f32 %v12218_v45, %v2907_v37  ;;  %v12227_v46 = vpop.eup %7892  ;;  %7912 = vpow2.f32 %v2797_v13  ;;  %v2805_v26 = vmul.f32 1.442695, %v19359_v59  ;;  %v19363_v13 = vld [vmem:[#allocation64_spill] sm:$0xff] }
 0x76c   : > { %19358 = vst [vmem:[#allocation22_spill] sm:$0xff] %v12227_v46  ;;  %v12232_v36 = vpop.eup %7894  ;;  %7914 = vpow2.f32 %v2801_v31  ;;  %v2809_v32 = vmul.f32 1.442695, %v19361_v6  ;;  %v19364_v37 = vsub.f32 %v19310_v8, %v11880_v39  ;;  %v19366_v59 = vld [vmem:[#allocation68_spill] sm:$0xff] }
 0x76d   : > { %v2886_v24 = vadd.f32 %v12202_v11, %v2885_v19  ;;  %v2909_v35 = vadd.f32 %v12227_v46, %v2908_v53  ;;  %v12236_v14 = vpop.eup %7896  ;;  %7916 = vpow2.f32 %v2805_v26 }
 0x76e   : > { %19360 = vst [vmem:[#allocation23_spill] sm:$0xff] %v12236_v14  ;;  %v12241_v19 = vpop.eup %7898  ;;  %v2813_v57 = vmul.f32 1.442695, %v19364_v37  ;;  %7918 = vpow2.f32 %v2809_v32 }
 0x76f   : > { %v2887_v48 = vadd.f32 %v12214_v20, %v2886_v24  ;;  %v2910_v33 = vadd.f32 %v12236_v14, %v2909_v35  ;;  %v12245_v1 = vpop.eup %7900  ;;  %v2714_v24 = vsub.f32 %v19363_v13, %v11880_v39  ;;  %v19367_v35 = vsub.f32 %v19311_v34, %v11880_v39 }
 0x770   : > { %19362 = vst [vmem:[#allocation14_spill] sm:$0xff] %v12245_v1  ;;  %v12252_v31 = vpop.eup %7902  ;;  %7920 = vpow2.f32 %v2813_v57 }
 0x771   : > { %v2888_v16 = vadd.f32 %v12223_v21, %v2887_v48  ;;  %v2911_v48 = vadd.f32 %v12245_v1, %v2910_v33  ;;  %v12256_v53 = vpop.eup %7904  ;;  %v2817_v26 = vmul.f32 1.442695, %v19367_v35  ;;  %v2821_v41 = vmul.f32 1.442695, %v2714_v24  ;;  %v19369_v35 = vld [vmem:[#allocation104_spill] sm:$0xff] }
 0x772   : > { %19365 = vst [vmem:[#allocation17_spill] sm:$0xff] %v12256_v53  ;;  %v12263_v6 = vpop.eup %7906  ;;  %v19370_v24 = vld [vmem:[#allocation100_spill] sm:$0xff] }
 0x773   : > { %v2889_v47 = vadd.f32 %v12232_v36, %v2888_v16  ;;  %v2716_v16 = vsub.f32 %v19366_v59, %v11880_v39  ;;  %v2912_v13 = vadd.f32 %v12256_v53, %v2911_v48  ;;  %v12267_v37 = vpop.eup %7908  ;;  %7922 = vpow2.f32 %v2817_v26 }
 0x774   : > { %v12271_v28 = vpop.eup %7910  ;;  %v2722_v57 = vsub.f32 %v19370_v24, %v11880_v39  ;;  %7924 = vpow2.f32 %v2821_v41  ;;  %v19371_v41 = vsub.f32 %v19313_v60, %v11880_v39  ;;  %v19373_v60 = vsub.f32 %v19315_v63, %v11880_v39 }
 0x775   : > { %v2890_v58 = vadd.f32 %v12241_v19, %v2889_v47  ;;  %v19368_v47 = vld [vmem:[#allocation98_spill] sm:$0xff]  ;;  %v2913_v34 = vadd.f32 %v12267_v37, %v2912_v13  ;;  %v12275_v59 = vpop.eup %7912  ;;  %v2825_v48 = vmul.f32 1.442695, %v2716_v16 }
 0x776   : > { %v2718_v33 = vsub.f32 %v19368_v47, %v11880_v39  ;;  %v12281_v47 = vpop.eup %7914 }
 0x777   : > { %v2891_v8 = vadd.f32 %v12252_v31, %v2890_v58  ;;  %v2720_v58 = vsub.f32 %v19369_v35, %v11880_v39  ;;  %v2914_v1 = vadd.f32 %v12275_v59, %v2913_v34  ;;  %v12286_v52 = vpop.eup %7916  ;;  %7926 = vpow2.f32 %v2825_v48 }
 0x778   : > { %v2837_v34 = vmul.f32 1.442695, %v2722_v57 }
 0x779   : > { %v2892_v32 = vadd.f32 %v12263_v6, %v2891_v8  ;;  %v2829_v8 = vmul.f32 1.442695, %v2718_v33  ;;  %v2915_v13 = vadd.f32 %v12281_v47, %v2914_v1  ;;  %v2833_v35 = vmul.f32 1.442695, %v2720_v58 }
 0x77a   : > { %v2841_v1 = vmul.f32 1.442695, %v19371_v41 }
 0x77b   : > { %v2893_v53 = vadd.f32 %v12271_v28, %v2892_v32  ;;  %v2916_v16 = vadd.f32 %v12286_v52, %v2915_v13  ;;  %v12289_v32 = vpop.eup %7918  ;;  %7928 = vpow2.f32 %v2829_v8 }
 0x77c   : > { %v12292_v24 = vpop.eup %7920  ;;  %7930 = vpow2.f32 %v2833_v35  ;;  %v2849_v35 = vmul.f32 1.442695, %v19373_v60 }
 0x77d   : > { %v2894_v3 = vrot.slane %v2893_v53, 4  ;;  %v2917_v46 = vadd.f32 %v12289_v32, %v2916_v16  ;;  %7932 = vpow2.f32 %v2837_v34 }
 0x77e   : > { %7934 = vpow2.f32 %v2841_v1  ;;  %v19375_v1 = vsub.f32 %v19317_v17, %v11880_v39 }
 0x77f   : > { %v2895_v26 = vadd.f32 %v2894_v3, %v2893_v53  ;;  %v2918_v58 = vadd.f32 %v12292_v24, %v2917_v46  ;;  %v12298_v3 = vpop.eup %7922  ;;  %v19372_v53 = vsub.f32 %v19314_v43, %v11880_v39  ;;  %v19374_v46 = vsub.f32 %v19316_v54, %v11880_v39 }
 0x780   : > { %v12304_v13 = vpop.eup %7924  ;;  %v2857_v63 = vmul.f32 1.442695, %v19375_v1 }
 0x781   : > { %v2896_v14 = vrot.slane %v2895_v26, 2  ;;  %v2845_v48 = vmul.f32 1.442695, %v19372_v53  ;;  %v2919_v8 = vadd.f32 %v12298_v3, %v2918_v58  ;;  %v12313_v16 = vpop.eup %7926  ;;  %v19376_v53 = vsub.f32 %v11875_v29, %v11880_v39 }
 0x783   : > { %v2897_v33 = vadd.f32 %v2896_v14, %v2895_v26  ;;  %v2853_v14 = vmul.f32 1.442695, %v19374_v46  ;;  %v2920_v26 = vadd.f32 %v12304_v13, %v2919_v8  ;;  %7936 = vpow2.f32 %v2845_v48 }
 0x784   : > { %7938 = vpow2.f32 %v2849_v35 }
 0x785   : > { %v2898_v57 = vrot.slane %v2897_v33, 1  ;;  %v2921_v34 = vadd.f32 %v12313_v16, %v2920_v26  ;;  %v12316_v41 = vpop.eup %7928  ;;  %7940 = vpow2.f32 %v2853_v14 }
 0x786   : > { %v12322_v54 = vpop.eup %7930 }
 0x787   : > { %v2899_v43 = vadd.f32 %v2898_v57, %v2897_v33  ;;  %v2922_v58 = vadd.f32 %v12316_v41, %v2921_v34  ;;  %v2861_v33 = vmul.f32 1.442695, %v19376_v53  ;;  %v12328_v57 = vpop.eup %7932 }
 0x788   : > { %v12331_v60 = vpop.eup %7934 }
 0x789   : > { %7942 = vrcp.f32 %v2899_v43  ;;  %v2923_v48 = vadd.f32 %v12322_v54, %v2922_v58 }
 0x78a   : > { %7944 = vpow2.f32 %v2857_v63 }
 0x78b   : > { %v2924_v8 = vadd.f32 %v12328_v57, %v2923_v48  ;;  %7946 = vpow2.f32 %v2861_v33 }
 0x78d   : > { %v2925_v17 = vadd.f32 %v12331_v60, %v2924_v8  ;;  %v12334_v35 = vpop.eup %7936 }
 0x78e   : > { %v12337_v14 = vpop.eup %7938 }
 0x78f   : > { %v2926_v46 = vadd.f32 %v12334_v35, %v2925_v17  ;;  %v12339_v29 = vpop.eup %7940 }
 0x791   : > { %v2927_v39 = vadd.f32 %v12337_v14, %v2926_v46 }
 0x793   : > { %v12342_v26 = vpop.eup %7942  ;;  %v2928_v43 = vadd.f32 %v12339_v29, %v2927_v39 }
 0x794   : > { %v12345_v34 = vpop.eup %7944  ;;  %v12350_v63 = vmul.f32 %v12342_v26, %v12093_v49  ;;  %v12354_v58 = vmul.f32 %v12342_v26, %v12102_v55  ;;  %v12360_v33 = vmul.f32 %v12342_v26, %v12107_v44  ;;  %v12364_v48 = vmul.f32 %v12342_v26, %v12113_v10 }
 0x795   : > { %v2929_v1 = vadd.f32 %v12345_v34, %v2928_v43  ;;  %v12356_v53 = vpop.eup %7946  ;;  %v12371_v17 = vmul.f32 %v12342_v26, %v12129_v4  ;;  %v12375_v55 = vmul.f32 %v12342_v26, %v12142_v12  ;;  %v12381_v10 = vmul.f32 %v12342_v26, %v12154_v62 }
 0x796   : > { %v12385_v46 = vmul.f32 %v12342_v26, %v12166_v5  ;;  %v12389_v39 = vmul.f32 %v12342_v26, %v12178_v9  ;;  %v12395_v43 = vmul.f32 %v12342_v26, %v12190_v40  ;;  %v12399_v62 = vmul.f32 %v12342_v26, %v12202_v11 }
 0x797   : > { %v2930_v8 = vadd.f32 %v12356_v53, %v2929_v1  ;;  %v12405_v1 = vmul.f32 %v12342_v26, %v12214_v20  ;;  %v12409_v9 = vmul.f32 %v12342_v26, %v12223_v21  ;;  %v12413_v12 = vmul.f32 %v12342_v26, %v12232_v36 }
 0x798   : > { %19377 = vst [vmem:[#allocation24_spill] sm:$0xff] %v12399_v62  ;;  %v12419_v44 = vmul.f32 %v12342_v26, %v12241_v19  ;;  %v12423_v20 = vmul.f32 %v12342_v26, %v12252_v31  ;;  %v12431_v36 = vmul.f32 %v12342_v26, %v12263_v6  ;;  %v2938_v6 = vmul.f32 %v12342_v26, %v11958_v30  ;;  %v19381_v62 = vld [vmem:[#allocation10_spill] sm:$0xff] }
 0x799   : > { %v2931_v4 = vrot.slane %v2930_v8, 4  ;;  %19378 = vst [vmem:[#allocation26_spill] sm:$0xff] %v12409_v9  ;;  %19379 = vst [vmem:[#allocation25_spill] sm:$0xff] %v12413_v12  ;;  %v19380_v9 = vld [vmem:[#allocation9_spill] sm:$0xff] }
 0x79a   : > { %v2943_v12 = vmul.f32 %v12342_v26, %v19380_v9 }
 0x79b   : > { %v2932_v40 = vadd.f32 %v2931_v4, %v2930_v8  ;;  %v12435_v8 = vmul.f32 %v12342_v26, %v12271_v28  ;;  %v2941_v28 = vmul.f32 %v12342_v26, %v11966_v23  ;;  %v2945_v4 = vmul.f32 %v12342_v26, %v19381_v62 }
 0x79d   : > { %v2933_v19 = vrot.slane %v2932_v40, 2  ;;  %v3003_v62 = vpack.c.bf16 %v2941_v28, %v2938_v6 }
 0x79f   : > { %v2934_v11 = vadd.f32 %v2933_v19, %v2932_v40  ;;  %v19382_v19 = vld [vmem:[#allocation11_spill] sm:$0xff] }
 0x7a1   : > { %v2935_v21 = vrot.slane %v2934_v11, 1 }
 0x7a3   : > { %v2936_v49 = vadd.f32 %v2935_v21, %v2934_v11 }
 0x7a5   : > { %7948 = vrcp.f32 %v2936_v49 }
 0x7af   : > { %v12441_v5 = vpop.eup %7948 }
 0x7b0   : > { %v2940_v40 = vmul.f32 %v12441_v5, %v12118_v51  ;;  %v2942_v49 = vmul.f32 %v12441_v5, %v12124_v61  ;;  %v2944_v11 = vmul.f32 %v12441_v5, %v12137_v50  ;;  %v2946_v30 = vmul.f32 %v12441_v5, %v12149_v38 }
 0x7b1   : > { %v2948_v23 = vmul.f32 %v12441_v5, %v12161_v0  ;;  %v2950_v9 = vmul.f32 %v12441_v5, %v12173_v56  ;;  %v2947_v51 = vmul.f32 %v12342_v26, %v19382_v19  ;;  %v2949_v61 = vmul.f32 %v12342_v26, %v12018_v27 }
 0x7b2   : > { %v3004_v21 = vpack.c.bf16 %v2942_v49, %v2940_v40  ;;  %v2951_v50 = vmul.f32 %v12342_v26, %v12027_v22  ;;  %v3006_v31 = vpack.c.bf16 %v2946_v30, %v2944_v11  ;;  %v3005_v38 = vpack.c.bf16 %v2945_v4, %v2943_v12 }
 0x7b3   : > { %v2952_v40 = vmul.f32 %v12441_v5, %v12185_v42  ;;  %v12473_v0 = vmul.f32 %v12441_v5, %v12267_v37  ;;  %v2954_v56 = vmul.f32 %v12441_v5, %v12197_v15  ;;  %v2970_v27 = vmul.f32 %v12441_v5, %v12275_v59 }
 0x7b4   : > { %3039 = vmatprep.subr.bf16.mxu0 %v3004_v21  ;;  %v2972_v22 = vmul.f32 %v12441_v5, %v12281_v47  ;;  %v2974_v12 = vmul.f32 %v12441_v5, %v12286_v52  ;;  %v3008_v4 = vpack.c.bf16 %v2950_v9, %v2948_v23  ;;  %v2976_v42 = vmul.f32 %v12441_v5, %v12289_v32 }
 0x7b5   : > { %3040 = vmatpush1.bf16.msra.mxu0 %v3003_v62  ;;  %v2978_v37 = vmul.f32 %v12441_v5, %v12292_v24  ;;  %v2980_v15 = vmul.f32 %v12441_v5, %v12298_v3  ;;  %v3018_v6 = vpack.c.bf16 %v2970_v27, %v12473_v0  ;;  %v2982_v47 = vmul.f32 %v12441_v5, %v12304_v13  ;;  %v19387_v27 = vld [vmem:[#allocation14_spill] sm:$0xff] }
 0x7b6   : > { %3041 = vmatprep.subr.bf16.mxu0 %v3006_v31  ;;  %v3020_v59 = vpack.c.bf16 %v2974_v12, %v2972_v22  ;;  %v2984_v52 = vmul.f32 %v12441_v5, %v12313_v16  ;;  %v2986_v28 = vmul.f32 %v12441_v5, %v12316_v41  ;;  %v2988_v32 = vmul.f32 %v12441_v5, %v12322_v54  ;;  %v19388_v22 = vld [vmem:[#allocation17_spill] sm:$0xff] }
 0x7b7   : > { %v3022_v31 = vpack.c.bf16 %v2978_v37, %v2976_v42  ;;  %v2990_v24 = vmul.f32 %v12441_v5, %v12328_v57  ;;  %v3024_v3 = vpack.c.bf16 %v2982_v47, %v2980_v15  ;;  %v2992_v49 = vmul.f32 %v12441_v5, %v12331_v60  ;;  %v19389_v42 = vld [vmem:[#allocation12_spill] sm:$0xff]  ;;  %v19390_v15 = vld [vmem:[#allocation13_spill] sm:$0xff] }
 0x7b8   : > { %v2994_v13 = vmul.f32 %v12441_v5, %v12334_v35  ;;  %v2996_v16 = vmul.f32 %v12441_v5, %v12337_v14  ;;  %v3026_v11 = vpack.c.bf16 %v2986_v28, %v2984_v52  ;;  %v2998_v54 = vmul.f32 %v12441_v5, %v12339_v29 }
 0x7b9   : > { %3042 = vmatpush1.bf16.msra.mxu0 %v3005_v38  ;;  %v3028_v41 = vpack.c.bf16 %v2990_v24, %v2988_v32  ;;  %v3000_v57 = vmul.f32 %v12441_v5, %v12345_v34  ;;  %v3007_v30 = vpack.c.bf16 %v2949_v61, %v2947_v51  ;;  %v2953_v21 = vmul.f32 %v12342_v26, %v12033_v18  ;;  %v19384_v38 = vld [vmem:[#allocation23_spill] sm:$0xff] }
 0x7ba   : > { %3043 = vmatprep.subr.bf16.mxu0 %v3008_v4  ;;  %v3030_v60 = vpack.c.bf16 %v2994_v13, %v2992_v49  ;;  %v3002_v35 = vmul.f32 %v12441_v5, %v12356_v53  ;;  %v3010_v23 = vpack.c.bf16 %v2954_v56, %v2952_v40  ;;  %v2956_v14 = vmul.f32 %v12441_v5, %v12209_v25  ;;  %v19383_v53 = vld [vmem:[#allocation22_spill] sm:$0xff]  ;;  %v19385_v40 = vld [vmem:[#allocation20_spill] sm:$0xff] }
 0x7bb   : > { %v2958_v9 = vmul.f32 %v12441_v5, %v12218_v45  ;;  %v3032_v62 = vpack.c.bf16 %v2998_v54, %v2996_v16  ;;  %v3009_v34 = vpack.c.bf16 %v2953_v21, %v2951_v50  ;;  %v2955_v19 = vmul.f32 %v12342_v26, %v12039_v2  ;;  %v19386_v50 = vld [vmem:[#allocation21_spill] sm:$0xff]  ;;  %v3110_v54 = vpop.trf.xlu1 }
 0x7bc   : > { %v3034_v29 = vpack.c.bf16 %v3002_v35, %v3000_v57  ;;  %v2957_v18 = vmul.f32 %v12342_v26, %v12048_v7  ;;  %v2960_v61 = vmul.f32 %v12441_v5, %v19383_v53  ;;  %v2962_v25 = vmul.f32 %v12441_v5, %v19384_v38 }
 0x7bd   : > { %3044 = vmatpush1.bf16.msra.mxu0 %v3007_v30  ;;  %v3012_v51 = vpack.c.bf16 %v2958_v9, %v2956_v14  ;;  %v2959_v0 = vmul.f32 %v12342_v26, %v19385_v40  ;;  %v2961_v56 = vmul.f32 %v12342_v26, %v19386_v50  ;;  %v2964_v7 = vmul.f32 %v12441_v5, %v19387_v27  ;;  %v19423_v9 = vld [vmem:[#allocation19_spill] sm:$0xff] }
 0x7be   : > { %3045 = vmatprep.subr.bf16.mxu0 %v3010_v23  ;;  %v3011_v45 = vpack.c.bf16 %v2957_v18, %v2955_v19  ;;  %v3014_v2 = vpack.c.bf16 %v2962_v25, %v2960_v61  ;;  %v2966_v12 = vmul.f32 %v12441_v5, %v19388_v22  ;;  %v2963_v37 = vmul.f32 %v12342_v26, %v19389_v42  ;;  %v19514_v25 = vld [vmem:[#allocation83_spill] sm:$0xff] }
 0x7bf   : > { %v3013_v4 = vpack.c.bf16 %v2961_v56, %v2959_v0  ;;  %v2965_v47 = vmul.f32 %v12342_v26, %v19390_v15  ;;  %v19391_v32 = vpack.c.bf16 %v12354_v58, %v12350_v63  ;;  %v19392_v5 = vpack.c.bf16 %v12364_v48, %v12360_v33  ;;  %v19396_v58 = vld [vmem:[#allocation24_spill] sm:$0xff]  ;;  %v19398_v48 = vld [vmem:[#allocation25_spill] sm:$0xff]  ;;  %v3111_v57 = vpop.trf.xlu1  ;;  %v19512_v56 = vld [vmem:[#allocation82_spill] sm:$0xff] }
 0x7c0   : > { %v3016_v52 = vpack.c.bf16 %v2966_v12, %v2964_v7  ;;  %v19393_v24 = vpack.c.bf16 %v12375_v55, %v12371_v17  ;;  %v19394_v26 = vpack.c.bf16 %v12385_v46, %v12381_v10  ;;  %v19395_v63 = vpack.c.bf16 %v12395_v43, %v12389_v39  ;;  %v19402_v10 = vld [vmem:[#allocation6_spill] sm:$0xff]  ;;  %v19403_v39 = vld [vmem:[#allocation5_spill] sm:$0xff] }
 0x7c1   : > { %3046 = vmatpush1.bf16.msra.mxu0 %v3009_v34  ;;  %v3015_v28 = vpack.c.bf16 %v2965_v47, %v2963_v37  ;;  %v19397_v33 = vpack.c.bf16 %v12405_v1, %v19396_v58  ;;  %v19401_v55 = vpack.c.bf16 %v12423_v20, %v12419_v44  ;;  %v3119_v46 = vrot.slane %v19402_v10, 6  ;;  %v19405_v1 = vld [vmem:[#allocation15_spill] sm:$0xff]  ;;  %v3094_v44 = vpop.trf.xlu0 }
 0x7c2   : > { %3047 = vmatprep.subr.bf16.mxu0 %v3012_v51  ;;  %v3118_v43 = vrot.slane %v19403_v39, 6  ;;  %v19408_v49 = vmov 0  }
 0x7c3   : > { %v3112_v30 = vpop.trf.xlu1 }
 0x7c5   : > { %3048 = vmatpush1.bf16.msra.mxu0 %v3011_v45  ;;  %v3095_v20 = vpop.trf.xlu0 }
 0x7c6   : > { %3049 = vmatprep.subr.bf16.mxu0 %v3014_v2 }
 0x7c7   : > { %v3113_v21 = vpop.trf.xlu1 }
 0x7c9   : > { %3050 = vmatpush1.bf16.msra.mxu0 %v3013_v4 }
 0x7ca   : > { %3051 = vmatprep.subr.bf16.mxu0 %v3016_v52 }
 0x7cd   : > { %3052 = vmatpush1.bf16.msra.mxu0 %v3015_v28 }
 0x7ce   : > { %3053 = vmatprep.subr.bf16.mxu0 %v3018_v6  ;;  %v19399_v6 = vld [vmem:[#allocation26_spill] sm:$0xff] }
 0x7cf   : > { %v19400_v17 = vpack.c.bf16 %v19398_v48, %v19399_v6 }
 0x7d1   : > { %3054 = vmatpush1.bf16.msra.mxu0 %v19391_v32 }
 0x7d2   : > { %3055 = vmatprep.subr.bf16.mxu0 %v3020_v59  ;;  %v19404_v59 = vpack.c.bf16 %v12435_v8, %v12431_v36  ;;  %v3096_v36 = vpop.trf.xlu0 }
 0x7d5   : > { %3056 = vmatpush1.bf16.msra.mxu0 %v19392_v5 }
 0x7d6   : > { %3057 = vmatprep.subr.bf16.mxu0 %v3022_v31  ;;  %v3035_v31 = vrot.slane %v19405_v1, 4  ;;  %v3097_v8 = vpop.trf.xlu0 }
 0x7d9   : > { %3058 = vmatpush1.bf16.msra.mxu0 %v19393_v24 }
 0x7da   : > { %3059 = vmatprep.subr.bf16.mxu0 %v3024_v3  ;;  %v3169_v3 = vsel %vm19407_vm0, %v3118_v43, 0  ;;  %vm19412_vm0 = vmmov %vm19409_vm1  ;;  %v3098_v13 = vpop.trf.xlu0 }
 0x7dd   : > { %3060 = vmatpush1.bf16.msra.mxu0 %v19394_v26 }
 0x7de   : > { %3061 = vmatprep.subr.bf16.mxu0 %v3026_v11  ;;  %v3099_v16 = vpop.trf.xlu0 }
 0x7e1   : > { %3062 = vmatpush1.bf16.msra.mxu0 %v19395_v63 }
 0x7e2   : > { %3063 = vmatprep.subr.bf16.mxu0 %v3028_v41  ;;  %v3100_v11 = vpop.trf.xlu0 }
 0x7e5   : > { %3064 = vmatpush1.bf16.msra.mxu0 %v19397_v33 }
 0x7e6   : > { %3065 = vmatprep.subr.bf16.mxu0 %v3030_v60  ;;  %v3101_v41 = vpop.trf.xlu0  ;;  %v3114_v60 = vpop.trf.xlu1 }
 0x7e9   : > { %3066 = vmatpush1.bf16.msra.mxu0 %v19400_v17 }
 0x7ea   : > { %3067 = vmatprep.subr.bf16.mxu0 %v3032_v62  ;;  %v3115_v35 = vpop.trf.xlu1 }
 0x7ed   : > { %3068 = vmatpush1.bf16.msra.mxu0 %v19401_v55 }
 0x7ee   : > { %3069 = vmatprep.subr.bf16.mxu0 %v3034_v29  ;;  %v3116_v23 = vpop.trf.xlu1 }
 0x7f1   : > { %3070 = vmatpush1.bf16.msra.mxu0 %v19404_v59 }
 0x7f2   : > { %7412 = vmatprep.subr.msk.bf16.mxu0 %vm19406_vm14, %v3119_v46  ;;  %vm19413_vm14 = vmmov %vm19412_vm0  ;;  %v3117_v14 = vpop.trf.xlu1 }
 0x7f4   : > { %3072 = vmatmul.mubr.bf16.vlgmr.msra.gmra.mrb[68].mxu0 %v3035_v31 }
 0x7f5   : > { %3175 = vmatpush1.bf16.msra.mxu0 %v3169_v3  ;;  %3206 = vmatprep.mubr.bf16.mxu0 %v19408_v49 }
 0x7fc   : > { %7413 = vmatmul.mubr.msk.bf16.vlgmr.msra.gmra.mrb[72].mxu0 %vm19409_vm1, %v3094_v44  ;;  %vm19414_vm1 = vmmov %vm19412_vm0  ;;  %v19435_v44 = vld [vmem:[#allocation38_spill] sm:$0xff] }
 0x7fd   : > { %3216 = vmatprep.mubr.bf16.mxu0 %v19408_v49 }
 0x804   : > { %7414 = vmatmul.mubr.msk.bf16.gmra.mrb[76].mxu0 %vm19410_vm2, %v3095_v20  ;;  %vm19415_vm2 = vmmov %vm19412_vm0 }
 0x805   : > { %3226 = vmatprep.mubr.bf16.mxu0 %v19408_v49 }
 0x80c   : > { %7415 = vmatmul.mubr.msk.bf16.gmra.mrb[80].mxu0 %vm19411_vm15, %v3096_v36  ;;  %vm19416_vm15 = vmmov %vm19412_vm0 }
 0x80d   : > { %3236 = vmatprep.mubr.bf16.mxu0 %v19408_v49 }
 0x814   : > { %7416 = vmatmul.mubr.msk.bf16.gmra.mrb[84].mxu0 %vm19412_vm0, %v3097_v8 }
 0x815   : > { %3246 = vmatprep.mubr.bf16.mxu0 %v19408_v49 }
 0x81c   : > { %7417 = vmatmul.mubr.msk.bf16.gmra.mrb[88].mxu0 %vm19413_vm14, %v3098_v13  ;;  %vm19417_vm14 = vmmov %vm19412_vm0  ;;  %v19437_v13 = vld [vmem:[#allocation39_spill] sm:$0xff] }
 0x81d   : > { %3256 = vmatprep.mubr.bf16.mxu0 %v19408_v49 }
 0x824   : > { %7418 = vmatmul.mubr.msk.bf16.gmra.mrb[92].mxu0 %vm19414_vm1, %v3099_v16  ;;  %vm19418_vm1 = vmmov %vm19412_vm0 }
 0x825   : > { %3266 = vmatprep.mubr.bf16.mxu0 %v19408_v49 }
 0x82c   : > { %7419 = vmatmul.mubr.msk.bf16.gmra.mrb[96].mxu0 %vm19415_vm2, %v3100_v11  ;;  %vm19419_vm2 = vmmov %vm19412_vm0 }
 0x82d   : > { %3276 = vmatprep.mubr.bf16.mxu0 %v19408_v49 }
 0x834   : > { %7420 = vmatmul.mubr.msk.bf16.gmra.mrb[100].mxu0 %vm19416_vm15, %v3101_v41  ;;  %vm19420_vm15 = vmmov %vm19412_vm0 }
 0x835   : > { %3286 = vmatprep.mubr.bf16.mxu0 %v19408_v49 }
 0x83c   : > { %7421 = vmatmul.mubr.msk.bf16.gmra.mrb[104].mxu0 %vm19412_vm0, %v3110_v54  ;;  %v19439_v54 = vld [vmem:[#allocation40_spill] sm:$0xff] }
 0x83d   : > { %3296 = vmatprep.mubr.bf16.mxu0 %v19408_v49 }
 0x844   : > { %7422 = vmatmul.mubr.msk.bf16.gmra.mrb[108].mxu0 %vm19417_vm14, %v3111_v57  ;;  %vm19421_vm14 = vmmov %vm19412_vm0 }
 0x845   : > { %3306 = vmatprep.mubr.bf16.mxu0 %v19408_v49 }
 0x84c   : > { %7423 = vmatmul.mubr.msk.bf16.gmra.mrb[112].mxu0 %vm19418_vm1, %v3112_v30  ;;  %vm19422_vm1 = vmmov %vm19412_vm0 }
 0x84d   : > { %3316 = vmatprep.mubr.bf16.mxu0 %v19408_v49 }
 0x854   : > { %7424 = vmatmul.mubr.msk.bf16.gmra.mrb[116].mxu0 %vm19419_vm2, %v3113_v21  ;;  %vm19436_vm2 = vnez %v19435_v44 }
 0x855   : > { %3326 = vmatprep.mubr.bf16.mxu0 %v19408_v49 }
 0x85c   : > { %7425 = vmatmul.mubr.msk.bf16.gmra.mrb[120].mxu0 %vm19420_vm15, %v3114_v60  ;;  %vm19438_vm15 = vnez %v19437_v13  ;;  %v19441_v60 = vld [vmem:[#allocation41_spill] sm:$0xff] }
 0x85d   : > { %3336 = vmatprep.mubr.bf16.mxu0 %v19408_v49 }
 0x864   : > { %7426 = vmatmul.mubr.msk.bf16.gmra.mrb[124].mxu0 %vm19412_vm0, %v3115_v35  ;;  %vm19440_vm0 = vnez %v19439_v54 }
 0x865   : > { %3346 = vmatprep.mubr.bf16.mxu0 %v19408_v49 }
 0x86c   : > { %7427 = vmatmul.mubr.msk.bf16.gmra.mrb[128].mxu0 %vm19421_vm14, %v3116_v23  ;;  %vm19442_vm14 = vnez %v19441_v60 }
 0x86d   : > { %3356 = vmatprep.mubr.bf16.mxu0 %v19408_v49  ;;  %v19516_v49 = vld [vmem:[#allocation85_spill] sm:$0xff] }
 0x874   : > { %7428 = vmatmul.mubr.msk.bf16.gmra.mrb[132].mxu0 %vm19422_vm1, %v3117_v14 }
 0x875   : > { %4735 = vmatprep.mubr.bf16.mxu0 %v19423_v9 }
 0x8c7   : > { %v3073_v62 = vpop.f32.mrb[68].mxu0 }
 0x8c8   : > { %3080 = vst [vmem:[%s10507_s27 + $0x10] sm:$0xf] %v3073_v62  ;;  %v3075_v29 = vpop.f32.mrb[69].mxu0  ;;  %v19443_v62 = vld [vmem:[#allocation42_spill] sm:$0xff] }
 0x8c9   : > { %3081 = vst [vmem:[%s10507_s27 + $0x18] sm:$0xf] %v3075_v29  ;;  %v3077_v34 = vpop.f32.mrb[70].mxu0  ;;  %vm19444_vm1 = vnez %v19443_v62 }
 0x8ca   : > { %v3078_v19 = vpop.f32.mrb[71].mxu0 }
 0x8cf   : > { %v3208_v18 = vpop.f32.mrb[72].mxu0 }
 0x8d0   : > { %v3210_v51 = vpop.f32.mrb[73].mxu0  ;;  %v12607_v45 = vsel %vm9063_vm3, %v3208_v18, -1e+30  ;;  %v19445_v18 = vld [vmem:[#allocation43_spill] sm:$0xff] }
 0x8d1   : > { %v3212_v53 = vpop.f32.mrb[74].mxu0  ;;  %v12615_v2 = vsel %vm9075_vm5, %v3210_v51, -1e+30 }
 0x8d2   : > { %v3214_v61 = vpop.f32.mrb[75].mxu0  ;;  %v12625_v42 = vsel %vm9087_vm7, %v3212_v53, -1e+30 }
 0x8d3   : > { %v12635_v32 = vsel %vm9099_vm9, %v3214_v61, -1e+30 }
 0x8d7   : > { %v3218_v38 = vpop.f32.mrb[76].mxu0 }
 0x8d8   : > { %v12611_v0 = vsel %vm9069_vm4, %v3218_v38, -1e+30  ;;  %v3220_v50 = vpop.f32.mrb[77].mxu0  ;;  %v19447_v38 = vld [vmem:[#allocation45_spill] sm:$0xff] }
 0x8d9   : > { %v3431_v27 = vmax.f32 %v12607_v45, %v12611_v0  ;;  %v12621_v22 = vsel %vm9081_vm6, %v3220_v50, -1e+30  ;;  %v3222_v12 = vpop.f32.mrb[78].mxu0 }
 0x8da   : > { %v3468_v37 = vmax.f32 %v12615_v2, %v12621_v22  ;;  %v12631_v47 = vsel %vm9093_vm8, %v3222_v12, -1e+30  ;;  %v3224_v52 = vpop.f32.mrb[79].mxu0 }
 0x8db   : > { %v3432_v5 = vmax.f32 %v12625_v42, %v12631_v47  ;;  %v12641_v26 = vsel %vm9105_vm10, %v3224_v52, -1e+30 }
 0x8dc   : > { %v3469_v63 = vmax.f32 %v12635_v32, %v12641_v26 }
 0x8df   : > { %v3228_v58 = vpop.f32.mrb[80].mxu0 }
 0x8e0   : > { %v12647_v48 = vsel %vm9151_vm11, %v3228_v58, -1e+30  ;;  %v3230_v6 = vpop.f32.mrb[81].mxu0  ;;  %v19451_v58 = vld [vmem:[#allocation46_spill] sm:$0xff] }
 0x8e1   : > { %v3433_v17 = vmax.f32 %v3431_v27, %v12647_v48  ;;  %v12652_v10 = vsel %vm9157_vm12, %v3230_v6, -1e+30  ;;  %v3232_v46 = vpop.f32.mrb[82].mxu0 }
 0x8e2   : > { %v3470_v39 = vmax.f32 %v3468_v37, %v12652_v10  ;;  %v12657_v59 = vsel %vm9163_vm13, %v3232_v46, -1e+30  ;;  %v3234_v31 = vpop.f32.mrb[83].mxu0  ;;  %v19449_v37 = vld [vmem:[#allocation44_spill] sm:$0xff] }
 0x8e3   : > { %v3434_v3 = vmax.f32 %v3432_v5, %v12657_v59  ;;  %v12662_v20 = vsel %vm19436_vm2, %v3234_v31, -1e+30 }
 0x8e4   : > { %v3471_v36 = vmax.f32 %v3469_v63, %v12662_v20 }
 0x8e7   : > { %v3238_v8 = vpop.f32.mrb[84].mxu0 }
 0x8e8   : > { %v12667_v16 = vsel %vm19438_vm15, %v3238_v8, -1e+30  ;;  %v3240_v11 = vpop.f32.mrb[85].mxu0  ;;  %v19455_v8 = vld [vmem:[#allocation48_spill] sm:$0xff] }
 0x8e9   : > { %v3435_v41 = vmax.f32 %v3433_v17, %v12667_v16  ;;  %v12672_v57 = vsel %vm19440_vm0, %v3240_v11, -1e+30  ;;  %v3242_v30 = vpop.f32.mrb[86].mxu0  ;;  %vm19446_vm0 = vnez %v19445_v18 }
 0x8ea   : > { %v3472_v21 = vmax.f32 %v3470_v39, %v12672_v57  ;;  %v12677_v35 = vsel %vm19442_vm14, %v3242_v30, -1e+30  ;;  %v3244_v23 = vpop.f32.mrb[87].mxu0  ;;  %vm19448_vm14 = vnez %v19447_v38  ;;  %v19453_v39 = vld [vmem:[#allocation47_spill] sm:$0xff] }
 0x8eb   : > { %v3436_v14 = vmax.f32 %v3434_v3, %v12677_v35  ;;  %v12682_v29 = vsel %vm19444_vm1, %v3244_v23, -1e+30  ;;  %vm19450_vm1 = vnez %v19449_v37 }
 0x8ec   : > { %v3473_v34 = vmax.f32 %v3471_v36, %v12682_v29 }
 0x8ef   : > { %v3248_v19 = vpop.f32.mrb[88].mxu0 }
 0x8f0   : > { %v12687_v51 = vsel %vm19446_vm0, %v3248_v19, -1e+30  ;;  %v3250_v53 = vpop.f32.mrb[89].mxu0  ;;  %vm19452_vm0 = vnez %v19451_v58  ;;  %v19460_v19 = vld [vmem:[#allocation51_spill] sm:$0xff] }
 0x8f1   : > { %v3437_v61 = vmax.f32 %v3435_v41, %v12687_v51  ;;  %v12692_v50 = vsel %vm19448_vm14, %v3250_v53, -1e+30  ;;  %v3252_v27 = vpop.f32.mrb[90].mxu0  ;;  %vm19454_vm14 = vnez %v19453_v39 }
 0x8f2   : > { %v3474_v12 = vmax.f32 %v3472_v21, %v12692_v50  ;;  %v12697_v52 = vsel %vm19450_vm1, %v3252_v27, -1e+30  ;;  %v3254_v5 = vpop.f32.mrb[91].mxu0  ;;  %vm19456_vm1 = vnez %v19455_v8  ;;  %v19458_v21 = vld [vmem:[#allocation49_spill] sm:$0xff] }
 0x8f3   : > { %v3438_v63 = vmax.f32 %v3436_v14, %v12697_v52  ;;  %v12702_v6 = vsel %vm19452_vm0, %v3254_v5, -1e+30  ;;  %vm19459_vm0 = vnez %v19458_v21  ;;  %v19463_v5 = vld [vmem:[#allocation53_spill] sm:$0xff]  ;;  %v19465_v21 = vld [vmem:[#allocation54_spill] sm:$0xff] }
 0x8f4   : > { %v3475_v17 = vmax.f32 %v3473_v34, %v12702_v6 }
 0x8f7   : > { %v3258_v46 = vpop.f32.mrb[92].mxu0 }
 0x8f8   : > { %v12707_v31 = vsel %vm19454_vm14, %v3258_v46, -1e+30  ;;  %v3260_v3 = vpop.f32.mrb[93].mxu0  ;;  %vm19461_vm14 = vnez %v19460_v19  ;;  %v19468_v19 = vld [vmem:[#allocation55_spill] sm:$0xff] }
 0x8f9   : > { %v3439_v36 = vmax.f32 %v3437_v61, %v12707_v31  ;;  %v12712_v11 = vsel %vm19456_vm1, %v3260_v3, -1e+30  ;;  %v3262_v41 = vpop.f32.mrb[94].mxu0  ;;  %vm19464_vm1 = vnez %v19463_v5  ;;  %v19470_v5 = vld [vmem:[#allocation57_spill] sm:$0xff] }
 0x8fa   : > { %19457 = vst [vmem:[#allocation16_spill] sm:$0xff] %v12712_v11  ;;  %v3476_v30 = vmax.f32 %v3474_v12, %v12712_v11  ;;  %v12717_v23 = vsel %vm19459_vm0, %v3262_v41, -1e+30  ;;  %v3264_v14 = vpop.f32.mrb[95].mxu0  ;;  %vm19466_vm0 = vnez %v19465_v21  ;;  %v19473_v21 = vld [vmem:[#allocation59_spill] sm:$0xff] }
 0x8fb   : > { %v3440_v34 = vmax.f32 %v3438_v63, %v12717_v23  ;;  %v12722_v53 = vsel %vm19461_vm14, %v3264_v14, -1e+30  ;;  %vm19469_vm14 = vnez %v19468_v19  ;;  %v19475_v19 = vld [vmem:[#allocation60_spill] sm:$0xff] }
 0x8fc   : > { %19462 = vst [vmem:[#allocation106_spill] sm:$0xff] %v12722_v53  ;;  %v3477_v61 = vmax.f32 %v3475_v17, %v12722_v53 }
 0x8ff   : > { %v3268_v27 = vpop.f32.mrb[96].mxu0 }
 0x900   : > { %v12727_v46 = vsel %vm19464_vm1, %v3268_v27, -1e+30  ;;  %v3270_v3 = vpop.f32.mrb[97].mxu0  ;;  %vm19471_vm1 = vnez %v19470_v5  ;;  %v19478_v5 = vld [vmem:[#allocation61_spill] sm:$0xff] }
 0x901   : > { %v3441_v12 = vmax.f32 %v3439_v36, %v12727_v46  ;;  %v12732_v41 = vsel %vm19466_vm0, %v3270_v3, -1e+30  ;;  %v3272_v8 = vpop.f32.mrb[98].mxu0  ;;  %vm19474_vm0 = vnez %v19473_v21  ;;  %v19480_v21 = vld [vmem:[#allocation63_spill] sm:$0xff] }
 0x902   : > { %19467 = vst [vmem:[#allocation110_spill] sm:$0xff] %v12732_v41  ;;  %v3478_v63 = vmax.f32 %v3476_v30, %v12732_v41  ;;  %v12737_v14 = vsel %vm19469_vm14, %v3272_v8, -1e+30  ;;  %v3274_v17 = vpop.f32.mrb[99].mxu0  ;;  %vm19476_vm14 = vnez %v19475_v19  ;;  %v19483_v19 = vld [vmem:[#allocation65_spill] sm:$0xff] }
 0x903   : > { %v3442_v39 = vmax.f32 %v3440_v34, %v12737_v14  ;;  %v12742_v27 = vsel %vm19471_vm1, %v3274_v17, -1e+30  ;;  %vm19479_vm1 = vnez %v19478_v5  ;;  %v19485_v5 = vld [vmem:[#allocation66_spill] sm:$0xff] }
 0x904   : > { %19472 = vst [vmem:[#allocation88_spill] sm:$0xff] %v12742_v27  ;;  %v3479_v36 = vmax.f32 %v3477_v61, %v12742_v27 }
 0x907   : > { %v3278_v58 = vpop.f32.mrb[100].mxu0 }
 0x908   : > { %v12747_v3 = vsel %vm19474_vm0, %v3278_v58, -1e+30  ;;  %v3280_v37 = vpop.f32.mrb[101].mxu0  ;;  %vm19481_vm0 = vnez %v19480_v21  ;;  %v19488_v21 = vld [vmem:[#allocation67_spill] sm:$0xff] }
 0x909   : > { %v3443_v30 = vmax.f32 %v3441_v12, %v12747_v3  ;;  %v12752_v8 = vsel %vm19476_vm14, %v3280_v37, -1e+30  ;;  %v3282_v38 = vpop.f32.mrb[102].mxu0  ;;  %vm19484_vm14 = vnez %v19483_v19  ;;  %v19490_v19 = vld [vmem:[#allocation69_spill] sm:$0xff] }
 0x90a   : > { %19477 = vst [vmem:[#allocation89_spill] sm:$0xff] %v12752_v8  ;;  %v3480_v34 = vmax.f32 %v3478_v63, %v12752_v8  ;;  %v12757_v17 = vsel %vm19479_vm1, %v3282_v38, -1e+30  ;;  %v3284_v61 = vpop.f32.mrb[103].mxu0  ;;  %vm19486_vm1 = vnez %v19485_v5  ;;  %v19493_v5 = vld [vmem:[#allocation71_spill] sm:$0xff] }
 0x90b   : > { %v3444_v18 = vmax.f32 %v3442_v39, %v12757_v17  ;;  %v12762_v58 = vsel %vm19481_vm0, %v3284_v61, -1e+30  ;;  %vm19489_vm0 = vnez %v19488_v21  ;;  %v19495_v21 = vld [vmem:[#allocation73_spill] sm:$0xff] }
 0x90c   : > { %19482 = vst [vmem:[#allocation91_spill] sm:$0xff] %v12762_v58  ;;  %v3481_v12 = vmax.f32 %v3479_v36, %v12762_v58 }
 0x90f   : > { %v3288_v62 = vpop.f32.mrb[104].mxu0 }
 0x910   : > { %v12767_v37 = vsel %vm19484_vm14, %v3288_v62, -1e+30  ;;  %v3290_v60 = vpop.f32.mrb[105].mxu0  ;;  %vm19491_vm14 = vnez %v19490_v19  ;;  %v19498_v19 = vld [vmem:[#allocation72_spill] sm:$0xff] }
 0x911   : > { %v3445_v63 = vmax.f32 %v3443_v30, %v12767_v37  ;;  %v12772_v38 = vsel %vm19486_vm1, %v3290_v60, -1e+30  ;;  %v3292_v54 = vpop.f32.mrb[106].mxu0  ;;  %vm19494_vm1 = vnez %v19493_v5  ;;  %v19500_v5 = vld [vmem:[#allocation74_spill] sm:$0xff] }
 0x912   : > { %19487 = vst [vmem:[#allocation92_spill] sm:$0xff] %v12772_v38  ;;  %v3482_v39 = vmax.f32 %v3480_v34, %v12772_v38  ;;  %v12777_v61 = vsel %vm19489_vm0, %v3292_v54, -1e+30  ;;  %v3294_v36 = vpop.f32.mrb[107].mxu0  ;;  %vm19496_vm0 = vnez %v19495_v21  ;;  %v19503_v21 = vld [vmem:[#allocation77_spill] sm:$0xff] }
 0x913   : > { %v3446_v13 = vmax.f32 %v3444_v18, %v12777_v61  ;;  %v12782_v62 = vsel %vm19491_vm14, %v3294_v36, -1e+30  ;;  %vm19499_vm14 = vnez %v19498_v19  ;;  %v19505_v19 = vld [vmem:[#allocation79_spill] sm:$0xff] }
 0x914   : > { %19492 = vst [vmem:[#allocation95_spill] sm:$0xff] %v12782_v62  ;;  %v3483_v30 = vmax.f32 %v3481_v12, %v12782_v62  ;;  %v19535_v62 = vld [vmem:[#allocation96_spill] sm:$0xff] }
 0x917   : > { %v3298_v44 = vpop.f32.mrb[108].mxu0 }
 0x918   : > { %v12787_v60 = vsel %vm19494_vm1, %v3298_v44, -1e+30  ;;  %v3300_v43 = vpop.f32.mrb[109].mxu0  ;;  %vm19501_vm1 = vnez %v19500_v5  ;;  %v19508_v5 = vld [vmem:[#allocation78_spill] sm:$0xff] }
 0x919   : > { %v3447_v34 = vmax.f32 %v3445_v63, %v12787_v60  ;;  %v12792_v54 = vsel %vm19496_vm0, %v3300_v43, -1e+30  ;;  %v3302_v55 = vpop.f32.mrb[110].mxu0  ;;  %vm19504_vm0 = vnez %v19503_v21 }
 0x91a   : > { %19497 = vst [vmem:[#allocation50_spill] sm:$0xff] %v12792_v54  ;;  %v3484_v18 = vmax.f32 %v3482_v39, %v12792_v54  ;;  %v12797_v36 = vsel %vm19499_vm14, %v3302_v55, -1e+30  ;;  %v3304_v12 = vpop.f32.mrb[111].mxu0  ;;  %vm19506_vm14 = vnez %v19505_v19 }
 0x91b   : > { %v3448_v33 = vmax.f32 %v3446_v13, %v12797_v36  ;;  %v12802_v44 = vsel %vm19501_vm1, %v3304_v12, -1e+30  ;;  %vm19509_vm1 = vnez %v19508_v5 }
 0x91c   : > { %19502 = vst [vmem:[#allocation52_spill] sm:$0xff] %v12802_v44  ;;  %v3485_v63 = vmax.f32 %v3483_v30, %v12802_v44 }
 0x91f   : > { %v3308_v24 = vpop.f32.mrb[112].mxu0 }
 0x920   : > { %v12807_v43 = vsel %vm19504_vm0, %v3308_v24, -1e+30  ;;  %v3310_v28 = vpop.f32.mrb[113].mxu0  ;;  %v19510_v24 = vld [vmem:[#allocation81_spill] sm:$0xff] }
 0x921   : > { %v3449_v39 = vmax.f32 %v3447_v34, %v12807_v43  ;;  %v12812_v55 = vsel %vm19506_vm14, %v3310_v28, -1e+30  ;;  %v3312_v15 = vpop.f32.mrb[114].mxu0  ;;  %vm19511_vm0 = vnez %v19510_v24  ;;  %vm19513_vm14 = vnez %v19512_v56  ;;  %v19518_v56 = vld [vmem:[#allocation84_spill] sm:$0xff] }
 0x922   : > { %19507 = vst [vmem:[#allocation56_spill] sm:$0xff] %v12812_v55  ;;  %v3486_v13 = vmax.f32 %v3484_v18, %v12812_v55  ;;  %v12817_v12 = vsel %vm19509_vm1, %v3312_v15, -1e+30  ;;  %v3314_v30 = vpop.f32.mrb[115].mxu0  ;;  %vm19515_vm1 = vnez %v19514_v25  ;;  %v19521_v55 = vld [vmem:[#allocation86_spill] sm:$0xff]  ;;  %v19524_v25 = vld [vmem:[#allocation87_spill] sm:$0xff] }
 0x923   : > { %v3450_v4 = vmax.f32 %v3448_v33, %v12817_v12  ;;  %vm19522_vm15 = vnez %v19521_v55 }
 0x927   : > { %v3318_v21 = vpop.f32.mrb[116].mxu0 }
 0x928   : > { %v12822_v7 = vsel %vm19511_vm0, %v3318_v21, -1e+30  ;;  %v3320_v34 = vpop.f32.mrb[117].mxu0  ;;  %vm19517_vm0 = vnez %v19516_v49 }
 0x929   : > { %v3451_v19 = vmax.f32 %v3449_v39, %v12822_v7  ;;  %v3322_v28 = vpop.f32.mrb[118].mxu0 }
 0x92a   : > { %v12827_v40 = vsel %vm19513_vm14, %v3322_v28, -1e+30  ;;  %v3324_v18 = vpop.f32.mrb[119].mxu0  ;;  %vm19519_vm14 = vnez %v19518_v56 }
 0x92b   : > { %v3452_v15 = vmax.f32 %v3450_v4, %v12827_v40  ;;  %v12841_v28 = vsel %vm19519_vm14, %v3314_v30, -1e+30  ;;  %v12845_v4 = vsel %vm19522_vm15, %v3320_v34, -1e+30  ;;  %v19530_v30 = vld [vmem:[#allocation93_spill] sm:$0xff] }
 0x92c   : > { %19520 = vst [vmem:[#allocation70_spill] sm:$0xff] %v12841_v28  ;;  %19523 = vst [vmem:[#allocation75_spill] sm:$0xff] %v12845_v4  ;;  %v3488_v56 = vmax.f32 %v3486_v13, %v12845_v4  ;;  %vm19531_vm14 = vnez %v19530_v30  ;;  %v19538_v4 = vld [vmem:[#allocation97_spill] sm:$0xff] }
 0x92f   : > { %v3328_v5 = vpop.f32.mrb[120].mxu0 }
 0x930   : > { %v12832_v33 = vsel %vm19515_vm1, %v3328_v5, -1e+30  ;;  %v3330_v9 = vpop.f32.mrb[121].mxu0  ;;  %vm19525_vm1 = vnez %v19524_v25  ;;  %v19533_v25 = vld [vmem:[#allocation94_spill] sm:$0xff] }
 0x931   : > { %v3453_v21 = vmax.f32 %v3451_v19, %v12832_v33  ;;  %v3332_v24 = vpop.f32.mrb[122].mxu0  ;;  %v12850_v44 = vsel %vm19525_vm1, %v3324_v18, -1e+30  ;;  %v19527_v19 = vld [vmem:[#allocation90_spill] sm:$0xff]  ;;  %vm19534_vm1 = vnez %v19533_v25  ;;  %v19540_v25 = vld [vmem:[#allocation99_spill] sm:$0xff] }
 0x932   : > { %v12837_v39 = vsel %vm19517_vm0, %v3332_v24, -1e+30  ;;  %v3334_v1 = vpop.f32.mrb[123].mxu0  ;;  %19526 = vst [vmem:[#allocation58_spill] sm:$0xff] %v12850_v44  ;;  %vm19528_vm2 = vnez %v19527_v19  ;;  %v3487_v24 = vmax.f32 %v3485_v63, %v12841_v28 }
 0x933   : > { %v3454_v5 = vmax.f32 %v3452_v15, %v12837_v39  ;;  %v12854_v49 = vsel %vm19528_vm2, %v3330_v9, -1e+30  ;;  %v12860_v54 = vsel %vm19531_vm14, %v3334_v1, -1e+30  ;;  %vm19536_vm2 = vnez %v19535_v62  ;;  %v19543_v62 = vld [vmem:[#allocation101_spill] sm:$0xff] }
 0x934   : > { %19529 = vst [vmem:[#allocation62_spill] sm:$0xff] %v12854_v49  ;;  %19532 = vst [vmem:[#allocation76_spill] sm:$0xff] %v12860_v54  ;;  %v3489_v55 = vmax.f32 %v3487_v24, %v12850_v44  ;;  %v3490_v15 = vmax.f32 %v3488_v56, %v12854_v49  ;;  %vm19539_vm14 = vnez %v19538_v4  ;;  %v19545_v4 = vld [vmem:[#allocation102_spill] sm:$0xff] }
 0x936   : > { %v3491_v1 = vmax.f32 %v3489_v55, %v12860_v54 }
 0x937   : > { %v3338_v34 = vpop.f32.mrb[124].mxu0 }
 0x938   : > { %v12866_v18 = vsel %vm19534_vm1, %v3338_v34, -1e+30  ;;  %v3340_v19 = vpop.f32.mrb[125].mxu0  ;;  %vm19541_vm1 = vnez %v19540_v25  ;;  %v19548_v25 = vld [vmem:[#allocation103_spill] sm:$0xff] }
 0x939   : > { %v3455_v9 = vmax.f32 %v3453_v21, %v12866_v18  ;;  %v12871_v63 = vsel %vm19536_vm2, %v3340_v19, -1e+30  ;;  %v3342_v13 = vpop.f32.mrb[126].mxu0  ;;  %vm19544_vm2 = vnez %v19543_v62  ;;  %v19550_v62 = vld [vmem:[#allocation105_spill] sm:$0xff] }
 0x93a   : > { %19537 = vst [vmem:[#allocation80_spill] sm:$0xff] %v12871_v63  ;;  %v3492_v30 = vmax.f32 %v3490_v15, %v12871_v63  ;;  %v12877_v24 = vsel %vm19539_vm14, %v3342_v13, -1e+30  ;;  %v3344_v56 = vpop.f32.mrb[127].mxu0  ;;  %vm19546_vm14 = vnez %v19545_v4  ;;  %v19553_v4 = vld [vmem:[#allocation107_spill] sm:$0xff] }
 0x93b   : > { %v3456_v34 = vmax.f32 %v3454_v5, %v12877_v24  ;;  %v12882_v49 = vsel %vm19541_vm1, %v3344_v56, -1e+30  ;;  %vm19549_vm1 = vnez %v19548_v25  ;;  %v19555_v25 = vld [vmem:[#allocation108_spill] sm:$0xff] }
 0x93c   : > { %19542 = vst [vmem:[#allocation64_spill] sm:$0xff] %v12882_v49  ;;  %v3493_v21 = vmax.f32 %v3491_v1, %v12882_v49 }
 0x93f   : > { %v3348_v19 = vpop.f32.mrb[128].mxu0 }
 0x940   : > { %v12887_v44 = vsel %vm19544_vm2, %v3348_v19, -1e+30  ;;  %v3350_v55 = vpop.f32.mrb[129].mxu0  ;;  %vm19551_vm2 = vnez %v19550_v62  ;;  %v19558_v62 = vld [vmem:[#allocation109_spill] sm:$0xff] }
 0x941   : > { %v3457_v15 = vmax.f32 %v3455_v9, %v12887_v44  ;;  %v12892_v13 = vsel %vm19546_vm14, %v3350_v55, -1e+30  ;;  %v3352_v54 = vpop.f32.mrb[130].mxu0  ;;  %vm19554_vm14 = vnez %v19553_v4  ;;  %v19560_v4 = vld [vmem:[#allocation111_spill] sm:$0xff] }
 0x942   : > { %19547 = vst [vmem:[#allocation68_spill] sm:$0xff] %v12892_v13  ;;  %v3494_v5 = vmax.f32 %v3492_v30, %v12892_v13  ;;  %v12897_v56 = vsel %vm19549_vm1, %v3352_v54, -1e+30  ;;  %v3354_v1 = vpop.f32.mrb[131].mxu0  ;;  %vm19556_vm1 = vnez %v19555_v25 }
 0x943   : > { %v3458_v28 = vmax.f32 %v3456_v34, %v12897_v56  ;;  %v12902_v19 = vsel %vm19551_vm2, %v3354_v1, -1e+30  ;;  %vm19559_vm2 = vnez %v19558_v62 }
 0x944   : > { %19552 = vst [vmem:[#allocation98_spill] sm:$0xff] %v12902_v19  ;;  %v3495_v9 = vmax.f32 %v3493_v21, %v12902_v19 }
 0x947   : > { %v3358_v49 = vpop.f32.mrb[132].mxu0 }
 0x948   : > { %v12907_v55 = vsel %vm19554_vm14, %v3358_v49, -1e+30  ;;  %v3360_v63 = vpop.f32.mrb[133].mxu0  ;;  %vm19561_vm14 = vnez %v19560_v4 }
 0x949   : > { %v3459_v30 = vmax.f32 %v3457_v15, %v12907_v55  ;;  %v12912_v54 = vsel %vm19556_vm1, %v3360_v63, -1e+30  ;;  %v3362_v13 = vpop.f32.mrb[134].mxu0  ;;  %vm19672_vm1 = vcmask 31744  }
 0x94a   : > { %19557 = vst [vmem:[#allocation104_spill] sm:$0xff] %v12912_v54  ;;  %v3496_v34 = vmax.f32 %v3494_v5, %v12912_v54  ;;  %v12917_v1 = vsel %vm19559_vm2, %v3362_v13, -1e+30  ;;  %v3364_v21 = vpop.f32.mrb[135].mxu0  ;;  %vm19673_vm15 = vmmov %vm19672_vm1 }
 0x94b   : > { %v3460_v19 = vmax.f32 %v3458_v28, %v12917_v1  ;;  %v12922_v49 = vsel %vm19561_vm14, %v3364_v21, -1e+30  ;;  %vm19668_vm14 = vcmask 1041408   ;;  %vm19674_vm0 = vmmov %vm19672_vm1 }
 0x94c   : > { %v3497_v15 = vmax.f32 %v3495_v9, %v12922_v49  ;;  %vm19670_vm2 = vmmov %vm19668_vm14 }
 0x94d   : > { %v3461_v38 = vmax.f32 %v3459_v30, %v3460_v19 }
 0x94e   : > { %v3498_v25 = vmax.f32 %v3496_v34, %v3497_v15 }
 0x94f   : > { %v3462_v63 = vrot.slane %v3461_v38, 4 }
 0x950   : > { %v3499_v58 = vrot.slane %v3498_v25, 4 }
 0x951   : > { %v3463_v8 = vmax.f32 %v3461_v38, %v3462_v63 }
 0x952   : > { %v3500_v27 = vmax.f32 %v3498_v25, %v3499_v58 }
 0x953   : > { %v3464_v5 = vrot.slane %v3463_v8, 2 }
 0x954   : > { %v3501_v54 = vrot.slane %v3500_v27, 2 }
 0x955   : > { %v3465_v62 = vmax.f32 %v3463_v8, %v3464_v5  ;;  %v19570_v5 = vld [vmem:[#allocation95_spill] sm:$0xff] }
 0x956   : > { %v3502_v13 = vmax.f32 %v3500_v27, %v3501_v54 }
 0x957   : > { %v3466_v41 = vrot.slane %v3465_v62, 1 }
 0x958   : > { %v3503_v53 = vrot.slane %v3502_v13, 1 }
 0x959   : > { %v12925_v11 = vmax.f32 %v3465_v62, %v3466_v41 }
 0x95a   : > { %v12927_v28 = vmax.f32 %v3502_v13, %v3503_v53 }
 0x95b   : > { %v3505_v21 = vsub.f32 %v12607_v45, %v12925_v11  ;;  %v3507_v19 = vsub.f32 %v12625_v42, %v12925_v11  ;;  %v3509_v38 = vsub.f32 %v12611_v0, %v12925_v11  ;;  %v3511_v25 = vsub.f32 %v12631_v47, %v12925_v11 }
 0x95c   : > { %v3513_v27 = vsub.f32 %v12647_v48, %v12925_v11  ;;  %v3515_v41 = vsub.f32 %v12657_v59, %v12925_v11  ;;  %v3517_v53 = vsub.f32 %v12667_v16, %v12925_v11  ;;  %v3519_v45 = vsub.f32 %v12677_v35, %v12925_v11  ;;  %v19577_v35 = vld [vmem:[#allocation64_spill] sm:$0xff] }
 0x95d   : > { %v3521_v42 = vsub.f32 %v12687_v51, %v12925_v11  ;;  %v3523_v0 = vsub.f32 %v12697_v52, %v12925_v11  ;;  %v3525_v47 = vsub.f32 %v12707_v31, %v12925_v11  ;;  %v3527_v48 = vsub.f32 %v12717_v23, %v12925_v11  ;;  %v19571_v52 = vld [vmem:[#allocation50_spill] sm:$0xff] }
 0x95e   : > { %v3529_v59 = vsub.f32 %v12727_v46, %v12925_v11  ;;  %v3569_v9 = vmul.f32 1.442695, %v3505_v21  ;;  %v3573_v63 = vmul.f32 1.442695, %v3507_v19  ;;  %v3577_v62 = vmul.f32 1.442695, %v3509_v38 }
 0x95f   : > { %v3581_v30 = vmul.f32 1.442695, %v3511_v25  ;;  %v3585_v54 = vmul.f32 1.442695, %v3513_v27  ;;  %v3589_v58 = vmul.f32 1.442695, %v3515_v41  ;;  %v19581_v4 = vsub.f32 %v12737_v14, %v12925_v11 }
 0x960   : > { %7950 = vpow2.f32 %v3569_v9  ;;  %v3593_v34 = vmul.f32 1.442695, %v3517_v53  ;;  %v3597_v8 = vmul.f32 1.442695, %v3519_v45  ;;  %v3601_v27 = vmul.f32 1.442695, %v3521_v42 }
 0x961   : > { %7952 = vpow2.f32 %v3573_v63  ;;  %v19563_v42 = vld [vmem:[#allocation106_spill] sm:$0xff]  ;;  %v3605_v15 = vmul.f32 1.442695, %v3523_v0  ;;  %v19565_v45 = vld [vmem:[#allocation88_spill] sm:$0xff]  ;;  %v19567_v9 = vld [vmem:[#allocation89_spill] sm:$0xff]  ;;  %v19584_v14 = vsub.f32 %v12767_v37, %v12925_v11  ;;  %v19588_v37 = vsub.f32 %v12635_v32, %v12927_v28 }
 0x962   : > { %7954 = vpow2.f32 %v3577_v62  ;;  %v19564_v53 = vld [vmem:[#allocation110_spill] sm:$0xff]  ;;  %v19569_v0 = vld [vmem:[#allocation92_spill] sm:$0xff]  ;;  %v3613_v38 = vmul.f32 1.442695, %v3527_v48  ;;  %v3617_v31 = vmul.f32 1.442695, %v3529_v59 }
 0x963   : > { %7956 = vpow2.f32 %v3581_v30  ;;  %v19562_v30 = vld [vmem:[#allocation16_spill] sm:$0xff]  ;;  %v19579_v23 = vld [vmem:[#allocation98_spill] sm:$0xff]  ;;  %v3621_v19 = vmul.f32 1.442695, %v19581_v4  ;;  %v3633_v4 = vmul.f32 1.442695, %v19584_v14 }
 0x964   : > { %7958 = vpow2.f32 %v3585_v54  ;;  %v19568_v54 = vld [vmem:[#allocation91_spill] sm:$0xff]  ;;  %v19573_v21 = vld [vmem:[#allocation52_spill] sm:$0xff] }
 0x965   : > { %7960 = vpow2.f32 %v3589_v58  ;;  %v19574_v63 = vld [vmem:[#allocation56_spill] sm:$0xff] }
 0x966   : > { %7962 = vpow2.f32 %v3593_v34  ;;  %v19580_v25 = vld [vmem:[#allocation104_spill] sm:$0xff] }
 0x967   : > { %7964 = vpow2.f32 %v3597_v8  ;;  %v3609_v8 = vmul.f32 1.442695, %v3525_v47 }
 0x968   : > { %7966 = vpow2.f32 %v3601_v27  ;;  %v19576_v27 = vld [vmem:[#allocation80_spill] sm:$0xff] }
 0x969   : > { %7968 = vpow2.f32 %v3605_v15 }
 0x96a   : > { %v13005_v62 = vpop.eup %7950  ;;  %7970 = vpow2.f32 %v3609_v8 }
 0x96b   : > { %v13013_v58 = vpop.eup %7952  ;;  %7972 = vpow2.f32 %v3613_v38  ;;  %v19583_v38 = vsub.f32 %v12757_v17, %v12925_v11 }
 0x96c   : > { %v3697_v41 = vadd.f32 %v13013_v58, %v13005_v62  ;;  %v13027_v34 = vpop.eup %7954  ;;  %7974 = vpow2.f32 %v3617_v31 }
 0x96d   : > { %19566 = vst [vmem:[#allocation100_spill] sm:$0xff] %v13027_v34  ;;  %v13040_v51 = vpop.eup %7956  ;;  %7976 = vpow2.f32 %v3621_v19  ;;  %v19586_v19 = vsub.f32 %v12615_v2, %v12927_v28  ;;  %v19591_v2 = vsub.f32 %v12621_v22, %v12927_v28 }
 0x96e   : > { %v3698_v13 = vadd.f32 %v13027_v34, %v3697_v41  ;;  %19572 = vst [vmem:[#allocation9_spill] sm:$0xff] %v13040_v51  ;;  %v13050_v16 = vpop.eup %7958 }
 0x96f   : > { %19575 = vst [vmem:[#allocation10_spill] sm:$0xff] %v13050_v16  ;;  %v13065_v15 = vpop.eup %7960  ;;  %v3571_v17 = vmul.f32 1.442695, %v19586_v19 }
 0x970   : > { %v3699_v41 = vadd.f32 %v13040_v51, %v3698_v13  ;;  %v19578_v13 = vld [vmem:[#allocation68_spill] sm:$0xff]  ;;  %v19582_v51 = vsub.f32 %v12747_v3, %v12925_v11  ;;  %v19585_v3 = vsub.f32 %v12777_v61, %v12925_v11 }
 0x972   : > { %v3700_v47 = vadd.f32 %v13050_v16, %v3699_v41  ;;  %v13074_v41 = vpop.eup %7962  ;;  %v3625_v48 = vmul.f32 1.442695, %v19582_v51  ;;  %v3637_v51 = vmul.f32 1.442695, %v19585_v3 }
 0x973   : > { %v13080_v16 = vpop.eup %7964 }
 0x974   : > { %v3701_v59 = vadd.f32 %v13065_v15, %v3700_v47  ;;  %v13086_v34 = vpop.eup %7966  ;;  %v3629_v47 = vmul.f32 1.442695, %v19583_v38  ;;  %7978 = vpow2.f32 %v3625_v48  ;;  %v19589_v48 = vsub.f32 %v12787_v60, %v12925_v11 }
 0x975   : > { %v13095_v31 = vpop.eup %7968  ;;  %v19594_v60 = vsub.f32 %v12641_v26, %v12927_v28 }
 0x976   : > { %v3702_v8 = vadd.f32 %v13074_v41, %v3701_v59  ;;  %v13104_v38 = vpop.eup %7970  ;;  %7980 = vpow2.f32 %v3629_v47  ;;  %v3641_v14 = vmul.f32 1.442695, %v19589_v48  ;;  %v19592_v47 = vsub.f32 %v12797_v36, %v12925_v11 }
 0x977   : > { %19587 = vst [vmem:[#allocation11_spill] sm:$0xff] %v13104_v38  ;;  %7982 = vpow2.f32 %v3633_v4  ;;  %v13113_v3 = vpop.eup %7972  ;;  %v19597_v36 = vsub.f32 %v12652_v10, %v12927_v28 }
 0x978   : > { %v3703_v46 = vadd.f32 %v13080_v16, %v3702_v8  ;;  %19590 = vst [vmem:[#allocation22_spill] sm:$0xff] %v13113_v3  ;;  %7984 = vpow2.f32 %v3637_v51  ;;  %v3645_v19 = vmul.f32 1.442695, %v19592_v47  ;;  %v13122_v4 = vpop.eup %7974  ;;  %v19595_v51 = vsub.f32 %v12807_v43, %v12925_v11 }
 0x979   : > { %7986 = vpow2.f32 %v3571_v17  ;;  %19593 = vst [vmem:[#allocation23_spill] sm:$0xff] %v13122_v4  ;;  %v13131_v48 = vpop.eup %7976  ;;  %v3587_v17 = vmul.f32 1.442695, %v19597_v36  ;;  %v19599_v43 = vsub.f32 %v12662_v20, %v12927_v28  ;;  %v19602_v20 = vsub.f32 %v12827_v40, %v12925_v11 }
 0x97a   : > { %v3704_v59 = vadd.f32 %v13086_v34, %v3703_v46  ;;  %v3575_v46 = vmul.f32 1.442695, %v19588_v37  ;;  %v3649_v22 = vmul.f32 1.442695, %v19595_v51  ;;  %19596 = vst [vmem:[#allocation20_spill] sm:$0xff] %v13131_v48 }
 0x97c   : > { %v3705_v8 = vadd.f32 %v13095_v31, %v3704_v59  ;;  %v3579_v59 = vmul.f32 1.442695, %v19591_v2  ;;  %7988 = vpow2.f32 %v3575_v46  ;;  %v19598_v46 = vsub.f32 %v12817_v12, %v12925_v11 }
 0x97d   : > { %7990 = vpow2.f32 %v3641_v14  ;;  %v3591_v2 = vmul.f32 1.442695, %v19599_v43  ;;  %v19601_v12 = vsub.f32 %v12672_v57, %v12927_v28  ;;  %v19604_v57 = vsub.f32 %v12832_v33, %v12925_v11 }
 0x97e   : > { %v3706_v61 = vadd.f32 %v13104_v38, %v3705_v8  ;;  %v3583_v8 = vmul.f32 1.442695, %v19594_v60  ;;  %7992 = vpow2.f32 %v3579_v59  ;;  %v3653_v26 = vmul.f32 1.442695, %v19598_v46 }
 0x97f   : > { %7994 = vpow2.f32 %v3645_v19  ;;  %v19600_v59 = vsub.f32 %v12822_v7, %v12925_v11 }
 0x980   : > { %v3707_v32 = vadd.f32 %v13113_v3, %v3706_v61  ;;  %v13140_v61 = vpop.eup %7978  ;;  %7996 = vpow2.f32 %v3583_v8  ;;  %v3661_v8 = vmul.f32 1.442695, %v19602_v20 }
 0x981   : > { %7998 = vpow2.f32 %v3649_v22  ;;  %v3657_v10 = vmul.f32 1.442695, %v19600_v59  ;;  %v13149_v19 = vpop.eup %7980  ;;  %v19603_v22 = vsub.f32 %v12682_v29, %v12927_v28  ;;  %v19606_v29 = vsub.f32 %v12837_v39, %v12925_v11 }
 0x982   : > { %v3708_v37 = vadd.f32 %v13122_v4, %v3707_v32  ;;  %8000 = vpow2.f32 %v3587_v17  ;;  %v3595_v32 = vmul.f32 1.442695, %v19601_v12  ;;  %v13154_v60 = vpop.eup %7982  ;;  %v3665_v17 = vmul.f32 1.442695, %v19604_v57 }
 0x983   : > { %8002 = vpow2.f32 %v3653_v26  ;;  %v13160_v7 = vpop.eup %7984  ;;  %v19605_v26 = vsub.f32 %v12692_v50, %v12927_v28  ;;  %v19610_v57 = vsub.f32 %v12877_v24, %v12925_v11 }
 0x984   : > { %v3709_v14 = vadd.f32 %v13131_v48, %v3708_v37  ;;  %8004 = vpow2.f32 %v3591_v2  ;;  %v3599_v37 = vmul.f32 1.442695, %v19603_v22  ;;  %v13165_v36 = vpop.eup %7986  ;;  %v3669_v2 = vmul.f32 1.442695, %v19606_v29 }
 0x985   : > { %8006 = vpow2.f32 %v3657_v10  ;;  %v19609_v22 = vsub.f32 %v19562_v30, %v12927_v28 }
 0x986   : > { %v3710_v47 = vadd.f32 %v13140_v61, %v3709_v14  ;;  %v13171_v40 = vpop.eup %7988  ;;  %8008 = vpow2.f32 %v3595_v32  ;;  %v3603_v14 = vmul.f32 1.442695, %v19605_v26  ;;  %v19608_v32 = vsub.f32 %v12866_v18, %v12925_v11 }
 0x987   : > { %v13176_v43 = vpop.eup %7990  ;;  %8010 = vpow2.f32 %v3661_v8  ;;  %v3734_v33 = vadd.f32 %v13171_v40, %v13165_v36 }
 0x988   : > { %v3711_v51 = vadd.f32 %v13149_v19, %v3710_v47  ;;  %v13184_v10 = vpop.eup %7992  ;;  %8012 = vpow2.f32 %v3599_v37  ;;  %v19607_v47 = vsub.f32 %v12702_v6, %v12927_v28  ;;  %v3673_v39 = vmul.f32 1.442695, %v19608_v32 }
 0x989   : > { %v13189_v12 = vpop.eup %7994  ;;  %8014 = vpow2.f32 %v3665_v17  ;;  %v3735_v8 = vadd.f32 %v13184_v10, %v3734_v33  ;;  %v3611_v37 = vmul.f32 1.442695, %v19609_v22  ;;  %v3677_v17 = vmul.f32 1.442695, %v19610_v57 }
 0x98a   : > { %v3712_v46 = vadd.f32 %v13154_v60, %v3711_v51  ;;  %v3607_v50 = vmul.f32 1.442695, %v19607_v47  ;;  %v13196_v51 = vpop.eup %7996  ;;  %8016 = vpow2.f32 %v3603_v14  ;;  %v19611_v14 = vsub.f32 %v19563_v42, %v12927_v28 }
 0x98b   : > { %v13201_v6 = vpop.eup %7998  ;;  %8018 = vpow2.f32 %v3669_v2  ;;  %v19612_v2 = vsub.f32 %v12887_v44, %v12925_v11 }
 0x98c   : > { %v3713_v59 = vadd.f32 %v13160_v7, %v3712_v46  ;;  %v3736_v46 = vadd.f32 %v13196_v51, %v3735_v8  ;;  %v13208_v26 = vpop.eup %8000  ;;  %8020 = vpow2.f32 %v3607_v50  ;;  %v3615_v29 = vmul.f32 1.442695, %v19611_v14 }
 0x98d   : > { %v13213_v30 = vpop.eup %8002  ;;  %8022 = vpow2.f32 %v3673_v39  ;;  %v19613_v50 = vsub.f32 %v19564_v53, %v12927_v28  ;;  %v19614_v39 = vsub.f32 %v12897_v56, %v12925_v11 }
 0x98e   : > { %v3714_v20 = vadd.f32 %v13176_v43, %v3713_v59  ;;  %v3681_v59 = vmul.f32 1.442695, %v19612_v2  ;;  %v3737_v33 = vadd.f32 %v13208_v26, %v3736_v46  ;;  %v13220_v47 = vpop.eup %8004  ;;  %8024 = vpow2.f32 %v3611_v37 }
 0x98f   : > { %v3619_v32 = vmul.f32 1.442695, %v19613_v50  ;;  %v13225_v42 = vpop.eup %8006  ;;  %8026 = vpow2.f32 %v3677_v17  ;;  %v19615_v37 = vsub.f32 %v19565_v45, %v12927_v28  ;;  %v19616_v17 = vsub.f32 %v12907_v55, %v12925_v11 }
 0x990   : > { %v3715_v18 = vadd.f32 %v13189_v12, %v3714_v20  ;;  %v3685_v20 = vmul.f32 1.442695, %v19614_v39  ;;  %v3738_v8 = vadd.f32 %v13220_v47, %v3737_v33  ;;  %v13232_v22 = vpop.eup %8008  ;;  %8028 = vpow2.f32 %v3615_v29 }
 0x991   : > { %v3623_v57 = vmul.f32 1.442695, %v19615_v37  ;;  %v13237_v53 = vpop.eup %8010  ;;  %8030 = vpow2.f32 %v3681_v59  ;;  %v19617_v29 = vsub.f32 %v19567_v9, %v12927_v28  ;;  %v19618_v59 = vsub.f32 %v12917_v1, %v12925_v11 }
 0x992   : > { %v3716_v24 = vadd.f32 %v13201_v6, %v3715_v18  ;;  %v3689_v18 = vmul.f32 1.442695, %v19616_v17  ;;  %v3739_v46 = vadd.f32 %v13232_v22, %v3738_v8  ;;  %v13244_v14 = vpop.eup %8012  ;;  %8032 = vpow2.f32 %v3619_v32 }
 0x993   : > { %v3627_v2 = vmul.f32 1.442695, %v19617_v29  ;;  %v13249_v45 = vpop.eup %8014  ;;  %8034 = vpow2.f32 %v3685_v20  ;;  %v19619_v32 = vsub.f32 %v19568_v54, %v12927_v28  ;;  %v19620_v1 = vsub.f32 %v19569_v0, %v12927_v28 }
 0x994   : > { %v3717_v44 = vadd.f32 %v13213_v30, %v3716_v24  ;;  %v3693_v24 = vmul.f32 1.442695, %v19618_v59  ;;  %v3740_v33 = vadd.f32 %v13244_v14, %v3739_v46  ;;  %v13256_v50 = vpop.eup %8016  ;;  %8036 = vpow2.f32 %v3623_v57 }
 0x995   : > { %v3631_v39 = vmul.f32 1.442695, %v19619_v32  ;;  %v13261_v9 = vpop.eup %8018  ;;  %8038 = vpow2.f32 %v3689_v18  ;;  %v3635_v8 = vmul.f32 1.442695, %v19620_v1  ;;  %v19622_v18 = vsub.f32 %v19570_v5, %v12927_v28 }
 0x996   : > { %v3718_v56 = vadd.f32 %v13225_v42, %v3717_v44  ;;  %v3741_v44 = vadd.f32 %v13256_v50, %v3740_v33  ;;  %v13265_v11 = vpop.eup %8020  ;;  %8040 = vpow2.f32 %v3627_v2  ;;  %v19624_v59 = vsub.f32 %v19571_v52, %v12927_v28 }
 0x997   : > { %v13270_v37 = vpop.eup %8022  ;;  %8042 = vpow2.f32 %v3693_v24 }
 0x998   : > { %v3719_v55 = vadd.f32 %v13237_v53, %v3718_v56  ;;  %v3742_v57 = vadd.f32 %v13265_v11, %v3741_v44  ;;  %v13274_v17 = vpop.eup %8024  ;;  %8044 = vpow2.f32 %v3631_v39  ;;  %v3639_v56 = vmul.f32 1.442695, %v19622_v18  ;;  %v19626_v39 = vld [vmem:[#allocation70_spill] sm:$0xff]  ;;  %v19629_v18 = vld [vmem:[#allocation75_spill] sm:$0xff] }
 0x999   : > { %19621 = vst [vmem:[#allocation21_spill] sm:$0xff] %v13274_v17  ;;  %v13279_v46 = vpop.eup %8026  ;;  %8046 = vpow2.f32 %v3635_v8  ;;  %v3643_v24 = vmul.f32 1.442695, %v19624_v59  ;;  %v19627_v44 = vsub.f32 %v19573_v21, %v12927_v28 }
 0x99a   : > { %v3720_v20 = vadd.f32 %v13249_v45, %v3719_v55  ;;  %v3743_v0 = vadd.f32 %v13274_v17, %v3742_v57  ;;  %v13283_v2 = vpop.eup %8028  ;;  %8048 = vpow2.f32 %v3639_v56 }
 0x99b   : > { %19623 = vst [vmem:[#allocation14_spill] sm:$0xff] %v13283_v2  ;;  %v13288_v55 = vpop.eup %8030  ;;  %v3647_v1 = vmul.f32 1.442695, %v19627_v44  ;;  %8050 = vpow2.f32 %v3643_v24 }
 0x99c   : > { %v3721_v54 = vadd.f32 %v13261_v9, %v3720_v20  ;;  %v3744_v5 = vadd.f32 %v13283_v2, %v3743_v0  ;;  %v13292_v32 = vpop.eup %8032  ;;  %v3548_v20 = vsub.f32 %v19626_v39, %v12927_v28  ;;  %v19630_v0 = vsub.f32 %v19574_v63, %v12927_v28 }
 0x99d   : > { %19625 = vst [vmem:[#allocation17_spill] sm:$0xff] %v13292_v32  ;;  %v13299_v8 = vpop.eup %8034  ;;  %8052 = vpow2.f32 %v3647_v1 }
 0x99e   : > { %v3722_v29 = vadd.f32 %v13270_v37, %v3721_v54  ;;  %v3745_v54 = vadd.f32 %v13292_v32, %v3744_v5  ;;  %v13303_v57 = vpop.eup %8036  ;;  %v3651_v56 = vmul.f32 1.442695, %v19630_v0  ;;  %v3655_v48 = vmul.f32 1.442695, %v3548_v20  ;;  %v19632_v0 = vld [vmem:[#allocation62_spill] sm:$0xff]  ;;  %v19633_v20 = vld [vmem:[#allocation76_spill] sm:$0xff] }
 0x99f   : > { %19628 = vst [vmem:[#allocation12_spill] sm:$0xff] %v13303_v57  ;;  %v13310_v59 = vpop.eup %8038  ;;  %v3556_v1 = vsub.f32 %v19633_v20, %v12927_v28 }
 0x9a0   : > { %v3723_v33 = vadd.f32 %v13279_v46, %v3722_v29  ;;  %v3550_v29 = vsub.f32 %v19629_v18, %v12927_v28  ;;  %v3746_v39 = vadd.f32 %v13303_v57, %v3745_v54  ;;  %v13314_v44 = vpop.eup %8040  ;;  %8054 = vpow2.f32 %v3651_v56 }
 0x9a1   : > { %v13318_v4 = vpop.eup %8042  ;;  %8056 = vpow2.f32 %v3655_v48  ;;  %v19634_v48 = vsub.f32 %v19576_v27, %v12927_v28  ;;  %v19636_v27 = vsub.f32 %v19578_v13, %v12927_v28 }
 0x9a2   : > { %v3724_v52 = vadd.f32 %v13288_v55, %v3723_v33  ;;  %v19631_v33 = vld [vmem:[#allocation58_spill] sm:$0xff]  ;;  %v3747_v63 = vadd.f32 %v13314_v44, %v3746_v39  ;;  %v13322_v18 = vpop.eup %8044  ;;  %v3659_v54 = vmul.f32 1.442695, %v3550_v29 }
 0x9a3   : > { %v3552_v5 = vsub.f32 %v19631_v33, %v12927_v28  ;;  %v13328_v33 = vpop.eup %8046 }
 0x9a4   : > { %v3725_v21 = vadd.f32 %v13299_v8, %v3724_v52  ;;  %v3554_v52 = vsub.f32 %v19632_v0, %v12927_v28  ;;  %v3748_v32 = vadd.f32 %v13322_v18, %v3747_v63  ;;  %v13333_v38 = vpop.eup %8048  ;;  %8058 = vpow2.f32 %v3659_v54 }
 0x9a5   : > { %v3671_v63 = vmul.f32 1.442695, %v3556_v1 }
 0x9a6   : > { %v3726_v24 = vadd.f32 %v13310_v59, %v3725_v21  ;;  %v3663_v21 = vmul.f32 1.442695, %v3552_v5  ;;  %v3749_v39 = vadd.f32 %v13328_v33, %v3748_v32  ;;  %v3667_v0 = vmul.f32 1.442695, %v3554_v52 }
 0x9a7   : > { %v3675_v32 = vmul.f32 1.442695, %v19634_v48 }
 0x9a8   : > { %v3727_v57 = vadd.f32 %v13318_v4, %v3726_v24  ;;  %v3750_v29 = vadd.f32 %v13333_v38, %v3749_v39  ;;  %v13336_v24 = vpop.eup %8050  ;;  %8060 = vpow2.f32 %v3663_v21 }
 0x9a9   : > { %v13339_v20 = vpop.eup %8052  ;;  %8062 = vpow2.f32 %v3667_v0  ;;  %v3683_v0 = vmul.f32 1.442695, %v19636_v27 }
 0x9aa   : > { %v3728_v3 = vrot.slane %v3727_v57, 4  ;;  %v3751_v17 = vadd.f32 %v13336_v24, %v3750_v29  ;;  %8064 = vpow2.f32 %v3671_v63 }
 0x9ab   : > { %8066 = vpow2.f32 %v3675_v32  ;;  %v19638_v32 = vsub.f32 %v19580_v25, %v12927_v28 }
 0x9ac   : > { %v3729_v56 = vadd.f32 %v3728_v3, %v3727_v57  ;;  %v3752_v52 = vadd.f32 %v13339_v20, %v3751_v17  ;;  %v13345_v3 = vpop.eup %8054  ;;  %v19635_v57 = vsub.f32 %v19577_v35, %v12927_v28  ;;  %v19637_v17 = vsub.f32 %v19579_v23, %v12927_v28 }
 0x9ad   : > { %v13351_v39 = vpop.eup %8056  ;;  %v3691_v13 = vmul.f32 1.442695, %v19638_v32 }
 0x9ae   : > { %v3730_v2 = vrot.slane %v3729_v56, 2  ;;  %v3679_v54 = vmul.f32 1.442695, %v19635_v57  ;;  %v3753_v21 = vadd.f32 %v13345_v3, %v3752_v52  ;;  %v13360_v29 = vpop.eup %8058  ;;  %v19639_v57 = vsub.f32 %v12922_v49, %v12927_v28 }
 0x9b0   : > { %v3731_v5 = vadd.f32 %v3730_v2, %v3729_v56  ;;  %v3687_v2 = vmul.f32 1.442695, %v19637_v17  ;;  %v3754_v56 = vadd.f32 %v13351_v39, %v3753_v21  ;;  %8068 = vpow2.f32 %v3679_v54 }
 0x9b1   : > { %8070 = vpow2.f32 %v3683_v0 }
 0x9b2   : > { %v3732_v1 = vrot.slane %v3731_v5, 1  ;;  %v3755_v63 = vadd.f32 %v13360_v29, %v3754_v56  ;;  %v13363_v48 = vpop.eup %8060  ;;  %8072 = vpow2.f32 %v3687_v2 }
 0x9b3   : > { %v13369_v23 = vpop.eup %8062 }
 0x9b4   : > { %v3733_v35 = vadd.f32 %v3732_v1, %v3731_v5  ;;  %v3756_v52 = vadd.f32 %v13363_v48, %v3755_v63  ;;  %v3695_v5 = vmul.f32 1.442695, %v19639_v57  ;;  %v13375_v1 = vpop.eup %8064 }
 0x9b5   : > { %v13378_v27 = vpop.eup %8066 }
 0x9b6   : > { %8074 = vrcp.f32 %v3733_v35  ;;  %v3757_v54 = vadd.f32 %v13369_v23, %v3756_v52 }
 0x9b7   : > { %8076 = vpow2.f32 %v3691_v13 }
 0x9b8   : > { %v3758_v21 = vadd.f32 %v13375_v1, %v3757_v54  ;;  %8078 = vpow2.f32 %v3695_v5 }
 0x9ba   : > { %v3759_v25 = vadd.f32 %v13378_v27, %v3758_v21  ;;  %v13381_v0 = vpop.eup %8068 }
 0x9bb   : > { %v13384_v2 = vpop.eup %8070 }
 0x9bc   : > { %v3760_v17 = vadd.f32 %v13381_v0, %v3759_v25  ;;  %v13386_v49 = vpop.eup %8072 }
 0x9be   : > { %v3761_v28 = vadd.f32 %v13384_v2, %v3760_v17 }
 0x9c0   : > { %v13389_v56 = vpop.eup %8074  ;;  %v3762_v35 = vadd.f32 %v13386_v49, %v3761_v28 }
 0x9c1   : > { %v13392_v63 = vpop.eup %8076  ;;  %v13397_v13 = vmul.f32 %v13389_v56, %v13140_v61  ;;  %v13401_v52 = vmul.f32 %v13389_v56, %v13149_v19  ;;  %v13407_v5 = vmul.f32 %v13389_v56, %v13154_v60  ;;  %v13411_v54 = vmul.f32 %v13389_v56, %v13160_v7 }
 0x9c2   : > { %v3763_v32 = vadd.f32 %v13392_v63, %v3762_v35  ;;  %v13403_v57 = vpop.eup %8078  ;;  %v13418_v25 = vmul.f32 %v13389_v56, %v13176_v43  ;;  %v13422_v19 = vmul.f32 %v13389_v56, %v13189_v12  ;;  %v13428_v7 = vmul.f32 %v13389_v56, %v13201_v6 }
 0x9c3   : > { %v13432_v17 = vmul.f32 %v13389_v56, %v13213_v30  ;;  %v13436_v28 = vmul.f32 %v13389_v56, %v13225_v42  ;;  %v13442_v35 = vmul.f32 %v13389_v56, %v13237_v53  ;;  %v13446_v6 = vmul.f32 %v13389_v56, %v13249_v45 }
 0x9c4   : > { %v3764_v21 = vadd.f32 %v13403_v57, %v3763_v32  ;;  %v13452_v32 = vmul.f32 %v13389_v56, %v13261_v9  ;;  %v13456_v42 = vmul.f32 %v13389_v56, %v13270_v37  ;;  %v13460_v12 = vmul.f32 %v13389_v56, %v13279_v46 }
 0x9c5   : > { %19640 = vst [vmem:[#allocation13_spill] sm:$0xff] %v13446_v6  ;;  %v13466_v60 = vmul.f32 %v13389_v56, %v13288_v55  ;;  %v13470_v9 = vmul.f32 %v13389_v56, %v13299_v8  ;;  %v13478_v46 = vmul.f32 %v13389_v56, %v13310_v59  ;;  %v3772_v59 = vmul.f32 %v13389_v56, %v13005_v62  ;;  %v19644_v6 = vld [vmem:[#allocation9_spill] sm:$0xff] }
 0x9c6   : > { %v3765_v43 = vrot.slane %v3764_v21, 4  ;;  %19641 = vst [vmem:[#allocation24_spill] sm:$0xff] %v13456_v42  ;;  %19642 = vst [vmem:[#allocation25_spill] sm:$0xff] %v13460_v12  ;;  %v19643_v42 = vld [vmem:[#allocation100_spill] sm:$0xff] }
 0x9c7   : > { %v3777_v12 = vmul.f32 %v13389_v56, %v19643_v42 }
 0x9c8   : > { %v3766_v53 = vadd.f32 %v3765_v43, %v3764_v21  ;;  %v13482_v21 = vmul.f32 %v13389_v56, %v13318_v4  ;;  %v3775_v4 = vmul.f32 %v13389_v56, %v13013_v58  ;;  %v3779_v43 = vmul.f32 %v13389_v56, %v19644_v6 }
 0x9ca   : > { %v3767_v55 = vrot.slane %v3766_v53, 2  ;;  %v3837_v6 = vpack.c.bf16 %v3775_v4, %v3772_v59 }
 0x9cc   : > { %v3768_v45 = vadd.f32 %v3767_v55, %v3766_v53  ;;  %v19645_v55 = vld [vmem:[#allocation10_spill] sm:$0xff] }
 0x9ce   : > { %v3769_v37 = vrot.slane %v3768_v45, 1 }
 0x9d0   : > { %v3770_v61 = vadd.f32 %v3769_v37, %v3768_v45 }
 0x9d2   : > { %8080 = vrcp.f32 %v3770_v61 }
 0x9dc   : > { %v13488_v30 = vpop.eup %8080 }
 0x9dd   : > { %v3774_v53 = vmul.f32 %v13488_v30, %v13165_v36  ;;  %v3776_v61 = vmul.f32 %v13488_v30, %v13171_v40  ;;  %v3778_v45 = vmul.f32 %v13488_v30, %v13184_v10  ;;  %v3780_v62 = vmul.f32 %v13488_v30, %v13196_v51 }
 0x9de   : > { %v3782_v58 = vmul.f32 %v13488_v30, %v13208_v26  ;;  %v3784_v42 = vmul.f32 %v13488_v30, %v13220_v47  ;;  %v3781_v36 = vmul.f32 %v13389_v56, %v19645_v55  ;;  %v3783_v40 = vmul.f32 %v13389_v56, %v13065_v15 }
 0x9df   : > { %v3838_v37 = vpack.c.bf16 %v3776_v61, %v3774_v53  ;;  %v3785_v10 = vmul.f32 %v13389_v56, %v13074_v41  ;;  %v3840_v8 = vpack.c.bf16 %v3780_v62, %v3778_v45  ;;  %v3839_v51 = vpack.c.bf16 %v3779_v43, %v3777_v12 }
 0x9e0   : > { %v3786_v53 = vmul.f32 %v13488_v30, %v13232_v22  ;;  %v13520_v26 = vmul.f32 %v13488_v30, %v13314_v44  ;;  %v3788_v47 = vmul.f32 %v13488_v30, %v13244_v14  ;;  %v3804_v15 = vmul.f32 %v13488_v30, %v13322_v18 }
 0x9e1   : > { %3873 = vmatprep.subr.bf16.mxu1 %v3838_v37  ;;  %v3806_v41 = vmul.f32 %v13488_v30, %v13328_v33  ;;  %v3808_v12 = vmul.f32 %v13488_v30, %v13333_v38  ;;  %v3842_v43 = vpack.c.bf16 %v3784_v42, %v3782_v58  ;;  %v3810_v22 = vmul.f32 %v13488_v30, %v13336_v24 }
 0x9e2   : > { %3874 = vmatpush1.bf16.msra.mxu1 %v3837_v6  ;;  %v3812_v44 = vmul.f32 %v13488_v30, %v13339_v20  ;;  %v3814_v14 = vmul.f32 %v13488_v30, %v13345_v3  ;;  %v3852_v59 = vpack.c.bf16 %v3804_v15, %v13520_v26  ;;  %v3816_v33 = vmul.f32 %v13488_v30, %v13351_v39  ;;  %v19650_v15 = vld [vmem:[#allocation17_spill] sm:$0xff] }
 0x9e3   : > { %3875 = vmatprep.subr.bf16.mxu1 %v3840_v8  ;;  %v3854_v18 = vpack.c.bf16 %v3808_v12, %v3806_v41  ;;  %v3818_v38 = vmul.f32 %v13488_v30, %v13360_v29  ;;  %v3820_v4 = vmul.f32 %v13488_v30, %v13363_v48  ;;  %v3822_v24 = vmul.f32 %v13488_v30, %v13369_v23  ;;  %v19651_v41 = vld [vmem:[#allocation12_spill] sm:$0xff] }
 0x9e4   : > { %v3856_v8 = vpack.c.bf16 %v3812_v44, %v3810_v22  ;;  %v3824_v20 = vmul.f32 %v13488_v30, %v13375_v1  ;;  %v3858_v3 = vpack.c.bf16 %v3816_v33, %v3814_v14  ;;  %v3826_v61 = vmul.f32 %v13488_v30, %v13378_v27  ;;  %v19652_v22 = vld [vmem:[#allocation23_spill] sm:$0xff]  ;;  %v19653_v14 = vld [vmem:[#allocation20_spill] sm:$0xff] }
 0x9e5   : > { %v3828_v39 = vmul.f32 %v13488_v30, %v13381_v0  ;;  %v3830_v29 = vmul.f32 %v13488_v30, %v13384_v2  ;;  %v3860_v45 = vpack.c.bf16 %v3820_v4, %v3818_v38  ;;  %v3832_v23 = vmul.f32 %v13488_v30, %v13386_v49 }
 0x9e6   : > { %3876 = vmatpush1.bf16.msra.mxu1 %v3839_v51  ;;  %v3862_v48 = vpack.c.bf16 %v3824_v20, %v3822_v24  ;;  %v3834_v1 = vmul.f32 %v13488_v30, %v13392_v63  ;;  %v3841_v62 = vpack.c.bf16 %v3783_v40, %v3781_v36  ;;  %v3787_v37 = vmul.f32 %v13389_v56, %v13080_v16  ;;  %v19647_v51 = vld [vmem:[#allocation14_spill] sm:$0xff] }
 0x9e7   : > { %3877 = vmatprep.subr.bf16.mxu1 %v3842_v43  ;;  %v3864_v27 = vpack.c.bf16 %v3828_v39, %v3826_v61  ;;  %v3836_v0 = vmul.f32 %v13488_v30, %v13403_v57  ;;  %v3844_v58 = vpack.c.bf16 %v3788_v47, %v3786_v53  ;;  %v3790_v2 = vmul.f32 %v13488_v30, %v13256_v50  ;;  %v19646_v57 = vld [vmem:[#allocation21_spill] sm:$0xff]  ;;  %v19648_v53 = vld [vmem:[#allocation11_spill] sm:$0xff] }
 0x9e8   : > { %v3792_v42 = vmul.f32 %v13488_v30, %v13265_v11  ;;  %v3866_v6 = vpack.c.bf16 %v3832_v23, %v3830_v29  ;;  %v3843_v63 = vpack.c.bf16 %v3787_v37, %v3785_v10  ;;  %v3789_v55 = vmul.f32 %v13389_v56, %v13086_v34  ;;  %v19649_v10 = vld [vmem:[#allocation22_spill] sm:$0xff] }
 0x9e9   : > { %v3868_v49 = vpack.c.bf16 %v3836_v0, %v3834_v1  ;;  %v3791_v16 = vmul.f32 %v13389_v56, %v13095_v31  ;;  %v3794_v40 = vmul.f32 %v13488_v30, %v19646_v57  ;;  %v3796_v50 = vmul.f32 %v13488_v30, %v19647_v51 }
 0x9ea   : > { %3878 = vmatpush1.bf16.msra.mxu1 %v3841_v62  ;;  %v3846_v36 = vpack.c.bf16 %v3792_v42, %v3790_v2  ;;  %v3793_v26 = vmul.f32 %v13389_v56, %v19648_v53  ;;  %v3795_v47 = vmul.f32 %v13389_v56, %v19649_v10  ;;  %v3798_v31 = vmul.f32 %v13488_v30, %v19650_v15 }
 0x9eb   : > { %3879 = vmatprep.subr.bf16.mxu1 %v3844_v58  ;;  %v3845_v11 = vpack.c.bf16 %v3791_v16, %v3789_v55  ;;  %v3848_v34 = vpack.c.bf16 %v3796_v50, %v3794_v40  ;;  %v3800_v12 = vmul.f32 %v13488_v30, %v19651_v41  ;;  %v3797_v44 = vmul.f32 %v13389_v56, %v19652_v22  ;;  %v19685_v58 = vld [vmem:[#allocation19_spill] sm:$0xff] }
 0x9ec   : > { %v3847_v43 = vpack.c.bf16 %v3795_v47, %v3793_v26  ;;  %v3799_v33 = vmul.f32 %v13389_v56, %v19653_v14  ;;  %v19654_v24 = vpack.c.bf16 %v13401_v52, %v13397_v13  ;;  %v19655_v30 = vpack.c.bf16 %v13411_v54, %v13407_v5  ;;  %v19659_v52 = vld [vmem:[#allocation13_spill] sm:$0xff]  ;;  %v19775_v26 = vld [vmem:[#allocation82_spill] sm:$0xff] }
 0x9ed   : > { %v3850_v38 = vpack.c.bf16 %v3800_v12, %v3798_v31  ;;  %v19656_v20 = vpack.c.bf16 %v13422_v19, %v13418_v25  ;;  %v19657_v56 = vpack.c.bf16 %v13432_v17, %v13428_v7  ;;  %v19658_v13 = vpack.c.bf16 %v13442_v35, %v13436_v28  ;;  %v19661_v54 = vld [vmem:[#allocation25_spill] sm:$0xff]  ;;  %v19666_v17 = vld [vmem:[#allocation15_spill] sm:$0xff]  ;;  %v19667_v35 = vld [vmem:[#allocation8_spill] sm:$0xff] }
 0x9ee   : > { %3880 = vmatpush1.bf16.msra.mxu1 %v3843_v63  ;;  %v3849_v4 = vpack.c.bf16 %v3799_v33, %v3797_v44  ;;  %v19660_v5 = vpack.c.bf16 %v13452_v32, %v19659_v52  ;;  %v19664_v19 = vpack.c.bf16 %v13470_v9, %v13466_v60  ;;  %v19665_v7 = vpack.c.bf16 %v13482_v21, %v13478_v46  ;;  %v19669_v32 = vld [vmem:[#allocation7_spill] sm:$0xff] }
 0x9ef   : > { %3881 = vmatprep.subr.bf16.mxu1 %v3846_v36  ;;  %v3869_v28 = vrot.slane %v19666_v17, 6  ;;  %v5540_v2 = vrot.slane %v19685_v58, 2  ;;  %v19777_v58 = vld [vmem:[#allocation83_spill] sm:$0xff] }
 0x9f2   : > { %3882 = vmatpush1.bf16.msra.mxu1 %v3845_v11 }
 0x9f3   : > { %3883 = vmatprep.subr.bf16.mxu1 %v3848_v34 }
 0x9f6   : > { %3884 = vmatpush1.bf16.msra.mxu1 %v3847_v43 }
 0x9f7   : > { %3885 = vmatprep.subr.bf16.mxu1 %v3850_v38 }
 0x9fa   : > { %3886 = vmatpush1.bf16.msra.mxu1 %v3849_v4 }
 0x9fb   : > { %3887 = vmatprep.subr.bf16.mxu1 %v3852_v59  ;;  %v19662_v59 = vld [vmem:[#allocation24_spill] sm:$0xff] }
 0x9fc   : > { %v19663_v25 = vpack.c.bf16 %v19661_v54, %v19662_v59 }
 0x9fe   : > { %3888 = vmatpush1.bf16.msra.mxu1 %v19654_v24 }
 0x9ff   : > { %3889 = vmatprep.subr.bf16.mxu1 %v3854_v18  ;;  %v4003_v18 = vsel %vm19670_vm2, %v19669_v32, 0  ;;  %vm19675_vm2 = vmmov %vm19674_vm0  ;;  %v19779_v32 = vld [vmem:[#allocation85_spill] sm:$0xff] }
 0xa02   : > { %3890 = vmatpush1.bf16.msra.mxu1 %v19655_v30 }
 0xa03   : > { %3891 = vmatprep.subr.bf16.mxu1 %v3856_v8  ;;  %v19671_v8 = vmov 0  }
 0xa06   : > { %3892 = vmatpush1.bf16.msra.mxu1 %v19656_v20 }
 0xa07   : > { %3893 = vmatprep.subr.bf16.mxu1 %v3858_v3  ;;  %v3930_v3 = vpop.trf.xlu0 }
 0xa0a   : > { %3894 = vmatpush1.bf16.msra.mxu1 %v19657_v56 }
 0xa0b   : > { %3895 = vmatprep.subr.bf16.mxu1 %v3860_v45  ;;  %v3931_v60 = vpop.trf.xlu0  ;;  %v3946_v45 = vpop.trf.xlu1 }
 0xa0e   : > { %3896 = vmatpush1.bf16.msra.mxu1 %v19658_v13 }
 0xa0f   : > { %3897 = vmatprep.subr.bf16.mxu1 %v3862_v48  ;;  %v3932_v9 = vpop.trf.xlu0  ;;  %v3947_v48 = vpop.trf.xlu1 }
 0xa12   : > { %3898 = vmatpush1.bf16.msra.mxu1 %v19660_v5 }
 0xa13   : > { %3899 = vmatprep.subr.bf16.mxu1 %v3864_v27  ;;  %v3933_v46 = vpop.trf.xlu0  ;;  %v3948_v23 = vpop.trf.xlu1 }
 0xa16   : > { %3900 = vmatpush1.bf16.msra.mxu1 %v19663_v25 }
 0xa17   : > { %3901 = vmatprep.subr.bf16.mxu1 %v3866_v6  ;;  %v3934_v21 = vpop.trf.xlu0  ;;  %v3949_v1 = vpop.trf.xlu1 }
 0xa1a   : > { %3902 = vmatpush1.bf16.msra.mxu1 %v19664_v19 }
 0xa1b   : > { %3903 = vmatprep.subr.bf16.mxu1 %v3868_v49  ;;  %v3935_v61 = vpop.trf.xlu0  ;;  %v3950_v62 = vpop.trf.xlu1 }
 0xa1e   : > { %3904 = vmatpush1.bf16.msra.mxu1 %v19665_v7 }
 0xa1f   : > { %7429 = vmatprep.subr.msk.bf16.mxu1 %vm19668_vm14, %v19667_v35  ;;  %vm19676_vm14 = vmmov %vm19674_vm0  ;;  %v3936_v39 = vpop.trf.xlu0  ;;  %v3951_v37 = vpop.trf.xlu1 }
 0xa21   : > { %3906 = vmatmul.mubr.bf16.vlgmr.msra.gmra.mrb[156].mxu1 %v3869_v28 }
 0xa22   : > { %4009 = vmatpush1.bf16.msra.mxu1 %v4003_v18  ;;  %4040 = vmatprep.mubr.bf16.mxu1 %v19671_v8 }
 0xa23   : > { %v3937_v29 = vpop.trf.xlu0  ;;  %v3952_v27 = vpop.trf.xlu1 }
 0xa27   : > { %v3953_v0 = vpop.trf.xlu1 }
 0xa29   : > { %7430 = vmatmul.mubr.msk.bf16.vlgmr.msra.gmra.mrb[160].mxu1 %vm19672_vm1, %v3930_v3  ;;  %vm19677_vm1 = vmmov %vm19674_vm0 }
 0xa2a   : > { %4050 = vmatprep.mubr.bf16.mxu1 %v19671_v8 }
 0xa31   : > { %7431 = vmatmul.mubr.msk.bf16.gmra.mrb[164].mxu1 %vm19673_vm15, %v3931_v60  ;;  %vm19678_vm15 = vmmov %vm19674_vm0 }
 0xa32   : > { %4060 = vmatprep.mubr.bf16.mxu1 %v19671_v8 }
 0xa39   : > { %7432 = vmatmul.mubr.msk.bf16.gmra.mrb[168].mxu1 %vm19674_vm0, %v3932_v9 }
 0xa3a   : > { %4070 = vmatprep.mubr.bf16.mxu1 %v19671_v8 }
 0xa41   : > { %7433 = vmatmul.mubr.msk.bf16.gmra.mrb[172].mxu1 %vm19675_vm2, %v3933_v46  ;;  %vm19679_vm2 = vmmov %vm19674_vm0 }
 0xa42   : > { %4080 = vmatprep.mubr.bf16.mxu1 %v19671_v8 }
 0xa49   : > { %7434 = vmatmul.mubr.msk.bf16.gmra.mrb[176].mxu1 %vm19676_vm14, %v3934_v21  ;;  %vm19680_vm14 = vmmov %vm19674_vm0  ;;  %v19698_v21 = vld [vmem:[#allocation38_spill] sm:$0xff] }
 0xa4a   : > { %4090 = vmatprep.mubr.bf16.mxu1 %v19671_v8 }
 0xa51   : > { %7435 = vmatmul.mubr.msk.bf16.gmra.mrb[180].mxu1 %vm19677_vm1, %v3935_v61  ;;  %vm19681_vm1 = vmmov %vm19674_vm0 }
 0xa52   : > { %4100 = vmatprep.mubr.bf16.mxu1 %v19671_v8 }
 0xa59   : > { %7436 = vmatmul.mubr.msk.bf16.gmra.mrb[184].mxu1 %vm19678_vm15, %v3936_v39  ;;  %vm19682_vm15 = vmmov %vm19674_vm0 }
 0xa5a   : > { %4110 = vmatprep.mubr.bf16.mxu1 %v19671_v8 }
 0xa61   : > { %7437 = vmatmul.mubr.msk.bf16.gmra.mrb[188].mxu1 %vm19674_vm0, %v3937_v29 }
 0xa62   : > { %4120 = vmatprep.mubr.bf16.mxu1 %v19671_v8 }
 0xa69   : > { %7438 = vmatmul.mubr.msk.bf16.gmra.mrb[192].mxu1 %vm19679_vm2, %v3946_v45  ;;  %vm19683_vm2 = vmmov %vm19674_vm0  ;;  %v19700_v45 = vld [vmem:[#allocation39_spill] sm:$0xff] }
 0xa6a   : > { %4130 = vmatprep.mubr.bf16.mxu1 %v19671_v8 }
 0xa71   : > { %7439 = vmatmul.mubr.msk.bf16.gmra.mrb[196].mxu1 %vm19680_vm14, %v3947_v48  ;;  %vm19684_vm14 = vmmov %vm19674_vm0 }
 0xa72   : > { %4140 = vmatprep.mubr.bf16.mxu1 %v19671_v8 }
 0xa79   : > { %7440 = vmatmul.mubr.msk.bf16.gmra.mrb[200].mxu1 %vm19681_vm1, %v3948_v23  ;;  %vm19686_vm1 = vmmov %vm19674_vm0 }
 0xa7a   : > { %4150 = vmatprep.mubr.bf16.mxu1 %v19671_v8 }
 0xa81   : > { %7441 = vmatmul.mubr.msk.bf16.gmra.mrb[204].mxu1 %vm19682_vm15, %v3949_v1  ;;  %vm19699_vm15 = vnez %v19698_v21 }
 0xa82   : > { %4160 = vmatprep.mubr.bf16.mxu1 %v19671_v8 }
 0xa89   : > { %7442 = vmatmul.mubr.msk.bf16.gmra.mrb[208].mxu1 %vm19674_vm0, %v3950_v62  ;;  %vm19701_vm0 = vnez %v19700_v45  ;;  %v19702_v62 = vld [vmem:[#allocation40_spill] sm:$0xff] }
 0xa8a   : > { %4170 = vmatprep.mubr.bf16.mxu1 %v19671_v8 }
 0xa91   : > { %7443 = vmatmul.mubr.msk.bf16.gmra.mrb[212].mxu1 %vm19683_vm2, %v3951_v37  ;;  %vm19703_vm2 = vnez %v19702_v62 }
 0xa92   : > { %4180 = vmatprep.mubr.bf16.mxu1 %v19671_v8 }
 0xa99   : > { %7444 = vmatmul.mubr.msk.bf16.gmra.mrb[216].mxu1 %vm19684_vm14, %v3952_v27 }
 0xa9a   : > { %4190 = vmatprep.mubr.bf16.mxu1 %v19671_v8 }
 0xaa1   : > { %7445 = vmatmul.mubr.msk.bf16.gmra.mrb[220].mxu1 %vm19686_vm1, %v3953_v0 }
 0xaa2   : > { %5575 = vmatprep.mubr.bf16.mxu1 %v5540_v2  ;;  %v19704_v2 = vld [vmem:[#allocation41_spill] sm:$0xff] }
 0xaa3   : > { %vm19705_vm14 = vnez %v19704_v2 }
 0xaf4   : > { %v3907_v42 = vpop.f32.mrb[156].mxu1 }
 0xaf5   : > { %v3916_v6 = vrot.slane %v3907_v42, 4  ;;  %v3909_v49 = vpop.f32.mrb[157].mxu1 }
 0xaf6   : > { %v3917_v63 = vrot.slane %v3909_v49, 4  ;;  %v3911_v55 = vpop.f32.mrb[158].mxu1 }
 0xaf7   : > { %3920 = vst [vmem:[%s10507_s27 + $0x10] sm:$0xf0] %v3916_v6  ;;  %v3912_v16 = vpop.f32.mrb[159].mxu1 }
 0xaf8   : > { %3921 = vst [vmem:[%s10507_s27 + $0x18] sm:$0xf0] %v3917_v63  ;;  %v19706_v63 = vld [vmem:[#allocation42_spill] sm:$0xff] }
 0xaf9   : > { %vm19707_vm1 = vnez %v19706_v63 }
 0xafc   : > { %v4042_v36 = vpop.f32.mrb[160].mxu1 }
 0xafd   : > { %v4044_v57 = vpop.f32.mrb[161].mxu1  ;;  %v13654_v53 = vsel %vm9063_vm3, %v4042_v36, -1e+30 }
 0xafe   : > { %v4046_v40 = vpop.f32.mrb[162].mxu1  ;;  %v13662_v15 = vsel %vm9075_vm5, %v4044_v57, -1e+30  ;;  %v19708_v57 = vld [vmem:[#allocation43_spill] sm:$0xff] }
 0xaff   : > { %v4048_v51 = vpop.f32.mrb[163].mxu1  ;;  %v13672_v44 = vsel %vm9087_vm7, %v4046_v40, -1e+30 }
 0xb00   : > { %v13682_v30 = vsel %vm9099_vm9, %v4048_v51, -1e+30 }
 0xb04   : > { %v4052_v50 = vpop.f32.mrb[164].mxu1 }
 0xb05   : > { %v13658_v10 = vsel %vm9069_vm4, %v4052_v50, -1e+30  ;;  %v4054_v47 = vpop.f32.mrb[165].mxu1 }
 0xb06   : > { %v4265_v31 = vmax.f32 %v13654_v53, %v13658_v10  ;;  %v13668_v12 = vsel %vm9081_vm6, %v4054_v47, -1e+30  ;;  %v4056_v43 = vpop.f32.mrb[166].mxu1  ;;  %v19710_v47 = vld [vmem:[#allocation45_spill] sm:$0xff] }
 0xb07   : > { %v4302_v14 = vmax.f32 %v13662_v15, %v13668_v12  ;;  %v13678_v38 = vsel %vm9093_vm8, %v4056_v43, -1e+30  ;;  %v4058_v4 = vpop.f32.mrb[167].mxu1 }
 0xb08   : > { %v4266_v20 = vmax.f32 %v13672_v44, %v13678_v38  ;;  %v13688_v13 = vsel %vm9105_vm10, %v4058_v4, -1e+30  ;;  %v19712_v4 = vld [vmem:[#allocation44_spill] sm:$0xff] }
 0xb09   : > { %v4303_v52 = vmax.f32 %v13682_v30, %v13688_v13 }
 0xb0c   : > { %v4062_v5 = vpop.f32.mrb[168].mxu1 }
 0xb0d   : > { %v13694_v59 = vsel %vm9151_vm11, %v4062_v5, -1e+30  ;;  %v4064_v25 = vpop.f32.mrb[169].mxu1 }
 0xb0e   : > { %v4267_v19 = vmax.f32 %v4265_v31, %v13694_v59  ;;  %v13699_v17 = vsel %vm9157_vm12, %v4064_v25, -1e+30  ;;  %v4066_v28 = vpop.f32.mrb[170].mxu1  ;;  %v19714_v25 = vld [vmem:[#allocation46_spill] sm:$0xff] }
 0xb0f   : > { %v4304_v18 = vmax.f32 %v4302_v14, %v13699_v17  ;;  %v13704_v60 = vsel %vm9163_vm13, %v4066_v28, -1e+30  ;;  %v4068_v9 = vpop.f32.mrb[171].mxu1 }
 0xb10   : > { %v4268_v46 = vmax.f32 %v4266_v20, %v13704_v60  ;;  %v13709_v61 = vsel %vm19699_vm15, %v4068_v9, -1e+30  ;;  %v19716_v9 = vld [vmem:[#allocation47_spill] sm:$0xff] }
 0xb11   : > { %v4305_v39 = vmax.f32 %v4303_v52, %v13709_v61 }
 0xb14   : > { %v4072_v29 = vpop.f32.mrb[172].mxu1 }
 0xb15   : > { %v13714_v48 = vsel %vm19701_vm0, %v4072_v29, -1e+30  ;;  %v4074_v23 = vpop.f32.mrb[173].mxu1 }
 0xb16   : > { %v4269_v1 = vmax.f32 %v4267_v19, %v13714_v48  ;;  %v13719_v37 = vsel %vm19703_vm2, %v4074_v23, -1e+30  ;;  %v4076_v27 = vpop.f32.mrb[174].mxu1  ;;  %vm19709_vm2 = vnez %v19708_v57  ;;  %v19718_v23 = vld [vmem:[#allocation48_spill] sm:$0xff] }
 0xb17   : > { %v4306_v0 = vmax.f32 %v4304_v18, %v13719_v37  ;;  %v13724_v42 = vsel %vm19705_vm14, %v4076_v27, -1e+30  ;;  %v4078_v6 = vpop.f32.mrb[175].mxu1  ;;  %vm19711_vm14 = vnez %v19710_v47 }
 0xb18   : > { %v4270_v49 = vmax.f32 %v4268_v46, %v13724_v42  ;;  %v13729_v55 = vsel %vm19707_vm1, %v4078_v6, -1e+30  ;;  %vm19713_vm1 = vnez %v19712_v4  ;;  %v19721_v6 = vld [vmem:[#allocation49_spill] sm:$0xff] }
 0xb19   : > { %v4307_v16 = vmax.f32 %v4305_v39, %v13729_v55 }
 0xb1c   : > { %v4082_v36 = vpop.f32.mrb[176].mxu1 }
 0xb1d   : > { %v13734_v40 = vsel %vm19709_vm2, %v4082_v36, -1e+30  ;;  %v4084_v51 = vpop.f32.mrb[177].mxu1  ;;  %vm19715_vm2 = vnez %v19714_v25 }
 0xb1e   : > { %v4271_v50 = vmax.f32 %v4269_v1, %v13734_v40  ;;  %v13739_v31 = vsel %vm19711_vm14, %v4084_v51, -1e+30  ;;  %v4086_v43 = vpop.f32.mrb[178].mxu1  ;;  %vm19717_vm14 = vnez %v19716_v9  ;;  %v19723_v51 = vld [vmem:[#allocation51_spill] sm:$0xff] }
 0xb1f   : > { %v4308_v14 = vmax.f32 %v4306_v0, %v13739_v31  ;;  %v13744_v20 = vsel %vm19713_vm1, %v4086_v43, -1e+30  ;;  %v4088_v52 = vpop.f32.mrb[179].mxu1  ;;  %vm19719_vm1 = vnez %v19718_v23 }
 0xb20   : > { %v4272_v5 = vmax.f32 %v4270_v49, %v13744_v20  ;;  %v13749_v19 = vsel %vm19715_vm2, %v4088_v52, -1e+30  ;;  %vm19722_vm2 = vnez %v19721_v6  ;;  %v19728_v6 = vld [vmem:[#allocation54_spill] sm:$0xff] }
 0xb21   : > { %v4309_v28 = vmax.f32 %v4307_v16, %v13749_v19 }
 0xb24   : > { %v4092_v18 = vpop.f32.mrb[180].mxu1 }
 0xb25   : > { %v13754_v46 = vsel %vm19717_vm14, %v4092_v18, -1e+30  ;;  %v4094_v39 = vpop.f32.mrb[181].mxu1  ;;  %vm19724_vm14 = vnez %v19723_v51  ;;  %v19726_v18 = vld [vmem:[#allocation53_spill] sm:$0xff]  ;;  %v19731_v51 = vld [vmem:[#allocation55_spill] sm:$0xff] }
 0xb26   : > { %v4273_v29 = vmax.f32 %v4271_v50, %v13754_v46  ;;  %v13759_v1 = vsel %vm19719_vm1, %v4094_v39, -1e+30  ;;  %v4096_v27 = vpop.f32.mrb[182].mxu1  ;;  %vm19727_vm1 = vnez %v19726_v18  ;;  %v19733_v18 = vld [vmem:[#allocation57_spill] sm:$0xff] }
 0xb27   : > { %19720 = vst [vmem:[#allocation26_spill] sm:$0xff] %v13759_v1  ;;  %v4310_v0 = vmax.f32 %v4308_v14, %v13759_v1  ;;  %v13764_v49 = vsel %vm19722_vm2, %v4096_v27, -1e+30  ;;  %v4098_v16 = vpop.f32.mrb[183].mxu1  ;;  %vm19729_vm2 = vnez %v19728_v6  ;;  %v19736_v6 = vld [vmem:[#allocation59_spill] sm:$0xff] }
 0xb28   : > { %v4274_v36 = vmax.f32 %v4272_v5, %v13764_v49  ;;  %v13769_v43 = vsel %vm19724_vm14, %v4098_v16, -1e+30  ;;  %vm19732_vm14 = vnez %v19731_v51  ;;  %v19738_v51 = vld [vmem:[#allocation60_spill] sm:$0xff] }
 0xb29   : > { %19725 = vst [vmem:[#allocation6_spill] sm:$0xff] %v13769_v43  ;;  %v4311_v50 = vmax.f32 %v4309_v28, %v13769_v43 }
 0xb2c   : > { %v4102_v52 = vpop.f32.mrb[184].mxu1 }
 0xb2d   : > { %v13774_v39 = vsel %vm19727_vm1, %v4102_v52, -1e+30  ;;  %v4104_v23 = vpop.f32.mrb[185].mxu1  ;;  %vm19734_vm1 = vnez %v19733_v18  ;;  %v19741_v18 = vld [vmem:[#allocation61_spill] sm:$0xff] }
 0xb2e   : > { %v4275_v14 = vmax.f32 %v4273_v29, %v13774_v39  ;;  %v13779_v27 = vsel %vm19729_vm2, %v4104_v23, -1e+30  ;;  %v4106_v9 = vpop.f32.mrb[186].mxu1  ;;  %vm19737_vm2 = vnez %v19736_v6  ;;  %v19743_v6 = vld [vmem:[#allocation63_spill] sm:$0xff] }
 0xb2f   : > { %19730 = vst [vmem:[#allocation5_spill] sm:$0xff] %v13779_v27  ;;  %v4312_v5 = vmax.f32 %v4310_v0, %v13779_v27  ;;  %v13784_v16 = vsel %vm19732_vm14, %v4106_v9, -1e+30  ;;  %v4108_v28 = vpop.f32.mrb[187].mxu1  ;;  %vm19739_vm14 = vnez %v19738_v51  ;;  %v19746_v51 = vld [vmem:[#allocation65_spill] sm:$0xff] }
 0xb30   : > { %v4276_v25 = vmax.f32 %v4274_v36, %v13784_v16  ;;  %v13789_v52 = vsel %vm19734_vm1, %v4108_v28, -1e+30  ;;  %vm19742_vm1 = vnez %v19741_v18  ;;  %v19748_v18 = vld [vmem:[#allocation66_spill] sm:$0xff] }
 0xb31   : > { %19735 = vst [vmem:[#allocation16_spill] sm:$0xff] %v13789_v52  ;;  %v4313_v29 = vmax.f32 %v4311_v50, %v13789_v52 }
 0xb34   : > { %v4112_v4 = vpop.f32.mrb[188].mxu1 }
 0xb35   : > { %v13794_v23 = vsel %vm19737_vm2, %v4112_v4, -1e+30  ;;  %v4114_v47 = vpop.f32.mrb[189].mxu1  ;;  %vm19744_vm2 = vnez %v19743_v6  ;;  %v19751_v6 = vld [vmem:[#allocation67_spill] sm:$0xff] }
 0xb36   : > { %v4277_v0 = vmax.f32 %v4275_v14, %v13794_v23  ;;  %v13799_v9 = vsel %vm19739_vm14, %v4114_v47, -1e+30  ;;  %v4116_v57 = vpop.f32.mrb[190].mxu1  ;;  %vm19747_vm14 = vnez %v19746_v51  ;;  %v19753_v51 = vld [vmem:[#allocation69_spill] sm:$0xff] }
 0xb37   : > { %19740 = vst [vmem:[#allocation106_spill] sm:$0xff] %v13799_v9  ;;  %v4314_v36 = vmax.f32 %v4312_v5, %v13799_v9  ;;  %v13804_v28 = vsel %vm19742_vm1, %v4116_v57, -1e+30  ;;  %v4118_v50 = vpop.f32.mrb[191].mxu1  ;;  %vm19749_vm1 = vnez %v19748_v18  ;;  %v19756_v18 = vld [vmem:[#allocation71_spill] sm:$0xff] }
 0xb38   : > { %v4278_v63 = vmax.f32 %v4276_v25, %v13804_v28  ;;  %v13809_v4 = vsel %vm19744_vm2, %v4118_v50, -1e+30  ;;  %vm19752_vm2 = vnez %v19751_v6  ;;  %v19758_v6 = vld [vmem:[#allocation73_spill] sm:$0xff] }
 0xb39   : > { %19745 = vst [vmem:[#allocation110_spill] sm:$0xff] %v13809_v4  ;;  %v4315_v14 = vmax.f32 %v4313_v29, %v13809_v4 }
 0xb3c   : > { %v4122_v2 = vpop.f32.mrb[192].mxu1 }
 0xb3d   : > { %v13814_v47 = vsel %vm19747_vm14, %v4122_v2, -1e+30  ;;  %v4124_v62 = vpop.f32.mrb[193].mxu1  ;;  %vm19754_vm14 = vnez %v19753_v51  ;;  %v19761_v51 = vld [vmem:[#allocation72_spill] sm:$0xff] }
 0xb3e   : > { %v4279_v5 = vmax.f32 %v4277_v0, %v13814_v47  ;;  %v13819_v57 = vsel %vm19749_vm1, %v4124_v62, -1e+30  ;;  %v4126_v45 = vpop.f32.mrb[194].mxu1  ;;  %vm19757_vm1 = vnez %v19756_v18  ;;  %v19763_v18 = vld [vmem:[#allocation74_spill] sm:$0xff] }
 0xb3f   : > { %19750 = vst [vmem:[#allocation88_spill] sm:$0xff] %v13819_v57  ;;  %v4316_v25 = vmax.f32 %v4314_v36, %v13819_v57  ;;  %v13824_v50 = vsel %vm19752_vm2, %v4126_v45, -1e+30  ;;  %v4128_v29 = vpop.f32.mrb[195].mxu1  ;;  %vm19759_vm2 = vnez %v19758_v6  ;;  %v19766_v6 = vld [vmem:[#allocation77_spill] sm:$0xff] }
 0xb40   : > { %v4280_v21 = vmax.f32 %v4278_v63, %v13824_v50  ;;  %v13829_v2 = vsel %vm19754_vm14, %v4128_v29, -1e+30  ;;  %vm19762_vm14 = vnez %v19761_v51  ;;  %v19768_v51 = vld [vmem:[#allocation79_spill] sm:$0xff] }
 0xb41   : > { %19755 = vst [vmem:[#allocation89_spill] sm:$0xff] %v13829_v2  ;;  %v4317_v0 = vmax.f32 %v4315_v14, %v13829_v2  ;;  %v19798_v2 = vld [vmem:[#allocation96_spill] sm:$0xff] }
 0xb44   : > { %v4132_v3 = vpop.f32.mrb[196].mxu1 }
 0xb45   : > { %v13834_v62 = vsel %vm19757_vm1, %v4132_v3, -1e+30  ;;  %v4134_v7 = vpop.f32.mrb[197].mxu1  ;;  %vm19764_vm1 = vnez %v19763_v18  ;;  %v19771_v18 = vld [vmem:[#allocation78_spill] sm:$0xff] }
 0xb46   : > { %v4281_v36 = vmax.f32 %v4279_v5, %v13834_v62  ;;  %v13839_v45 = vsel %vm19759_vm2, %v4134_v7, -1e+30  ;;  %v4136_v54 = vpop.f32.mrb[198].mxu1  ;;  %vm19767_vm2 = vnez %v19766_v6 }
 0xb47   : > { %19760 = vst [vmem:[#allocation91_spill] sm:$0xff] %v13839_v45  ;;  %v4318_v63 = vmax.f32 %v4316_v25, %v13839_v45  ;;  %v13844_v29 = vsel %vm19762_vm14, %v4136_v54, -1e+30  ;;  %v4138_v14 = vpop.f32.mrb[199].mxu1  ;;  %vm19769_vm14 = vnez %v19768_v51 }
 0xb48   : > { %v4282_v56 = vmax.f32 %v4280_v21, %v13844_v29  ;;  %v13849_v3 = vsel %vm19764_vm1, %v4138_v14, -1e+30  ;;  %vm19772_vm1 = vnez %v19771_v18 }
 0xb49   : > { %19765 = vst [vmem:[#allocation92_spill] sm:$0xff] %v13849_v3  ;;  %v4319_v5 = vmax.f32 %v4317_v0, %v13849_v3 }
 0xb4c   : > { %v4142_v24 = vpop.f32.mrb[200].mxu1 }
 0xb4d   : > { %v13854_v7 = vsel %vm19767_vm2, %v4142_v24, -1e+30  ;;  %v4144_v33 = vpop.f32.mrb[201].mxu1  ;;  %v19773_v24 = vld [vmem:[#allocation81_spill] sm:$0xff] }
 0xb4e   : > { %v4283_v25 = vmax.f32 %v4281_v36, %v13854_v7  ;;  %v13859_v54 = vsel %vm19769_vm14, %v4144_v33, -1e+30  ;;  %v4146_v22 = vpop.f32.mrb[202].mxu1  ;;  %vm19774_vm2 = vnez %v19773_v24  ;;  %vm19776_vm14 = vnez %v19775_v26  ;;  %v19781_v26 = vld [vmem:[#allocation84_spill] sm:$0xff] }
 0xb4f   : > { %19770 = vst [vmem:[#allocation95_spill] sm:$0xff] %v13859_v54  ;;  %v4320_v21 = vmax.f32 %v4318_v63, %v13859_v54  ;;  %v13864_v14 = vsel %vm19772_vm1, %v4146_v22, -1e+30  ;;  %v4148_v0 = vpop.f32.mrb[203].mxu1  ;;  %vm19778_vm1 = vnez %v19777_v58  ;;  %v19784_v54 = vld [vmem:[#allocation86_spill] sm:$0xff]  ;;  %v19787_v58 = vld [vmem:[#allocation87_spill] sm:$0xff] }
 0xb50   : > { %v4284_v41 = vmax.f32 %v4282_v56, %v13864_v14  ;;  %vm19785_vm0 = vnez %v19784_v54 }
 0xb54   : > { %v4152_v6 = vpop.f32.mrb[204].mxu1 }
 0xb55   : > { %v13869_v34 = vsel %vm19774_vm2, %v4152_v6, -1e+30  ;;  %v4154_v36 = vpop.f32.mrb[205].mxu1  ;;  %vm19780_vm2 = vnez %v19779_v32 }
 0xb56   : > { %v4285_v51 = vmax.f32 %v4283_v25, %v13869_v34  ;;  %v4156_v33 = vpop.f32.mrb[206].mxu1 }
 0xb57   : > { %v13874_v11 = vsel %vm19776_vm14, %v4156_v33, -1e+30  ;;  %v4158_v63 = vpop.f32.mrb[207].mxu1  ;;  %vm19782_vm14 = vnez %v19781_v26 }
 0xb58   : > { %v4286_v22 = vmax.f32 %v4284_v41, %v13874_v11  ;;  %v13888_v33 = vsel %vm19782_vm14, %v4148_v0, -1e+30  ;;  %v13892_v41 = vsel %vm19785_vm0, %v4154_v36, -1e+30  ;;  %v19793_v0 = vld [vmem:[#allocation93_spill] sm:$0xff] }
 0xb59   : > { %19783 = vst [vmem:[#allocation50_spill] sm:$0xff] %v13888_v33  ;;  %19786 = vst [vmem:[#allocation52_spill] sm:$0xff] %v13892_v41  ;;  %v4322_v26 = vmax.f32 %v4320_v21, %v13892_v41  ;;  %vm19794_vm14 = vnez %v19793_v0  ;;  %v19801_v41 = vld [vmem:[#allocation97_spill] sm:$0xff] }
 0xb5c   : > { %v4162_v18 = vpop.f32.mrb[208].mxu1 }
 0xb5d   : > { %v13879_v56 = vsel %vm19778_vm1, %v4162_v18, -1e+30  ;;  %v4164_v8 = vpop.f32.mrb[209].mxu1  ;;  %vm19788_vm1 = vnez %v19787_v58  ;;  %v19796_v58 = vld [vmem:[#allocation94_spill] sm:$0xff] }
 0xb5e   : > { %v4287_v6 = vmax.f32 %v4285_v51, %v13879_v56  ;;  %v4166_v24 = vpop.f32.mrb[210].mxu1  ;;  %v13897_v3 = vsel %vm19788_vm1, %v4158_v63, -1e+30  ;;  %v19790_v51 = vld [vmem:[#allocation90_spill] sm:$0xff]  ;;  %vm19797_vm1 = vnez %v19796_v58  ;;  %v19803_v58 = vld [vmem:[#allocation99_spill] sm:$0xff] }
 0xb5f   : > { %v13884_v25 = vsel %vm19780_vm2, %v4166_v24, -1e+30  ;;  %v4168_v35 = vpop.f32.mrb[211].mxu1  ;;  %19789 = vst [vmem:[#allocation56_spill] sm:$0xff] %v13897_v3  ;;  %vm19791_vm15 = vnez %v19790_v51  ;;  %v4321_v24 = vmax.f32 %v4319_v5, %v13888_v33 }
 0xb60   : > { %v4288_v18 = vmax.f32 %v4286_v22, %v13884_v25  ;;  %v13901_v32 = vsel %vm19791_vm15, %v4164_v8, -1e+30  ;;  %v13907_v45 = vsel %vm19794_vm14, %v4168_v35, -1e+30  ;;  %vm19799_vm15 = vnez %v19798_v2  ;;  %v19806_v2 = vld [vmem:[#allocation101_spill] sm:$0xff] }
 0xb61   : > { %19792 = vst [vmem:[#allocation80_spill] sm:$0xff] %v13901_v32  ;;  %19795 = vst [vmem:[#allocation64_spill] sm:$0xff] %v13907_v45  ;;  %v4323_v54 = vmax.f32 %v4321_v24, %v13897_v3  ;;  %v4324_v22 = vmax.f32 %v4322_v26, %v13901_v32  ;;  %vm19802_vm14 = vnez %v19801_v41  ;;  %v19808_v41 = vld [vmem:[#allocation102_spill] sm:$0xff] }
 0xb63   : > { %v4325_v35 = vmax.f32 %v4323_v54, %v13907_v45 }
 0xb64   : > { %v4172_v36 = vpop.f32.mrb[212].mxu1 }
 0xb65   : > { %v13913_v63 = vsel %vm19797_vm1, %v4172_v36, -1e+30  ;;  %v4174_v51 = vpop.f32.mrb[213].mxu1  ;;  %vm19804_vm1 = vnez %v19803_v58  ;;  %v19811_v58 = vld [vmem:[#allocation103_spill] sm:$0xff] }
 0xb66   : > { %v4289_v8 = vmax.f32 %v4287_v6, %v13913_v63  ;;  %v13918_v5 = vsel %vm19799_vm15, %v4174_v51, -1e+30  ;;  %v4176_v21 = vpop.f32.mrb[214].mxu1  ;;  %vm19807_vm15 = vnez %v19806_v2  ;;  %v19813_v2 = vld [vmem:[#allocation105_spill] sm:$0xff] }
 0xb67   : > { %19800 = vst [vmem:[#allocation68_spill] sm:$0xff] %v13918_v5  ;;  %v4326_v0 = vmax.f32 %v4324_v22, %v13918_v5  ;;  %v13924_v24 = vsel %vm19802_vm14, %v4176_v21, -1e+30  ;;  %v4178_v26 = vpop.f32.mrb[215].mxu1  ;;  %vm19809_vm14 = vnez %v19808_v41  ;;  %v19816_v41 = vld [vmem:[#allocation107_spill] sm:$0xff] }
 0xb68   : > { %v4290_v36 = vmax.f32 %v4288_v18, %v13924_v24  ;;  %v13929_v32 = vsel %vm19804_vm1, %v4178_v26, -1e+30  ;;  %vm19812_vm1 = vnez %v19811_v58  ;;  %v19818_v58 = vld [vmem:[#allocation108_spill] sm:$0xff] }
 0xb69   : > { %19805 = vst [vmem:[#allocation98_spill] sm:$0xff] %v13929_v32  ;;  %v4327_v6 = vmax.f32 %v4325_v35, %v13929_v32 }
 0xb6c   : > { %v4182_v51 = vpop.f32.mrb[216].mxu1 }
 0xb6d   : > { %v13934_v3 = vsel %vm19807_vm15, %v4182_v51, -1e+30  ;;  %v4184_v54 = vpop.f32.mrb[217].mxu1  ;;  %vm19814_vm15 = vnez %v19813_v2  ;;  %v19821_v2 = vld [vmem:[#allocation109_spill] sm:$0xff] }
 0xb6e   : > { %v4291_v22 = vmax.f32 %v4289_v8, %v13934_v3  ;;  %v13939_v21 = vsel %vm19809_vm14, %v4184_v54, -1e+30  ;;  %v4186_v45 = vpop.f32.mrb[218].mxu1  ;;  %vm19817_vm14 = vnez %v19816_v41  ;;  %v19823_v41 = vld [vmem:[#allocation111_spill] sm:$0xff] }
 0xb6f   : > { %19810 = vst [vmem:[#allocation104_spill] sm:$0xff] %v13939_v21  ;;  %v4328_v18 = vmax.f32 %v4326_v0, %v13939_v21  ;;  %v13944_v26 = vsel %vm19812_vm1, %v4186_v45, -1e+30  ;;  %v4188_v35 = vpop.f32.mrb[219].mxu1  ;;  %vm19819_vm1 = vnez %v19818_v58 }
 0xb70   : > { %v4292_v33 = vmax.f32 %v4290_v36, %v13944_v26  ;;  %v13949_v51 = vsel %vm19814_vm15, %v4188_v35, -1e+30  ;;  %vm19822_vm15 = vnez %v19821_v2 }
 0xb71   : > { %19815 = vst [vmem:[#allocation70_spill] sm:$0xff] %v13949_v51  ;;  %v4329_v8 = vmax.f32 %v4327_v6, %v13949_v51 }
 0xb74   : > { %v4192_v32 = vpop.f32.mrb[220].mxu1 }
 0xb75   : > { %v13954_v54 = vsel %vm19817_vm14, %v4192_v32, -1e+30  ;;  %v4194_v5 = vpop.f32.mrb[221].mxu1  ;;  %vm19824_vm14 = vnez %v19823_v41 }
 0xb76   : > { %v4293_v0 = vmax.f32 %v4291_v22, %v13954_v54  ;;  %v13959_v45 = vsel %vm19819_vm1, %v4194_v5, -1e+30  ;;  %v4196_v21 = vpop.f32.mrb[222].mxu1  ;;  %vm19935_vm1 = vcmask 31744  }
 0xb77   : > { %19820 = vst [vmem:[#allocation75_spill] sm:$0xff] %v13959_v45  ;;  %v4330_v36 = vmax.f32 %v4328_v18, %v13959_v45  ;;  %v13964_v35 = vsel %vm19822_vm15, %v4196_v21, -1e+30  ;;  %v4198_v6 = vpop.f32.mrb[223].mxu1  ;;  %vm19936_vm0 = vmmov %vm19935_vm1 }
 0xb78   : > { %v4294_v51 = vmax.f32 %v4292_v33, %v13964_v35  ;;  %v13969_v32 = vsel %vm19824_vm14, %v4198_v6, -1e+30  ;;  %vm19931_vm14 = vcmask 1041408   ;;  %vm19937_vm2 = vmmov %vm19936_vm0 }
 0xb79   : > { %v4331_v22 = vmax.f32 %v4329_v8, %v13969_v32  ;;  %vm19933_vm15 = vmmov %vm19931_vm14 }
 0xb7a   : > { %v4295_v57 = vmax.f32 %v4293_v0, %v4294_v51 }
 0xb7b   : > { %v4332_v58 = vmax.f32 %v4330_v36, %v4331_v22 }
 0xb7c   : > { %v4296_v5 = vrot.slane %v4295_v57, 4 }
 0xb7d   : > { %v4333_v4 = vrot.slane %v4332_v58, 4 }
 0xb7e   : > { %v4297_v9 = vmax.f32 %v4295_v57, %v4296_v5 }
 0xb7f   : > { %v4334_v52 = vmax.f32 %v4332_v58, %v4333_v4 }
 0xb80   : > { %v4298_v18 = vrot.slane %v4297_v9, 2 }
 0xb81   : > { %v4335_v45 = vrot.slane %v4334_v52, 2 }
 0xb82   : > { %v4299_v2 = vmax.f32 %v4297_v9, %v4298_v18  ;;  %v19833_v18 = vld [vmem:[#allocation89_spill] sm:$0xff] }
 0xb83   : > { %v4336_v21 = vmax.f32 %v4334_v52, %v4335_v45 }
 0xb84   : > { %v4300_v27 = vrot.slane %v4299_v2, 1 }
 0xb85   : > { %v4337_v43 = vrot.slane %v4336_v21, 1 }
 0xb86   : > { %v13972_v1 = vmax.f32 %v4299_v2, %v4300_v27 }
 0xb87   : > { %v13974_v33 = vmax.f32 %v4336_v21, %v4337_v43 }
 0xb88   : > { %v4339_v6 = vsub.f32 %v13654_v53, %v13972_v1  ;;  %v4341_v51 = vsub.f32 %v13672_v44, %v13972_v1  ;;  %v4343_v57 = vsub.f32 %v13658_v10, %v13972_v1  ;;  %v4345_v58 = vsub.f32 %v13678_v38, %v13972_v1 }
 0xb89   : > { %v4347_v52 = vsub.f32 %v13694_v59, %v13972_v1  ;;  %v4349_v27 = vsub.f32 %v13704_v60, %v13972_v1  ;;  %v4351_v43 = vsub.f32 %v13714_v48, %v13972_v1  ;;  %v4353_v53 = vsub.f32 %v13724_v42, %v13972_v1  ;;  %v19840_v42 = vld [vmem:[#allocation98_spill] sm:$0xff] }
 0xb8a   : > { %v4355_v44 = vsub.f32 %v13734_v40, %v13972_v1  ;;  %v4357_v10 = vsub.f32 %v13744_v20, %v13972_v1  ;;  %v4359_v38 = vsub.f32 %v13754_v46, %v13972_v1  ;;  %v4361_v59 = vsub.f32 %v13764_v49, %v13972_v1  ;;  %v19834_v20 = vld [vmem:[#allocation91_spill] sm:$0xff]  ;;  %v19842_v49 = vld [vmem:[#allocation70_spill] sm:$0xff] }
 0xb8b   : > { %v4363_v60 = vsub.f32 %v13774_v39, %v13972_v1  ;;  %v4403_v8 = vmul.f32 1.442695, %v4339_v6  ;;  %v4407_v5 = vmul.f32 1.442695, %v4341_v51  ;;  %v4411_v2 = vmul.f32 1.442695, %v4343_v57 }
 0xb8c   : > { %v4415_v0 = vmul.f32 1.442695, %v4345_v58  ;;  %v4419_v45 = vmul.f32 1.442695, %v4347_v52  ;;  %v4423_v4 = vmul.f32 1.442695, %v4349_v27  ;;  %v19844_v41 = vsub.f32 %v13784_v16, %v13972_v1 }
 0xb8d   : > { %8082 = vpow2.f32 %v4403_v8  ;;  %v4427_v36 = vmul.f32 1.442695, %v4351_v43  ;;  %v4431_v9 = vmul.f32 1.442695, %v4353_v53  ;;  %v4435_v52 = vmul.f32 1.442695, %v4355_v44 }
 0xb8e   : > { %8084 = vpow2.f32 %v4407_v5  ;;  %v19826_v44 = vld [vmem:[#allocation6_spill] sm:$0xff]  ;;  %v4439_v22 = vmul.f32 1.442695, %v4357_v10  ;;  %v19827_v43 = vld [vmem:[#allocation5_spill] sm:$0xff]  ;;  %v19828_v53 = vld [vmem:[#allocation16_spill] sm:$0xff]  ;;  %v19847_v16 = vsub.f32 %v13814_v47, %v13972_v1  ;;  %v19851_v47 = vsub.f32 %v13682_v30, %v13974_v33 }
 0xb8f   : > { %8086 = vpow2.f32 %v4411_v2  ;;  %v19830_v8 = vld [vmem:[#allocation106_spill] sm:$0xff]  ;;  %v19832_v10 = vld [vmem:[#allocation88_spill] sm:$0xff]  ;;  %v19837_v5 = vld [vmem:[#allocation95_spill] sm:$0xff]  ;;  %v4447_v57 = vmul.f32 1.442695, %v4361_v59 }
 0xb90   : > { %8088 = vpow2.f32 %v4415_v0  ;;  %v19825_v0 = vld [vmem:[#allocation26_spill] sm:$0xff]  ;;  %v19836_v6 = vld [vmem:[#allocation92_spill] sm:$0xff]  ;;  %v4451_v46 = vmul.f32 1.442695, %v4363_v60  ;;  %v19843_v58 = vld [vmem:[#allocation75_spill] sm:$0xff] }
 0xb91   : > { %8090 = vpow2.f32 %v4419_v45  ;;  %v19831_v45 = vld [vmem:[#allocation110_spill] sm:$0xff]  ;;  %v4455_v51 = vmul.f32 1.442695, %v19844_v41  ;;  %v4467_v41 = vmul.f32 1.442695, %v19847_v16 }
 0xb92   : > { %8092 = vpow2.f32 %v4423_v4 }
 0xb93   : > { %8094 = vpow2.f32 %v4427_v36 }
 0xb94   : > { %8096 = vpow2.f32 %v4431_v9  ;;  %v4443_v9 = vmul.f32 1.442695, %v4359_v38 }
 0xb95   : > { %8098 = vpow2.f32 %v4435_v52  ;;  %v19839_v52 = vld [vmem:[#allocation68_spill] sm:$0xff] }
 0xb96   : > { %8100 = vpow2.f32 %v4439_v22 }
 0xb97   : > { %v14052_v2 = vpop.eup %8082  ;;  %8102 = vpow2.f32 %v4443_v9 }
 0xb98   : > { %v14060_v4 = vpop.eup %8084  ;;  %8104 = vpow2.f32 %v4447_v57  ;;  %v19846_v57 = vsub.f32 %v13804_v28, %v13972_v1 }
 0xb99   : > { %v4531_v27 = vadd.f32 %v14060_v4, %v14052_v2  ;;  %v14074_v36 = vpop.eup %8086  ;;  %8106 = vpow2.f32 %v4451_v46 }
 0xb9a   : > { %19829 = vst [vmem:[#allocation58_spill] sm:$0xff] %v14074_v36  ;;  %v14087_v40 = vpop.eup %8088  ;;  %8108 = vpow2.f32 %v4455_v51  ;;  %v19849_v51 = vsub.f32 %v13662_v15, %v13974_v33  ;;  %v19854_v15 = vsub.f32 %v13668_v12, %v13974_v33 }
 0xb9b   : > { %v4532_v21 = vadd.f32 %v14074_v36, %v4531_v27  ;;  %19835 = vst [vmem:[#allocation62_spill] sm:$0xff] %v14087_v40  ;;  %v14097_v48 = vpop.eup %8090 }
 0xb9c   : > { %19838 = vst [vmem:[#allocation76_spill] sm:$0xff] %v14097_v48  ;;  %v14112_v22 = vpop.eup %8092  ;;  %v4405_v28 = vmul.f32 1.442695, %v19849_v51 }
 0xb9d   : > { %v4533_v27 = vadd.f32 %v14087_v40, %v4532_v21  ;;  %v19841_v21 = vld [vmem:[#allocation104_spill] sm:$0xff]  ;;  %v19845_v40 = vsub.f32 %v13794_v23, %v13972_v1  ;;  %v19848_v23 = vsub.f32 %v13824_v50, %v13972_v1 }
 0xb9f   : > { %v4534_v38 = vadd.f32 %v14097_v48, %v4533_v27  ;;  %v14121_v27 = vpop.eup %8094  ;;  %v4459_v59 = vmul.f32 1.442695, %v19845_v40  ;;  %v4471_v40 = vmul.f32 1.442695, %v19848_v23 }
 0xba0   : > { %v14127_v48 = vpop.eup %8096 }
 0xba1   : > { %v4535_v60 = vadd.f32 %v14112_v22, %v4534_v38  ;;  %v14133_v36 = vpop.eup %8098  ;;  %v4463_v38 = vmul.f32 1.442695, %v19846_v57  ;;  %8110 = vpow2.f32 %v4459_v59  ;;  %v19852_v59 = vsub.f32 %v13834_v62, %v13972_v1 }
 0xba2   : > { %v14142_v46 = vpop.eup %8100  ;;  %v19857_v62 = vsub.f32 %v13688_v13, %v13974_v33 }
 0xba3   : > { %v4536_v9 = vadd.f32 %v14121_v27, %v4535_v60  ;;  %v14151_v57 = vpop.eup %8102  ;;  %8112 = vpow2.f32 %v4463_v38  ;;  %v4475_v16 = vmul.f32 1.442695, %v19852_v59  ;;  %v19855_v38 = vsub.f32 %v13844_v29, %v13972_v1 }
 0xba4   : > { %19850 = vst [vmem:[#allocation100_spill] sm:$0xff] %v14151_v57  ;;  %8114 = vpow2.f32 %v4467_v41  ;;  %v14160_v23 = vpop.eup %8104  ;;  %v19860_v29 = vsub.f32 %v13699_v17, %v13974_v33 }
 0xba5   : > { %v4537_v39 = vadd.f32 %v14127_v48, %v4536_v9  ;;  %19853 = vst [vmem:[#allocation9_spill] sm:$0xff] %v14160_v23  ;;  %8116 = vpow2.f32 %v4471_v40  ;;  %v4479_v51 = vmul.f32 1.442695, %v19855_v38  ;;  %v14169_v41 = vpop.eup %8106  ;;  %v19858_v40 = vsub.f32 %v13854_v7, %v13972_v1 }
 0xba6   : > { %8118 = vpow2.f32 %v4405_v28  ;;  %19856 = vst [vmem:[#allocation10_spill] sm:$0xff] %v14169_v41  ;;  %v14178_v59 = vpop.eup %8108  ;;  %v4421_v28 = vmul.f32 1.442695, %v19860_v29  ;;  %v19862_v7 = vsub.f32 %v13709_v61, %v13974_v33  ;;  %v19865_v61 = vsub.f32 %v13874_v11, %v13972_v1 }
 0xba7   : > { %v4538_v60 = vadd.f32 %v14133_v36, %v4537_v39  ;;  %v4409_v39 = vmul.f32 1.442695, %v19851_v47  ;;  %v4483_v12 = vmul.f32 1.442695, %v19858_v40  ;;  %19859 = vst [vmem:[#allocation21_spill] sm:$0xff] %v14178_v59 }
 0xba9   : > { %v4539_v9 = vadd.f32 %v14142_v46, %v4538_v60  ;;  %v4413_v60 = vmul.f32 1.442695, %v19854_v15  ;;  %8120 = vpow2.f32 %v4409_v39  ;;  %v19861_v39 = vsub.f32 %v13864_v14, %v13972_v1 }
 0xbaa   : > { %8122 = vpow2.f32 %v4475_v16  ;;  %v4425_v15 = vmul.f32 1.442695, %v19862_v7  ;;  %v19864_v14 = vsub.f32 %v13719_v37, %v13974_v33  ;;  %v19867_v37 = vsub.f32 %v13879_v56, %v13972_v1 }
 0xbab   : > { %v4540_v50 = vadd.f32 %v14151_v57, %v4539_v9  ;;  %v4417_v9 = vmul.f32 1.442695, %v19857_v62  ;;  %8124 = vpow2.f32 %v4413_v60  ;;  %v4487_v13 = vmul.f32 1.442695, %v19861_v39 }
 0xbac   : > { %8126 = vpow2.f32 %v4479_v51  ;;  %v19863_v60 = vsub.f32 %v13869_v34, %v13972_v1 }
 0xbad   : > { %v4541_v30 = vadd.f32 %v14160_v23, %v4540_v50  ;;  %v14187_v50 = vpop.eup %8110  ;;  %8128 = vpow2.f32 %v4417_v9  ;;  %v4495_v9 = vmul.f32 1.442695, %v19865_v61 }
 0xbae   : > { %8130 = vpow2.f32 %v4483_v12  ;;  %v4491_v17 = vmul.f32 1.442695, %v19863_v60  ;;  %v14196_v51 = vpop.eup %8112  ;;  %v19866_v12 = vsub.f32 %v13729_v55, %v13974_v33  ;;  %v19869_v55 = vsub.f32 %v13884_v25, %v13972_v1 }
 0xbaf   : > { %v4542_v47 = vadd.f32 %v14169_v41, %v4541_v30  ;;  %8132 = vpow2.f32 %v4421_v28  ;;  %v4429_v30 = vmul.f32 1.442695, %v19864_v14  ;;  %v14201_v62 = vpop.eup %8114  ;;  %v4499_v28 = vmul.f32 1.442695, %v19867_v37 }
 0xbb0   : > { %8134 = vpow2.f32 %v4487_v13  ;;  %v14207_v34 = vpop.eup %8116  ;;  %v19868_v13 = vsub.f32 %v13739_v31, %v13974_v33  ;;  %v19873_v37 = vsub.f32 %v13924_v24, %v13972_v1 }
 0xbb1   : > { %v4543_v16 = vadd.f32 %v14178_v59, %v4542_v47  ;;  %8136 = vpow2.f32 %v4425_v15  ;;  %v4433_v47 = vmul.f32 1.442695, %v19866_v12  ;;  %v14212_v29 = vpop.eup %8118  ;;  %v4503_v15 = vmul.f32 1.442695, %v19869_v55 }
 0xbb2   : > { %8138 = vpow2.f32 %v4491_v17  ;;  %v19872_v12 = vsub.f32 %v19825_v0, %v13974_v33 }
 0xbb3   : > { %v4544_v38 = vadd.f32 %v14187_v50, %v4543_v16  ;;  %v14218_v11 = vpop.eup %8120  ;;  %8140 = vpow2.f32 %v4429_v30  ;;  %v4437_v16 = vmul.f32 1.442695, %v19868_v13  ;;  %v19871_v30 = vsub.f32 %v13913_v63, %v13972_v1 }
 0xbb4   : > { %v14223_v7 = vpop.eup %8122  ;;  %8142 = vpow2.f32 %v4495_v9  ;;  %v4568_v56 = vadd.f32 %v14218_v11, %v14212_v29 }
 0xbb5   : > { %v4545_v40 = vadd.f32 %v14196_v51, %v4544_v38  ;;  %v14231_v17 = vpop.eup %8124  ;;  %8144 = vpow2.f32 %v4433_v47  ;;  %v19870_v38 = vsub.f32 %v13749_v19, %v13974_v33  ;;  %v4507_v25 = vmul.f32 1.442695, %v19871_v30 }
 0xbb6   : > { %v14236_v14 = vpop.eup %8126  ;;  %8146 = vpow2.f32 %v4499_v28  ;;  %v4569_v9 = vadd.f32 %v14231_v17, %v4568_v56  ;;  %v4445_v47 = vmul.f32 1.442695, %v19872_v12  ;;  %v4511_v28 = vmul.f32 1.442695, %v19873_v37 }
 0xbb7   : > { %v4546_v39 = vadd.f32 %v14201_v62, %v4545_v40  ;;  %v4441_v31 = vmul.f32 1.442695, %v19870_v38  ;;  %v14243_v40 = vpop.eup %8128  ;;  %8148 = vpow2.f32 %v4437_v16  ;;  %v19874_v16 = vsub.f32 %v19826_v44, %v13974_v33 }
 0xbb8   : > { %v14248_v19 = vpop.eup %8130  ;;  %8150 = vpow2.f32 %v4503_v15  ;;  %v19875_v15 = vsub.f32 %v13934_v3, %v13972_v1 }
 0xbb9   : > { %v4547_v60 = vadd.f32 %v14207_v34, %v4546_v39  ;;  %v4570_v39 = vadd.f32 %v14243_v40, %v4569_v9  ;;  %v14255_v13 = vpop.eup %8132  ;;  %8152 = vpow2.f32 %v4441_v31  ;;  %v4449_v55 = vmul.f32 1.442695, %v19874_v16 }
 0xbba   : > { %v14260_v0 = vpop.eup %8134  ;;  %8154 = vpow2.f32 %v4507_v25  ;;  %v19876_v31 = vsub.f32 %v19827_v43, %v13974_v33  ;;  %v19877_v25 = vsub.f32 %v13944_v26, %v13972_v1 }
 0xbbb   : > { %v4548_v61 = vadd.f32 %v14223_v7, %v4547_v60  ;;  %v4515_v60 = vmul.f32 1.442695, %v19875_v15  ;;  %v4571_v56 = vadd.f32 %v14255_v13, %v4570_v39  ;;  %v14267_v38 = vpop.eup %8136  ;;  %8156 = vpow2.f32 %v4445_v47 }
 0xbbc   : > { %v4453_v30 = vmul.f32 1.442695, %v19876_v31  ;;  %v14272_v44 = vpop.eup %8138  ;;  %8158 = vpow2.f32 %v4511_v28  ;;  %v19878_v47 = vsub.f32 %v19828_v53, %v13974_v33  ;;  %v19879_v28 = vsub.f32 %v13954_v54, %v13972_v1 }
 0xbbd   : > { %v4549_v63 = vadd.f32 %v14236_v14, %v4548_v61  ;;  %v4519_v61 = vmul.f32 1.442695, %v19877_v25  ;;  %v4572_v9 = vadd.f32 %v14267_v38, %v4571_v56  ;;  %v14279_v12 = vpop.eup %8140  ;;  %8160 = vpow2.f32 %v4449_v55 }
 0xbbe   : > { %v4457_v37 = vmul.f32 1.442695, %v19878_v47  ;;  %v14284_v43 = vpop.eup %8142  ;;  %8162 = vpow2.f32 %v4515_v60  ;;  %v19880_v55 = vsub.f32 %v19830_v8, %v13974_v33  ;;  %v19881_v60 = vsub.f32 %v13964_v35, %v13972_v1 }
 0xbbf   : > { %v4550_v24 = vadd.f32 %v14248_v19, %v4549_v63  ;;  %v4523_v63 = vmul.f32 1.442695, %v19879_v28  ;;  %v4573_v39 = vadd.f32 %v14279_v12, %v4572_v9  ;;  %v14291_v16 = vpop.eup %8144  ;;  %8164 = vpow2.f32 %v4453_v30 }
 0xbc0   : > { %v4461_v15 = vmul.f32 1.442695, %v19880_v55  ;;  %v14296_v53 = vpop.eup %8146  ;;  %8166 = vpow2.f32 %v4519_v61  ;;  %v19882_v30 = vsub.f32 %v19831_v45, %v13974_v33  ;;  %v19883_v35 = vsub.f32 %v19832_v10, %v13974_v33 }
 0xbc1   : > { %v4551_v3 = vadd.f32 %v14260_v0, %v4550_v24  ;;  %v4527_v24 = vmul.f32 1.442695, %v19881_v60  ;;  %v4574_v56 = vadd.f32 %v14291_v16, %v4573_v39  ;;  %v14303_v31 = vpop.eup %8148  ;;  %8168 = vpow2.f32 %v4457_v37 }
 0xbc2   : > { %v4465_v25 = vmul.f32 1.442695, %v19882_v30  ;;  %v14308_v8 = vpop.eup %8150  ;;  %8170 = vpow2.f32 %v4523_v63  ;;  %v4469_v9 = vmul.f32 1.442695, %v19883_v35  ;;  %v19885_v63 = vsub.f32 %v19833_v18, %v13974_v33 }
 0xbc3   : > { %v4552_v26 = vadd.f32 %v14272_v44, %v4551_v3  ;;  %v4575_v3 = vadd.f32 %v14303_v31, %v4574_v56  ;;  %v14312_v1 = vpop.eup %8152  ;;  %8172 = vpow2.f32 %v4461_v15  ;;  %v19887_v60 = vsub.f32 %v19834_v20, %v13974_v33 }
 0xbc4   : > { %v14317_v47 = vpop.eup %8154  ;;  %8174 = vpow2.f32 %v4527_v24 }
 0xbc5   : > { %v4553_v54 = vadd.f32 %v14284_v43, %v4552_v26  ;;  %v4576_v37 = vadd.f32 %v14312_v1, %v4575_v3  ;;  %v14321_v28 = vpop.eup %8156  ;;  %8176 = vpow2.f32 %v4465_v25  ;;  %v4473_v26 = vmul.f32 1.442695, %v19885_v63  ;;  %v19889_v25 = vld [vmem:[#allocation50_spill] sm:$0xff]  ;;  %v19892_v63 = vld [vmem:[#allocation52_spill] sm:$0xff] }
 0xbc6   : > { %19884 = vst [vmem:[#allocation14_spill] sm:$0xff] %v14321_v28  ;;  %v14326_v39 = vpop.eup %8158  ;;  %8178 = vpow2.f32 %v4469_v9  ;;  %v4477_v24 = vmul.f32 1.442695, %v19887_v60  ;;  %v19890_v3 = vsub.f32 %v19836_v6, %v13974_v33 }
 0xbc7   : > { %v4554_v61 = vadd.f32 %v14296_v53, %v4553_v54  ;;  %v4577_v10 = vadd.f32 %v14321_v28, %v4576_v37  ;;  %v14330_v15 = vpop.eup %8160  ;;  %8180 = vpow2.f32 %v4473_v26 }
 0xbc8   : > { %19886 = vst [vmem:[#allocation11_spill] sm:$0xff] %v14330_v15  ;;  %v14335_v54 = vpop.eup %8162  ;;  %v4481_v35 = vmul.f32 1.442695, %v19890_v3  ;;  %8182 = vpow2.f32 %v4477_v24 }
 0xbc9   : > { %v4555_v45 = vadd.f32 %v14308_v8, %v4554_v61  ;;  %v4578_v18 = vadd.f32 %v14330_v15, %v4577_v10  ;;  %v14339_v30 = vpop.eup %8164  ;;  %v4382_v61 = vsub.f32 %v19889_v25, %v13974_v33  ;;  %v19893_v10 = vsub.f32 %v19837_v5, %v13974_v33 }
 0xbca   : > { %19888 = vst [vmem:[#allocation22_spill] sm:$0xff] %v14339_v30  ;;  %v14346_v9 = vpop.eup %8166  ;;  %8184 = vpow2.f32 %v4481_v35 }
 0xbcb   : > { %v4556_v55 = vadd.f32 %v14317_v47, %v4555_v45  ;;  %v4579_v45 = vadd.f32 %v14339_v30, %v4578_v18  ;;  %v14350_v37 = vpop.eup %8168  ;;  %v4485_v26 = vmul.f32 1.442695, %v19893_v10  ;;  %v4489_v59 = vmul.f32 1.442695, %v4382_v61  ;;  %v19895_v10 = vld [vmem:[#allocation80_spill] sm:$0xff] }
 0xbcc   : > { %19891 = vst [vmem:[#allocation17_spill] sm:$0xff] %v14350_v37  ;;  %v14357_v60 = vpop.eup %8170  ;;  %v19896_v61 = vld [vmem:[#allocation64_spill] sm:$0xff] }
 0xbcd   : > { %v4557_v56 = vadd.f32 %v14326_v39, %v4556_v55  ;;  %v4384_v55 = vsub.f32 %v19892_v63, %v13974_v33  ;;  %v4580_v25 = vadd.f32 %v14350_v37, %v4579_v45  ;;  %v14361_v3 = vpop.eup %8172  ;;  %8186 = vpow2.f32 %v4485_v26 }
 0xbce   : > { %v14365_v41 = vpop.eup %8174  ;;  %v4390_v35 = vsub.f32 %v19896_v61, %v13974_v33  ;;  %8188 = vpow2.f32 %v4489_v59  ;;  %v19897_v59 = vsub.f32 %v19839_v52, %v13974_v33  ;;  %v19899_v52 = vsub.f32 %v19841_v21, %v13974_v33 }
 0xbcf   : > { %v4558_v20 = vadd.f32 %v14335_v54, %v4557_v56  ;;  %v19894_v56 = vld [vmem:[#allocation56_spill] sm:$0xff]  ;;  %v4581_v5 = vadd.f32 %v14361_v3, %v4580_v25  ;;  %v14369_v63 = vpop.eup %8176  ;;  %v4493_v45 = vmul.f32 1.442695, %v4384_v55 }
 0xbd0   : > { %v4386_v18 = vsub.f32 %v19894_v56, %v13974_v33  ;;  %v14375_v56 = vpop.eup %8178 }
 0xbd1   : > { %v4559_v6 = vadd.f32 %v14346_v9, %v4558_v20  ;;  %v4388_v20 = vsub.f32 %v19895_v10, %v13974_v33  ;;  %v4582_v30 = vadd.f32 %v14369_v63, %v4581_v5  ;;  %v14380_v57 = vpop.eup %8180  ;;  %8190 = vpow2.f32 %v4493_v45 }
 0xbd2   : > { %v4505_v5 = vmul.f32 1.442695, %v4390_v35 }
 0xbd3   : > { %v4560_v24 = vadd.f32 %v14357_v60, %v4559_v6  ;;  %v4497_v6 = vmul.f32 1.442695, %v4386_v18  ;;  %v4583_v25 = vadd.f32 %v14375_v56, %v4582_v30  ;;  %v4501_v10 = vmul.f32 1.442695, %v4388_v20 }
 0xbd4   : > { %v4509_v30 = vmul.f32 1.442695, %v19897_v59 }
 0xbd5   : > { %v4561_v37 = vadd.f32 %v14365_v41, %v4560_v24  ;;  %v4584_v55 = vadd.f32 %v14380_v57, %v4583_v25  ;;  %v14383_v24 = vpop.eup %8182  ;;  %8192 = vpow2.f32 %v4497_v6 }
 0xbd6   : > { %v14386_v61 = vpop.eup %8184  ;;  %8194 = vpow2.f32 %v4501_v10  ;;  %v4517_v10 = vmul.f32 1.442695, %v19899_v52 }
 0xbd7   : > { %v4562_v23 = vrot.slane %v4561_v37, 4  ;;  %v4585_v28 = vadd.f32 %v14383_v24, %v4584_v55  ;;  %8196 = vpow2.f32 %v4505_v5 }
 0xbd8   : > { %8198 = vpow2.f32 %v4509_v30  ;;  %v19901_v30 = vsub.f32 %v19843_v58, %v13974_v33 }
 0xbd9   : > { %v4563_v26 = vadd.f32 %v4562_v23, %v4561_v37  ;;  %v4586_v20 = vadd.f32 %v14386_v61, %v4585_v28  ;;  %v14392_v23 = vpop.eup %8186  ;;  %v19898_v37 = vsub.f32 %v19840_v42, %v13974_v33  ;;  %v19900_v28 = vsub.f32 %v19842_v49, %v13974_v33 }
 0xbda   : > { %v14398_v25 = vpop.eup %8188  ;;  %v4525_v21 = vmul.f32 1.442695, %v19901_v30 }
 0xbdb   : > { %v4564_v15 = vrot.slane %v4563_v26, 2  ;;  %v4513_v45 = vmul.f32 1.442695, %v19898_v37  ;;  %v4587_v6 = vadd.f32 %v14392_v23, %v4586_v20  ;;  %v14407_v55 = vpop.eup %8190  ;;  %v19902_v37 = vsub.f32 %v13969_v32, %v13974_v33 }
 0xbdd   : > { %v4565_v18 = vadd.f32 %v4564_v15, %v4563_v26  ;;  %v4521_v15 = vmul.f32 1.442695, %v19900_v28  ;;  %v4588_v26 = vadd.f32 %v14398_v25, %v4587_v6  ;;  %8200 = vpow2.f32 %v4513_v45 }
 0xbde   : > { %8202 = vpow2.f32 %v4517_v10 }
 0xbdf   : > { %v4566_v35 = vrot.slane %v4565_v18, 1  ;;  %v4589_v5 = vadd.f32 %v14407_v55, %v4588_v26  ;;  %v14410_v59 = vpop.eup %8192  ;;  %8204 = vpow2.f32 %v4521_v15 }
 0xbe0   : > { %v14416_v49 = vpop.eup %8194 }
 0xbe1   : > { %v4567_v42 = vadd.f32 %v4566_v35, %v4565_v18  ;;  %v4590_v20 = vadd.f32 %v14410_v59, %v4589_v5  ;;  %v4529_v18 = vmul.f32 1.442695, %v19902_v37  ;;  %v14422_v35 = vpop.eup %8196 }
 0xbe2   : > { %v14425_v52 = vpop.eup %8198 }
 0xbe3   : > { %8206 = vrcp.f32 %v4567_v42  ;;  %v4591_v45 = vadd.f32 %v14416_v49, %v4590_v20 }
 0xbe4   : > { %8208 = vpow2.f32 %v4525_v21 }
 0xbe5   : > { %v4592_v6 = vadd.f32 %v14422_v35, %v4591_v45  ;;  %8210 = vpow2.f32 %v4529_v18 }
 0xbe7   : > { %v4593_v58 = vadd.f32 %v14425_v52, %v4592_v6  ;;  %v14428_v10 = vpop.eup %8200 }
 0xbe8   : > { %v14431_v15 = vpop.eup %8202 }
 0xbe9   : > { %v4594_v28 = vadd.f32 %v14428_v10, %v4593_v58  ;;  %v14433_v32 = vpop.eup %8204 }
 0xbeb   : > { %v4595_v33 = vadd.f32 %v14431_v15, %v4594_v28 }
 0xbed   : > { %v14436_v26 = vpop.eup %8206  ;;  %v4596_v42 = vadd.f32 %v14433_v32, %v4595_v33 }
 0xbee   : > { %v14439_v5 = vpop.eup %8208  ;;  %v14444_v21 = vmul.f32 %v14436_v26, %v14187_v50  ;;  %v14448_v20 = vmul.f32 %v14436_v26, %v14196_v51  ;;  %v14454_v18 = vmul.f32 %v14436_v26, %v14201_v62  ;;  %v14458_v45 = vmul.f32 %v14436_v26, %v14207_v34 }
 0xbef   : > { %v4597_v30 = vadd.f32 %v14439_v5, %v4596_v42  ;;  %v14450_v37 = vpop.eup %8210  ;;  %v14465_v58 = vmul.f32 %v14436_v26, %v14223_v7  ;;  %v14469_v51 = vmul.f32 %v14436_v26, %v14236_v14  ;;  %v14475_v34 = vmul.f32 %v14436_v26, %v14248_v19 }
 0xbf0   : > { %v14479_v28 = vmul.f32 %v14436_v26, %v14260_v0  ;;  %v14483_v33 = vmul.f32 %v14436_v26, %v14272_v44  ;;  %v14489_v42 = vmul.f32 %v14436_v26, %v14284_v43  ;;  %v14493_v19 = vmul.f32 %v14436_v26, %v14296_v53 }
 0xbf1   : > { %v4598_v6 = vadd.f32 %v14450_v37, %v4597_v30  ;;  %v14499_v30 = vmul.f32 %v14436_v26, %v14308_v8  ;;  %v14503_v44 = vmul.f32 %v14436_v26, %v14317_v47  ;;  %v14507_v14 = vmul.f32 %v14436_v26, %v14326_v39 }
 0xbf2   : > { %19903 = vst [vmem:[#allocation12_spill] sm:$0xff] %v14493_v19  ;;  %v14513_v62 = vmul.f32 %v14436_v26, %v14335_v54  ;;  %v14517_v8 = vmul.f32 %v14436_v26, %v14346_v9  ;;  %v14525_v39 = vmul.f32 %v14436_v26, %v14357_v60  ;;  %v4606_v60 = vmul.f32 %v14436_v26, %v14052_v2  ;;  %v19907_v19 = vld [vmem:[#allocation62_spill] sm:$0xff] }
 0xbf3   : > { %v4599_v7 = vrot.slane %v4598_v6, 4  ;;  %19904 = vst [vmem:[#allocation23_spill] sm:$0xff] %v14503_v44  ;;  %19905 = vst [vmem:[#allocation20_spill] sm:$0xff] %v14507_v14  ;;  %v19906_v44 = vld [vmem:[#allocation58_spill] sm:$0xff] }
 0xbf4   : > { %v4611_v14 = vmul.f32 %v14436_v26, %v19906_v44 }
 0xbf5   : > { %v4600_v43 = vadd.f32 %v4599_v7, %v4598_v6  ;;  %v14529_v6 = vmul.f32 %v14436_v26, %v14365_v41  ;;  %v4609_v41 = vmul.f32 %v14436_v26, %v14060_v4  ;;  %v4613_v7 = vmul.f32 %v14436_v26, %v19907_v19 }
 0xbf7   : > { %v4601_v54 = vrot.slane %v4600_v43, 2  ;;  %v4671_v19 = vpack.c.bf16 %v4609_v41, %v4606_v60 }
 0xbf9   : > { %v4602_v53 = vadd.f32 %v4601_v54, %v4600_v43  ;;  %v19908_v54 = vld [vmem:[#allocation76_spill] sm:$0xff] }
 0xbfb   : > { %v4603_v47 = vrot.slane %v4602_v53, 1 }
 0xbfd   : > { %v4604_v50 = vadd.f32 %v4603_v47, %v4602_v53 }
 0xbff   : > { %8212 = vrcp.f32 %v4604_v50 }
 0xc09   : > { %v14535_v0 = vpop.eup %8212 }
 0xc0a   : > { %v4608_v43 = vmul.f32 %v14535_v0, %v14212_v29  ;;  %v4610_v50 = vmul.f32 %v14535_v0, %v14218_v11  ;;  %v4612_v53 = vmul.f32 %v14535_v0, %v14231_v17  ;;  %v4614_v2 = vmul.f32 %v14535_v0, %v14243_v40 }
 0xc0b   : > { %v4616_v4 = vmul.f32 %v14535_v0, %v14255_v13  ;;  %v4618_v44 = vmul.f32 %v14535_v0, %v14267_v38  ;;  %v4615_v29 = vmul.f32 %v14436_v26, %v19908_v54  ;;  %v4617_v11 = vmul.f32 %v14436_v26, %v14112_v22 }
 0xc0c   : > { %v4672_v47 = vpack.c.bf16 %v4610_v50, %v4608_v43  ;;  %v4619_v17 = vmul.f32 %v14436_v26, %v14121_v27  ;;  %v4674_v9 = vpack.c.bf16 %v4614_v2, %v4612_v53  ;;  %v4673_v40 = vpack.c.bf16 %v4613_v7, %v4611_v14 }
 0xc0d   : > { %v4620_v43 = vmul.f32 %v14535_v0, %v14279_v12  ;;  %v14567_v13 = vmul.f32 %v14535_v0, %v14361_v3  ;;  %v4622_v38 = vmul.f32 %v14535_v0, %v14291_v16  ;;  %v4638_v22 = vmul.f32 %v14535_v0, %v14369_v63 }
 0xc0e   : > { %4703 = vmatprep.subr.bf16.mxu0 %v4672_v47  ;;  %v4640_v27 = vmul.f32 %v14535_v0, %v14375_v56  ;;  %v4642_v14 = vmul.f32 %v14535_v0, %v14380_v57  ;;  %v4676_v7 = vpack.c.bf16 %v4618_v44, %v4616_v4  ;;  %v4644_v12 = vmul.f32 %v14535_v0, %v14383_v24 }
 0xc0f   : > { %4704 = vmatpush1.bf16.msra.mxu0 %v4671_v19  ;;  %v4646_v3 = vmul.f32 %v14535_v0, %v14386_v61  ;;  %v4648_v16 = vmul.f32 %v14535_v0, %v14392_v23  ;;  %v4686_v60 = vpack.c.bf16 %v4638_v22, %v14567_v13  ;;  %v4650_v56 = vmul.f32 %v14535_v0, %v14398_v25  ;;  %v19913_v22 = vld [vmem:[#allocation22_spill] sm:$0xff] }
 0xc10   : > { %4705 = vmatprep.subr.bf16.mxu0 %v4674_v9  ;;  %v4688_v63 = vpack.c.bf16 %v4642_v14, %v4640_v27  ;;  %v4652_v57 = vmul.f32 %v14535_v0, %v14407_v55  ;;  %v4654_v41 = vmul.f32 %v14535_v0, %v14410_v59  ;;  %v4656_v24 = vmul.f32 %v14535_v0, %v14416_v49  ;;  %v19914_v27 = vld [vmem:[#allocation17_spill] sm:$0xff] }
 0xc11   : > { %v4690_v9 = vpack.c.bf16 %v4646_v3, %v4644_v12  ;;  %v4658_v61 = vmul.f32 %v14535_v0, %v14422_v35  ;;  %v4692_v23 = vpack.c.bf16 %v4650_v56, %v4648_v16  ;;  %v4660_v50 = vmul.f32 %v14535_v0, %v14425_v52  ;;  %v19915_v12 = vld [vmem:[#allocation10_spill] sm:$0xff]  ;;  %v19916_v16 = vld [vmem:[#allocation21_spill] sm:$0xff] }
 0xc12   : > { %v4662_v25 = vmul.f32 %v14535_v0, %v14428_v10  ;;  %v4664_v55 = vmul.f32 %v14535_v0, %v14431_v15  ;;  %v4694_v53 = vpack.c.bf16 %v4654_v41, %v4652_v57  ;;  %v4666_v49 = vmul.f32 %v14535_v0, %v14433_v32 }
 0xc13   : > { %4706 = vmatpush1.bf16.msra.mxu0 %v4673_v40  ;;  %v4696_v59 = vpack.c.bf16 %v4658_v61, %v4656_v24  ;;  %v4668_v35 = vmul.f32 %v14535_v0, %v14439_v5  ;;  %v4675_v2 = vpack.c.bf16 %v4617_v11, %v4615_v29  ;;  %v4621_v47 = vmul.f32 %v14436_v26, %v14127_v48  ;;  %v19910_v40 = vld [vmem:[#allocation11_spill] sm:$0xff] }
 0xc14   : > { %4707 = vmatprep.subr.bf16.mxu0 %v4676_v7  ;;  %v4698_v52 = vpack.c.bf16 %v4662_v25, %v4660_v50  ;;  %v4670_v10 = vmul.f32 %v14535_v0, %v14450_v37  ;;  %v4678_v4 = vpack.c.bf16 %v4622_v38, %v4620_v43  ;;  %v4624_v15 = vmul.f32 %v14535_v0, %v14303_v31  ;;  %v19909_v37 = vld [vmem:[#allocation14_spill] sm:$0xff]  ;;  %v19911_v43 = vld [vmem:[#allocation100_spill] sm:$0xff] }
 0xc15   : > { %v4626_v44 = vmul.f32 %v14535_v0, %v14312_v1  ;;  %v4700_v19 = vpack.c.bf16 %v4666_v49, %v4664_v55  ;;  %v4677_v5 = vpack.c.bf16 %v4621_v47, %v4619_v17  ;;  %v4623_v54 = vmul.f32 %v14436_v26, %v14133_v36  ;;  %v19912_v17 = vld [vmem:[#allocation9_spill] sm:$0xff] }
 0xc16   : > { %v4702_v32 = vpack.c.bf16 %v4670_v10, %v4668_v35  ;;  %v4625_v48 = vmul.f32 %v14436_v26, %v14142_v46  ;;  %v4628_v11 = vmul.f32 %v14535_v0, %v19909_v37  ;;  %v4630_v31 = vmul.f32 %v14535_v0, %v19910_v40 }
 0xc17   : > { %4708 = vmatpush1.bf16.msra.mxu0 %v4675_v2  ;;  %v4680_v29 = vpack.c.bf16 %v4626_v44, %v4624_v15  ;;  %v4627_v13 = vmul.f32 %v14436_v26, %v19911_v43  ;;  %v4629_v38 = vmul.f32 %v14436_v26, %v19912_v17  ;;  %v4632_v46 = vmul.f32 %v14535_v0, %v19913_v22  ;;  %v19948_v15 = vld [vmem:[#allocation19_spill] sm:$0xff] }
 0xc18   : > { %4709 = vmatprep.subr.bf16.mxu0 %v4678_v4  ;;  %v4679_v1 = vpack.c.bf16 %v4625_v48, %v4623_v54  ;;  %v4682_v36 = vpack.c.bf16 %v4630_v31, %v4628_v11  ;;  %v4634_v14 = vmul.f32 %v14535_v0, %v19914_v27  ;;  %v4631_v3 = vmul.f32 %v14436_v26, %v19915_v12  ;;  %v20038_v31 = vld [vmem:[#allocation82_spill] sm:$0xff] }
 0xc19   : > { %v4681_v7 = vpack.c.bf16 %v4629_v38, %v4627_v13  ;;  %v4633_v56 = vmul.f32 %v14436_v26, %v19916_v16  ;;  %v19917_v24 = vpack.c.bf16 %v14448_v20, %v14444_v21  ;;  %v19918_v0 = vpack.c.bf16 %v14458_v45, %v14454_v18  ;;  %v19922_v20 = vld [vmem:[#allocation12_spill] sm:$0xff] }
 0xc1a   : > { %v4684_v57 = vpack.c.bf16 %v4634_v14, %v4632_v46  ;;  %v19919_v61 = vpack.c.bf16 %v14469_v51, %v14465_v58  ;;  %v19920_v26 = vpack.c.bf16 %v14479_v28, %v14475_v34  ;;  %v19921_v21 = vpack.c.bf16 %v14489_v42, %v14483_v33  ;;  %v19924_v45 = vld [vmem:[#allocation20_spill] sm:$0xff]  ;;  %v19929_v33 = vld [vmem:[#allocation7_spill] sm:$0xff] }
 0xc1b   : > { %4710 = vmatpush1.bf16.msra.mxu0 %v4677_v5  ;;  %v4683_v41 = vpack.c.bf16 %v4633_v56, %v4631_v3  ;;  %v19923_v18 = vpack.c.bf16 %v14499_v30, %v19922_v20  ;;  %v19927_v51 = vpack.c.bf16 %v14517_v8, %v14513_v62  ;;  %v19928_v34 = vld [vmem:[#allocation8_spill] sm:$0xff]  ;;  %v4786_v42 = vrot.slane %v19929_v33, 2  ;;  %v19932_v30 = vld [vmem:[#allocation18_spill] sm:$0xff]  ;;  %v4760_v62 = vpop.trf.xlu0  ;;  %v20042_v33 = vld [vmem:[#allocation85_spill] sm:$0xff] }
 0xc1c   : > { %4711 = vmatprep.subr.bf16.mxu0 %v4680_v29  ;;  %v4787_v28 = vrot.slane %v19928_v34, 2  ;;  %v6380_v44 = vrot.slane %v19948_v15, 4 }
 0xc1f   : > { %4712 = vmatpush1.bf16.msra.mxu0 %v4679_v1  ;;  %v4761_v8 = vpop.trf.xlu0 }
 0xc20   : > { %4713 = vmatprep.subr.bf16.mxu0 %v4682_v36 }
 0xc23   : > { %4714 = vmatpush1.bf16.msra.mxu0 %v4681_v7 }
 0xc24   : > { %4715 = vmatprep.subr.bf16.mxu0 %v4684_v57 }
 0xc27   : > { %4716 = vmatpush1.bf16.msra.mxu0 %v4683_v41 }
 0xc28   : > { %4717 = vmatprep.subr.bf16.mxu0 %v4686_v60  ;;  %v19925_v60 = vld [vmem:[#allocation23_spill] sm:$0xff] }
 0xc29   : > { %v19926_v58 = vpack.c.bf16 %v19924_v45, %v19925_v60 }
 0xc2b   : > { %4718 = vmatpush1.bf16.msra.mxu0 %v19917_v24 }
 0xc2c   : > { %4719 = vmatprep.subr.bf16.mxu0 %v4688_v63  ;;  %v19930_v63 = vpack.c.bf16 %v14529_v6, %v14525_v39  ;;  %v4762_v39 = vpop.trf.xlu0 }
 0xc2f   : > { %4720 = vmatpush1.bf16.msra.mxu0 %v19918_v0 }
 0xc30   : > { %4721 = vmatprep.subr.bf16.mxu0 %v4690_v9  ;;  %v4837_v9 = vsel %vm19933_vm15, %v4786_v42, 0  ;;  %v4763_v6 = vpop.trf.xlu0  ;;  %vm19938_vm15 = vmmov %vm19936_vm0 }
 0xc33   : > { %4722 = vmatpush1.bf16.msra.mxu0 %v19919_v61 }
 0xc34   : > { %4723 = vmatprep.subr.bf16.mxu0 %v4692_v23  ;;  %v19934_v23 = vmov 0   ;;  %v4764_v50 = vpop.trf.xlu0 }
 0xc37   : > { %4724 = vmatpush1.bf16.msra.mxu0 %v19920_v26 }
 0xc38   : > { %4725 = vmatprep.subr.bf16.mxu0 %v4694_v53  ;;  %v4765_v25 = vpop.trf.xlu0 }
 0xc3b   : > { %4726 = vmatpush1.bf16.msra.mxu0 %v19921_v21 }
 0xc3c   : > { %4727 = vmatprep.subr.bf16.mxu0 %v4696_v59  ;;  %v4766_v55 = vpop.trf.xlu0  ;;  %v4776_v59 = vpop.trf.xlu1 }
 0xc3f   : > { %4728 = vmatpush1.bf16.msra.mxu0 %v19923_v18 }
 0xc40   : > { %4729 = vmatprep.subr.bf16.mxu0 %v4698_v52  ;;  %v4767_v53 = vpop.trf.xlu0  ;;  %v4777_v49 = vpop.trf.xlu1 }
 0xc43   : > { %4730 = vmatpush1.bf16.msra.mxu0 %v19926_v58 }
 0xc44   : > { %4731 = vmatprep.subr.bf16.mxu0 %v4700_v19  ;;  %v4778_v35 = vpop.trf.xlu1 }
 0xc47   : > { %4732 = vmatpush1.bf16.msra.mxu0 %v19927_v51 }
 0xc48   : > { %4733 = vmatprep.subr.bf16.mxu0 %v4702_v32  ;;  %v4779_v2 = vpop.trf.xlu1 }
 0xc4b   : > { %4734 = vmatpush1.bf16.msra.mxu0 %v19930_v63 }
 0xc4c   : > { %7446 = vmatprep.subr.msk.bf16.mxu0 %vm19931_vm14, %v4787_v28  ;;  %vm19939_vm14 = vmmov %vm19936_vm0  ;;  %v4780_v47 = vpop.trf.xlu1 }
 0xc4e   : > { %4736 = vmatmul.mubr.bf16.vlgmr.msra.gmra.mrb[136].mxu0 %v19932_v30 }
 0xc4f   : > { %4843 = vmatpush1.bf16.msra.mxu0 %v4837_v9  ;;  %4874 = vmatprep.mubr.bf16.mxu0 %v19934_v23 }
 0xc50   : > { %v4781_v52 = vpop.trf.xlu1 }
 0xc54   : > { %v4782_v10 = vpop.trf.xlu1 }
 0xc56   : > { %7447 = vmatmul.mubr.msk.bf16.vlgmr.msra.gmra.mrb[140].mxu0 %vm19935_vm1, %v4760_v62  ;;  %vm19940_vm1 = vmmov %vm19936_vm0 }
 0xc57   : > { %4884 = vmatprep.mubr.bf16.mxu0 %v19934_v23 }
 0xc58   : > { %v4783_v4 = vpop.trf.xlu1 }
 0xc5e   : > { %7448 = vmatmul.mubr.msk.bf16.gmra.mrb[144].mxu0 %vm19936_vm0, %v4761_v8 }
 0xc5f   : > { %4894 = vmatprep.mubr.bf16.mxu0 %v19934_v23 }
 0xc66   : > { %7449 = vmatmul.mubr.msk.bf16.gmra.mrb[148].mxu0 %vm19937_vm2, %v4762_v39  ;;  %vm19941_vm2 = vmmov %vm19936_vm0 }
 0xc67   : > { %4904 = vmatprep.mubr.bf16.mxu0 %v19934_v23 }
 0xc6e   : > { %7450 = vmatmul.mubr.msk.bf16.gmra.mrb[152].mxu0 %vm19938_vm15, %v4763_v6  ;;  %vm19942_vm15 = vmmov %vm19936_vm0  ;;  %v19961_v6 = vld [vmem:[#allocation38_spill] sm:$0xff] }
 0xc6f   : > { %4914 = vmatprep.mubr.bf16.mxu0 %v19934_v23 }
 0xc76   : > { %7451 = vmatmul.mubr.msk.bf16.gmra.mrb[156].mxu0 %vm19939_vm14, %v4764_v50  ;;  %vm19943_vm14 = vmmov %vm19936_vm0 }
 0xc77   : > { %4924 = vmatprep.mubr.bf16.mxu0 %v19934_v23 }
 0xc7e   : > { %7452 = vmatmul.mubr.msk.bf16.gmra.mrb[160].mxu0 %vm19940_vm1, %v4765_v25  ;;  %vm19944_vm1 = vmmov %vm19936_vm0 }
 0xc7f   : > { %4934 = vmatprep.mubr.bf16.mxu0 %v19934_v23 }
 0xc86   : > { %7453 = vmatmul.mubr.msk.bf16.gmra.mrb[164].mxu0 %vm19936_vm0, %v4766_v55 }
 0xc87   : > { %4944 = vmatprep.mubr.bf16.mxu0 %v19934_v23 }
 0xc8e   : > { %7454 = vmatmul.mubr.msk.bf16.gmra.mrb[168].mxu0 %vm19941_vm2, %v4767_v53  ;;  %vm19945_vm2 = vmmov %vm19936_vm0  ;;  %v19963_v53 = vld [vmem:[#allocation39_spill] sm:$0xff] }
 0xc8f   : > { %4954 = vmatprep.mubr.bf16.mxu0 %v19934_v23 }
 0xc96   : > { %7455 = vmatmul.mubr.msk.bf16.gmra.mrb[172].mxu0 %vm19942_vm15, %v4776_v59  ;;  %vm19946_vm15 = vmmov %vm19936_vm0 }
 0xc97   : > { %4964 = vmatprep.mubr.bf16.mxu0 %v19934_v23 }
 0xc9e   : > { %7456 = vmatmul.mubr.msk.bf16.gmra.mrb[176].mxu0 %vm19943_vm14, %v4777_v49  ;;  %vm19947_vm14 = vmmov %vm19936_vm0 }
 0xc9f   : > { %4974 = vmatprep.mubr.bf16.mxu0 %v19934_v23 }
 0xca6   : > { %7457 = vmatmul.mubr.msk.bf16.gmra.mrb[180].mxu0 %vm19944_vm1, %v4778_v35  ;;  %vm19949_vm1 = vmmov %vm19936_vm0 }
 0xca7   : > { %4984 = vmatprep.mubr.bf16.mxu0 %v19934_v23 }
 0xcae   : > { %7458 = vmatmul.mubr.msk.bf16.gmra.mrb[184].mxu0 %vm19936_vm0, %v4779_v2  ;;  %vm19962_vm0 = vnez %v19961_v6  ;;  %v19965_v2 = vld [vmem:[#allocation40_spill] sm:$0xff] }
 0xcaf   : > { %4994 = vmatprep.mubr.bf16.mxu0 %v19934_v23 }
 0xcb6   : > { %7459 = vmatmul.mubr.msk.bf16.gmra.mrb[188].mxu0 %vm19945_vm2, %v4780_v47  ;;  %vm19964_vm2 = vnez %v19963_v53 }
 0xcb7   : > { %5004 = vmatprep.mubr.bf16.mxu0 %v19934_v23 }
 0xcbe   : > { %7460 = vmatmul.mubr.msk.bf16.gmra.mrb[192].mxu0 %vm19946_vm15, %v4781_v52  ;;  %vm19966_vm15 = vnez %v19965_v2 }
 0xcbf   : > { %5014 = vmatprep.mubr.bf16.mxu0 %v19934_v23 }
 0xcc6   : > { %7461 = vmatmul.mubr.msk.bf16.gmra.mrb[196].mxu0 %vm19947_vm14, %v4782_v10 }
 0xcc7   : > { %5024 = vmatprep.mubr.bf16.mxu0 %v19934_v23  ;;  %v20040_v23 = vld [vmem:[#allocation83_spill] sm:$0xff] }
 0xcce   : > { %7462 = vmatmul.mubr.msk.bf16.gmra.mrb[200].mxu0 %vm19949_vm1, %v4783_v4  ;;  %v19967_v4 = vld [vmem:[#allocation41_spill] sm:$0xff] }
 0xccf   : > { %6415 = vmatprep.mubr.bf16.mxu0 %v6380_v44  ;;  %vm19968_vm14 = vnez %v19967_v4 }
 0xd21   : > { %v4737_v19 = vpop.f32.mrb[136].mxu0 }
 0xd22   : > { %4744 = vst [vmem:[%s10507_s27 + $0x20] sm:$0xf] %v4737_v19  ;;  %v4739_v32 = vpop.f32.mrb[137].mxu0 }
 0xd23   : > { %4745 = vst [vmem:[%s10507_s27 + $0x28] sm:$0xf] %v4739_v32  ;;  %v4741_v5 = vpop.f32.mrb[138].mxu0 }
 0xd24   : > { %v4742_v54 = vpop.f32.mrb[139].mxu0  ;;  %v19969_v5 = vld [vmem:[#allocation42_spill] sm:$0xff] }
 0xd25   : > { %vm19970_vm1 = vnez %v19969_v5 }
 0xd29   : > { %v4876_v48 = vpop.f32.mrb[140].mxu0 }
 0xd2a   : > { %v4878_v29 = vpop.f32.mrb[141].mxu0  ;;  %v14701_v1 = vsel %vm9063_vm3, %v4876_v48, -1e+30 }
 0xd2b   : > { %v4880_v37 = vpop.f32.mrb[142].mxu0  ;;  %v14709_v36 = vsel %vm9075_vm5, %v4878_v29, -1e+30 }
 0xd2c   : > { %v4882_v11 = vpop.f32.mrb[143].mxu0  ;;  %v14719_v12 = vsel %vm9087_vm7, %v4880_v37, -1e+30  ;;  %v19971_v37 = vld [vmem:[#allocation43_spill] sm:$0xff] }
 0xd2d   : > { %v14729_v24 = vsel %vm9099_vm9, %v4882_v11, -1e+30 }
 0xd31   : > { %v4886_v40 = vpop.f32.mrb[144].mxu0 }
 0xd32   : > { %v14705_v13 = vsel %vm9069_vm4, %v4886_v40, -1e+30  ;;  %v4888_v17 = vpop.f32.mrb[145].mxu0 }
 0xd33   : > { %v5099_v22 = vmax.f32 %v14701_v1, %v14705_v13  ;;  %v14715_v27 = vsel %vm9081_vm6, %v4888_v17, -1e+30  ;;  %v4890_v14 = vpop.f32.mrb[146].mxu0 }
 0xd34   : > { %v5136_v3 = vmax.f32 %v14709_v36, %v14715_v27  ;;  %v14725_v56 = vsel %vm9093_vm8, %v4890_v14, -1e+30  ;;  %v4892_v57 = vpop.f32.mrb[147].mxu0 }
 0xd35   : > { %v5100_v0 = vmax.f32 %v14719_v12, %v14725_v56  ;;  %v14735_v26 = vsel %vm9105_vm10, %v4892_v57, -1e+30 }
 0xd36   : > { %v5137_v21 = vmax.f32 %v14729_v24, %v14735_v26 }
 0xd39   : > { %v4896_v20 = vpop.f32.mrb[148].mxu0 }
 0xd3a   : > { %v14741_v45 = vsel %vm9151_vm11, %v4896_v20, -1e+30  ;;  %v4898_v60 = vpop.f32.mrb[149].mxu0 }
 0xd3b   : > { %v5101_v58 = vmax.f32 %v5099_v22, %v14741_v45  ;;  %v14746_v28 = vsel %vm9157_vm12, %v4898_v60, -1e+30  ;;  %v4900_v42 = vpop.f32.mrb[150].mxu0  ;;  %v19973_v22 = vld [vmem:[#allocation45_spill] sm:$0xff] }
 0xd3c   : > { %v5138_v63 = vmax.f32 %v5136_v3, %v14746_v28  ;;  %v14751_v62 = vsel %vm9163_vm13, %v4900_v42, -1e+30  ;;  %v4902_v8 = vpop.f32.mrb[151].mxu0 }
 0xd3d   : > { %v5102_v39 = vmax.f32 %v5100_v0, %v14751_v62  ;;  %v14756_v50 = vsel %vm19962_vm0, %v4902_v8, -1e+30  ;;  %v19975_v0 = vld [vmem:[#allocation44_spill] sm:$0xff] }
 0xd3e   : > { %v5139_v25 = vmax.f32 %v5137_v21, %v14756_v50 }
 0xd41   : > { %v4906_v55 = vpop.f32.mrb[152].mxu0 }
 0xd42   : > { %v14761_v59 = vsel %vm19964_vm2, %v4906_v55, -1e+30  ;;  %v4908_v49 = vpop.f32.mrb[153].mxu0 }
 0xd43   : > { %v5103_v35 = vmax.f32 %v5101_v58, %v14761_v59  ;;  %v14766_v47 = vsel %vm19966_vm15, %v4908_v49, -1e+30  ;;  %v4910_v52 = vpop.f32.mrb[154].mxu0  ;;  %vm19972_vm15 = vnez %v19971_v37  ;;  %v19977_v58 = vld [vmem:[#allocation46_spill] sm:$0xff] }
 0xd44   : > { %v5140_v10 = vmax.f32 %v5138_v63, %v14766_v47  ;;  %v14771_v44 = vsel %vm19968_vm14, %v4910_v52, -1e+30  ;;  %v4912_v19 = vpop.f32.mrb[155].mxu0  ;;  %vm19974_vm14 = vnez %v19973_v22 }
 0xd45   : > { %v5104_v32 = vmax.f32 %v5102_v39, %v14771_v44  ;;  %v14776_v54 = vsel %vm19970_vm1, %v4912_v19, -1e+30  ;;  %vm19976_vm1 = vnez %v19975_v0  ;;  %v19979_v39 = vld [vmem:[#allocation47_spill] sm:$0xff] }
 0xd46   : > { %v5141_v48 = vmax.f32 %v5139_v25, %v14776_v54 }
 0xd49   : > { %v4916_v29 = vpop.f32.mrb[156].mxu0 }
 0xd4a   : > { %v14781_v11 = vsel %vm19972_vm15, %v4916_v29, -1e+30  ;;  %v4918_v40 = vpop.f32.mrb[157].mxu0  ;;  %vm19978_vm15 = vnez %v19977_v58 }
 0xd4b   : > { %v5105_v17 = vmax.f32 %v5103_v35, %v14781_v11  ;;  %v14786_v14 = vsel %vm19974_vm14, %v4918_v40, -1e+30  ;;  %v4920_v3 = vpop.f32.mrb[158].mxu0  ;;  %vm19980_vm14 = vnez %v19979_v39  ;;  %v19981_v35 = vld [vmem:[#allocation48_spill] sm:$0xff] }
 0xd4c   : > { %v5142_v57 = vmax.f32 %v5140_v10, %v14786_v14  ;;  %v14791_v21 = vsel %vm19976_vm1, %v4920_v3, -1e+30  ;;  %v4922_v20 = vpop.f32.mrb[159].mxu0  ;;  %vm19982_vm1 = vnez %v19981_v35  ;;  %v19986_v3 = vld [vmem:[#allocation51_spill] sm:$0xff]  ;;  %v19989_v35 = vld [vmem:[#allocation53_spill] sm:$0xff] }
 0xd4d   : > { %v5106_v60 = vmax.f32 %v5104_v32, %v14791_v21  ;;  %v14796_v42 = vsel %vm19978_vm15, %v4922_v20, -1e+30  ;;  %v19984_v32 = vld [vmem:[#allocation49_spill] sm:$0xff] }
 0xd4e   : > { %v5143_v63 = vmax.f32 %v5141_v48, %v14796_v42  ;;  %vm19985_vm15 = vnez %v19984_v32  ;;  %v19991_v32 = vld [vmem:[#allocation54_spill] sm:$0xff] }
 0xd51   : > { %v4926_v8 = vpop.f32.mrb[160].mxu0 }
 0xd52   : > { %v14801_v25 = vsel %vm19980_vm14, %v4926_v8, -1e+30  ;;  %v4928_v55 = vpop.f32.mrb[161].mxu0  ;;  %vm19987_vm14 = vnez %v19986_v3  ;;  %v19994_v3 = vld [vmem:[#allocation55_spill] sm:$0xff] }
 0xd53   : > { %v5107_v49 = vmax.f32 %v5105_v17, %v14801_v25  ;;  %v14806_v52 = vsel %vm19982_vm1, %v4928_v55, -1e+30  ;;  %v4930_v10 = vpop.f32.mrb[162].mxu0  ;;  %vm19990_vm1 = vnez %v19989_v35  ;;  %v19996_v35 = vld [vmem:[#allocation57_spill] sm:$0xff] }
 0xd54   : > { %19983 = vst [vmem:[#allocation13_spill] sm:$0xff] %v14806_v52  ;;  %v5144_v19 = vmax.f32 %v5142_v57, %v14806_v52  ;;  %v14811_v29 = vsel %vm19985_vm15, %v4930_v10, -1e+30  ;;  %v4932_v48 = vpop.f32.mrb[163].mxu0  ;;  %vm19992_vm15 = vnez %v19991_v32  ;;  %v19999_v32 = vld [vmem:[#allocation59_spill] sm:$0xff] }
 0xd55   : > { %v5108_v40 = vmax.f32 %v5106_v60, %v14811_v29  ;;  %v14816_v20 = vsel %vm19987_vm14, %v4932_v48, -1e+30  ;;  %vm19995_vm14 = vnez %v19994_v3  ;;  %v20001_v3 = vld [vmem:[#allocation60_spill] sm:$0xff] }
 0xd56   : > { %19988 = vst [vmem:[#allocation25_spill] sm:$0xff] %v14816_v20  ;;  %v5145_v17 = vmax.f32 %v5143_v63, %v14816_v20 }
 0xd59   : > { %v4936_v8 = vpop.f32.mrb[164].mxu0 }
 0xd5a   : > { %v14821_v55 = vsel %vm19990_vm1, %v4936_v8, -1e+30  ;;  %v4938_v39 = vpop.f32.mrb[165].mxu0  ;;  %vm19997_vm1 = vnez %v19996_v35  ;;  %v20004_v35 = vld [vmem:[#allocation61_spill] sm:$0xff] }
 0xd5b   : > { %v5109_v57 = vmax.f32 %v5107_v49, %v14821_v55  ;;  %v14826_v10 = vsel %vm19992_vm15, %v4938_v39, -1e+30  ;;  %v4940_v58 = vpop.f32.mrb[166].mxu0  ;;  %vm20000_vm15 = vnez %v19999_v32  ;;  %v20006_v32 = vld [vmem:[#allocation63_spill] sm:$0xff] }
 0xd5c   : > { %19993 = vst [vmem:[#allocation24_spill] sm:$0xff] %v14826_v10  ;;  %v5146_v60 = vmax.f32 %v5144_v19, %v14826_v10  ;;  %v14831_v48 = vsel %vm19995_vm14, %v4940_v58, -1e+30  ;;  %v4942_v63 = vpop.f32.mrb[167].mxu0  ;;  %vm20002_vm14 = vnez %v20001_v3  ;;  %v20009_v3 = vld [vmem:[#allocation65_spill] sm:$0xff] }
 0xd5d   : > { %v5110_v0 = vmax.f32 %v5108_v40, %v14831_v48  ;;  %v14836_v8 = vsel %vm19997_vm1, %v4942_v63, -1e+30  ;;  %vm20005_vm1 = vnez %v20004_v35  ;;  %v20011_v35 = vld [vmem:[#allocation66_spill] sm:$0xff] }
 0xd5e   : > { %19998 = vst [vmem:[#allocation15_spill] sm:$0xff] %v14836_v8  ;;  %v5147_v49 = vmax.f32 %v5145_v17, %v14836_v8 }
 0xd61   : > { %v4946_v22 = vpop.f32.mrb[168].mxu0 }
 0xd62   : > { %v14841_v39 = vsel %vm20000_vm15, %v4946_v22, -1e+30  ;;  %v4948_v37 = vpop.f32.mrb[169].mxu0  ;;  %vm20007_vm15 = vnez %v20006_v32  ;;  %v20014_v32 = vld [vmem:[#allocation67_spill] sm:$0xff] }
 0xd63   : > { %v5111_v19 = vmax.f32 %v5109_v57, %v14841_v39  ;;  %v14846_v58 = vsel %vm20002_vm14, %v4948_v37, -1e+30  ;;  %v4950_v5 = vpop.f32.mrb[170].mxu0  ;;  %vm20010_vm14 = vnez %v20009_v3  ;;  %v20016_v3 = vld [vmem:[#allocation69_spill] sm:$0xff] }
 0xd64   : > { %20003 = vst [vmem:[#allocation26_spill] sm:$0xff] %v14846_v58  ;;  %v5148_v40 = vmax.f32 %v5146_v60, %v14846_v58  ;;  %v14851_v63 = vsel %vm20005_vm1, %v4950_v5, -1e+30  ;;  %v4952_v17 = vpop.f32.mrb[171].mxu0  ;;  %vm20012_vm1 = vnez %v20011_v35  ;;  %v20019_v35 = vld [vmem:[#allocation71_spill] sm:$0xff] }
 0xd65   : > { %v5112_v4 = vmax.f32 %v5110_v0, %v14851_v63  ;;  %v14856_v22 = vsel %vm20007_vm15, %v4952_v17, -1e+30  ;;  %vm20015_vm15 = vnez %v20014_v32  ;;  %v20021_v32 = vld [vmem:[#allocation73_spill] sm:$0xff] }
 0xd66   : > { %20008 = vst [vmem:[#allocation6_spill] sm:$0xff] %v14856_v22  ;;  %v5149_v57 = vmax.f32 %v5147_v49, %v14856_v22 }
 0xd69   : > { %v4956_v2 = vpop.f32.mrb[172].mxu0 }
 0xd6a   : > { %v14861_v37 = vsel %vm20010_vm14, %v4956_v2, -1e+30  ;;  %v4958_v53 = vpop.f32.mrb[173].mxu0  ;;  %vm20017_vm14 = vnez %v20016_v3  ;;  %v20024_v3 = vld [vmem:[#allocation72_spill] sm:$0xff] }
 0xd6b   : > { %v5113_v60 = vmax.f32 %v5111_v19, %v14861_v37  ;;  %v14866_v5 = vsel %vm20012_vm1, %v4958_v53, -1e+30  ;;  %v4960_v6 = vpop.f32.mrb[174].mxu0  ;;  %vm20020_vm1 = vnez %v20019_v35  ;;  %v20026_v35 = vld [vmem:[#allocation74_spill] sm:$0xff] }
 0xd6c   : > { %20013 = vst [vmem:[#allocation5_spill] sm:$0xff] %v14866_v5  ;;  %v5150_v0 = vmax.f32 %v5148_v40, %v14866_v5  ;;  %v14871_v17 = vsel %vm20015_vm15, %v4960_v6, -1e+30  ;;  %v4962_v49 = vpop.f32.mrb[175].mxu0  ;;  %vm20022_vm15 = vnez %v20021_v32  ;;  %v20029_v32 = vld [vmem:[#allocation77_spill] sm:$0xff] }
 0xd6d   : > { %v5114_v9 = vmax.f32 %v5112_v4, %v14871_v17  ;;  %v14876_v2 = vsel %vm20017_vm14, %v4962_v49, -1e+30  ;;  %vm20025_vm14 = vnez %v20024_v3  ;;  %v20031_v3 = vld [vmem:[#allocation79_spill] sm:$0xff] }
 0xd6e   : > { %20018 = vst [vmem:[#allocation16_spill] sm:$0xff] %v14876_v2  ;;  %v5151_v19 = vmax.f32 %v5149_v57, %v14876_v2  ;;  %v20061_v2 = vld [vmem:[#allocation96_spill] sm:$0xff] }
 0xd71   : > { %v4966_v51 = vpop.f32.mrb[176].mxu0 }
 0xd72   : > { %v14881_v53 = vsel %vm20020_vm1, %v4966_v51, -1e+30  ;;  %v4968_v18 = vpop.f32.mrb[177].mxu0  ;;  %vm20027_vm1 = vnez %v20026_v35  ;;  %v20034_v35 = vld [vmem:[#allocation78_spill] sm:$0xff] }
 0xd73   : > { %v5115_v40 = vmax.f32 %v5113_v60, %v14881_v53  ;;  %v14886_v6 = vsel %vm20022_vm15, %v4968_v18, -1e+30  ;;  %v4970_v61 = vpop.f32.mrb[178].mxu0  ;;  %vm20030_vm15 = vnez %v20029_v32 }
 0xd74   : > { %20023 = vst [vmem:[#allocation106_spill] sm:$0xff] %v14886_v6  ;;  %v5152_v4 = vmax.f32 %v5150_v0, %v14886_v6  ;;  %v14891_v49 = vsel %vm20025_vm14, %v4970_v61, -1e+30  ;;  %v4972_v57 = vpop.f32.mrb[179].mxu0  ;;  %vm20032_vm14 = vnez %v20031_v3 }
 0xd75   : > { %v5116_v41 = vmax.f32 %v5114_v9, %v14891_v49  ;;  %v14896_v51 = vsel %vm20027_vm1, %v4972_v57, -1e+30  ;;  %vm20035_vm1 = vnez %v20034_v35 }
 0xd76   : > { %20028 = vst [vmem:[#allocation110_spill] sm:$0xff] %v14896_v51  ;;  %v5153_v60 = vmax.f32 %v5151_v19, %v14896_v51 }
 0xd79   : > { %v4976_v16 = vpop.f32.mrb[180].mxu0 }
 0xd7a   : > { %v14901_v18 = vsel %vm20030_vm15, %v4976_v16, -1e+30  ;;  %v4978_v7 = vpop.f32.mrb[181].mxu0  ;;  %v20036_v16 = vld [vmem:[#allocation81_spill] sm:$0xff] }
 0xd7b   : > { %v5117_v0 = vmax.f32 %v5115_v40, %v14901_v18  ;;  %v14906_v61 = vsel %vm20032_vm14, %v4978_v7, -1e+30  ;;  %v4980_v46 = vpop.f32.mrb[182].mxu0  ;;  %vm20037_vm15 = vnez %v20036_v16  ;;  %vm20039_vm14 = vnez %v20038_v31  ;;  %v20044_v31 = vld [vmem:[#allocation84_spill] sm:$0xff] }
 0xd7c   : > { %20033 = vst [vmem:[#allocation88_spill] sm:$0xff] %v14906_v61  ;;  %v5154_v9 = vmax.f32 %v5152_v4, %v14906_v61  ;;  %v14911_v57 = vsel %vm20035_vm1, %v4980_v46, -1e+30  ;;  %v4982_v19 = vpop.f32.mrb[183].mxu0  ;;  %vm20041_vm1 = vnez %v20040_v23  ;;  %v20047_v61 = vld [vmem:[#allocation86_spill] sm:$0xff]  ;;  %v20050_v23 = vld [vmem:[#allocation87_spill] sm:$0xff] }
 0xd7d   : > { %v5118_v38 = vmax.f32 %v5116_v41, %v14911_v57  ;;  %vm20048_vm2 = vnez %v20047_v61 }
 0xd81   : > { %v4986_v32 = vpop.f32.mrb[184].mxu0 }
 0xd82   : > { %v14916_v43 = vsel %vm20037_vm15, %v4986_v32, -1e+30  ;;  %v4988_v40 = vpop.f32.mrb[185].mxu0  ;;  %vm20043_vm15 = vnez %v20042_v33 }
 0xd83   : > { %v5119_v3 = vmax.f32 %v5117_v0, %v14916_v43  ;;  %v4990_v7 = vpop.f32.mrb[186].mxu0 }
 0xd84   : > { %v14921_v15 = vsel %vm20039_vm14, %v4990_v7, -1e+30  ;;  %v4992_v4 = vpop.f32.mrb[187].mxu0  ;;  %vm20045_vm14 = vnez %v20044_v31 }
 0xd85   : > { %v5120_v46 = vmax.f32 %v5118_v38, %v14921_v15  ;;  %v14935_v7 = vsel %vm20045_vm14, %v4982_v19, -1e+30  ;;  %v14939_v38 = vsel %vm20048_vm2, %v4988_v40, -1e+30  ;;  %v20056_v19 = vld [vmem:[#allocation93_spill] sm:$0xff] }
 0xd86   : > { %20046 = vst [vmem:[#allocation89_spill] sm:$0xff] %v14935_v7  ;;  %20049 = vst [vmem:[#allocation91_spill] sm:$0xff] %v14939_v38  ;;  %v5156_v31 = vmax.f32 %v5154_v9, %v14939_v38  ;;  %vm20057_vm14 = vnez %v20056_v19  ;;  %v20064_v38 = vld [vmem:[#allocation97_spill] sm:$0xff] }
 0xd89   : > { %v4996_v35 = vpop.f32.mrb[188].mxu0 }
 0xd8a   : > { %v14926_v41 = vsel %vm20041_vm1, %v4996_v35, -1e+30  ;;  %v4998_v30 = vpop.f32.mrb[189].mxu0  ;;  %vm20051_vm1 = vnez %v20050_v23  ;;  %v20059_v23 = vld [vmem:[#allocation94_spill] sm:$0xff] }
 0xd8b   : > { %v5121_v32 = vmax.f32 %v5119_v3, %v14926_v41  ;;  %v5000_v16 = vpop.f32.mrb[190].mxu0  ;;  %v14944_v51 = vsel %vm20051_vm1, %v4992_v4, -1e+30  ;;  %v20053_v3 = vld [vmem:[#allocation90_spill] sm:$0xff]  ;;  %vm20060_vm1 = vnez %v20059_v23  ;;  %v20066_v23 = vld [vmem:[#allocation99_spill] sm:$0xff] }
 0xd8c   : > { %v14931_v0 = vsel %vm20043_vm15, %v5000_v16, -1e+30  ;;  %v5002_v34 = vpop.f32.mrb[191].mxu0  ;;  %20052 = vst [vmem:[#allocation92_spill] sm:$0xff] %v14944_v51  ;;  %vm20054_vm0 = vnez %v20053_v3  ;;  %v5155_v16 = vmax.f32 %v5153_v60, %v14935_v7 }
 0xd8d   : > { %v5122_v35 = vmax.f32 %v5120_v46, %v14931_v0  ;;  %v14948_v33 = vsel %vm20054_vm0, %v4998_v30, -1e+30  ;;  %v14954_v6 = vsel %vm20057_vm14, %v5002_v34, -1e+30  ;;  %vm20062_vm0 = vnez %v20061_v2  ;;  %v20069_v2 = vld [vmem:[#allocation101_spill] sm:$0xff] }
 0xd8e   : > { %20055 = vst [vmem:[#allocation95_spill] sm:$0xff] %v14948_v33  ;;  %20058 = vst [vmem:[#allocation68_spill] sm:$0xff] %v14954_v6  ;;  %v5157_v61 = vmax.f32 %v5155_v16, %v14944_v51  ;;  %v5158_v46 = vmax.f32 %v5156_v31, %v14948_v33  ;;  %vm20065_vm14 = vnez %v20064_v38  ;;  %v20071_v38 = vld [vmem:[#allocation102_spill] sm:$0xff] }
 0xd90   : > { %v5159_v34 = vmax.f32 %v5157_v61, %v14954_v6 }
 0xd91   : > { %v5006_v40 = vpop.f32.mrb[192].mxu0 }
 0xd92   : > { %v14960_v4 = vsel %vm20060_vm1, %v5006_v40, -1e+30  ;;  %v5008_v3 = vpop.f32.mrb[193].mxu0  ;;  %vm20067_vm1 = vnez %v20066_v23  ;;  %v20074_v23 = vld [vmem:[#allocation103_spill] sm:$0xff] }
 0xd93   : > { %v5123_v30 = vmax.f32 %v5121_v32, %v14960_v4  ;;  %v14965_v60 = vsel %vm20062_vm0, %v5008_v3, -1e+30  ;;  %v5010_v9 = vpop.f32.mrb[194].mxu0  ;;  %vm20070_vm0 = vnez %v20069_v2  ;;  %v20076_v2 = vld [vmem:[#allocation105_spill] sm:$0xff] }
 0xd94   : > { %20063 = vst [vmem:[#allocation98_spill] sm:$0xff] %v14965_v60  ;;  %v5160_v19 = vmax.f32 %v5158_v46, %v14965_v60  ;;  %v14971_v16 = vsel %vm20065_vm14, %v5010_v9, -1e+30  ;;  %v5012_v31 = vpop.f32.mrb[195].mxu0  ;;  %vm20072_vm14 = vnez %v20071_v38  ;;  %v20079_v38 = vld [vmem:[#allocation107_spill] sm:$0xff] }
 0xd95   : > { %v5124_v40 = vmax.f32 %v5122_v35, %v14971_v16  ;;  %v14976_v33 = vsel %vm20067_vm1, %v5012_v31, -1e+30  ;;  %vm20075_vm1 = vnez %v20074_v23  ;;  %v20081_v23 = vld [vmem:[#allocation108_spill] sm:$0xff] }
 0xd96   : > { %20068 = vst [vmem:[#allocation104_spill] sm:$0xff] %v14976_v33  ;;  %v5161_v32 = vmax.f32 %v5159_v34, %v14976_v33 }
 0xd99   : > { %v5016_v3 = vpop.f32.mrb[196].mxu0 }
 0xd9a   : > { %v14981_v51 = vsel %vm20070_vm0, %v5016_v3, -1e+30  ;;  %v5018_v61 = vpop.f32.mrb[197].mxu0  ;;  %vm20077_vm0 = vnez %v20076_v2  ;;  %v20084_v2 = vld [vmem:[#allocation109_spill] sm:$0xff] }
 0xd9b   : > { %v5125_v46 = vmax.f32 %v5123_v30, %v14981_v51  ;;  %v14986_v9 = vsel %vm20072_vm14, %v5018_v61, -1e+30  ;;  %v5020_v6 = vpop.f32.mrb[198].mxu0  ;;  %vm20080_vm14 = vnez %v20079_v38  ;;  %v20086_v38 = vld [vmem:[#allocation111_spill] sm:$0xff] }
 0xd9c   : > { %20073 = vst [vmem:[#allocation70_spill] sm:$0xff] %v14986_v9  ;;  %v5162_v35 = vmax.f32 %v5160_v19, %v14986_v9  ;;  %v14991_v31 = vsel %vm20075_vm1, %v5020_v6, -1e+30  ;;  %v5022_v34 = vpop.f32.mrb[199].mxu0  ;;  %vm20082_vm1 = vnez %v20081_v23 }
 0xd9d   : > { %v5126_v7 = vmax.f32 %v5124_v40, %v14991_v31  ;;  %v14996_v3 = vsel %vm20077_vm0, %v5022_v34, -1e+30  ;;  %vm20085_vm0 = vnez %v20084_v2 }
 0xd9e   : > { %20078 = vst [vmem:[#allocation75_spill] sm:$0xff] %v14996_v3  ;;  %v5163_v30 = vmax.f32 %v5161_v32, %v14996_v3 }
 0xda1   : > { %v5026_v33 = vpop.f32.mrb[200].mxu0 }
 0xda2   : > { %v15001_v61 = vsel %vm20080_vm14, %v5026_v33, -1e+30  ;;  %v5028_v60 = vpop.f32.mrb[201].mxu0  ;;  %vm20087_vm14 = vnez %v20086_v38 }
 0xda3   : > { %v5127_v19 = vmax.f32 %v5125_v46, %v15001_v61  ;;  %v15006_v6 = vsel %vm20082_vm1, %v5028_v60, -1e+30  ;;  %v5030_v9 = vpop.f32.mrb[202].mxu0  ;;  %vm20198_vm1 = vcmask 31744  }
 0xda4   : > { %20083 = vst [vmem:[#allocation50_spill] sm:$0xff] %v15006_v6  ;;  %v5164_v40 = vmax.f32 %v5162_v35, %v15006_v6  ;;  %v15011_v34 = vsel %vm20085_vm0, %v5030_v9, -1e+30  ;;  %v5032_v32 = vpop.f32.mrb[203].mxu0  ;;  %vm20199_vm2 = vmmov %vm20198_vm1 }
 0xda5   : > { %v5128_v3 = vmax.f32 %v5126_v7, %v15011_v34  ;;  %v15016_v33 = vsel %vm20087_vm14, %v5032_v32, -1e+30  ;;  %vm20195_vm14 = vcmask 1041408   ;;  %vm20200_vm15 = vmmov %vm20198_vm1 }
 0xda6   : > { %v5165_v46 = vmax.f32 %v5163_v30, %v15016_v33  ;;  %vm20196_vm0 = vmmov %vm20195_vm14 }
 0xda7   : > { %v5129_v5 = vmax.f32 %v5127_v19, %v5128_v3 }
 0xda8   : > { %v5166_v23 = vmax.f32 %v5164_v40, %v5165_v46 }
 0xda9   : > { %v5130_v60 = vrot.slane %v5129_v5, 4 }
 0xdaa   : > { %v5167_v22 = vrot.slane %v5166_v23, 4 }
 0xdab   : > { %v5131_v58 = vmax.f32 %v5129_v5, %v5130_v60 }
 0xdac   : > { %v5168_v8 = vmax.f32 %v5166_v23, %v5167_v22 }
 0xdad   : > { %v5132_v35 = vrot.slane %v5131_v58, 2 }
 0xdae   : > { %v5169_v6 = vrot.slane %v5168_v8, 2 }
 0xdaf   : > { %v5133_v2 = vmax.f32 %v5131_v58, %v5132_v35  ;;  %v20096_v35 = vld [vmem:[#allocation16_spill] sm:$0xff] }
 0xdb0   : > { %v5170_v9 = vmax.f32 %v5168_v8, %v5169_v6 }
 0xdb1   : > { %v5134_v10 = vrot.slane %v5133_v2, 1 }
 0xdb2   : > { %v5171_v20 = vrot.slane %v5170_v9, 1 }
 0xdb3   : > { %v15019_v52 = vmax.f32 %v5133_v2, %v5134_v10 }
 0xdb4   : > { %v15021_v7 = vmax.f32 %v5170_v9, %v5171_v20 }
 0xdb5   : > { %v5173_v32 = vsub.f32 %v14701_v1, %v15019_v52  ;;  %v5175_v3 = vsub.f32 %v14719_v12, %v15019_v52  ;;  %v5177_v5 = vsub.f32 %v14705_v13, %v15019_v52  ;;  %v5179_v23 = vsub.f32 %v14725_v56, %v15019_v52 }
 0xdb6   : > { %v5181_v8 = vsub.f32 %v14741_v45, %v15019_v52  ;;  %v5183_v10 = vsub.f32 %v14751_v62, %v15019_v52  ;;  %v5185_v20 = vsub.f32 %v14761_v59, %v15019_v52  ;;  %v5187_v1 = vsub.f32 %v14771_v44, %v15019_v52  ;;  %v20103_v44 = vld [vmem:[#allocation104_spill] sm:$0xff] }
 0xdb7   : > { %v5189_v12 = vsub.f32 %v14781_v11, %v15019_v52  ;;  %v5191_v13 = vsub.f32 %v14791_v21, %v15019_v52  ;;  %v5193_v56 = vsub.f32 %v14801_v25, %v15019_v52  ;;  %v5195_v45 = vsub.f32 %v14811_v29, %v15019_v52  ;;  %v20097_v21 = vld [vmem:[#allocation106_spill] sm:$0xff]  ;;  %v20105_v29 = vld [vmem:[#allocation75_spill] sm:$0xff] }
 0xdb8   : > { %v5197_v62 = vsub.f32 %v14821_v55, %v15019_v52  ;;  %v5237_v30 = vmul.f32 1.442695, %v5173_v32  ;;  %v5241_v60 = vmul.f32 1.442695, %v5175_v3  ;;  %v5245_v2 = vmul.f32 1.442695, %v5177_v5 }
 0xdb9   : > { %v5249_v19 = vmul.f32 1.442695, %v5179_v23  ;;  %v5253_v6 = vmul.f32 1.442695, %v5181_v8  ;;  %v5257_v22 = vmul.f32 1.442695, %v5183_v10  ;;  %v20107_v38 = vsub.f32 %v14831_v48, %v15019_v52 }
 0xdba   : > { %8214 = vpow2.f32 %v5237_v30  ;;  %v5261_v40 = vmul.f32 1.442695, %v5185_v20  ;;  %v5265_v58 = vmul.f32 1.442695, %v5187_v1  ;;  %v5269_v8 = vmul.f32 1.442695, %v5189_v12 }
 0xdbb   : > { %8216 = vpow2.f32 %v5241_v60  ;;  %v20089_v12 = vld [vmem:[#allocation25_spill] sm:$0xff]  ;;  %v5273_v46 = vmul.f32 1.442695, %v5191_v13  ;;  %v20090_v20 = vld [vmem:[#allocation24_spill] sm:$0xff]  ;;  %v20091_v1 = vld [vmem:[#allocation15_spill] sm:$0xff]  ;;  %v20110_v48 = vsub.f32 %v14861_v37, %v15019_v52  ;;  %v20114_v37 = vsub.f32 %v14729_v24, %v15021_v7 }
 0xdbc   : > { %8218 = vpow2.f32 %v5245_v2  ;;  %v20093_v30 = vld [vmem:[#allocation26_spill] sm:$0xff]  ;;  %v20095_v13 = vld [vmem:[#allocation5_spill] sm:$0xff]  ;;  %v20100_v60 = vld [vmem:[#allocation88_spill] sm:$0xff]  ;;  %v5281_v5 = vmul.f32 1.442695, %v5195_v45 }
 0xdbd   : > { %8220 = vpow2.f32 %v5249_v19  ;;  %v20088_v19 = vld [vmem:[#allocation13_spill] sm:$0xff]  ;;  %v20099_v32 = vld [vmem:[#allocation110_spill] sm:$0xff]  ;;  %v5285_v25 = vmul.f32 1.442695, %v5197_v62  ;;  %v5289_v3 = vmul.f32 1.442695, %v20107_v38 }
 0xdbe   : > { %8222 = vpow2.f32 %v5253_v6  ;;  %v20094_v6 = vld [vmem:[#allocation6_spill] sm:$0xff]  ;;  %v5301_v38 = vmul.f32 1.442695, %v20110_v48 }
 0xdbf   : > { %8224 = vpow2.f32 %v5257_v22  ;;  %v20106_v23 = vld [vmem:[#allocation50_spill] sm:$0xff] }
 0xdc0   : > { %8226 = vpow2.f32 %v5261_v40 }
 0xdc1   : > { %8228 = vpow2.f32 %v5265_v58  ;;  %v5277_v58 = vmul.f32 1.442695, %v5193_v56 }
 0xdc2   : > { %8230 = vpow2.f32 %v5269_v8  ;;  %v20102_v8 = vld [vmem:[#allocation98_spill] sm:$0xff] }
 0xdc3   : > { %8232 = vpow2.f32 %v5273_v46 }
 0xdc4   : > { %v15099_v2 = vpop.eup %8214  ;;  %8234 = vpow2.f32 %v5277_v58 }
 0xdc5   : > { %v15107_v22 = vpop.eup %8216  ;;  %8236 = vpow2.f32 %v5281_v5  ;;  %v20109_v5 = vsub.f32 %v14851_v63, %v15019_v52 }
 0xdc6   : > { %v5365_v10 = vadd.f32 %v15107_v22, %v15099_v2  ;;  %v15121_v40 = vpop.eup %8218  ;;  %8238 = vpow2.f32 %v5285_v25 }
 0xdc7   : > { %20092 = vst [vmem:[#allocation52_spill] sm:$0xff] %v15121_v40  ;;  %v15134_v11 = vpop.eup %8220  ;;  %8240 = vpow2.f32 %v5289_v3  ;;  %v20112_v3 = vsub.f32 %v14709_v36, %v15021_v7  ;;  %v20117_v36 = vsub.f32 %v14715_v27, %v15021_v7 }
 0xdc8   : > { %v5366_v9 = vadd.f32 %v15121_v40, %v5365_v10  ;;  %20098 = vst [vmem:[#allocation56_spill] sm:$0xff] %v15134_v11  ;;  %v15144_v59 = vpop.eup %8222 }
 0xdc9   : > { %20101 = vst [vmem:[#allocation80_spill] sm:$0xff] %v15144_v59  ;;  %v15159_v46 = vpop.eup %8224  ;;  %v5239_v63 = vmul.f32 1.442695, %v20112_v3 }
 0xdca   : > { %v5367_v10 = vadd.f32 %v15134_v11, %v5366_v9  ;;  %v20104_v9 = vld [vmem:[#allocation70_spill] sm:$0xff]  ;;  %v20108_v11 = vsub.f32 %v14841_v39, %v15019_v52  ;;  %v20111_v39 = vsub.f32 %v14871_v17, %v15019_v52 }
 0xdcc   : > { %v5368_v56 = vadd.f32 %v15144_v59, %v5367_v10  ;;  %v15168_v10 = vpop.eup %8226  ;;  %v5293_v45 = vmul.f32 1.442695, %v20108_v11  ;;  %v5305_v11 = vmul.f32 1.442695, %v20111_v39 }
 0xdcd   : > { %v15174_v59 = vpop.eup %8228 }
 0xdce   : > { %v5369_v62 = vadd.f32 %v15159_v46, %v5368_v56  ;;  %v15180_v40 = vpop.eup %8230  ;;  %v5297_v56 = vmul.f32 1.442695, %v20109_v5  ;;  %8242 = vpow2.f32 %v5293_v45  ;;  %v20115_v45 = vsub.f32 %v14881_v53, %v15019_v52 }
 0xdcf   : > { %v15189_v25 = vpop.eup %8232  ;;  %v20120_v53 = vsub.f32 %v14735_v26, %v15021_v7 }
 0xdd0   : > { %v5370_v58 = vadd.f32 %v15168_v10, %v5369_v62  ;;  %v15198_v5 = vpop.eup %8234  ;;  %8244 = vpow2.f32 %v5297_v56  ;;  %v5309_v48 = vmul.f32 1.442695, %v20115_v45  ;;  %v20118_v56 = vsub.f32 %v14891_v49, %v15019_v52 }
 0xdd1   : > { %20113 = vst [vmem:[#allocation64_spill] sm:$0xff] %v15198_v5  ;;  %8246 = vpow2.f32 %v5301_v38  ;;  %v15207_v39 = vpop.eup %8236  ;;  %v20123_v49 = vsub.f32 %v14746_v28, %v15021_v7 }
 0xdd2   : > { %v5371_v55 = vadd.f32 %v15174_v59, %v5370_v58  ;;  %20116 = vst [vmem:[#allocation58_spill] sm:$0xff] %v15207_v39  ;;  %8248 = vpow2.f32 %v5305_v11  ;;  %v5313_v3 = vmul.f32 1.442695, %v20118_v56  ;;  %v15216_v38 = vpop.eup %8238  ;;  %v20121_v11 = vsub.f32 %v14901_v18, %v15019_v52 }
 0xdd3   : > { %8250 = vpow2.f32 %v5239_v63  ;;  %20119 = vst [vmem:[#allocation62_spill] sm:$0xff] %v15216_v38  ;;  %v15225_v45 = vpop.eup %8240  ;;  %v5255_v63 = vmul.f32 1.442695, %v20123_v49  ;;  %v20125_v18 = vsub.f32 %v14756_v50, %v15021_v7  ;;  %v20128_v50 = vsub.f32 %v14921_v15, %v15019_v52 }
 0xdd4   : > { %v5372_v62 = vadd.f32 %v15180_v40, %v5371_v55  ;;  %v5243_v55 = vmul.f32 1.442695, %v20114_v37  ;;  %v5317_v27 = vmul.f32 1.442695, %v20121_v11  ;;  %20122 = vst [vmem:[#allocation76_spill] sm:$0xff] %v15225_v45 }
 0xdd6   : > { %v5373_v58 = vadd.f32 %v15189_v25, %v5372_v62  ;;  %v5247_v62 = vmul.f32 1.442695, %v20117_v36  ;;  %8252 = vpow2.f32 %v5243_v55  ;;  %v20124_v55 = vsub.f32 %v14911_v57, %v15019_v52 }
 0xdd7   : > { %8254 = vpow2.f32 %v5309_v48  ;;  %v5259_v36 = vmul.f32 1.442695, %v20125_v18  ;;  %v20127_v57 = vsub.f32 %v14766_v47, %v15021_v7  ;;  %v20130_v47 = vsub.f32 %v14926_v41, %v15019_v52 }
 0xdd8   : > { %v5374_v17 = vadd.f32 %v15198_v5, %v5373_v58  ;;  %v5251_v58 = vmul.f32 1.442695, %v20120_v53  ;;  %8256 = vpow2.f32 %v5247_v62  ;;  %v5321_v26 = vmul.f32 1.442695, %v20124_v55 }
 0xdd9   : > { %8258 = vpow2.f32 %v5313_v3  ;;  %v20126_v62 = vsub.f32 %v14916_v43, %v15019_v52 }
 0xdda   : > { %v5375_v24 = vadd.f32 %v15207_v39, %v5374_v17  ;;  %v15234_v17 = vpop.eup %8242  ;;  %8260 = vpow2.f32 %v5251_v58  ;;  %v5329_v58 = vmul.f32 1.442695, %v20128_v50 }
 0xddb   : > { %8262 = vpow2.f32 %v5317_v27  ;;  %v5325_v28 = vmul.f32 1.442695, %v20126_v62  ;;  %v15243_v3 = vpop.eup %8244  ;;  %v20129_v27 = vsub.f32 %v14776_v54, %v15021_v7  ;;  %v20132_v54 = vsub.f32 %v14931_v0, %v15019_v52 }
 0xddc   : > { %v5376_v37 = vadd.f32 %v15216_v38, %v5375_v24  ;;  %8264 = vpow2.f32 %v5255_v63  ;;  %v5263_v24 = vmul.f32 1.442695, %v20127_v57  ;;  %v15248_v53 = vpop.eup %8246  ;;  %v5333_v63 = vmul.f32 1.442695, %v20130_v47 }
 0xddd   : > { %8266 = vpow2.f32 %v5321_v26  ;;  %v15254_v43 = vpop.eup %8248  ;;  %v20131_v26 = vsub.f32 %v14786_v14, %v15021_v7  ;;  %v20136_v47 = vsub.f32 %v14971_v16, %v15019_v52 }
 0xdde   : > { %v5377_v48 = vadd.f32 %v15225_v45, %v5376_v37  ;;  %8268 = vpow2.f32 %v5259_v36  ;;  %v5267_v37 = vmul.f32 1.442695, %v20129_v27  ;;  %v15259_v49 = vpop.eup %8250  ;;  %v5337_v36 = vmul.f32 1.442695, %v20132_v54 }
 0xddf   : > { %8270 = vpow2.f32 %v5325_v28  ;;  %v20135_v27 = vsub.f32 %v20088_v19, %v15021_v7 }
 0xde0   : > { %v5378_v56 = vadd.f32 %v15234_v17, %v5377_v48  ;;  %v15265_v15 = vpop.eup %8252  ;;  %8272 = vpow2.f32 %v5263_v24  ;;  %v5271_v48 = vmul.f32 1.442695, %v20131_v26  ;;  %v20134_v24 = vsub.f32 %v14960_v4, %v15019_v52 }
 0xde1   : > { %v15270_v18 = vpop.eup %8254  ;;  %8274 = vpow2.f32 %v5329_v58  ;;  %v5402_v41 = vadd.f32 %v15265_v15, %v15259_v49 }
 0xde2   : > { %v5379_v11 = vadd.f32 %v15243_v3, %v5378_v56  ;;  %v15278_v28 = vpop.eup %8256  ;;  %8276 = vpow2.f32 %v5267_v37  ;;  %v20133_v56 = vsub.f32 %v14796_v42, %v15021_v7  ;;  %v5341_v0 = vmul.f32 1.442695, %v20134_v24 }
 0xde3   : > { %v15283_v57 = vpop.eup %8258  ;;  %8278 = vpow2.f32 %v5333_v63  ;;  %v5403_v58 = vadd.f32 %v15278_v28, %v5402_v41  ;;  %v5279_v37 = vmul.f32 1.442695, %v20135_v27  ;;  %v5345_v63 = vmul.f32 1.442695, %v20136_v47 }
 0xde4   : > { %v5380_v55 = vadd.f32 %v15248_v53, %v5379_v11  ;;  %v5275_v14 = vmul.f32 1.442695, %v20133_v56  ;;  %v15290_v11 = vpop.eup %8260  ;;  %8280 = vpow2.f32 %v5271_v48  ;;  %v20137_v48 = vsub.f32 %v20089_v12, %v15021_v7 }
 0xde5   : > { %v15295_v42 = vpop.eup %8262  ;;  %8282 = vpow2.f32 %v5337_v36  ;;  %v20138_v36 = vsub.f32 %v14981_v51, %v15019_v52 }
 0xde6   : > { %v5381_v62 = vadd.f32 %v15254_v43, %v5380_v55  ;;  %v5404_v55 = vadd.f32 %v15290_v11, %v5403_v58  ;;  %v15302_v26 = vpop.eup %8264  ;;  %8284 = vpow2.f32 %v5275_v14  ;;  %v5283_v54 = vmul.f32 1.442695, %v20137_v48 }
 0xde7   : > { %v15307_v19 = vpop.eup %8266  ;;  %8286 = vpow2.f32 %v5341_v0  ;;  %v20139_v14 = vsub.f32 %v20090_v20, %v15021_v7  ;;  %v20140_v0 = vsub.f32 %v14991_v31, %v15019_v52 }
 0xde8   : > { %v5382_v50 = vadd.f32 %v15270_v18, %v5381_v62  ;;  %v5349_v62 = vmul.f32 1.442695, %v20138_v36  ;;  %v5405_v41 = vadd.f32 %v15302_v26, %v5404_v55  ;;  %v15314_v56 = vpop.eup %8268  ;;  %8288 = vpow2.f32 %v5279_v37 }
 0xde9   : > { %v5287_v24 = vmul.f32 1.442695, %v20139_v14  ;;  %v15319_v12 = vpop.eup %8270  ;;  %8290 = vpow2.f32 %v5345_v63  ;;  %v20141_v37 = vsub.f32 %v20091_v1, %v15021_v7  ;;  %v20142_v63 = vsub.f32 %v15001_v61, %v15019_v52 }
 0xdea   : > { %v5383_v4 = vadd.f32 %v15283_v57, %v5382_v50  ;;  %v5353_v50 = vmul.f32 1.442695, %v20140_v0  ;;  %v5406_v58 = vadd.f32 %v15314_v56, %v5405_v41  ;;  %v15326_v27 = vpop.eup %8272  ;;  %8292 = vpow2.f32 %v5283_v54 }
 0xdeb   : > { %v5291_v47 = vmul.f32 1.442695, %v20141_v37  ;;  %v15331_v20 = vpop.eup %8274  ;;  %8294 = vpow2.f32 %v5349_v62  ;;  %v20143_v54 = vsub.f32 %v20093_v30, %v15021_v7  ;;  %v20144_v62 = vsub.f32 %v15011_v34, %v15019_v52 }
 0xdec   : > { %v5384_v16 = vadd.f32 %v15295_v42, %v5383_v4  ;;  %v5357_v4 = vmul.f32 1.442695, %v20142_v63  ;;  %v5407_v55 = vadd.f32 %v15326_v27, %v5406_v58  ;;  %v15338_v48 = vpop.eup %8276  ;;  %8296 = vpow2.f32 %v5287_v24 }
 0xded   : > { %v5295_v36 = vmul.f32 1.442695, %v20143_v54  ;;  %v15343_v1 = vpop.eup %8278  ;;  %8298 = vpow2.f32 %v5353_v50  ;;  %v20145_v24 = vsub.f32 %v20094_v6, %v15021_v7  ;;  %v20146_v34 = vsub.f32 %v20095_v13, %v15021_v7 }
 0xdee   : > { %v5385_v51 = vadd.f32 %v15307_v19, %v5384_v16  ;;  %v5361_v16 = vmul.f32 1.442695, %v20144_v62  ;;  %v5408_v41 = vadd.f32 %v15338_v48, %v5407_v55  ;;  %v15350_v14 = vpop.eup %8280  ;;  %8300 = vpow2.f32 %v5291_v47 }
 0xdef   : > { %v5299_v0 = vmul.f32 1.442695, %v20145_v24  ;;  %v15355_v30 = vpop.eup %8282  ;;  %8302 = vpow2.f32 %v5357_v4  ;;  %v5303_v58 = vmul.f32 1.442695, %v20146_v34  ;;  %v20148_v4 = vsub.f32 %v20096_v35, %v15021_v7 }
 0xdf0   : > { %v5386_v31 = vadd.f32 %v15319_v12, %v5385_v51  ;;  %v5409_v51 = vadd.f32 %v15350_v14, %v5408_v41  ;;  %v15359_v52 = vpop.eup %8284  ;;  %8304 = vpow2.f32 %v5295_v36  ;;  %v20150_v62 = vsub.f32 %v20097_v21, %v15021_v7 }
 0xdf1   : > { %v15364_v37 = vpop.eup %8286  ;;  %8306 = vpow2.f32 %v5361_v16 }
 0xdf2   : > { %v5387_v61 = vadd.f32 %v15331_v20, %v5386_v31  ;;  %v5410_v47 = vadd.f32 %v15359_v52, %v5409_v51  ;;  %v15368_v63 = vpop.eup %8288  ;;  %8308 = vpow2.f32 %v5299_v0  ;;  %v5307_v31 = vmul.f32 1.442695, %v20148_v4  ;;  %v20152_v0 = vld [vmem:[#allocation89_spill] sm:$0xff]  ;;  %v20155_v4 = vld [vmem:[#allocation91_spill] sm:$0xff] }
 0xdf3   : > { %20147 = vst [vmem:[#allocation14_spill] sm:$0xff] %v15368_v63  ;;  %v15373_v55 = vpop.eup %8290  ;;  %8310 = vpow2.f32 %v5303_v58  ;;  %v5311_v16 = vmul.f32 1.442695, %v20150_v62  ;;  %v20153_v51 = vsub.f32 %v20099_v32, %v15021_v7 }
 0xdf4   : > { %v5388_v50 = vadd.f32 %v15343_v1, %v5387_v61  ;;  %v5411_v13 = vadd.f32 %v15368_v63, %v5410_v47  ;;  %v15377_v36 = vpop.eup %8292  ;;  %8312 = vpow2.f32 %v5307_v31 }
 0xdf5   : > { %20149 = vst [vmem:[#allocation11_spill] sm:$0xff] %v15377_v36  ;;  %v15382_v61 = vpop.eup %8294  ;;  %v5315_v34 = vmul.f32 1.442695, %v20153_v51  ;;  %8314 = vpow2.f32 %v5311_v16 }
 0xdf6   : > { %v5389_v6 = vadd.f32 %v15355_v30, %v5388_v50  ;;  %v5412_v35 = vadd.f32 %v15377_v36, %v5411_v13  ;;  %v15386_v24 = vpop.eup %8296  ;;  %v5216_v50 = vsub.f32 %v20152_v0, %v15021_v7  ;;  %v20156_v13 = vsub.f32 %v20100_v60, %v15021_v7 }
 0xdf7   : > { %20151 = vst [vmem:[#allocation100_spill] sm:$0xff] %v15386_v24  ;;  %v15393_v58 = vpop.eup %8298  ;;  %8316 = vpow2.f32 %v5315_v34 }
 0xdf8   : > { %v5390_v54 = vadd.f32 %v15364_v37, %v5389_v6  ;;  %v5413_v6 = vadd.f32 %v15386_v24, %v5412_v35  ;;  %v15397_v47 = vpop.eup %8300  ;;  %v5319_v31 = vmul.f32 1.442695, %v20156_v13  ;;  %v5323_v45 = vmul.f32 1.442695, %v5216_v50  ;;  %v20158_v13 = vld [vmem:[#allocation95_spill] sm:$0xff]  ;;  %v20159_v50 = vld [vmem:[#allocation68_spill] sm:$0xff] }
 0xdf9   : > { %20154 = vst [vmem:[#allocation9_spill] sm:$0xff] %v15397_v47  ;;  %v15404_v62 = vpop.eup %8302  ;;  %v5224_v34 = vsub.f32 %v20159_v50, %v15021_v7 }
 0xdfa   : > { %v5391_v41 = vadd.f32 %v15373_v55, %v5390_v54  ;;  %v5218_v54 = vsub.f32 %v20155_v4, %v15021_v7  ;;  %v5414_v0 = vadd.f32 %v15397_v47, %v5413_v6  ;;  %v15408_v51 = vpop.eup %8304  ;;  %8318 = vpow2.f32 %v5319_v31 }
 0xdfb   : > { %v15412_v38 = vpop.eup %8306  ;;  %8320 = vpow2.f32 %v5323_v45  ;;  %v20160_v45 = vsub.f32 %v20102_v8, %v15021_v7  ;;  %v20162_v8 = vsub.f32 %v20104_v9, %v15021_v7 }
 0xdfc   : > { %v5392_v21 = vadd.f32 %v15382_v61, %v5391_v41  ;;  %v20157_v41 = vld [vmem:[#allocation92_spill] sm:$0xff]  ;;  %v5415_v60 = vadd.f32 %v15408_v51, %v5414_v0  ;;  %v15416_v4 = vpop.eup %8308  ;;  %v5327_v6 = vmul.f32 1.442695, %v5218_v54 }
 0xdfd   : > { %v5220_v35 = vsub.f32 %v20157_v41, %v15021_v7  ;;  %v15422_v41 = vpop.eup %8310 }
 0xdfe   : > { %v5393_v32 = vadd.f32 %v15393_v58, %v5392_v21  ;;  %v5222_v21 = vsub.f32 %v20158_v13, %v15021_v7  ;;  %v5416_v24 = vadd.f32 %v15416_v4, %v5415_v60  ;;  %v15427_v5 = vpop.eup %8312  ;;  %8322 = vpow2.f32 %v5327_v6 }
 0xdff   : > { %v5339_v60 = vmul.f32 1.442695, %v5224_v34 }
 0xe00   : > { %v5394_v16 = vadd.f32 %v15404_v62, %v5393_v32  ;;  %v5331_v32 = vmul.f32 1.442695, %v5220_v35  ;;  %v5417_v0 = vadd.f32 %v15422_v41, %v5416_v24  ;;  %v5335_v13 = vmul.f32 1.442695, %v5222_v21 }
 0xe01   : > { %v5343_v24 = vmul.f32 1.442695, %v20160_v45 }
 0xe02   : > { %v5395_v47 = vadd.f32 %v15412_v38, %v5394_v16  ;;  %v5418_v54 = vadd.f32 %v15427_v5, %v5417_v0  ;;  %v15430_v16 = vpop.eup %8314  ;;  %8324 = vpow2.f32 %v5331_v32 }
 0xe03   : > { %v15433_v50 = vpop.eup %8316  ;;  %8326 = vpow2.f32 %v5335_v13  ;;  %v5351_v13 = vmul.f32 1.442695, %v20162_v8 }
 0xe04   : > { %v5396_v39 = vrot.slane %v5395_v47, 4  ;;  %v5419_v63 = vadd.f32 %v15430_v16, %v5418_v54  ;;  %8328 = vpow2.f32 %v5339_v60 }
 0xe05   : > { %8330 = vpow2.f32 %v5343_v24  ;;  %v20164_v24 = vsub.f32 %v20106_v23, %v15021_v7 }
 0xe06   : > { %v5397_v31 = vadd.f32 %v5396_v39, %v5395_v47  ;;  %v5420_v21 = vadd.f32 %v15433_v50, %v5419_v63  ;;  %v15439_v39 = vpop.eup %8318  ;;  %v20161_v47 = vsub.f32 %v20103_v44, %v15021_v7  ;;  %v20163_v63 = vsub.f32 %v20105_v29, %v15021_v7 }
 0xe07   : > { %v15445_v0 = vpop.eup %8320  ;;  %v5359_v9 = vmul.f32 1.442695, %v20164_v24 }
 0xe08   : > { %v5398_v36 = vrot.slane %v5397_v31, 2  ;;  %v5347_v6 = vmul.f32 1.442695, %v20161_v47  ;;  %v5421_v32 = vadd.f32 %v15439_v39, %v5420_v21  ;;  %v15454_v54 = vpop.eup %8322  ;;  %v20165_v47 = vsub.f32 %v15016_v33, %v15021_v7 }
 0xe0a   : > { %v5399_v35 = vadd.f32 %v5398_v36, %v5397_v31  ;;  %v5355_v36 = vmul.f32 1.442695, %v20163_v63  ;;  %v5422_v31 = vadd.f32 %v15445_v0, %v5421_v32  ;;  %8332 = vpow2.f32 %v5347_v6 }
 0xe0b   : > { %8334 = vpow2.f32 %v5351_v13 }
 0xe0c   : > { %v5400_v34 = vrot.slane %v5399_v35, 1  ;;  %v5423_v60 = vadd.f32 %v15454_v54, %v5422_v31  ;;  %v15457_v45 = vpop.eup %8324  ;;  %8336 = vpow2.f32 %v5355_v36 }
 0xe0d   : > { %v15463_v29 = vpop.eup %8326 }
 0xe0e   : > { %v5401_v44 = vadd.f32 %v5400_v34, %v5399_v35  ;;  %v5424_v21 = vadd.f32 %v15457_v45, %v5423_v60  ;;  %v5363_v35 = vmul.f32 1.442695, %v20165_v47  ;;  %v15469_v34 = vpop.eup %8328 }
 0xe0f   : > { %v15472_v8 = vpop.eup %8330 }
 0xe10   : > { %8338 = vrcp.f32 %v5401_v44  ;;  %v5425_v6 = vadd.f32 %v15463_v29, %v5424_v21 }
 0xe11   : > { %8340 = vpow2.f32 %v5359_v9 }
 0xe12   : > { %v5426_v32 = vadd.f32 %v15469_v34, %v5425_v6  ;;  %8342 = vpow2.f32 %v5363_v35 }
 0xe14   : > { %v5427_v23 = vadd.f32 %v15472_v8, %v5426_v32  ;;  %v15475_v13 = vpop.eup %8332 }
 0xe15   : > { %v15478_v36 = vpop.eup %8334 }
 0xe16   : > { %v5428_v63 = vadd.f32 %v15475_v13, %v5427_v23  ;;  %v15480_v33 = vpop.eup %8336 }
 0xe18   : > { %v5429_v7 = vadd.f32 %v15478_v36, %v5428_v63 }
 0xe1a   : > { %v15483_v31 = vpop.eup %8338  ;;  %v5430_v44 = vadd.f32 %v15480_v33, %v5429_v7 }
 0xe1b   : > { %v15486_v60 = vpop.eup %8340  ;;  %v15491_v9 = vmul.f32 %v15483_v31, %v15234_v17  ;;  %v15495_v21 = vmul.f32 %v15483_v31, %v15243_v3  ;;  %v15501_v35 = vmul.f32 %v15483_v31, %v15248_v53  ;;  %v15505_v6 = vmul.f32 %v15483_v31, %v15254_v43 }
 0xe1c   : > { %v5431_v24 = vadd.f32 %v15486_v60, %v5430_v44  ;;  %v15497_v47 = vpop.eup %8342  ;;  %v15512_v23 = vmul.f32 %v15483_v31, %v15270_v18  ;;  %v15516_v3 = vmul.f32 %v15483_v31, %v15283_v57  ;;  %v15522_v43 = vmul.f32 %v15483_v31, %v15295_v42 }
 0xe1d   : > { %v15526_v63 = vmul.f32 %v15483_v31, %v15307_v19  ;;  %v15530_v7 = vmul.f32 %v15483_v31, %v15319_v12  ;;  %v15536_v44 = vmul.f32 %v15483_v31, %v15331_v20  ;;  %v15540_v42 = vmul.f32 %v15483_v31, %v15343_v1 }
 0xe1e   : > { %v5432_v32 = vadd.f32 %v15497_v47, %v5431_v24  ;;  %v15546_v24 = vmul.f32 %v15483_v31, %v15355_v30  ;;  %v15550_v12 = vmul.f32 %v15483_v31, %v15364_v37  ;;  %v15554_v57 = vmul.f32 %v15483_v31, %v15373_v55 }
 0xe1f   : > { %20166 = vst [vmem:[#allocation22_spill] sm:$0xff] %v15540_v42  ;;  %v15560_v53 = vmul.f32 %v15483_v31, %v15382_v61  ;;  %v15564_v30 = vmul.f32 %v15483_v31, %v15393_v58  ;;  %v15572_v55 = vmul.f32 %v15483_v31, %v15404_v62  ;;  %v5440_v62 = vmul.f32 %v15483_v31, %v15099_v2  ;;  %v20170_v42 = vld [vmem:[#allocation56_spill] sm:$0xff] }
 0xe20   : > { %v5433_v18 = vrot.slane %v5432_v32, 4  ;;  %20167 = vst [vmem:[#allocation17_spill] sm:$0xff] %v15550_v12  ;;  %20168 = vst [vmem:[#allocation10_spill] sm:$0xff] %v15554_v57  ;;  %v20169_v12 = vld [vmem:[#allocation52_spill] sm:$0xff] }
 0xe21   : > { %v5445_v57 = vmul.f32 %v15483_v31, %v20169_v12 }
 0xe22   : > { %v5434_v20 = vadd.f32 %v5433_v18, %v5432_v32  ;;  %v15576_v32 = vmul.f32 %v15483_v31, %v15412_v38  ;;  %v5443_v38 = vmul.f32 %v15483_v31, %v15107_v22  ;;  %v5447_v18 = vmul.f32 %v15483_v31, %v20170_v42 }
 0xe24   : > { %v5435_v61 = vrot.slane %v5434_v20, 2  ;;  %v5505_v42 = vpack.c.bf16 %v5443_v38, %v5440_v62 }
 0xe26   : > { %v5436_v1 = vadd.f32 %v5435_v61, %v5434_v20  ;;  %v20171_v61 = vld [vmem:[#allocation80_spill] sm:$0xff] }
 0xe28   : > { %v5437_v37 = vrot.slane %v5436_v1, 1 }
 0xe2a   : > { %v5438_v17 = vadd.f32 %v5437_v37, %v5436_v1 }
 0xe2c   : > { %8344 = vrcp.f32 %v5438_v17 }
 0xe36   : > { %v15582_v19 = vpop.eup %8344 }
 0xe37   : > { %v5442_v20 = vmul.f32 %v15582_v19, %v15259_v49  ;;  %v5444_v17 = vmul.f32 %v15582_v19, %v15265_v15  ;;  %v5446_v1 = vmul.f32 %v15582_v19, %v15278_v28  ;;  %v5448_v2 = vmul.f32 %v15582_v19, %v15290_v11 }
 0xe38   : > { %v5450_v22 = vmul.f32 %v15582_v19, %v15302_v26  ;;  %v5452_v12 = vmul.f32 %v15582_v19, %v15314_v56  ;;  %v5449_v49 = vmul.f32 %v15483_v31, %v20171_v61  ;;  %v5451_v15 = vmul.f32 %v15483_v31, %v15159_v46 }
 0xe39   : > { %v5506_v37 = vpack.c.bf16 %v5444_v17, %v5442_v20  ;;  %v5453_v28 = vmul.f32 %v15483_v31, %v15168_v10  ;;  %v5508_v58 = vpack.c.bf16 %v5448_v2, %v5446_v1  ;;  %v5507_v11 = vpack.c.bf16 %v5447_v18, %v5445_v57 }
 0xe3a   : > { %v5454_v20 = vmul.f32 %v15582_v19, %v15326_v27  ;;  %v15614_v26 = vmul.f32 %v15582_v19, %v15408_v51  ;;  %v5456_v56 = vmul.f32 %v15582_v19, %v15338_v48  ;;  %v5472_v46 = vmul.f32 %v15582_v19, %v15416_v4 }
 0xe3b   : > { %5543 = vmatprep.subr.bf16.mxu1 %v5506_v37  ;;  %v5474_v10 = vmul.f32 %v15582_v19, %v15422_v41  ;;  %v5476_v57 = vmul.f32 %v15582_v19, %v15427_v5  ;;  %v5510_v18 = vpack.c.bf16 %v5452_v12, %v5450_v22  ;;  %v5478_v27 = vmul.f32 %v15582_v19, %v15430_v16 }
 0xe3c   : > { %5544 = vmatpush1.bf16.msra.mxu1 %v5505_v42  ;;  %v5480_v51 = vmul.f32 %v15582_v19, %v15433_v50  ;;  %v5482_v48 = vmul.f32 %v15582_v19, %v15439_v39  ;;  %v5520_v62 = vpack.c.bf16 %v5472_v46, %v15614_v26  ;;  %v5484_v41 = vmul.f32 %v15582_v19, %v15445_v0  ;;  %v20176_v46 = vld [vmem:[#allocation100_spill] sm:$0xff] }
 0xe3d   : > { %5545 = vmatprep.subr.bf16.mxu1 %v5508_v58  ;;  %v5522_v4 = vpack.c.bf16 %v5476_v57, %v5474_v10  ;;  %v5486_v5 = vmul.f32 %v15582_v19, %v15454_v54  ;;  %v5488_v38 = vmul.f32 %v15582_v19, %v15457_v45  ;;  %v5490_v16 = vmul.f32 %v15582_v19, %v15463_v29  ;;  %v20177_v10 = vld [vmem:[#allocation9_spill] sm:$0xff] }
 0xe3e   : > { %v5524_v58 = vpack.c.bf16 %v5480_v51, %v5478_v27  ;;  %v5492_v50 = vmul.f32 %v15582_v19, %v15469_v34  ;;  %v5526_v39 = vpack.c.bf16 %v5484_v41, %v5482_v48  ;;  %v5494_v17 = vmul.f32 %v15582_v19, %v15472_v8  ;;  %v20178_v27 = vld [vmem:[#allocation62_spill] sm:$0xff]  ;;  %v20179_v48 = vld [vmem:[#allocation76_spill] sm:$0xff] }
 0xe3f   : > { %v5496_v0 = vmul.f32 %v15582_v19, %v15475_v13  ;;  %v5498_v54 = vmul.f32 %v15582_v19, %v15478_v36  ;;  %v5528_v1 = vpack.c.bf16 %v5488_v38, %v5486_v5  ;;  %v5500_v29 = vmul.f32 %v15582_v19, %v15480_v33 }
 0xe40   : > { %5546 = vmatpush1.bf16.msra.mxu1 %v5507_v11  ;;  %v5530_v45 = vpack.c.bf16 %v5492_v50, %v5490_v16  ;;  %v5502_v34 = vmul.f32 %v15582_v19, %v15486_v60  ;;  %v5509_v2 = vpack.c.bf16 %v5451_v15, %v5449_v49  ;;  %v5455_v37 = vmul.f32 %v15483_v31, %v15174_v59  ;;  %v20173_v11 = vld [vmem:[#allocation11_spill] sm:$0xff] }
 0xe41   : > { %5547 = vmatprep.subr.bf16.mxu1 %v5510_v18  ;;  %v5532_v8 = vpack.c.bf16 %v5496_v0, %v5494_v17  ;;  %v5504_v13 = vmul.f32 %v15582_v19, %v15497_v47  ;;  %v5512_v22 = vpack.c.bf16 %v5456_v56, %v5454_v20  ;;  %v5458_v36 = vmul.f32 %v15582_v19, %v15350_v14  ;;  %v20172_v47 = vld [vmem:[#allocation14_spill] sm:$0xff]  ;;  %v20174_v20 = vld [vmem:[#allocation64_spill] sm:$0xff] }
 0xe42   : > { %v5460_v12 = vmul.f32 %v15582_v19, %v15359_v52  ;;  %v5534_v42 = vpack.c.bf16 %v5500_v29, %v5498_v54  ;;  %v5511_v60 = vpack.c.bf16 %v5455_v37, %v5453_v28  ;;  %v5457_v61 = vmul.f32 %v15483_v31, %v15180_v40  ;;  %v20175_v28 = vld [vmem:[#allocation58_spill] sm:$0xff]  ;;  %v5620_v29 = vpop.trf.xlu1 }
 0xe43   : > { %v5536_v33 = vpack.c.bf16 %v5504_v13, %v5502_v34  ;;  %v5459_v59 = vmul.f32 %v15483_v31, %v15189_v25  ;;  %v5462_v15 = vmul.f32 %v15582_v19, %v20172_v47  ;;  %v5464_v14 = vmul.f32 %v15582_v19, %v20173_v11 }
 0xe44   : > { %5548 = vmatpush1.bf16.msra.mxu1 %v5509_v2  ;;  %v5514_v49 = vpack.c.bf16 %v5460_v12, %v5458_v36  ;;  %v5461_v26 = vmul.f32 %v15483_v31, %v20174_v20  ;;  %v5463_v56 = vmul.f32 %v15483_v31, %v20175_v28  ;;  %v5466_v25 = vmul.f32 %v15582_v19, %v20176_v46  ;;  %v20211_v12 = vld [vmem:[#allocation19_spill] sm:$0xff] }
 0xe45   : > { %5549 = vmatprep.subr.bf16.mxu1 %v5512_v22  ;;  %v5513_v52 = vpack.c.bf16 %v5459_v59, %v5457_v61  ;;  %v5516_v40 = vpack.c.bf16 %v5464_v14, %v5462_v15  ;;  %v5468_v57 = vmul.f32 %v15582_v19, %v20177_v10  ;;  %v5465_v51 = vmul.f32 %v15483_v31, %v20178_v27 }
 0xe46   : > { %v5515_v18 = vpack.c.bf16 %v5463_v56, %v5461_v26  ;;  %v5467_v41 = vmul.f32 %v15483_v31, %v20179_v48  ;;  %v20180_v16 = vpack.c.bf16 %v15495_v21, %v15491_v9  ;;  %v20181_v19 = vpack.c.bf16 %v15505_v6, %v15501_v35  ;;  %v20185_v21 = vld [vmem:[#allocation22_spill] sm:$0xff]  ;;  %v5621_v34 = vpop.trf.xlu1 }
 0xe47   : > { %v5518_v5 = vpack.c.bf16 %v5468_v57, %v5466_v25  ;;  %v20182_v50 = vpack.c.bf16 %v15516_v3, %v15512_v23  ;;  %v20183_v31 = vpack.c.bf16 %v15526_v63, %v15522_v43  ;;  %v20184_v9 = vpack.c.bf16 %v15536_v44, %v15530_v7  ;;  %v20187_v6 = vld [vmem:[#allocation10_spill] sm:$0xff]  ;;  %v20191_v43 = vld [vmem:[#allocation8_spill] sm:$0xff]  ;;  %v20192_v7 = vld [vmem:[#allocation7_spill] sm:$0xff] }
 0xe48   : > { %5550 = vmatpush1.bf16.msra.mxu1 %v5511_v60  ;;  %v5517_v38 = vpack.c.bf16 %v5467_v41, %v5465_v51  ;;  %v20186_v35 = vpack.c.bf16 %v15546_v24, %v20185_v21  ;;  %v20190_v3 = vpack.c.bf16 %v15564_v30, %v15560_v53  ;;  %v5629_v63 = vrot.slane %v20191_v43, 4  ;;  %v20194_v24 = vld [vmem:[#allocation18_spill] sm:$0xff]  ;;  %v5604_v53 = vpop.trf.xlu0 }
 0xe49   : > { %5551 = vmatprep.subr.bf16.mxu1 %v5514_v49  ;;  %v5628_v44 = vrot.slane %v20192_v7, 4  ;;  %v20197_v17 = vmov 0   ;;  %v20301_v56 = vld [vmem:[#allocation82_spill] sm:$0xff]  ;;  %v20305_v7 = vld [vmem:[#allocation85_spill] sm:$0xff] }
 0xe4a   : > { %v5622_v2 = vpop.trf.xlu1 }
 0xe4c   : > { %5552 = vmatpush1.bf16.msra.mxu1 %v5513_v52  ;;  %v5605_v30 = vpop.trf.xlu0 }
 0xe4d   : > { %5553 = vmatprep.subr.bf16.mxu1 %v5516_v40 }
 0xe4e   : > { %v5623_v37 = vpop.trf.xlu1 }
 0xe50   : > { %5554 = vmatpush1.bf16.msra.mxu1 %v5515_v18 }
 0xe51   : > { %5555 = vmatprep.subr.bf16.mxu1 %v5518_v5 }
 0xe54   : > { %5556 = vmatpush1.bf16.msra.mxu1 %v5517_v38 }
 0xe55   : > { %5557 = vmatprep.subr.bf16.mxu1 %v5520_v62  ;;  %v20188_v62 = vld [vmem:[#allocation17_spill] sm:$0xff] }
 0xe56   : > { %v20189_v23 = vpack.c.bf16 %v20187_v6, %v20188_v62 }
 0xe58   : > { %5558 = vmatpush1.bf16.msra.mxu1 %v20180_v16 }
 0xe59   : > { %5559 = vmatprep.subr.bf16.mxu1 %v5522_v4  ;;  %v20193_v4 = vpack.c.bf16 %v15576_v32, %v15572_v55  ;;  %v5606_v55 = vpop.trf.xlu0 }
 0xe5c   : > { %5560 = vmatpush1.bf16.msra.mxu1 %v20181_v19 }
 0xe5d   : > { %5561 = vmatprep.subr.bf16.mxu1 %v5524_v58  ;;  %v5539_v58 = vrot.slane %v20194_v24, 2  ;;  %v5607_v32 = vpop.trf.xlu0 }
 0xe60   : > { %5562 = vmatpush1.bf16.msra.mxu1 %v20182_v50 }
 0xe61   : > { %5563 = vmatprep.subr.bf16.mxu1 %v5526_v39  ;;  %v5679_v39 = vsel %vm20196_vm0, %v5628_v44, 0  ;;  %vm20201_vm0 = vmmov %vm20198_vm1  ;;  %v5608_v0 = vpop.trf.xlu0 }
 0xe64   : > { %5564 = vmatpush1.bf16.msra.mxu1 %v20183_v31 }
 0xe65   : > { %5565 = vmatprep.subr.bf16.mxu1 %v5528_v1  ;;  %v5609_v54 = vpop.trf.xlu0 }
 0xe68   : > { %5566 = vmatpush1.bf16.msra.mxu1 %v20184_v9 }
 0xe69   : > { %5567 = vmatprep.subr.bf16.mxu1 %v5530_v45  ;;  %v5610_v1 = vpop.trf.xlu0 }
 0xe6c   : > { %5568 = vmatpush1.bf16.msra.mxu1 %v20186_v35 }
 0xe6d   : > { %5569 = vmatprep.subr.bf16.mxu1 %v5532_v8  ;;  %v5611_v45 = vpop.trf.xlu0  ;;  %v5624_v8 = vpop.trf.xlu1 }
 0xe70   : > { %5570 = vmatpush1.bf16.msra.mxu1 %v20189_v23 }
 0xe71   : > { %5571 = vmatprep.subr.bf16.mxu1 %v5534_v42  ;;  %v5625_v13 = vpop.trf.xlu1  ;;  %v7214_v42 = vrot.slane %v20211_v12, 6 }
 0xe74   : > { %5572 = vmatpush1.bf16.msra.mxu1 %v20190_v3 }
 0xe75   : > { %5573 = vmatprep.subr.bf16.mxu1 %v5536_v33  ;;  %v5626_v22 = vpop.trf.xlu1 }
 0xe78   : > { %5574 = vmatpush1.bf16.msra.mxu1 %v20193_v4 }
 0xe79   : > { %7463 = vmatprep.subr.msk.bf16.mxu1 %vm20195_vm14, %v5629_v63  ;;  %vm20202_vm14 = vmmov %vm20201_vm0  ;;  %v5627_v36 = vpop.trf.xlu1 }
 0xe7b   : > { %5576 = vmatmul.mubr.bf16.vlgmr.msra.gmra.mrb[224].mxu1 %v5539_v58 }
 0xe7c   : > { %5685 = vmatpush1.bf16.msra.mxu1 %v5679_v39  ;;  %5716 = vmatprep.mubr.bf16.mxu1 %v20197_v17 }
 0xe83   : > { %7464 = vmatmul.mubr.msk.bf16.vlgmr.msra.gmra.mrb[228].mxu1 %vm20198_vm1, %v5604_v53  ;;  %vm20203_vm1 = vmmov %vm20201_vm0 }
 0xe84   : > { %5726 = vmatprep.mubr.bf16.mxu1 %v20197_v17 }
 0xe8b   : > { %7465 = vmatmul.mubr.msk.bf16.gmra.mrb[232].mxu1 %vm20199_vm2, %v5605_v30  ;;  %vm20204_vm2 = vmmov %vm20201_vm0 }
 0xe8c   : > { %5736 = vmatprep.mubr.bf16.mxu1 %v20197_v17 }
 0xe93   : > { %7466 = vmatmul.mubr.msk.bf16.gmra.mrb[236].mxu1 %vm20200_vm15, %v5606_v55  ;;  %vm20205_vm15 = vmmov %vm20201_vm0 }
 0xe94   : > { %5746 = vmatprep.mubr.bf16.mxu1 %v20197_v17 }
 0xe9b   : > { %7467 = vmatmul.mubr.msk.bf16.gmra.mrb[240].mxu1 %vm20201_vm0, %v5607_v32 }
 0xe9c   : > { %5756 = vmatprep.mubr.bf16.mxu1 %v20197_v17 }
 0xea3   : > { %7468 = vmatmul.mubr.msk.bf16.gmra.mrb[244].mxu1 %vm20202_vm14, %v5608_v0  ;;  %vm20206_vm14 = vmmov %vm20201_vm0 }
 0xea4   : > { %5766 = vmatprep.mubr.bf16.mxu1 %v20197_v17 }
 0xeab   : > { %7469 = vmatmul.mubr.msk.bf16.gmra.mrb[248].mxu1 %vm20203_vm1, %v5609_v54  ;;  %vm20207_vm1 = vmmov %vm20201_vm0  ;;  %v20224_v54 = vld [vmem:[#allocation38_spill] sm:$0xff] }
 0xeac   : > { %5776 = vmatprep.mubr.bf16.mxu1 %v20197_v17 }
 0xeb3   : > { %7470 = vmatmul.mubr.msk.bf16.gmra.mrb[252].mxu1 %vm20204_vm2, %v5610_v1  ;;  %vm20208_vm2 = vmmov %vm20201_vm0 }
 0xeb4   : > { %5786 = vmatprep.mubr.bf16.mxu1 %v20197_v17 }
 0xebb   : > { %7471 = vmatmul.mubr.msk.bf16.gmra.mrb[0].mxu1 %vm20205_vm15, %v5611_v45  ;;  %vm20209_vm15 = vmmov %vm20201_vm0 }
 0xebc   : > { %5796 = vmatprep.mubr.bf16.mxu1 %v20197_v17 }
 0xec3   : > { %7472 = vmatmul.mubr.msk.bf16.gmra.mrb[4].mxu1 %vm20201_vm0, %v5620_v29 }
 0xec4   : > { %5806 = vmatprep.mubr.bf16.mxu1 %v20197_v17 }
 0xecb   : > { %7473 = vmatmul.mubr.msk.bf16.gmra.mrb[8].mxu1 %vm20206_vm14, %v5621_v34  ;;  %vm20210_vm14 = vmmov %vm20201_vm0  ;;  %v20226_v34 = vld [vmem:[#allocation39_spill] sm:$0xff] }
 0xecc   : > { %5816 = vmatprep.mubr.bf16.mxu1 %v20197_v17 }
 0xed3   : > { %7474 = vmatmul.mubr.msk.bf16.gmra.mrb[12].mxu1 %vm20207_vm1, %v5622_v2  ;;  %vm20212_vm1 = vmmov %vm20201_vm0 }
 0xed4   : > { %5826 = vmatprep.mubr.bf16.mxu1 %v20197_v17 }
 0xedb   : > { %7475 = vmatmul.mubr.msk.bf16.gmra.mrb[16].mxu1 %vm20208_vm2, %v5623_v37  ;;  %vm20225_vm2 = vnez %v20224_v54 }
 0xedc   : > { %5836 = vmatprep.mubr.bf16.mxu1 %v20197_v17 }
 0xee3   : > { %7476 = vmatmul.mubr.msk.bf16.gmra.mrb[20].mxu1 %vm20209_vm15, %v5624_v8  ;;  %vm20227_vm15 = vnez %v20226_v34 }
 0xee4   : > { %5846 = vmatprep.mubr.bf16.mxu1 %v20197_v17 }
 0xeeb   : > { %7477 = vmatmul.mubr.msk.bf16.gmra.mrb[24].mxu1 %vm20201_vm0, %v5625_v13  ;;  %v20228_v13 = vld [vmem:[#allocation40_spill] sm:$0xff] }
 0xeec   : > { %5856 = vmatprep.mubr.bf16.mxu1 %v20197_v17  ;;  %vm20229_vm0 = vnez %v20228_v13 }
 0xef3   : > { %7478 = vmatmul.mubr.msk.bf16.gmra.mrb[28].mxu1 %vm20210_vm14, %v5626_v22 }
 0xef4   : > { %5866 = vmatprep.mubr.bf16.mxu1 %v20197_v17  ;;  %v20303_v17 = vld [vmem:[#allocation83_spill] sm:$0xff] }
 0xefb   : > { %7479 = vmatmul.mubr.msk.bf16.gmra.mrb[32].mxu1 %vm20212_vm1, %v5627_v36 }
 0xefc   : > { %7249 = vmatprep.mubr.bf16.mxu1 %v7214_v42  ;;  %v20230_v42 = vld [vmem:[#allocation41_spill] sm:$0xff] }
 0xefd   : > { %vm20231_vm14 = vnez %v20230_v42 }
 0xf4e   : > { %v5577_v33 = vpop.f32.mrb[224].mxu1 }
 0xf4f   : > { %v5586_v60 = vrot.slane %v5577_v33, 4  ;;  %v5579_v61 = vpop.f32.mrb[225].mxu1 }
 0xf50   : > { %v5587_v59 = vrot.slane %v5579_v61, 4  ;;  %v5581_v49 = vpop.f32.mrb[226].mxu1 }
 0xf51   : > { %5590 = vst [vmem:[%s10507_s27 + $0x20] sm:$0xf0] %v5586_v60  ;;  %v5582_v47 = vpop.f32.mrb[227].mxu1 }
 0xf52   : > { %5591 = vst [vmem:[%s10507_s27 + $0x28] sm:$0xf0] %v5587_v59  ;;  %v20232_v59 = vld [vmem:[#allocation42_spill] sm:$0xff] }
 0xf53   : > { %vm20233_vm1 = vnez %v20232_v59 }
 0xf56   : > { %v5718_v15 = vpop.f32.mrb[228].mxu1 }
 0xf57   : > { %v5720_v11 = vpop.f32.mrb[229].mxu1  ;;  %v15748_v28 = vsel %vm9063_vm3, %v5718_v15, -1e+30 }
 0xf58   : > { %v5722_v14 = vpop.f32.mrb[230].mxu1  ;;  %v15756_v10 = vsel %vm9075_vm5, %v5720_v11, -1e+30  ;;  %v20234_v11 = vld [vmem:[#allocation43_spill] sm:$0xff] }
 0xf59   : > { %v5724_v52 = vpop.f32.mrb[231].mxu1  ;;  %v15766_v41 = vsel %vm9087_vm7, %v5722_v14, -1e+30 }
 0xf5a   : > { %v15776_v31 = vsel %vm9099_vm9, %v5724_v52, -1e+30 }
 0xf5e   : > { %v5728_v20 = vpop.f32.mrb[232].mxu1 }
 0xf5f   : > { %v15752_v40 = vsel %vm9069_vm4, %v5728_v20, -1e+30  ;;  %v5730_v46 = vpop.f32.mrb[233].mxu1 }
 0xf60   : > { %v5941_v57 = vmax.f32 %v15748_v28, %v15752_v40  ;;  %v15762_v27 = vsel %vm9081_vm6, %v5730_v46, -1e+30  ;;  %v5732_v51 = vpop.f32.mrb[234].mxu1  ;;  %v20236_v46 = vld [vmem:[#allocation45_spill] sm:$0xff] }
 0xf61   : > { %v5978_v5 = vmax.f32 %v15756_v10, %v15762_v27  ;;  %v15772_v16 = vsel %vm9093_vm8, %v5732_v51, -1e+30  ;;  %v5734_v19 = vpop.f32.mrb[235].mxu1 }
 0xf62   : > { %v5942_v9 = vmax.f32 %v15766_v41, %v15772_v16  ;;  %v15782_v35 = vsel %vm9105_vm10, %v5734_v19, -1e+30  ;;  %v20238_v19 = vld [vmem:[#allocation44_spill] sm:$0xff] }
 0xf63   : > { %v5979_v6 = vmax.f32 %v15776_v31, %v15782_v35 }
 0xf66   : > { %v5738_v62 = vpop.f32.mrb[236].mxu1 }
 0xf67   : > { %v15788_v3 = vsel %vm9151_vm11, %v5738_v62, -1e+30  ;;  %v5740_v63 = vpop.f32.mrb[237].mxu1 }
 0xf68   : > { %v5943_v44 = vmax.f32 %v5941_v57, %v15788_v3  ;;  %v15793_v58 = vsel %vm9157_vm12, %v5740_v63, -1e+30  ;;  %v5742_v39 = vpop.f32.mrb[238].mxu1  ;;  %v20240_v63 = vld [vmem:[#allocation46_spill] sm:$0xff] }
 0xf69   : > { %v5980_v53 = vmax.f32 %v5978_v5, %v15793_v58  ;;  %v15798_v55 = vsel %vm9163_vm13, %v5742_v39, -1e+30  ;;  %v5744_v32 = vpop.f32.mrb[239].mxu1 }
 0xf6a   : > { %v5944_v0 = vmax.f32 %v5942_v9, %v15798_v55  ;;  %v15803_v1 = vsel %vm20225_vm2, %v5744_v32, -1e+30  ;;  %v20242_v32 = vld [vmem:[#allocation47_spill] sm:$0xff] }
 0xf6b   : > { %v5981_v45 = vmax.f32 %v5979_v6, %v15803_v1 }
 0xf6e   : > { %v5748_v29 = vpop.f32.mrb[240].mxu1 }
 0xf6f   : > { %v15808_v2 = vsel %vm20227_vm15, %v5748_v29, -1e+30  ;;  %v5750_v37 = vpop.f32.mrb[241].mxu1 }
 0xf70   : > { %v5945_v8 = vmax.f32 %v5943_v44, %v15808_v2  ;;  %v15813_v22 = vsel %vm20229_vm0, %v5750_v37, -1e+30  ;;  %v5752_v36 = vpop.f32.mrb[242].mxu1  ;;  %vm20235_vm0 = vnez %v20234_v11  ;;  %v20244_v37 = vld [vmem:[#allocation48_spill] sm:$0xff] }
 0xf71   : > { %v5982_v12 = vmax.f32 %v5980_v53, %v15813_v22  ;;  %v15818_v33 = vsel %vm20231_vm14, %v5752_v36, -1e+30  ;;  %v5754_v60 = vpop.f32.mrb[243].mxu1  ;;  %vm20237_vm14 = vnez %v20236_v46 }
 0xf72   : > { %v5946_v61 = vmax.f32 %v5944_v0, %v15818_v33  ;;  %v15823_v49 = vsel %vm20233_vm1, %v5754_v60, -1e+30  ;;  %vm20239_vm1 = vnez %v20238_v19  ;;  %v20247_v60 = vld [vmem:[#allocation49_spill] sm:$0xff] }
 0xf73   : > { %v5983_v47 = vmax.f32 %v5981_v45, %v15823_v49 }
 0xf76   : > { %v5758_v15 = vpop.f32.mrb[244].mxu1 }
 0xf77   : > { %v15828_v14 = vsel %vm20235_vm0, %v5758_v15, -1e+30  ;;  %v5760_v52 = vpop.f32.mrb[245].mxu1  ;;  %vm20241_vm0 = vnez %v20240_v63 }
 0xf78   : > { %v5947_v20 = vmax.f32 %v5945_v8, %v15828_v14  ;;  %v15833_v57 = vsel %vm20237_vm14, %v5760_v52, -1e+30  ;;  %v5762_v51 = vpop.f32.mrb[246].mxu1  ;;  %vm20243_vm14 = vnez %v20242_v32  ;;  %v20249_v52 = vld [vmem:[#allocation51_spill] sm:$0xff] }
 0xf79   : > { %v5984_v5 = vmax.f32 %v5982_v12, %v15833_v57  ;;  %v15838_v9 = vsel %vm20239_vm1, %v5762_v51, -1e+30  ;;  %v5764_v6 = vpop.f32.mrb[247].mxu1  ;;  %vm20245_vm1 = vnez %v20244_v37 }
 0xf7a   : > { %v5948_v62 = vmax.f32 %v5946_v61, %v15838_v9  ;;  %v15843_v44 = vsel %vm20241_vm0, %v5764_v6, -1e+30  ;;  %vm20248_vm0 = vnez %v20247_v60  ;;  %v20254_v60 = vld [vmem:[#allocation54_spill] sm:$0xff] }
 0xf7b   : > { %v5985_v39 = vmax.f32 %v5983_v47, %v15843_v44 }
 0xf7e   : > { %v5768_v53 = vpop.f32.mrb[248].mxu1 }
 0xf7f   : > { %v15848_v0 = vsel %vm20243_vm14, %v5768_v53, -1e+30  ;;  %v5770_v45 = vpop.f32.mrb[249].mxu1  ;;  %vm20250_vm14 = vnez %v20249_v52  ;;  %v20252_v53 = vld [vmem:[#allocation53_spill] sm:$0xff]  ;;  %v20257_v52 = vld [vmem:[#allocation55_spill] sm:$0xff] }
 0xf80   : > { %v5949_v29 = vmax.f32 %v5947_v20, %v15848_v0  ;;  %v15853_v8 = vsel %vm20245_vm1, %v5770_v45, -1e+30  ;;  %v5772_v36 = vpop.f32.mrb[250].mxu1  ;;  %vm20253_vm1 = vnez %v20252_v53  ;;  %v20259_v53 = vld [vmem:[#allocation57_spill] sm:$0xff] }
 0xf81   : > { %20246 = vst [vmem:[#allocation21_spill] sm:$0xff] %v15853_v8  ;;  %v5986_v12 = vmax.f32 %v5984_v5, %v15853_v8  ;;  %v15858_v61 = vsel %vm20248_vm0, %v5772_v36, -1e+30  ;;  %v5774_v47 = vpop.f32.mrb[251].mxu1  ;;  %vm20255_vm0 = vnez %v20254_v60  ;;  %v20262_v60 = vld [vmem:[#allocation59_spill] sm:$0xff] }
 0xf82   : > { %v5950_v15 = vmax.f32 %v5948_v62, %v15858_v61  ;;  %v15863_v51 = vsel %vm20250_vm14, %v5774_v47, -1e+30  ;;  %vm20258_vm14 = vnez %v20257_v52  ;;  %v20264_v52 = vld [vmem:[#allocation60_spill] sm:$0xff] }
 0xf83   : > { %20251 = vst [vmem:[#allocation12_spill] sm:$0xff] %v15863_v51  ;;  %v5987_v20 = vmax.f32 %v5985_v39, %v15863_v51 }
 0xf86   : > { %v5778_v6 = vpop.f32.mrb[252].mxu1 }
 0xf87   : > { %v15868_v45 = vsel %vm20253_vm1, %v5778_v6, -1e+30  ;;  %v5780_v37 = vpop.f32.mrb[253].mxu1  ;;  %vm20260_vm1 = vnez %v20259_v53  ;;  %v20267_v53 = vld [vmem:[#allocation61_spill] sm:$0xff] }
 0xf88   : > { %v5951_v5 = vmax.f32 %v5949_v29, %v15868_v45  ;;  %v15873_v36 = vsel %vm20255_vm0, %v5780_v37, -1e+30  ;;  %v5782_v32 = vpop.f32.mrb[254].mxu1  ;;  %vm20263_vm0 = vnez %v20262_v60  ;;  %v20269_v60 = vld [vmem:[#allocation63_spill] sm:$0xff] }
 0xf89   : > { %20256 = vst [vmem:[#allocation20_spill] sm:$0xff] %v15873_v36  ;;  %v5988_v62 = vmax.f32 %v5986_v12, %v15873_v36  ;;  %v15878_v47 = vsel %vm20258_vm14, %v5782_v32, -1e+30  ;;  %v5784_v39 = vpop.f32.mrb[255].mxu1  ;;  %vm20265_vm14 = vnez %v20264_v52  ;;  %v20272_v52 = vld [vmem:[#allocation65_spill] sm:$0xff] }
 0xf8a   : > { %v5952_v63 = vmax.f32 %v5950_v15, %v15878_v47  ;;  %v15883_v6 = vsel %vm20260_vm1, %v5784_v39, -1e+30  ;;  %vm20268_vm1 = vnez %v20267_v53  ;;  %v20274_v53 = vld [vmem:[#allocation66_spill] sm:$0xff] }
 0xf8b   : > { %20261 = vst [vmem:[#allocation23_spill] sm:$0xff] %v15883_v6  ;;  %v5989_v29 = vmax.f32 %v5987_v20, %v15883_v6 }
 0xf8e   : > { %v5788_v19 = vpop.f32.mrb[0].mxu1 }
 0xf8f   : > { %v15888_v37 = vsel %vm20263_vm0, %v5788_v19, -1e+30  ;;  %v5790_v46 = vpop.f32.mrb[1].mxu1  ;;  %vm20270_vm0 = vnez %v20269_v60  ;;  %v20277_v60 = vld [vmem:[#allocation67_spill] sm:$0xff] }
 0xf90   : > { %v5953_v12 = vmax.f32 %v5951_v5, %v15888_v37  ;;  %v15893_v32 = vsel %vm20265_vm14, %v5790_v46, -1e+30  ;;  %v5792_v11 = vpop.f32.mrb[2].mxu1  ;;  %vm20273_vm14 = vnez %v20272_v52  ;;  %v20279_v52 = vld [vmem:[#allocation69_spill] sm:$0xff] }
 0xf91   : > { %20266 = vst [vmem:[#allocation13_spill] sm:$0xff] %v15893_v32  ;;  %v5990_v15 = vmax.f32 %v5988_v62, %v15893_v32  ;;  %v15898_v39 = vsel %vm20268_vm1, %v5792_v11, -1e+30  ;;  %v5794_v20 = vpop.f32.mrb[3].mxu1  ;;  %vm20275_vm1 = vnez %v20274_v53  ;;  %v20282_v53 = vld [vmem:[#allocation71_spill] sm:$0xff] }
 0xf92   : > { %v5954_v59 = vmax.f32 %v5952_v63, %v15898_v39  ;;  %v15903_v19 = vsel %vm20270_vm0, %v5794_v20, -1e+30  ;;  %vm20278_vm0 = vnez %v20277_v60  ;;  %v20284_v60 = vld [vmem:[#allocation73_spill] sm:$0xff] }
 0xf93   : > { %20271 = vst [vmem:[#allocation25_spill] sm:$0xff] %v15903_v19  ;;  %v5991_v5 = vmax.f32 %v5989_v29, %v15903_v19 }
 0xf96   : > { %v5798_v42 = vpop.f32.mrb[4].mxu1 }
 0xf97   : > { %v15908_v46 = vsel %vm20273_vm14, %v5798_v42, -1e+30  ;;  %v5800_v13 = vpop.f32.mrb[5].mxu1  ;;  %vm20280_vm14 = vnez %v20279_v52  ;;  %v20287_v52 = vld [vmem:[#allocation72_spill] sm:$0xff] }
 0xf98   : > { %v5955_v62 = vmax.f32 %v5953_v12, %v15908_v46  ;;  %v15913_v11 = vsel %vm20275_vm1, %v5800_v13, -1e+30  ;;  %v5802_v34 = vpop.f32.mrb[6].mxu1  ;;  %vm20283_vm1 = vnez %v20282_v53  ;;  %v20289_v53 = vld [vmem:[#allocation74_spill] sm:$0xff] }
 0xf99   : > { %20276 = vst [vmem:[#allocation24_spill] sm:$0xff] %v15913_v11  ;;  %v5992_v63 = vmax.f32 %v5990_v15, %v15913_v11  ;;  %v15918_v20 = vsel %vm20278_vm0, %v5802_v34, -1e+30  ;;  %v5804_v29 = vpop.f32.mrb[7].mxu1  ;;  %vm20285_vm0 = vnez %v20284_v60  ;;  %v20292_v60 = vld [vmem:[#allocation77_spill] sm:$0xff] }
 0xf9a   : > { %v5956_v54 = vmax.f32 %v5954_v59, %v15918_v20  ;;  %v15923_v42 = vsel %vm20280_vm14, %v5804_v29, -1e+30  ;;  %vm20288_vm14 = vnez %v20287_v52  ;;  %v20294_v52 = vld [vmem:[#allocation79_spill] sm:$0xff] }
 0xf9b   : > { %20281 = vst [vmem:[#allocation15_spill] sm:$0xff] %v15923_v42  ;;  %v5993_v12 = vmax.f32 %v5991_v5, %v15923_v42  ;;  %v20324_v42 = vld [vmem:[#allocation96_spill] sm:$0xff] }
 0xf9e   : > { %v5808_v30 = vpop.f32.mrb[8].mxu1 }
 0xf9f   : > { %v15928_v13 = vsel %vm20283_vm1, %v5808_v30, -1e+30  ;;  %v5810_v4 = vpop.f32.mrb[9].mxu1  ;;  %vm20290_vm1 = vnez %v20289_v53  ;;  %v20297_v53 = vld [vmem:[#allocation78_spill] sm:$0xff] }
 0xfa0   : > { %v5957_v15 = vmax.f32 %v5955_v62, %v15928_v13  ;;  %v15933_v34 = vsel %vm20285_vm0, %v5810_v4, -1e+30  ;;  %v5812_v23 = vpop.f32.mrb[10].mxu1  ;;  %vm20293_vm0 = vnez %v20292_v60 }
 0xfa1   : > { %20286 = vst [vmem:[#allocation26_spill] sm:$0xff] %v15933_v34  ;;  %v5994_v59 = vmax.f32 %v5992_v63, %v15933_v34  ;;  %v15938_v29 = vsel %vm20288_vm14, %v5812_v23, -1e+30  ;;  %v5814_v5 = vpop.f32.mrb[11].mxu1  ;;  %vm20295_vm14 = vnez %v20294_v52 }
 0xfa2   : > { %v5958_v21 = vmax.f32 %v5956_v54, %v15938_v29  ;;  %v15943_v30 = vsel %vm20290_vm1, %v5814_v5, -1e+30  ;;  %vm20298_vm1 = vnez %v20297_v53 }
 0xfa3   : > { %20291 = vst [vmem:[#allocation6_spill] sm:$0xff] %v15943_v30  ;;  %v5995_v62 = vmax.f32 %v5993_v12, %v15943_v30 }
 0xfa6   : > { %v5818_v50 = vpop.f32.mrb[12].mxu1 }
 0xfa7   : > { %v15948_v4 = vsel %vm20293_vm0, %v5818_v50, -1e+30  ;;  %v5820_v38 = vpop.f32.mrb[13].mxu1  ;;  %v20299_v50 = vld [vmem:[#allocation81_spill] sm:$0xff] }
 0xfa8   : > { %v5959_v63 = vmax.f32 %v5957_v15, %v15948_v4  ;;  %v15953_v23 = vsel %vm20295_vm14, %v5820_v38, -1e+30  ;;  %v5822_v48 = vpop.f32.mrb[14].mxu1  ;;  %vm20300_vm0 = vnez %v20299_v50  ;;  %vm20302_vm14 = vnez %v20301_v56  ;;  %v20307_v56 = vld [vmem:[#allocation84_spill] sm:$0xff] }
 0xfa9   : > { %20296 = vst [vmem:[#allocation5_spill] sm:$0xff] %v15953_v23  ;;  %v5996_v54 = vmax.f32 %v5994_v59, %v15953_v23  ;;  %v15958_v5 = vsel %vm20298_vm1, %v5822_v48, -1e+30  ;;  %v5824_v12 = vpop.f32.mrb[15].mxu1  ;;  %vm20304_vm1 = vnez %v20303_v17  ;;  %v20310_v23 = vld [vmem:[#allocation86_spill] sm:$0xff]  ;;  %v20313_v17 = vld [vmem:[#allocation87_spill] sm:$0xff] }
 0xfaa   : > { %v5960_v18 = vmax.f32 %v5958_v21, %v15958_v5  ;;  %vm20311_vm15 = vnez %v20310_v23 }
 0xfae   : > { %v5828_v60 = vpop.f32.mrb[16].mxu1 }
 0xfaf   : > { %v15963_v25 = vsel %vm20300_vm0, %v5828_v60, -1e+30  ;;  %v5830_v15 = vpop.f32.mrb[17].mxu1  ;;  %vm20306_vm0 = vnez %v20305_v7 }
 0xfb0   : > { %v5961_v52 = vmax.f32 %v5959_v63, %v15963_v25  ;;  %v5832_v38 = vpop.f32.mrb[18].mxu1 }
 0xfb1   : > { %v15968_v26 = vsel %vm20302_vm14, %v5832_v38, -1e+30  ;;  %v5834_v59 = vpop.f32.mrb[19].mxu1  ;;  %vm20308_vm14 = vnez %v20307_v56 }
 0xfb2   : > { %v5962_v48 = vmax.f32 %v5960_v18, %v15968_v26  ;;  %v15982_v38 = vsel %vm20308_vm14, %v5824_v12, -1e+30  ;;  %v15986_v18 = vsel %vm20311_vm15, %v5830_v15, -1e+30  ;;  %v20319_v12 = vld [vmem:[#allocation93_spill] sm:$0xff] }
 0xfb3   : > { %20309 = vst [vmem:[#allocation16_spill] sm:$0xff] %v15982_v38  ;;  %20312 = vst [vmem:[#allocation106_spill] sm:$0xff] %v15986_v18  ;;  %v5998_v56 = vmax.f32 %v5996_v54, %v15986_v18  ;;  %vm20320_vm14 = vnez %v20319_v12  ;;  %v20327_v18 = vld [vmem:[#allocation97_spill] sm:$0xff] }
 0xfb6   : > { %v5838_v53 = vpop.f32.mrb[20].mxu1 }
 0xfb7   : > { %v15973_v21 = vsel %vm20304_vm1, %v5838_v53, -1e+30  ;;  %v5840_v24 = vpop.f32.mrb[21].mxu1  ;;  %vm20314_vm1 = vnez %v20313_v17  ;;  %v20322_v17 = vld [vmem:[#allocation94_spill] sm:$0xff] }
 0xfb8   : > { %v5963_v60 = vmax.f32 %v5961_v52, %v15973_v21  ;;  %v5842_v50 = vpop.f32.mrb[22].mxu1  ;;  %v15991_v30 = vsel %vm20314_vm1, %v5834_v59, -1e+30  ;;  %v20316_v52 = vld [vmem:[#allocation90_spill] sm:$0xff]  ;;  %vm20323_vm1 = vnez %v20322_v17  ;;  %v20329_v17 = vld [vmem:[#allocation99_spill] sm:$0xff] }
 0xfb9   : > { %v15978_v63 = vsel %vm20306_vm0, %v5842_v50, -1e+30  ;;  %v5844_v43 = vpop.f32.mrb[23].mxu1  ;;  %20315 = vst [vmem:[#allocation110_spill] sm:$0xff] %v15991_v30  ;;  %vm20317_vm2 = vnez %v20316_v52  ;;  %v5997_v50 = vmax.f32 %v5995_v62, %v15982_v38 }
 0xfba   : > { %v5964_v53 = vmax.f32 %v5962_v48, %v15978_v63  ;;  %v15995_v7 = vsel %vm20317_vm2, %v5840_v24, -1e+30  ;;  %v16001_v34 = vsel %vm20320_vm14, %v5844_v43, -1e+30  ;;  %vm20325_vm2 = vnez %v20324_v42  ;;  %v20332_v42 = vld [vmem:[#allocation101_spill] sm:$0xff] }
 0xfbb   : > { %20318 = vst [vmem:[#allocation88_spill] sm:$0xff] %v15995_v7  ;;  %20321 = vst [vmem:[#allocation98_spill] sm:$0xff] %v16001_v34  ;;  %v5999_v23 = vmax.f32 %v5997_v50, %v15991_v30  ;;  %v6000_v48 = vmax.f32 %v5998_v56, %v15995_v7  ;;  %vm20328_vm14 = vnez %v20327_v18  ;;  %v20334_v18 = vld [vmem:[#allocation102_spill] sm:$0xff] }
 0xfbd   : > { %v6001_v43 = vmax.f32 %v5999_v23, %v16001_v34 }
 0xfbe   : > { %v5848_v15 = vpop.f32.mrb[24].mxu1 }
 0xfbf   : > { %v16007_v59 = vsel %vm20323_vm1, %v5848_v15, -1e+30  ;;  %v5850_v52 = vpop.f32.mrb[25].mxu1  ;;  %vm20330_vm1 = vnez %v20329_v17  ;;  %v20337_v17 = vld [vmem:[#allocation103_spill] sm:$0xff] }
 0xfc0   : > { %v5965_v24 = vmax.f32 %v5963_v60, %v16007_v59  ;;  %v16012_v62 = vsel %vm20325_vm2, %v5850_v52, -1e+30  ;;  %v5852_v54 = vpop.f32.mrb[26].mxu1  ;;  %vm20333_vm2 = vnez %v20332_v42  ;;  %v20339_v42 = vld [vmem:[#allocation105_spill] sm:$0xff] }
 0xfc1   : > { %20326 = vst [vmem:[#allocation104_spill] sm:$0xff] %v16012_v62  ;;  %v6002_v12 = vmax.f32 %v6000_v48, %v16012_v62  ;;  %v16018_v50 = vsel %vm20328_vm14, %v5852_v54, -1e+30  ;;  %v5854_v56 = vpop.f32.mrb[27].mxu1  ;;  %vm20335_vm14 = vnez %v20334_v18  ;;  %v20342_v18 = vld [vmem:[#allocation107_spill] sm:$0xff] }
 0xfc2   : > { %v5966_v15 = vmax.f32 %v5964_v53, %v16018_v50  ;;  %v16023_v7 = vsel %vm20330_vm1, %v5854_v56, -1e+30  ;;  %vm20338_vm1 = vnez %v20337_v17  ;;  %v20344_v17 = vld [vmem:[#allocation108_spill] sm:$0xff] }
 0xfc3   : > { %20331 = vst [vmem:[#allocation70_spill] sm:$0xff] %v16023_v7  ;;  %v6003_v60 = vmax.f32 %v6001_v43, %v16023_v7 }
 0xfc6   : > { %v5858_v52 = vpop.f32.mrb[28].mxu1 }
 0xfc7   : > { %v16028_v30 = vsel %vm20333_vm2, %v5858_v52, -1e+30  ;;  %v5860_v23 = vpop.f32.mrb[29].mxu1  ;;  %vm20340_vm2 = vnez %v20339_v42  ;;  %v20347_v42 = vld [vmem:[#allocation109_spill] sm:$0xff] }
 0xfc8   : > { %v5967_v48 = vmax.f32 %v5965_v24, %v16028_v30  ;;  %v16033_v54 = vsel %vm20335_vm14, %v5860_v23, -1e+30  ;;  %v5862_v34 = vpop.f32.mrb[30].mxu1  ;;  %vm20343_vm14 = vnez %v20342_v18  ;;  %v20349_v18 = vld [vmem:[#allocation111_spill] sm:$0xff] }
 0xfc9   : > { %20336 = vst [vmem:[#allocation75_spill] sm:$0xff] %v16033_v54  ;;  %v6004_v53 = vmax.f32 %v6002_v12, %v16033_v54  ;;  %v16038_v56 = vsel %vm20338_vm1, %v5862_v34, -1e+30  ;;  %v5864_v43 = vpop.f32.mrb[31].mxu1  ;;  %vm20345_vm1 = vnez %v20344_v17 }
 0xfca   : > { %v5968_v38 = vmax.f32 %v5966_v15, %v16038_v56  ;;  %v16043_v52 = vsel %vm20340_vm2, %v5864_v43, -1e+30  ;;  %vm20348_vm2 = vnez %v20347_v42 }
 0xfcb   : > { %20341 = vst [vmem:[#allocation50_spill] sm:$0xff] %v16043_v52  ;;  %v6005_v24 = vmax.f32 %v6003_v60, %v16043_v52 }
 0xfce   : > { %v5868_v7 = vpop.f32.mrb[32].mxu1 }
 0xfcf   : > { %v16048_v23 = vsel %vm20343_vm14, %v5868_v7, -1e+30  ;;  %v5870_v62 = vpop.f32.mrb[33].mxu1  ;;  %vm20350_vm14 = vnez %v20349_v18 }
 0xfd0   : > { %v5969_v12 = vmax.f32 %v5967_v48, %v16048_v23  ;;  %v16053_v34 = vsel %vm20345_vm1, %v5870_v62, -1e+30  ;;  %v5872_v54 = vpop.f32.mrb[34].mxu1  ;;  %vm20461_vm1 = vcmask 31744  }
 0xfd1   : > { %20346 = vst [vmem:[#allocation89_spill] sm:$0xff] %v16053_v34  ;;  %v6006_v15 = vmax.f32 %v6004_v53, %v16053_v34  ;;  %v16058_v43 = vsel %vm20348_vm2, %v5872_v54, -1e+30  ;;  %v5874_v60 = vpop.f32.mrb[35].mxu1  ;;  %vm20462_vm15 = vmmov %vm20461_vm1 }
 0xfd2   : > { %v5970_v52 = vmax.f32 %v5968_v38, %v16058_v43  ;;  %v16063_v7 = vsel %vm20350_vm14, %v5874_v60, -1e+30  ;;  %vm20458_vm14 = vcmask 1041408   ;;  %vm20463_vm0 = vmmov %vm20461_vm1 }
 0xfd3   : > { %v6007_v48 = vmax.f32 %v6005_v24, %v16063_v7  ;;  %vm20459_vm2 = vmmov %vm20458_vm14 }
 0xfd4   : > { %v5971_v11 = vmax.f32 %v5969_v12, %v5970_v52 }
 0xfd5   : > { %v6008_v17 = vmax.f32 %v6006_v15, %v6007_v48 }
 0xfd6   : > { %v5972_v62 = vrot.slane %v5971_v11, 4 }
 0xfd7   : > { %v6009_v19 = vrot.slane %v6008_v17, 4 }
 0xfd8   : > { %v5973_v32 = vmax.f32 %v5971_v11, %v5972_v62 }
 0xfd9   : > { %v6010_v6 = vmax.f32 %v6008_v17, %v6009_v19 }
 0xfda   : > { %v5974_v53 = vrot.slane %v5973_v32, 2 }
 0xfdb   : > { %v6011_v34 = vrot.slane %v6010_v6, 2 }
 0xfdc   : > { %v5975_v42 = vmax.f32 %v5973_v32, %v5974_v53  ;;  %v20359_v53 = vld [vmem:[#allocation15_spill] sm:$0xff] }
 0xfdd   : > { %v6012_v54 = vmax.f32 %v6010_v6, %v6011_v34 }
 0xfde   : > { %v5976_v36 = vrot.slane %v5975_v42, 1 }
 0xfdf   : > { %v6013_v51 = vrot.slane %v6012_v54, 1 }
 0xfe0   : > { %v16066_v8 = vmax.f32 %v5975_v42, %v5976_v36 }
 0xfe1   : > { %v16068_v38 = vmax.f32 %v6012_v54, %v6013_v51 }
 0xfe2   : > { %v6015_v60 = vsub.f32 %v15748_v28, %v16066_v8  ;;  %v6017_v52 = vsub.f32 %v15766_v41, %v16066_v8  ;;  %v6019_v11 = vsub.f32 %v15752_v40, %v16066_v8  ;;  %v6021_v17 = vsub.f32 %v15772_v16, %v16066_v8 }
 0xfe3   : > { %v6023_v6 = vsub.f32 %v15788_v3, %v16066_v8  ;;  %v6025_v36 = vsub.f32 %v15798_v55, %v16066_v8  ;;  %v6027_v51 = vsub.f32 %v15808_v2, %v16066_v8  ;;  %v6029_v28 = vsub.f32 %v15818_v33, %v16066_v8  ;;  %v20366_v33 = vld [vmem:[#allocation70_spill] sm:$0xff] }
 0xfe4   : > { %v6031_v41 = vsub.f32 %v15828_v14, %v16066_v8  ;;  %v6033_v40 = vsub.f32 %v15838_v9, %v16066_v8  ;;  %v6035_v16 = vsub.f32 %v15848_v0, %v16066_v8  ;;  %v6037_v3 = vsub.f32 %v15858_v61, %v16066_v8  ;;  %v20360_v9 = vld [vmem:[#allocation26_spill] sm:$0xff] }
 0xfe5   : > { %v6039_v55 = vsub.f32 %v15868_v45, %v16066_v8  ;;  %v6079_v24 = vmul.f32 1.442695, %v6015_v60  ;;  %v6083_v62 = vmul.f32 1.442695, %v6017_v52  ;;  %v6087_v42 = vmul.f32 1.442695, %v6019_v11 }
 0xfe6   : > { %v6091_v12 = vmul.f32 1.442695, %v6021_v17  ;;  %v6095_v34 = vmul.f32 1.442695, %v6023_v6  ;;  %v6099_v19 = vmul.f32 1.442695, %v6025_v36  ;;  %v20370_v18 = vsub.f32 %v15878_v47, %v16066_v8 }
 0xfe7   : > { %8346 = vpow2.f32 %v6079_v24  ;;  %v6103_v15 = vmul.f32 1.442695, %v6027_v51  ;;  %v6107_v32 = vmul.f32 1.442695, %v6029_v28  ;;  %v6111_v6 = vmul.f32 1.442695, %v6031_v41 }
 0xfe8   : > { %8348 = vpow2.f32 %v6083_v62  ;;  %v20352_v41 = vld [vmem:[#allocation12_spill] sm:$0xff]  ;;  %v6115_v48 = vmul.f32 1.442695, %v6033_v40  ;;  %v20354_v28 = vld [vmem:[#allocation23_spill] sm:$0xff]  ;;  %v20356_v24 = vld [vmem:[#allocation13_spill] sm:$0xff]  ;;  %v20373_v47 = vsub.f32 %v15908_v46, %v16066_v8  ;;  %v20377_v46 = vsub.f32 %v15776_v31, %v16068_v38 }
 0xfe9   : > { %8350 = vpow2.f32 %v6087_v42  ;;  %v20353_v51 = vld [vmem:[#allocation20_spill] sm:$0xff]  ;;  %v20362_v60 = vld [vmem:[#allocation6_spill] sm:$0xff]  ;;  %v20363_v62 = vld [vmem:[#allocation5_spill] sm:$0xff]  ;;  %v6123_v11 = vmul.f32 1.442695, %v6037_v3 }
 0xfea   : > { %8352 = vpow2.f32 %v6091_v12  ;;  %v20351_v12 = vld [vmem:[#allocation21_spill] sm:$0xff]  ;;  %v20358_v40 = vld [vmem:[#allocation24_spill] sm:$0xff]  ;;  %v6127_v0 = vmul.f32 1.442695, %v6039_v55  ;;  %v20368_v61 = vld [vmem:[#allocation50_spill] sm:$0xff] }
 0xfeb   : > { %8354 = vpow2.f32 %v6095_v34  ;;  %v20357_v34 = vld [vmem:[#allocation25_spill] sm:$0xff]  ;;  %v6131_v52 = vmul.f32 1.442695, %v20370_v18  ;;  %v6143_v18 = vmul.f32 1.442695, %v20373_v47 }
 0xfec   : > { %8356 = vpow2.f32 %v6099_v19  ;;  %v20369_v17 = vld [vmem:[#allocation89_spill] sm:$0xff] }
 0xfed   : > { %8358 = vpow2.f32 %v6103_v15 }
 0xfee   : > { %8360 = vpow2.f32 %v6107_v32  ;;  %v6119_v32 = vmul.f32 1.442695, %v6035_v16 }
 0xfef   : > { %8362 = vpow2.f32 %v6111_v6  ;;  %v20365_v6 = vld [vmem:[#allocation104_spill] sm:$0xff] }
 0xff0   : > { %8364 = vpow2.f32 %v6115_v48 }
 0xff1   : > { %v16146_v42 = vpop.eup %8346  ;;  %8366 = vpow2.f32 %v6119_v32 }
 0xff2   : > { %v16154_v19 = vpop.eup %8348  ;;  %8368 = vpow2.f32 %v6123_v11  ;;  %v20372_v11 = vsub.f32 %v15898_v39, %v16066_v8 }
 0xff3   : > { %v6207_v36 = vadd.f32 %v16154_v19, %v16146_v42  ;;  %v16168_v15 = vpop.eup %8350  ;;  %8370 = vpow2.f32 %v6127_v0 }
 0xff4   : > { %20355 = vst [vmem:[#allocation91_spill] sm:$0xff] %v16168_v15  ;;  %v16181_v14 = vpop.eup %8352  ;;  %8372 = vpow2.f32 %v6131_v52  ;;  %v20375_v52 = vsub.f32 %v15756_v10, %v16068_v38  ;;  %v20380_v10 = vsub.f32 %v15762_v27, %v16068_v38 }
 0xff5   : > { %v6208_v54 = vadd.f32 %v16168_v15, %v6207_v36  ;;  %20361 = vst [vmem:[#allocation92_spill] sm:$0xff] %v16181_v14  ;;  %v16191_v2 = vpop.eup %8354 }
 0xff6   : > { %20364 = vst [vmem:[#allocation95_spill] sm:$0xff] %v16191_v2  ;;  %v16206_v48 = vpop.eup %8356  ;;  %v6081_v39 = vmul.f32 1.442695, %v20375_v52 }
 0xff7   : > { %v6209_v36 = vadd.f32 %v16181_v14, %v6208_v54  ;;  %v20367_v54 = vld [vmem:[#allocation75_spill] sm:$0xff]  ;;  %v20371_v14 = vsub.f32 %v15888_v37, %v16066_v8  ;;  %v20374_v37 = vsub.f32 %v15918_v20, %v16066_v8 }
 0xff9   : > { %v6210_v16 = vadd.f32 %v16191_v2, %v6209_v36  ;;  %v16215_v36 = vpop.eup %8358  ;;  %v6135_v3 = vmul.f32 1.442695, %v20371_v14  ;;  %v6147_v14 = vmul.f32 1.442695, %v20374_v37 }
 0xffa   : > { %v16221_v2 = vpop.eup %8360 }
 0xffb   : > { %v6211_v55 = vadd.f32 %v16206_v48, %v6210_v16  ;;  %v16227_v15 = vpop.eup %8362  ;;  %v6139_v16 = vmul.f32 1.442695, %v20372_v11  ;;  %8374 = vpow2.f32 %v6135_v3  ;;  %v20378_v3 = vsub.f32 %v15928_v13, %v16066_v8 }
 0xffc   : > { %v16236_v0 = vpop.eup %8364  ;;  %v20383_v13 = vsub.f32 %v15782_v35, %v16068_v38 }
 0xffd   : > { %v6212_v32 = vadd.f32 %v16215_v36, %v6211_v55  ;;  %v16245_v11 = vpop.eup %8366  ;;  %8376 = vpow2.f32 %v6139_v16  ;;  %v6151_v47 = vmul.f32 1.442695, %v20378_v3  ;;  %v20381_v16 = vsub.f32 %v15938_v29, %v16066_v8 }
 0xffe   : > { %20376 = vst [vmem:[#allocation68_spill] sm:$0xff] %v16245_v11  ;;  %8378 = vpow2.f32 %v6143_v18  ;;  %v16254_v37 = vpop.eup %8368  ;;  %v20386_v29 = vsub.f32 %v15793_v58, %v16068_v38 }
 0xfff   : > { %v6213_v45 = vadd.f32 %v16221_v2, %v6212_v32  ;;  %20379 = vst [vmem:[#allocation52_spill] sm:$0xff] %v16254_v37  ;;  %8380 = vpow2.f32 %v6147_v14  ;;  %v6155_v52 = vmul.f32 1.442695, %v20381_v16  ;;  %v16263_v18 = vpop.eup %8370  ;;  %v20384_v14 = vsub.f32 %v15948_v4, %v16066_v8 }
0x1000   : > { %8382 = vpow2.f32 %v6081_v39  ;;  %20382 = vst [vmem:[#allocation56_spill] sm:$0xff] %v16263_v18  ;;  %v16272_v3 = vpop.eup %8372  ;;  %v6097_v39 = vmul.f32 1.442695, %v20386_v29  ;;  %v20388_v4 = vsub.f32 %v15803_v1, %v16068_v38  ;;  %v20391_v1 = vsub.f32 %v15968_v26, %v16066_v8 }
0x1001   : > { %v6214_v55 = vadd.f32 %v16227_v15, %v6213_v45  ;;  %v6085_v45 = vmul.f32 1.442695, %v20377_v46  ;;  %v6159_v27 = vmul.f32 1.442695, %v20384_v14  ;;  %20385 = vst [vmem:[#allocation80_spill] sm:$0xff] %v16272_v3 }
0x1003   : > { %v6215_v32 = vadd.f32 %v16236_v0, %v6214_v55  ;;  %v6089_v55 = vmul.f32 1.442695, %v20380_v10  ;;  %8384 = vpow2.f32 %v6085_v45  ;;  %v20387_v45 = vsub.f32 %v15958_v5, %v16066_v8 }
0x1004   : > { %8386 = vpow2.f32 %v6151_v47  ;;  %v6101_v10 = vmul.f32 1.442695, %v20388_v4  ;;  %v20390_v5 = vsub.f32 %v15813_v22, %v16068_v38  ;;  %v20393_v22 = vsub.f32 %v15973_v21, %v16066_v8 }
0x1005   : > { %v6216_v20 = vadd.f32 %v16245_v11, %v6215_v32  ;;  %v6093_v32 = vmul.f32 1.442695, %v20383_v13  ;;  %8388 = vpow2.f32 %v6089_v55  ;;  %v6163_v35 = vmul.f32 1.442695, %v20387_v45 }
0x1006   : > { %8390 = vpow2.f32 %v6155_v52  ;;  %v20389_v55 = vsub.f32 %v15963_v25, %v16066_v8 }
0x1007   : > { %v6217_v31 = vadd.f32 %v16254_v37, %v6216_v20  ;;  %v16281_v20 = vpop.eup %8374  ;;  %8392 = vpow2.f32 %v6093_v32  ;;  %v6171_v32 = vmul.f32 1.442695, %v20391_v1 }
0x1008   : > { %8394 = vpow2.f32 %v6159_v27  ;;  %v6167_v58 = vmul.f32 1.442695, %v20389_v55  ;;  %v16290_v52 = vpop.eup %8376  ;;  %v20392_v27 = vsub.f32 %v15823_v49, %v16068_v38  ;;  %v20395_v49 = vsub.f32 %v15978_v63, %v16066_v8 }
0x1009   : > { %v6218_v46 = vadd.f32 %v16263_v18, %v6217_v31  ;;  %8396 = vpow2.f32 %v6097_v39  ;;  %v6105_v31 = vmul.f32 1.442695, %v20390_v5  ;;  %v16295_v13 = vpop.eup %8378  ;;  %v6175_v39 = vmul.f32 1.442695, %v20393_v22 }
0x100a   : > { %8398 = vpow2.f32 %v6163_v35  ;;  %v16301_v25 = vpop.eup %8380  ;;  %v20394_v35 = vsub.f32 %v15833_v57, %v16068_v38  ;;  %v20399_v22 = vsub.f32 %v16018_v50, %v16066_v8 }
0x100b   : > { %v6219_v47 = vadd.f32 %v16272_v3, %v6218_v46  ;;  %8400 = vpow2.f32 %v6101_v10  ;;  %v6109_v46 = vmul.f32 1.442695, %v20392_v27  ;;  %v16306_v29 = vpop.eup %8382  ;;  %v6179_v10 = vmul.f32 1.442695, %v20395_v49 }
0x100c   : > { %8402 = vpow2.f32 %v6167_v58  ;;  %v20398_v27 = vsub.f32 %v20351_v12, %v16068_v38 }
0x100d   : > { %v6220_v16 = vadd.f32 %v16281_v20, %v6219_v47  ;;  %v16312_v26 = vpop.eup %8384  ;;  %8404 = vpow2.f32 %v6105_v31  ;;  %v6113_v47 = vmul.f32 1.442695, %v20394_v35  ;;  %v20397_v31 = vsub.f32 %v16007_v59, %v16066_v8 }
0x100e   : > { %v16317_v4 = vpop.eup %8386  ;;  %8406 = vpow2.f32 %v6171_v32  ;;  %v6244_v21 = vadd.f32 %v16312_v26, %v16306_v29 }
0x100f   : > { %v6221_v14 = vadd.f32 %v16290_v52, %v6220_v16  ;;  %v16325_v58 = vpop.eup %8388  ;;  %8408 = vpow2.f32 %v6109_v46  ;;  %v20396_v16 = vsub.f32 %v15843_v44, %v16068_v38  ;;  %v6183_v63 = vmul.f32 1.442695, %v20397_v31 }
0x1010   : > { %v16330_v5 = vpop.eup %8390  ;;  %8410 = vpow2.f32 %v6175_v39  ;;  %v6245_v32 = vadd.f32 %v16325_v58, %v6244_v21  ;;  %v6121_v46 = vmul.f32 1.442695, %v20398_v27  ;;  %v6187_v39 = vmul.f32 1.442695, %v20399_v22 }
0x1011   : > { %v6222_v45 = vadd.f32 %v16295_v13, %v6221_v14  ;;  %v6117_v57 = vmul.f32 1.442695, %v20396_v16  ;;  %v16337_v14 = vpop.eup %8392  ;;  %8412 = vpow2.f32 %v6113_v47  ;;  %v20400_v47 = vsub.f32 %v20352_v41, %v16068_v38 }
0x1012   : > { %v16342_v44 = vpop.eup %8394  ;;  %8414 = vpow2.f32 %v6179_v10  ;;  %v20401_v10 = vsub.f32 %v16028_v30, %v16066_v8 }
0x1013   : > { %v6223_v55 = vadd.f32 %v16301_v25, %v6222_v45  ;;  %v6246_v45 = vadd.f32 %v16337_v14, %v6245_v32  ;;  %v16349_v35 = vpop.eup %8396  ;;  %8416 = vpow2.f32 %v6117_v57  ;;  %v6125_v49 = vmul.f32 1.442695, %v20400_v47 }
0x1014   : > { %v16354_v12 = vpop.eup %8398  ;;  %8418 = vpow2.f32 %v6183_v63  ;;  %v20402_v57 = vsub.f32 %v20353_v51, %v16068_v38  ;;  %v20403_v63 = vsub.f32 %v16038_v56, %v16066_v8 }
0x1015   : > { %v6224_v1 = vadd.f32 %v16317_v4, %v6223_v55  ;;  %v6191_v55 = vmul.f32 1.442695, %v20401_v10  ;;  %v6247_v21 = vadd.f32 %v16349_v35, %v6246_v45  ;;  %v16361_v16 = vpop.eup %8400  ;;  %8420 = vpow2.f32 %v6121_v46 }
0x1016   : > { %v6129_v31 = vmul.f32 1.442695, %v20402_v57  ;;  %v16366_v41 = vpop.eup %8402  ;;  %8422 = vpow2.f32 %v6187_v39  ;;  %v20404_v46 = vsub.f32 %v20354_v28, %v16068_v38  ;;  %v20405_v39 = vsub.f32 %v16048_v23, %v16066_v8 }
0x1017   : > { %v6225_v59 = vadd.f32 %v16330_v5, %v6224_v1  ;;  %v6195_v1 = vmul.f32 1.442695, %v20403_v63  ;;  %v6248_v32 = vadd.f32 %v16361_v16, %v6247_v21  ;;  %v16373_v27 = vpop.eup %8404  ;;  %8424 = vpow2.f32 %v6125_v49 }
0x1018   : > { %v6133_v22 = vmul.f32 1.442695, %v20404_v46  ;;  %v16378_v51 = vpop.eup %8406  ;;  %8426 = vpow2.f32 %v6191_v55  ;;  %v20406_v49 = vsub.f32 %v20356_v24, %v16068_v38  ;;  %v20407_v55 = vsub.f32 %v16058_v43, %v16066_v8 }
0x1019   : > { %v6226_v50 = vadd.f32 %v16342_v44, %v6225_v59  ;;  %v6199_v59 = vmul.f32 1.442695, %v20405_v39  ;;  %v6249_v45 = vadd.f32 %v16373_v27, %v6248_v32  ;;  %v16385_v47 = vpop.eup %8408  ;;  %8428 = vpow2.f32 %v6129_v31 }
0x101a   : > { %v6137_v10 = vmul.f32 1.442695, %v20406_v49  ;;  %v16390_v28 = vpop.eup %8410  ;;  %8430 = vpow2.f32 %v6195_v1  ;;  %v20408_v31 = vsub.f32 %v20357_v34, %v16068_v38  ;;  %v20409_v43 = vsub.f32 %v20358_v40, %v16068_v38 }
0x101b   : > { %v6227_v30 = vadd.f32 %v16354_v12, %v6226_v50  ;;  %v6203_v50 = vmul.f32 1.442695, %v20407_v55  ;;  %v6250_v21 = vadd.f32 %v16385_v47, %v6249_v45  ;;  %v16397_v57 = vpop.eup %8412  ;;  %8432 = vpow2.f32 %v6133_v22 }
0x101c   : > { %v6141_v63 = vmul.f32 1.442695, %v20408_v31  ;;  %v16402_v24 = vpop.eup %8414  ;;  %8434 = vpow2.f32 %v6199_v59  ;;  %v6145_v32 = vmul.f32 1.442695, %v20409_v43  ;;  %v20411_v59 = vsub.f32 %v20359_v53, %v16068_v38 }
0x101d   : > { %v6228_v56 = vadd.f32 %v16366_v41, %v6227_v30  ;;  %v6251_v30 = vadd.f32 %v16397_v57, %v6250_v21  ;;  %v16406_v8 = vpop.eup %8416  ;;  %8436 = vpow2.f32 %v6137_v10  ;;  %v20413_v55 = vsub.f32 %v20360_v9, %v16068_v38 }
0x101e   : > { %v16411_v46 = vpop.eup %8418  ;;  %8438 = vpow2.f32 %v6203_v50 }
0x101f   : > { %v6229_v23 = vadd.f32 %v16378_v51, %v6228_v56  ;;  %v6252_v22 = vadd.f32 %v16406_v8, %v6251_v30  ;;  %v16415_v39 = vpop.eup %8420  ;;  %8440 = vpow2.f32 %v6141_v63  ;;  %v6149_v56 = vmul.f32 1.442695, %v20411_v59  ;;  %v20415_v63 = vld [vmem:[#allocation16_spill] sm:$0xff]  ;;  %v20418_v59 = vld [vmem:[#allocation106_spill] sm:$0xff] }
0x1020   : > { %20410 = vst [vmem:[#allocation14_spill] sm:$0xff] %v16415_v39  ;;  %v16420_v45 = vpop.eup %8422  ;;  %8442 = vpow2.f32 %v6145_v32  ;;  %v6153_v50 = vmul.f32 1.442695, %v20413_v55  ;;  %v20416_v30 = vsub.f32 %v20362_v60, %v16068_v38 }
0x1021   : > { %v6230_v1 = vadd.f32 %v16390_v28, %v6229_v23  ;;  %v6253_v40 = vadd.f32 %v16415_v39, %v6252_v22  ;;  %v16424_v10 = vpop.eup %8424  ;;  %8444 = vpow2.f32 %v6149_v56 }
0x1022   : > { %20412 = vst [vmem:[#allocation11_spill] sm:$0xff] %v16424_v10  ;;  %v16429_v23 = vpop.eup %8426  ;;  %v6157_v43 = vmul.f32 1.442695, %v20416_v30  ;;  %8446 = vpow2.f32 %v6153_v50 }
0x1023   : > { %v6231_v34 = vadd.f32 %v16402_v24, %v6230_v1  ;;  %v6254_v53 = vadd.f32 %v16424_v10, %v6253_v40  ;;  %v16433_v31 = vpop.eup %8428  ;;  %v6058_v1 = vsub.f32 %v20415_v63, %v16068_v38  ;;  %v20419_v40 = vsub.f32 %v20363_v62, %v16068_v38 }
0x1024   : > { %20414 = vst [vmem:[#allocation64_spill] sm:$0xff] %v16433_v31  ;;  %v16440_v32 = vpop.eup %8430  ;;  %8448 = vpow2.f32 %v6157_v43 }
0x1025   : > { %v6232_v49 = vadd.f32 %v16411_v46, %v6231_v34  ;;  %v6255_v34 = vadd.f32 %v16433_v31, %v6254_v53  ;;  %v16444_v22 = vpop.eup %8432  ;;  %v6161_v56 = vmul.f32 1.442695, %v20419_v40  ;;  %v6165_v3 = vmul.f32 1.442695, %v6058_v1  ;;  %v20421_v40 = vld [vmem:[#allocation88_spill] sm:$0xff]  ;;  %v20422_v1 = vld [vmem:[#allocation98_spill] sm:$0xff] }
0x1026   : > { %20417 = vst [vmem:[#allocation58_spill] sm:$0xff] %v16444_v22  ;;  %v16451_v55 = vpop.eup %8434  ;;  %v6066_v43 = vsub.f32 %v20422_v1, %v16068_v38 }
0x1027   : > { %v6233_v21 = vadd.f32 %v16420_v45, %v6232_v49  ;;  %v6060_v49 = vsub.f32 %v20418_v59, %v16068_v38  ;;  %v6256_v63 = vadd.f32 %v16444_v22, %v6255_v34  ;;  %v16455_v30 = vpop.eup %8436  ;;  %8450 = vpow2.f32 %v6161_v56 }
0x1028   : > { %v16459_v18 = vpop.eup %8438  ;;  %8452 = vpow2.f32 %v6165_v3  ;;  %v20423_v3 = vsub.f32 %v20365_v6, %v16068_v38  ;;  %v20425_v6 = vsub.f32 %v20367_v54, %v16068_v38 }
0x1029   : > { %v6234_v9 = vadd.f32 %v16429_v23, %v6233_v21  ;;  %v20420_v21 = vld [vmem:[#allocation110_spill] sm:$0xff]  ;;  %v6257_v62 = vadd.f32 %v16455_v30, %v6256_v63  ;;  %v16463_v59 = vpop.eup %8440  ;;  %v6169_v34 = vmul.f32 1.442695, %v6060_v49 }
0x102a   : > { %v6062_v53 = vsub.f32 %v20420_v21, %v16068_v38  ;;  %v16469_v21 = vpop.eup %8442 }
0x102b   : > { %v6235_v60 = vadd.f32 %v16440_v32, %v6234_v9  ;;  %v6064_v9 = vsub.f32 %v20421_v40, %v16068_v38  ;;  %v6258_v31 = vadd.f32 %v16463_v59, %v6257_v62  ;;  %v16474_v11 = vpop.eup %8444  ;;  %8454 = vpow2.f32 %v6169_v34 }
0x102c   : > { %v6181_v62 = vmul.f32 1.442695, %v6066_v43 }
0x102d   : > { %v6236_v50 = vadd.f32 %v16451_v55, %v6235_v60  ;;  %v6173_v60 = vmul.f32 1.442695, %v6062_v53  ;;  %v6259_v63 = vadd.f32 %v16469_v21, %v6258_v31  ;;  %v6177_v40 = vmul.f32 1.442695, %v6064_v9 }
0x102e   : > { %v6185_v31 = vmul.f32 1.442695, %v20423_v3 }
0x102f   : > { %v6237_v22 = vadd.f32 %v16459_v18, %v6236_v50  ;;  %v6260_v49 = vadd.f32 %v16474_v11, %v6259_v63  ;;  %v16477_v50 = vpop.eup %8446  ;;  %8456 = vpow2.f32 %v6173_v60 }
0x1030   : > { %v16480_v1 = vpop.eup %8448  ;;  %8458 = vpow2.f32 %v6177_v40  ;;  %v6193_v40 = vmul.f32 1.442695, %v20425_v6 }
0x1031   : > { %v6238_v37 = vrot.slane %v6237_v22, 4  ;;  %v6261_v39 = vadd.f32 %v16477_v50, %v6260_v49  ;;  %8460 = vpow2.f32 %v6181_v62 }
0x1032   : > { %8462 = vpow2.f32 %v6185_v31  ;;  %v20427_v31 = vsub.f32 %v20369_v17, %v16068_v38 }
0x1033   : > { %v6239_v56 = vadd.f32 %v6238_v37, %v6237_v22  ;;  %v6262_v9 = vadd.f32 %v16480_v1, %v6261_v39  ;;  %v16486_v37 = vpop.eup %8450  ;;  %v20424_v22 = vsub.f32 %v20366_v33, %v16068_v38  ;;  %v20426_v39 = vsub.f32 %v20368_v61, %v16068_v38 }
0x1034   : > { %v16492_v63 = vpop.eup %8452  ;;  %v6201_v54 = vmul.f32 1.442695, %v20427_v31 }
0x1035   : > { %v6240_v10 = vrot.slane %v6239_v56, 2  ;;  %v6189_v34 = vmul.f32 1.442695, %v20424_v22  ;;  %v6263_v60 = vadd.f32 %v16486_v37, %v6262_v9  ;;  %v16501_v49 = vpop.eup %8454  ;;  %v20428_v22 = vsub.f32 %v16063_v7, %v16068_v38 }
0x1037   : > { %v6241_v53 = vadd.f32 %v6240_v10, %v6239_v56  ;;  %v6197_v10 = vmul.f32 1.442695, %v20426_v39  ;;  %v6264_v56 = vadd.f32 %v16492_v63, %v6263_v60  ;;  %8464 = vpow2.f32 %v6189_v34 }
0x1038   : > { %8466 = vpow2.f32 %v6193_v40 }
0x1039   : > { %v6242_v43 = vrot.slane %v6241_v53, 1  ;;  %v6265_v62 = vadd.f32 %v16501_v49, %v6264_v56  ;;  %v16504_v3 = vpop.eup %8456  ;;  %8468 = vpow2.f32 %v6197_v10 }
0x103a   : > { %v16510_v61 = vpop.eup %8458 }
0x103b   : > { %v6243_v33 = vadd.f32 %v6242_v43, %v6241_v53  ;;  %v6266_v9 = vadd.f32 %v16504_v3, %v6265_v62  ;;  %v6205_v53 = vmul.f32 1.442695, %v20428_v22  ;;  %v16516_v43 = vpop.eup %8460 }
0x103c   : > { %v16519_v6 = vpop.eup %8462 }
0x103d   : > { %8470 = vrcp.f32 %v6243_v33  ;;  %v6267_v34 = vadd.f32 %v16510_v61, %v6266_v9 }
0x103e   : > { %8472 = vpow2.f32 %v6201_v54 }
0x103f   : > { %v6268_v60 = vadd.f32 %v16516_v43, %v6267_v34  ;;  %8474 = vpow2.f32 %v6205_v53 }
0x1041   : > { %v6269_v17 = vadd.f32 %v16519_v6, %v6268_v60  ;;  %v16522_v40 = vpop.eup %8464 }
0x1042   : > { %v16525_v10 = vpop.eup %8466 }
0x1043   : > { %v6270_v39 = vadd.f32 %v16522_v40, %v6269_v17  ;;  %v16527_v7 = vpop.eup %8468 }
0x1045   : > { %v6271_v38 = vadd.f32 %v16525_v10, %v6270_v39 }
0x1047   : > { %v16530_v56 = vpop.eup %8470  ;;  %v6272_v33 = vadd.f32 %v16527_v7, %v6271_v38 }
0x1048   : > { %v16533_v62 = vpop.eup %8472  ;;  %v16538_v54 = vmul.f32 %v16530_v56, %v16281_v20  ;;  %v16542_v9 = vmul.f32 %v16530_v56, %v16290_v52  ;;  %v16548_v53 = vmul.f32 %v16530_v56, %v16295_v13  ;;  %v16552_v34 = vmul.f32 %v16530_v56, %v16301_v25 }
0x1049   : > { %v6273_v31 = vadd.f32 %v16533_v62, %v6272_v33  ;;  %v16544_v22 = vpop.eup %8474  ;;  %v16559_v17 = vmul.f32 %v16530_v56, %v16317_v4  ;;  %v16563_v52 = vmul.f32 %v16530_v56, %v16330_v5  ;;  %v16569_v25 = vmul.f32 %v16530_v56, %v16342_v44 }
0x104a   : > { %v16573_v39 = vmul.f32 %v16530_v56, %v16354_v12  ;;  %v16577_v38 = vmul.f32 %v16530_v56, %v16366_v41  ;;  %v16583_v33 = vmul.f32 %v16530_v56, %v16378_v51  ;;  %v16587_v44 = vmul.f32 %v16530_v56, %v16390_v28 }
0x104b   : > { %v6274_v60 = vadd.f32 %v16544_v22, %v6273_v31  ;;  %v16593_v31 = vmul.f32 %v16530_v56, %v16402_v24  ;;  %v16597_v41 = vmul.f32 %v16530_v56, %v16411_v46  ;;  %v16601_v5 = vmul.f32 %v16530_v56, %v16420_v45 }
0x104c   : > { %20429 = vst [vmem:[#allocation100_spill] sm:$0xff] %v16587_v44  ;;  %v16607_v13 = vmul.f32 %v16530_v56, %v16429_v23  ;;  %v16611_v24 = vmul.f32 %v16530_v56, %v16440_v32  ;;  %v16619_v45 = vmul.f32 %v16530_v56, %v16451_v55  ;;  %v6282_v55 = vmul.f32 %v16530_v56, %v16146_v42  ;;  %v20433_v44 = vld [vmem:[#allocation92_spill] sm:$0xff] }
0x104d   : > { %v6275_v4 = vrot.slane %v6274_v60, 4  ;;  %20430 = vst [vmem:[#allocation9_spill] sm:$0xff] %v16597_v41  ;;  %20431 = vst [vmem:[#allocation62_spill] sm:$0xff] %v16601_v5  ;;  %v20432_v41 = vld [vmem:[#allocation91_spill] sm:$0xff] }
0x104e   : > { %v6287_v5 = vmul.f32 %v16530_v56, %v20432_v41 }
0x104f   : > { %v6276_v51 = vadd.f32 %v6275_v4, %v6274_v60  ;;  %v16623_v60 = vmul.f32 %v16530_v56, %v16459_v18  ;;  %v6285_v18 = vmul.f32 %v16530_v56, %v16154_v19  ;;  %v6289_v4 = vmul.f32 %v16530_v56, %v20433_v44 }
0x1051   : > { %v6277_v23 = vrot.slane %v6276_v51, 2  ;;  %v6347_v44 = vpack.c.bf16 %v6285_v18, %v6282_v55 }
0x1053   : > { %v6278_v28 = vadd.f32 %v6277_v23, %v6276_v51  ;;  %v20434_v23 = vld [vmem:[#allocation95_spill] sm:$0xff] }
0x1055   : > { %v6279_v46 = vrot.slane %v6278_v28, 1 }
0x1057   : > { %v6280_v20 = vadd.f32 %v6279_v46, %v6278_v28 }
0x1059   : > { %8476 = vrcp.f32 %v6280_v20 }
0x1063   : > { %v16629_v12 = vpop.eup %8476 }
0x1064   : > { %v6284_v51 = vmul.f32 %v16629_v12, %v16306_v29  ;;  %v6286_v20 = vmul.f32 %v16629_v12, %v16312_v26  ;;  %v6288_v28 = vmul.f32 %v16629_v12, %v16325_v58  ;;  %v6290_v42 = vmul.f32 %v16629_v12, %v16337_v14 }
0x1065   : > { %v6292_v19 = vmul.f32 %v16629_v12, %v16349_v35  ;;  %v6294_v41 = vmul.f32 %v16629_v12, %v16361_v16  ;;  %v6291_v29 = vmul.f32 %v16530_v56, %v20434_v23  ;;  %v6293_v26 = vmul.f32 %v16530_v56, %v16206_v48 }
0x1066   : > { %v6348_v46 = vpack.c.bf16 %v6286_v20, %v6284_v51  ;;  %v6295_v58 = vmul.f32 %v16530_v56, %v16215_v36  ;;  %v6350_v32 = vpack.c.bf16 %v6290_v42, %v6288_v28  ;;  %v6349_v14 = vpack.c.bf16 %v6289_v4, %v6287_v5 }
0x1067   : > { %v6296_v51 = vmul.f32 %v16629_v12, %v16373_v27  ;;  %v16661_v35 = vmul.f32 %v16629_v12, %v16455_v30  ;;  %v6298_v16 = vmul.f32 %v16629_v12, %v16385_v47  ;;  %v6314_v48 = vmul.f32 %v16629_v12, %v16463_v59 }
0x1068   : > { %6383 = vmatprep.subr.bf16.mxu0 %v6348_v46  ;;  %v6316_v36 = vmul.f32 %v16629_v12, %v16469_v21  ;;  %v6318_v5 = vmul.f32 %v16629_v12, %v16474_v11  ;;  %v6352_v4 = vpack.c.bf16 %v6294_v41, %v6292_v19  ;;  %v6320_v27 = vmul.f32 %v16629_v12, %v16477_v50 }
0x1069   : > { %6384 = vmatpush1.bf16.msra.mxu0 %v6347_v44  ;;  %v6322_v30 = vmul.f32 %v16629_v12, %v16480_v1  ;;  %v6324_v47 = vmul.f32 %v16629_v12, %v16486_v37  ;;  %v6362_v55 = vpack.c.bf16 %v6314_v48, %v16661_v35  ;;  %v6326_v21 = vmul.f32 %v16629_v12, %v16492_v63  ;;  %v20439_v48 = vld [vmem:[#allocation64_spill] sm:$0xff] }
0x106a   : > { %6385 = vmatprep.subr.bf16.mxu0 %v6350_v32  ;;  %v6364_v59 = vpack.c.bf16 %v6318_v5, %v6316_v36  ;;  %v6328_v11 = vmul.f32 %v16629_v12, %v16501_v49  ;;  %v6330_v18 = vmul.f32 %v16629_v12, %v16504_v3  ;;  %v6332_v50 = vmul.f32 %v16629_v12, %v16510_v61  ;;  %v20440_v36 = vld [vmem:[#allocation58_spill] sm:$0xff] }
0x106b   : > { %v6366_v32 = vpack.c.bf16 %v6322_v30, %v6320_v27  ;;  %v6334_v1 = vmul.f32 %v16629_v12, %v16516_v43  ;;  %v6368_v37 = vpack.c.bf16 %v6326_v21, %v6324_v47  ;;  %v6336_v20 = vmul.f32 %v16629_v12, %v16519_v6  ;;  %v20441_v27 = vld [vmem:[#allocation56_spill] sm:$0xff] }
0x106c   : > { %v6338_v63 = vmul.f32 %v16629_v12, %v16522_v40  ;;  %v6340_v49 = vmul.f32 %v16629_v12, %v16525_v10  ;;  %v6370_v28 = vpack.c.bf16 %v6330_v18, %v6328_v11  ;;  %v6342_v61 = vmul.f32 %v16629_v12, %v16527_v7  ;;  %v20442_v47 = vld [vmem:[#allocation80_spill] sm:$0xff] }
0x106d   : > { %6386 = vmatpush1.bf16.msra.mxu0 %v6349_v14  ;;  %v6372_v3 = vpack.c.bf16 %v6334_v1, %v6332_v50  ;;  %v6344_v43 = vmul.f32 %v16629_v12, %v16533_v62  ;;  %v6351_v42 = vpack.c.bf16 %v6293_v26, %v6291_v29  ;;  %v6297_v46 = vmul.f32 %v16530_v56, %v16221_v2  ;;  %v20436_v14 = vld [vmem:[#allocation11_spill] sm:$0xff] }
0x106e   : > { %6387 = vmatprep.subr.bf16.mxu0 %v6352_v4  ;;  %v6374_v6 = vpack.c.bf16 %v6338_v63, %v6336_v20  ;;  %v6346_v40 = vmul.f32 %v16629_v12, %v16544_v22  ;;  %v6354_v19 = vpack.c.bf16 %v6298_v16, %v6296_v51  ;;  %v6300_v10 = vmul.f32 %v16629_v12, %v16397_v57  ;;  %v20435_v22 = vld [vmem:[#allocation14_spill] sm:$0xff]  ;;  %v20437_v51 = vld [vmem:[#allocation68_spill] sm:$0xff] }
0x106f   : > { %v6302_v41 = vmul.f32 %v16629_v12, %v16406_v8  ;;  %v6376_v44 = vpack.c.bf16 %v6342_v61, %v6340_v49  ;;  %v6353_v62 = vpack.c.bf16 %v6297_v46, %v6295_v58  ;;  %v6299_v23 = vmul.f32 %v16530_v56, %v16227_v15  ;;  %v20438_v58 = vld [vmem:[#allocation52_spill] sm:$0xff]  ;;  %v6454_v61 = vpop.trf.xlu1 }
0x1070   : > { %v6378_v7 = vpack.c.bf16 %v6346_v40, %v6344_v43  ;;  %v6301_v2 = vmul.f32 %v16530_v56, %v16236_v0  ;;  %v6304_v26 = vmul.f32 %v16629_v12, %v20435_v22  ;;  %v6306_v57 = vmul.f32 %v16629_v12, %v20436_v14 }
0x1071   : > { %6388 = vmatpush1.bf16.msra.mxu0 %v6351_v42  ;;  %v6356_v29 = vpack.c.bf16 %v6302_v41, %v6300_v10  ;;  %v6303_v35 = vmul.f32 %v16530_v56, %v20437_v51  ;;  %v6305_v16 = vmul.f32 %v16530_v56, %v20438_v58  ;;  %v6308_v0 = vmul.f32 %v16629_v12, %v20439_v48  ;;  %v20502_v48 = vld [vmem:[#allocation46_spill] sm:$0xff] }
0x1072   : > { %6389 = vmatprep.subr.bf16.mxu0 %v6354_v19  ;;  %v6355_v8 = vpack.c.bf16 %v6301_v2, %v6299_v23  ;;  %v6358_v15 = vpack.c.bf16 %v6306_v57, %v6304_v26  ;;  %v6310_v5 = vmul.f32 %v16629_v12, %v20440_v36  ;;  %v6307_v30 = vmul.f32 %v16530_v56, %v20441_v27 }
0x1073   : > { %v6357_v4 = vpack.c.bf16 %v6305_v16, %v6303_v35  ;;  %v6309_v21 = vmul.f32 %v16530_v56, %v20442_v47  ;;  %v20443_v50 = vpack.c.bf16 %v16542_v9, %v16538_v54  ;;  %v20444_v12 = vpack.c.bf16 %v16552_v34, %v16548_v53  ;;  %v20448_v9 = vld [vmem:[#allocation100_spill] sm:$0xff]  ;;  %v20450_v34 = vld [vmem:[#allocation62_spill] sm:$0xff]  ;;  %v6455_v43 = vpop.trf.xlu1 }
0x1074   : > { %v6360_v11 = vpack.c.bf16 %v6310_v5, %v6308_v0  ;;  %v20445_v1 = vpack.c.bf16 %v16563_v52, %v16559_v17  ;;  %v20446_v56 = vpack.c.bf16 %v16573_v39, %v16569_v25  ;;  %v20447_v54 = vpack.c.bf16 %v16583_v33, %v16577_v38  ;;  %v20454_v25 = vld [vmem:[#allocation8_spill] sm:$0xff]  ;;  %v20455_v38 = vld [vmem:[#allocation7_spill] sm:$0xff] }
0x1075   : > { %6390 = vmatpush1.bf16.msra.mxu0 %v6353_v62  ;;  %v6359_v18 = vpack.c.bf16 %v6309_v21, %v6307_v30  ;;  %v20449_v53 = vpack.c.bf16 %v16593_v31, %v20448_v9  ;;  %v20453_v52 = vpack.c.bf16 %v16611_v24, %v16607_v13  ;;  %v6463_v39 = vrot.slane %v20454_v25, 6  ;;  %v20457_v31 = vld [vmem:[#allocation18_spill] sm:$0xff]  ;;  %v6438_v13 = vpop.trf.xlu0  ;;  %v20504_v30 = vld [vmem:[#allocation47_spill] sm:$0xff] }
0x1076   : > { %6391 = vmatprep.subr.bf16.mxu0 %v6356_v29  ;;  %v6462_v33 = vrot.slane %v20455_v38, 6  ;;  %v20460_v20 = vmov 0  }
0x1077   : > { %v6456_v42 = vpop.trf.xlu1 }
0x1079   : > { %6392 = vmatpush1.bf16.msra.mxu0 %v6355_v8  ;;  %v6439_v24 = vpop.trf.xlu0  ;;  %v20500_v8 = vld [vmem:[#allocation44_spill] sm:$0xff] }
0x107a   : > { %6393 = vmatprep.subr.bf16.mxu0 %v6358_v15 }
0x107b   : > { %v6457_v46 = vpop.trf.xlu1 }
0x107d   : > { %6394 = vmatpush1.bf16.msra.mxu0 %v6357_v4 }
0x107e   : > { %6395 = vmatprep.subr.bf16.mxu0 %v6360_v11 }
0x1081   : > { %6396 = vmatpush1.bf16.msra.mxu0 %v6359_v18 }
0x1082   : > { %6397 = vmatprep.subr.bf16.mxu0 %v6362_v55  ;;  %v20451_v55 = vld [vmem:[#allocation9_spill] sm:$0xff] }
0x1083   : > { %v20452_v17 = vpack.c.bf16 %v20450_v34, %v20451_v55 }
0x1085   : > { %6398 = vmatpush1.bf16.msra.mxu0 %v20443_v50 }
0x1086   : > { %6399 = vmatprep.subr.bf16.mxu0 %v6364_v59  ;;  %v20456_v59 = vpack.c.bf16 %v16623_v60, %v16619_v45  ;;  %v6440_v45 = vpop.trf.xlu0 }
0x1089   : > { %6400 = vmatpush1.bf16.msra.mxu0 %v20444_v12  ;;  %v20506_v12 = vld [vmem:[#allocation48_spill] sm:$0xff] }
0x108a   : > { %6401 = vmatprep.subr.bf16.mxu0 %v6366_v32  ;;  %v6379_v32 = vrot.slane %v20457_v31, 4  ;;  %v6441_v60 = vpop.trf.xlu0 }
0x108d   : > { %6402 = vmatpush1.bf16.msra.mxu0 %v20445_v1 }
0x108e   : > { %6403 = vmatprep.subr.bf16.mxu0 %v6368_v37  ;;  %v6513_v37 = vsel %vm20459_vm2, %v6462_v33, 0  ;;  %vm20464_vm2 = vmmov %vm20463_vm0  ;;  %v6442_v63 = vpop.trf.xlu0 }
0x1091   : > { %6404 = vmatpush1.bf16.msra.mxu0 %v20446_v56 }
0x1092   : > { %6405 = vmatprep.subr.bf16.mxu0 %v6370_v28  ;;  %v6443_v49 = vpop.trf.xlu0 }
0x1095   : > { %6406 = vmatpush1.bf16.msra.mxu0 %v20447_v54 }
0x1096   : > { %6407 = vmatprep.subr.bf16.mxu0 %v6372_v3  ;;  %v6444_v28 = vpop.trf.xlu0 }
0x1099   : > { %6408 = vmatpush1.bf16.msra.mxu0 %v20449_v53 }
0x109a   : > { %6409 = vmatprep.subr.bf16.mxu0 %v6374_v6  ;;  %v6445_v3 = vpop.trf.xlu0  ;;  %v6458_v6 = vpop.trf.xlu1 }
0x109d   : > { %6410 = vmatpush1.bf16.msra.mxu0 %v20452_v17 }
0x109e   : > { %6411 = vmatprep.subr.bf16.mxu0 %v6376_v44  ;;  %v6459_v40 = vpop.trf.xlu1 }
0x10a1   : > { %6412 = vmatpush1.bf16.msra.mxu0 %v20453_v52 }
0x10a2   : > { %6413 = vmatprep.subr.bf16.mxu0 %v6378_v7  ;;  %v6460_v19 = vpop.trf.xlu1 }
0x10a5   : > { %6414 = vmatpush1.bf16.msra.mxu0 %v20456_v59 }
0x10a6   : > { %7480 = vmatprep.subr.msk.bf16.mxu0 %vm20458_vm14, %v6463_v39  ;;  %vm20465_vm14 = vmmov %vm20463_vm0  ;;  %v6461_v10 = vpop.trf.xlu1 }
0x10a8   : > { %6416 = vmatmul.mubr.bf16.vlgmr.msra.gmra.mrb[204].mxu0 %v6379_v32 }
0x10a9   : > { %6519 = vmatpush1.bf16.msra.mxu0 %v6513_v37  ;;  %6550 = vmatprep.mubr.bf16.mxu0 %v20460_v20  ;;  %v20486_v37 = vld [vmem:[#allocation38_spill] sm:$0xff] }
0x10b0   : > { %7481 = vmatmul.mubr.msk.bf16.vlgmr.msra.gmra.mrb[208].mxu0 %vm20461_vm1, %v6438_v13  ;;  %vm20466_vm1 = vmmov %vm20463_vm0 }
0x10b1   : > { %6560 = vmatprep.mubr.bf16.mxu0 %v20460_v20 }
0x10b8   : > { %7482 = vmatmul.mubr.msk.bf16.gmra.mrb[212].mxu0 %vm20462_vm15, %v6439_v24  ;;  %vm20467_vm15 = vmmov %vm20463_vm0 }
0x10b9   : > { %6570 = vmatprep.mubr.bf16.mxu0 %v20460_v20 }
0x10c0   : > { %7483 = vmatmul.mubr.msk.bf16.gmra.mrb[216].mxu0 %vm20463_vm0, %v6440_v45  ;;  %v20488_v45 = vld [vmem:[#allocation39_spill] sm:$0xff] }
0x10c1   : > { %6580 = vmatprep.mubr.bf16.mxu0 %v20460_v20 }
0x10c8   : > { %7484 = vmatmul.mubr.msk.bf16.gmra.mrb[220].mxu0 %vm20464_vm2, %v6441_v60  ;;  %vm20468_vm2 = vmmov %vm20463_vm0 }
0x10c9   : > { %6590 = vmatprep.mubr.bf16.mxu0 %v20460_v20 }
0x10d0   : > { %7485 = vmatmul.mubr.msk.bf16.gmra.mrb[224].mxu0 %vm20465_vm14, %v6442_v63  ;;  %vm20469_vm14 = vmmov %vm20463_vm0 }
0x10d1   : > { %6600 = vmatprep.mubr.bf16.mxu0 %v20460_v20 }
0x10d8   : > { %7486 = vmatmul.mubr.msk.bf16.gmra.mrb[228].mxu0 %vm20466_vm1, %v6443_v49  ;;  %vm20470_vm1 = vmmov %vm20463_vm0 }
0x10d9   : > { %6610 = vmatprep.mubr.bf16.mxu0 %v20460_v20 }
0x10e0   : > { %7487 = vmatmul.mubr.msk.bf16.gmra.mrb[232].mxu0 %vm20467_vm15, %v6444_v28  ;;  %vm20471_vm15 = vmmov %vm20463_vm0  ;;  %v20490_v28 = vld [vmem:[#allocation40_spill] sm:$0xff] }
0x10e1   : > { %6620 = vmatprep.mubr.bf16.mxu0 %v20460_v20 }
0x10e8   : > { %7488 = vmatmul.mubr.msk.bf16.gmra.mrb[236].mxu0 %vm20463_vm0, %v6445_v3 }
0x10e9   : > { %6630 = vmatprep.mubr.bf16.mxu0 %v20460_v20 }
0x10f0   : > { %7489 = vmatmul.mubr.msk.bf16.gmra.mrb[240].mxu0 %vm20468_vm2, %v6454_v61  ;;  %vm20472_vm2 = vmmov %vm20463_vm0 }
0x10f1   : > { %6640 = vmatprep.mubr.bf16.mxu0 %v20460_v20 }
0x10f8   : > { %7490 = vmatmul.mubr.msk.bf16.gmra.mrb[244].mxu0 %vm20469_vm14, %v6455_v43  ;;  %vm20473_vm14 = vmmov %vm20463_vm0 }
0x10f9   : > { %6650 = vmatprep.mubr.bf16.mxu0 %v20460_v20 }
0x1100   : > { %7491 = vmatmul.mubr.msk.bf16.gmra.mrb[248].mxu0 %vm20470_vm1, %v6456_v42  ;;  %vm20474_vm1 = vmmov %vm20463_vm0  ;;  %v20492_v42 = vld [vmem:[#allocation41_spill] sm:$0xff] }
0x1101   : > { %6660 = vmatprep.mubr.bf16.mxu0 %v20460_v20 }
0x1108   : > { %7492 = vmatmul.mubr.msk.bf16.gmra.mrb[252].mxu0 %vm20471_vm15, %v6457_v46 }
0x1109   : > { %6670 = vmatprep.mubr.bf16.mxu0 %v20460_v20 }
0x1110   : > { %7493 = vmatmul.mubr.msk.bf16.gmra.mrb[0].mxu0 %vm20463_vm0, %v6458_v6 }
0x1111   : > { %6680 = vmatprep.mubr.bf16.mxu0 %v20460_v20 }
0x1118   : > { %7494 = vmatmul.mubr.msk.bf16.gmra.mrb[4].mxu0 %vm20472_vm2, %v6459_v40 }
0x1119   : > { %6690 = vmatprep.mubr.bf16.mxu0 %v20460_v20 }
0x1120   : > { %7495 = vmatmul.mubr.msk.bf16.gmra.mrb[8].mxu0 %vm20473_vm14, %v6460_v19  ;;  %v20494_v19 = vld [vmem:[#allocation42_spill] sm:$0xff] }
0x1121   : > { %6700 = vmatprep.mubr.bf16.mxu0 %v20460_v20 }
0x1128   : > { %7496 = vmatmul.mubr.msk.bf16.gmra.mrb[12].mxu0 %vm20474_vm1, %v6461_v10 }
0x117b   : > { %v6417_v41 = vpop.f32.mrb[204].mxu0 }
0x117c   : > { %6424 = vst [vmem:[%s10507_s27 + $0x30] sm:$0xf] %v6417_v41  ;;  %v6419_v44 = vpop.f32.mrb[205].mxu0 }
0x117d   : > { %6425 = vst [vmem:[%s10507_s27 + $0x38] sm:$0xf] %v6419_v44  ;;  %v6421_v7 = vpop.f32.mrb[206].mxu0 }
0x117e   : > { %v6422_v62 = vpop.f32.mrb[207].mxu0  ;;  %v20496_v7 = vld [vmem:[#allocation43_spill] sm:$0xff] }
0x1183   : > { %v6552_v23 = vpop.f32.mrb[208].mxu0 }
0x1184   : > { %v6554_v2 = vpop.f32.mrb[209].mxu0  ;;  %v16794_v57 = vsel %vm9063_vm3, %v6552_v23, -1e+30  ;;  %vm20487_vm3 = vnez %v20486_v37  ;;  %v20514_v37 = vld [vmem:[#allocation53_spill] sm:$0xff] }
0x1185   : > { %v6556_v29 = vpop.f32.mrb[210].mxu0  ;;  %v16802_v16 = vsel %vm9075_vm5, %v6554_v2, -1e+30  ;;  %vm20491_vm5 = vnez %v20490_v28  ;;  %vm20515_vm2 = vnez %v20514_v37 }
0x1186   : > { %v6558_v22 = vpop.f32.mrb[211].mxu0  ;;  %v16812_v4 = vsel %vm9087_vm7, %v6556_v29, -1e+30  ;;  %vm20495_vm7 = vnez %v20494_v19  ;;  %v20498_v29 = vld [vmem:[#allocation45_spill] sm:$0xff] }
0x1187   : > { %v16822_v18 = vsel %vm9099_vm9, %v6558_v22, -1e+30  ;;  %vm20499_vm9 = vnez %v20498_v29  ;;  %v20521_v19 = vld [vmem:[#allocation57_spill] sm:$0xff] }
0x118b   : > { %v6562_v26 = vpop.f32.mrb[212].mxu0 }
0x118c   : > { %v16798_v51 = vsel %vm9069_vm4, %v6562_v26, -1e+30  ;;  %v6564_v35 = vpop.f32.mrb[213].mxu0  ;;  %vm20489_vm4 = vnez %v20488_v45 }
0x118d   : > { %v6775_v15 = vmax.f32 %v16794_v57, %v16798_v51  ;;  %v16808_v0 = vsel %vm9081_vm6, %v6564_v35, -1e+30  ;;  %v6566_v36 = vpop.f32.mrb[214].mxu0  ;;  %vm20493_vm6 = vnez %v20492_v42 }
0x118e   : > { %v6812_v27 = vmax.f32 %v16802_v16, %v16808_v0  ;;  %v16818_v47 = vsel %vm9093_vm8, %v6566_v36, -1e+30  ;;  %v6568_v21 = vpop.f32.mrb[215].mxu0  ;;  %vm20497_vm8 = vnez %v20496_v7 }
0x118f   : > { %v6776_v50 = vmax.f32 %v16812_v4, %v16818_v47  ;;  %v16828_v1 = vsel %vm9105_vm10, %v6568_v21, -1e+30  ;;  %vm20501_vm10 = vnez %v20500_v8 }
0x1190   : > { %v6813_v56 = vmax.f32 %v16822_v18, %v16828_v1 }
0x1193   : > { %v6572_v54 = vpop.f32.mrb[216].mxu0 }
0x1194   : > { %v16834_v53 = vsel %vm9151_vm11, %v6572_v54, -1e+30  ;;  %v6574_v34 = vpop.f32.mrb[217].mxu0  ;;  %vm20503_vm11 = vnez %v20502_v48  ;;  %v20529_v48 = vld [vmem:[#allocation61_spill] sm:$0xff] }
0x1195   : > { %v6777_v55 = vmax.f32 %v6775_v15, %v16834_v53  ;;  %v16839_v52 = vsel %vm9157_vm12, %v6574_v34, -1e+30  ;;  %v6576_v25 = vpop.f32.mrb[218].mxu0  ;;  %vm20505_vm12 = vnez %v20504_v30  ;;  %v20509_v34 = vld [vmem:[#allocation49_spill] sm:$0xff] }
0x1196   : > { %v6814_v39 = vmax.f32 %v6812_v27, %v16839_v52  ;;  %v16844_v33 = vsel %vm9163_vm13, %v6576_v25, -1e+30  ;;  %v6578_v59 = vpop.f32.mrb[219].mxu0  ;;  %vm20507_vm13 = vnez %v20506_v12  ;;  %vm20510_vm15 = vnez %v20509_v34 }
0x1197   : > { %v6778_v32 = vmax.f32 %v6776_v50, %v16844_v33  ;;  %v16849_v20 = vsel %vm20487_vm3, %v6578_v59, -1e+30  ;;  %vm20522_vm3 = vnez %v20521_v19  ;;  %v20544_v19 = vld [vmem:[#allocation71_spill] sm:$0xff] }
0x1198   : > { %v6815_v13 = vmax.f32 %v6813_v56, %v16849_v20 }
0x119b   : > { %v6582_v24 = vpop.f32.mrb[220].mxu0 }
0x119c   : > { %v16854_v60 = vsel %vm20489_vm4, %v6582_v24, -1e+30  ;;  %v6584_v63 = vpop.f32.mrb[221].mxu0 }
0x119d   : > { %v6779_v49 = vmax.f32 %v6777_v55, %v16854_v60  ;;  %v16859_v3 = vsel %vm20491_vm5, %v6584_v63, -1e+30  ;;  %v6586_v61 = vpop.f32.mrb[222].mxu0  ;;  %v20516_v63 = vld [vmem:[#allocation54_spill] sm:$0xff] }
0x119e   : > { %v6816_v43 = vmax.f32 %v6814_v39, %v16859_v3  ;;  %v16864_v46 = vsel %vm20493_vm6, %v6586_v61, -1e+30  ;;  %v6588_v6 = vpop.f32.mrb[223].mxu0  ;;  %v20511_v39 = vld [vmem:[#allocation51_spill] sm:$0xff]  ;;  %vm20517_vm14 = vnez %v20516_v63  ;;  %vm20530_vm6 = vnez %v20529_v48 }
0x119f   : > { %v6780_v40 = vmax.f32 %v6778_v32, %v16864_v46  ;;  %v16869_v10 = vsel %vm20495_vm7, %v6588_v6, -1e+30  ;;  %vm20512_vm0 = vnez %v20511_v39  ;;  %v20536_v39 = vld [vmem:[#allocation66_spill] sm:$0xff] }
0x11a0   : > { %v6817_v41 = vmax.f32 %v6815_v13, %v16869_v10 }
0x11a3   : > { %v6592_v44 = vpop.f32.mrb[224].mxu0 }
0x11a4   : > { %v16874_v62 = vsel %vm20497_vm8, %v6592_v44, -1e+30  ;;  %v6594_v23 = vpop.f32.mrb[225].mxu0 }
0x11a5   : > { %v6781_v2 = vmax.f32 %v6779_v49, %v16874_v62  ;;  %v16879_v22 = vsel %vm20499_vm9, %v6594_v23, -1e+30  ;;  %v6596_v26 = vpop.f32.mrb[226].mxu0  ;;  %v20524_v23 = vld [vmem:[#allocation59_spill] sm:$0xff]  ;;  %vm20537_vm9 = vnez %v20536_v39 }
0x11a6   : > { %v6818_v14 = vmax.f32 %v6816_v43, %v16879_v22  ;;  %v16884_v35 = vsel %vm20501_vm10, %v6596_v26, -1e+30  ;;  %v6598_v58 = vpop.f32.mrb[227].mxu0  ;;  %v20519_v43 = vld [vmem:[#allocation55_spill] sm:$0xff]  ;;  %vm20525_vm4 = vnez %v20524_v23 }
0x11a7   : > { %v6782_v15 = vmax.f32 %v6780_v40, %v16884_v35  ;;  %v16889_v36 = vsel %vm20503_vm11, %v6598_v58, -1e+30  ;;  %vm20520_vm1 = vnez %v20519_v43 }
0x11a8   : > { %v6819_v5 = vmax.f32 %v6817_v41, %v16889_v36 }
0x11ab   : > { %v6602_v27 = vpop.f32.mrb[228].mxu0 }
0x11ac   : > { %v16894_v21 = vsel %vm20505_vm12, %v6602_v27, -1e+30  ;;  %v6604_v11 = vpop.f32.mrb[229].mxu0  ;;  %vm20545_vm12 = vnez %v20544_v19 }
0x11ad   : > { %v6783_v50 = vmax.f32 %v6781_v2, %v16894_v21  ;;  %v16899_v56 = vsel %vm20507_vm13, %v6604_v11, -1e+30  ;;  %v6606_v54 = vpop.f32.mrb[230].mxu0  ;;  %v20531_v11 = vld [vmem:[#allocation63_spill] sm:$0xff] }
0x11ae   : > { %20508 = vst [vmem:[#allocation76_spill] sm:$0xff] %v16899_v56  ;;  %v6820_v9 = vmax.f32 %v6818_v14, %v16899_v56  ;;  %v16904_v55 = vsel %vm20510_vm15, %v6606_v54, -1e+30  ;;  %v6608_v17 = vpop.f32.mrb[231].mxu0  ;;  %v20526_v14 = vld [vmem:[#allocation60_spill] sm:$0xff]  ;;  %vm20532_vm7 = vnez %v20531_v11  ;;  %v20551_v11 = vld [vmem:[#allocation74_spill] sm:$0xff] }
0x11af   : > { %v6784_v25 = vmax.f32 %v6782_v15, %v16904_v55  ;;  %v16909_v38 = vsel %vm20512_vm0, %v6608_v17, -1e+30  ;;  %vm20527_vm5 = vnez %v20526_v14  ;;  %vm20552_vm0 = vnez %v20551_v11  ;;  %v20563_v11 = vld [vmem:[#allocation82_spill] sm:$0xff] }
0x11b0   : > { %20513 = vst [vmem:[#allocation22_spill] sm:$0xff] %v16909_v38  ;;  %v6821_v59 = vmax.f32 %v6819_v5, %v16909_v38 }
0x11b3   : > { %v6612_v32 = vpop.f32.mrb[232].mxu0 }
0x11b4   : > { %v16914_v13 = vsel %vm20515_vm2, %v6612_v32, -1e+30  ;;  %v6614_v24 = vpop.f32.mrb[233].mxu0 }
0x11b5   : > { %v6785_v45 = vmax.f32 %v6783_v50, %v16914_v13  ;;  %v16919_v49 = vsel %vm20517_vm14, %v6614_v24, -1e+30  ;;  %v6616_v28 = vpop.f32.mrb[234].mxu0  ;;  %v20539_v24 = vld [vmem:[#allocation67_spill] sm:$0xff] }
0x11b6   : > { %20518 = vst [vmem:[#allocation10_spill] sm:$0xff] %v16919_v49  ;;  %v6822_v61 = vmax.f32 %v6820_v9, %v16919_v49  ;;  %v16924_v42 = vsel %vm20520_vm1, %v6616_v28, -1e+30  ;;  %v6618_v6 = vpop.f32.mrb[235].mxu0  ;;  %v20534_v9 = vld [vmem:[#allocation65_spill] sm:$0xff]  ;;  %vm20540_vm10 = vnez %v20539_v24 }
0x11b7   : > { %v6786_v40 = vmax.f32 %v6784_v25, %v16924_v42  ;;  %v16929_v41 = vsel %vm20522_vm3, %v6618_v6, -1e+30  ;;  %vm20535_vm8 = vnez %v20534_v9 }
0x11b8   : > { %20523 = vst [vmem:[#allocation17_spill] sm:$0xff] %v16929_v41  ;;  %v6823_v44 = vmax.f32 %v6821_v59, %v16929_v41 }
0x11bb   : > { %v6622_v7 = vpop.f32.mrb[236].mxu0 }
0x11bc   : > { %v16934_v2 = vsel %vm20525_vm4, %v6622_v7, -1e+30  ;;  %v6624_v29 = vpop.f32.mrb[237].mxu0  ;;  %vm20564_vm4 = vnez %v20563_v11  ;;  %v20569_v11 = vld [vmem:[#allocation84_spill] sm:$0xff] }
0x11bd   : > { %v6787_v26 = vmax.f32 %v6785_v45, %v16934_v2  ;;  %v16939_v8 = vsel %vm20527_vm5, %v6624_v29, -1e+30  ;;  %v6626_v58 = vpop.f32.mrb[238].mxu0  ;;  %v20546_v29 = vld [vmem:[#allocation73_spill] sm:$0xff] }
0x11be   : > { %20528 = vst [vmem:[#allocation19_spill] sm:$0xff] %v16939_v8  ;;  %v6824_v15 = vmax.f32 %v6822_v61, %v16939_v8  ;;  %v16944_v5 = vsel %vm20530_vm6, %v6626_v58, -1e+30  ;;  %v6628_v27 = vpop.f32.mrb[239].mxu0  ;;  %v20541_v61 = vld [vmem:[#allocation69_spill] sm:$0xff]  ;;  %vm20547_vm13 = vnez %v20546_v29 }
0x11bf   : > { %v6788_v30 = vmax.f32 %v6786_v40, %v16944_v5  ;;  %v16949_v50 = vsel %vm20532_vm7, %v6628_v27, -1e+30  ;;  %vm20542_vm11 = vnez %v20541_v61  ;;  %v20559_v61 = vld [vmem:[#allocation78_spill] sm:$0xff]  ;;  %v20561_v29 = vld [vmem:[#allocation81_spill] sm:$0xff]  ;;  %vm20570_vm7 = vnez %v20569_v11 }
0x11c0   : > { %20533 = vst [vmem:[#allocation21_spill] sm:$0xff] %v16949_v50  ;;  %v6825_v12 = vmax.f32 %v6823_v44, %v16949_v50  ;;  %vm20560_vm1 = vnez %v20559_v61  ;;  %vm20562_vm3 = vnez %v20561_v29  ;;  %v20567_v29 = vld [vmem:[#allocation85_spill] sm:$0xff] }
0x11c1   : > { %vm20568_vm6 = vnez %v20567_v29 }
0x11c3   : > { %v6632_v54 = vpop.f32.mrb[240].mxu0 }
0x11c4   : > { %v16954_v34 = vsel %vm20535_vm8, %v6632_v54, -1e+30  ;;  %v6634_v17 = vpop.f32.mrb[241].mxu0 }
0x11c5   : > { %v6789_v25 = vmax.f32 %v6787_v26, %v16954_v34  ;;  %v16959_v59 = vsel %vm20537_vm9, %v6634_v17, -1e+30  ;;  %v6636_v32 = vpop.f32.mrb[242].mxu0  ;;  %v20554_v17 = vld [vmem:[#allocation77_spill] sm:$0xff] }
0x11c6   : > { %20538 = vst [vmem:[#allocation12_spill] sm:$0xff] %v16959_v59  ;;  %v6826_v37 = vmax.f32 %v6824_v15, %v16959_v59  ;;  %v16964_v45 = vsel %vm20540_vm10, %v6636_v32, -1e+30  ;;  %v6638_v63 = vpop.f32.mrb[243].mxu0  ;;  %v20549_v15 = vld [vmem:[#allocation72_spill] sm:$0xff]  ;;  %vm20555_vm2 = vnez %v20554_v17 }
0x11c7   : > { %v6790_v28 = vmax.f32 %v6788_v30, %v16964_v45  ;;  %v16969_v43 = vsel %vm20542_vm11, %v6638_v63, -1e+30  ;;  %vm20550_vm15 = vnez %v20549_v15 }
0x11c8   : > { %20543 = vst [vmem:[#allocation20_spill] sm:$0xff] %v16969_v43  ;;  %v6827_v6 = vmax.f32 %v6825_v12, %v16969_v43  ;;  %v20586_v43 = vld [vmem:[#allocation96_spill] sm:$0xff] }
0x11cb   : > { %v6642_v40 = vpop.f32.mrb[244].mxu0 }
0x11cc   : > { %v16974_v44 = vsel %vm20545_vm12, %v6642_v40, -1e+30  ;;  %v6644_v7 = vpop.f32.mrb[245].mxu0 }
0x11cd   : > { %v6791_v23 = vmax.f32 %v6789_v25, %v16974_v44  ;;  %v16979_v26 = vsel %vm20547_vm13, %v6644_v7, -1e+30  ;;  %v6646_v14 = vpop.f32.mrb[246].mxu0  ;;  %vm20587_vm13 = vnez %v20586_v43 }
0x11ce   : > { %20548 = vst [vmem:[#allocation23_spill] sm:$0xff] %v16979_v26  ;;  %v6828_v58 = vmax.f32 %v6826_v37, %v16979_v26  ;;  %v16984_v48 = vsel %vm20550_vm15, %v6646_v14, -1e+30  ;;  %v6648_v27 = vpop.f32.mrb[247].mxu0  ;;  %v20556_v37 = vld [vmem:[#allocation79_spill] sm:$0xff] }
0x11cf   : > { %v6792_v30 = vmax.f32 %v6790_v28, %v16984_v48  ;;  %v16989_v12 = vsel %vm20552_vm0, %v6648_v27, -1e+30  ;;  %vm20557_vm14 = vnez %v20556_v37  ;;  %v20565_v37 = vld [vmem:[#allocation83_spill] sm:$0xff] }
0x11d0   : > { %20553 = vst [vmem:[#allocation13_spill] sm:$0xff] %v16989_v12  ;;  %v6829_v54 = vmax.f32 %v6827_v6, %v16989_v12  ;;  %vm20566_vm5 = vnez %v20565_v37  ;;  %v20575_v37 = vld [vmem:[#allocation87_spill] sm:$0xff] }
0x11d1   : > { %vm20576_vm9 = vnez %v20575_v37  ;;  %v20584_v37 = vld [vmem:[#allocation94_spill] sm:$0xff] }
0x11d2   : > { %vm20585_vm12 = vnez %v20584_v37  ;;  %v20591_v37 = vld [vmem:[#allocation99_spill] sm:$0xff] }
0x11d3   : > { %v6652_v9 = vpop.f32.mrb[248].mxu0  ;;  %vm20592_vm0 = vnez %v20591_v37  ;;  %v20599_v37 = vld [vmem:[#allocation103_spill] sm:$0xff] }
0x11d4   : > { %v16994_v25 = vsel %vm20555_vm2, %v6652_v9, -1e+30  ;;  %v6654_v39 = vpop.f32.mrb[249].mxu0 }
0x11d5   : > { %v6793_v32 = vmax.f32 %v6791_v23, %v16994_v25  ;;  %v16999_v24 = vsel %vm20557_vm14, %v6654_v39, -1e+30  ;;  %v6656_v63 = vpop.f32.mrb[250].mxu0 }
0x11d6   : > { %20558 = vst [vmem:[#allocation25_spill] sm:$0xff] %v16999_v24  ;;  %v6830_v28 = vmax.f32 %v6828_v58, %v16999_v24  ;;  %v17004_v40 = vsel %vm20560_vm1, %v6656_v63, -1e+30  ;;  %v6658_v6 = vpop.f32.mrb[251].mxu0  ;;  %v20572_v24 = vld [vmem:[#allocation86_spill] sm:$0xff]  ;;  %vm20600_vm1 = vnez %v20599_v37  ;;  %v20606_v37 = vld [vmem:[#allocation108_spill] sm:$0xff] }
0x11d7   : > { %v6794_v19 = vmax.f32 %v6792_v30, %v17004_v40  ;;  %vm20573_vm8 = vnez %v20572_v24 }
0x11db   : > { %v6662_v7 = vpop.f32.mrb[252].mxu0 }
0x11dc   : > { %v17009_v14 = vsel %vm20562_vm3, %v6662_v7, -1e+30  ;;  %v6664_v23 = vpop.f32.mrb[253].mxu0 }
0x11dd   : > { %v6795_v15 = vmax.f32 %v6793_v32, %v17009_v14  ;;  %v6666_v27 = vpop.f32.mrb[254].mxu0 }
0x11de   : > { %v17014_v9 = vsel %vm20564_vm4, %v6666_v27, -1e+30  ;;  %v6668_v58 = vpop.f32.mrb[255].mxu0  ;;  %v17028_v27 = vsel %vm20570_vm7, %v6658_v6, -1e+30  ;;  %v20581_v6 = vld [vmem:[#allocation93_spill] sm:$0xff] }
0x11df   : > { %v6796_v17 = vmax.f32 %v6794_v19, %v17014_v9  ;;  %20571 = vst [vmem:[#allocation24_spill] sm:$0xff] %v17028_v27  ;;  %v17032_v19 = vsel %vm20573_vm8, %v6664_v23, -1e+30  ;;  %v17037_v12 = vsel %vm20576_vm9, %v6668_v58, -1e+30  ;;  %vm20582_vm11 = vnez %v20581_v6 }
0x11e0   : > { %20574 = vst [vmem:[#allocation15_spill] sm:$0xff] %v17032_v19  ;;  %20577 = vst [vmem:[#allocation26_spill] sm:$0xff] %v17037_v12  ;;  %v6832_v11 = vmax.f32 %v6830_v28, %v17032_v19  ;;  %v20589_v19 = vld [vmem:[#allocation97_spill] sm:$0xff] }
0x11e1   : > { %vm20590_vm15 = vnez %v20589_v19  ;;  %v20596_v19 = vld [vmem:[#allocation102_spill] sm:$0xff] }
0x11e2   : > { %vm20597_vm14 = vnez %v20596_v19  ;;  %v20604_v19 = vld [vmem:[#allocation107_spill] sm:$0xff] }
0x11e3   : > { %v6672_v39 = vpop.f32.mrb[0].mxu0  ;;  %vm20605_vm4 = vnez %v20604_v19  ;;  %v20611_v19 = vld [vmem:[#allocation111_spill] sm:$0xff] }
0x11e4   : > { %v17019_v30 = vsel %vm20566_vm5, %v6672_v39, -1e+30  ;;  %v6674_v63 = vpop.f32.mrb[1].mxu0  ;;  %vm20607_vm5 = vnez %v20606_v37  ;;  %vm20612_vm7 = vnez %v20611_v19 }
0x11e5   : > { %v6797_v61 = vmax.f32 %v6795_v15, %v17019_v30  ;;  %v6676_v7 = vpop.f32.mrb[2].mxu0  ;;  %v20578_v15 = vld [vmem:[#allocation90_spill] sm:$0xff] }
0x11e6   : > { %v17024_v32 = vsel %vm20568_vm6, %v6676_v7, -1e+30  ;;  %v6678_v31 = vpop.f32.mrb[3].mxu0  ;;  %vm20579_vm10 = vnez %v20578_v15  ;;  %v6831_v7 = vmax.f32 %v6829_v54, %v17028_v27 }
0x11e7   : > { %v6798_v39 = vmax.f32 %v6796_v17, %v17024_v32  ;;  %v17041_v29 = vsel %vm20579_vm10, %v6674_v63, -1e+30  ;;  %v17047_v26 = vsel %vm20582_vm11, %v6678_v31, -1e+30 }
0x11e8   : > { %20580 = vst [vmem:[#allocation6_spill] sm:$0xff] %v17041_v29  ;;  %20583 = vst [vmem:[#allocation5_spill] sm:$0xff] %v17047_v26  ;;  %v6833_v23 = vmax.f32 %v6831_v7, %v17037_v12  ;;  %v6834_v17 = vmax.f32 %v6832_v11, %v17041_v29 }
0x11ea   : > { %v6835_v31 = vmax.f32 %v6833_v23, %v17047_v26 }
0x11eb   : > { %v6682_v24 = vpop.f32.mrb[4].mxu0 }
0x11ec   : > { %v17053_v58 = vsel %vm20585_vm12, %v6682_v24, -1e+30  ;;  %v6684_v15 = vpop.f32.mrb[5].mxu0 }
0x11ed   : > { %v6799_v63 = vmax.f32 %v6797_v61, %v17053_v58  ;;  %v17058_v54 = vsel %vm20587_vm13, %v6684_v15, -1e+30  ;;  %v6686_v28 = vpop.f32.mrb[6].mxu0  ;;  %v20594_v15 = vld [vmem:[#allocation101_spill] sm:$0xff] }
0x11ee   : > { %20588 = vst [vmem:[#allocation104_spill] sm:$0xff] %v17058_v54  ;;  %v6836_v6 = vmax.f32 %v6834_v17, %v17058_v54  ;;  %v17064_v7 = vsel %vm20590_vm15, %v6686_v28, -1e+30  ;;  %v6688_v11 = vpop.f32.mrb[7].mxu0  ;;  %vm20595_vm2 = vnez %v20594_v15  ;;  %v20601_v15 = vld [vmem:[#allocation105_spill] sm:$0xff] }
0x11ef   : > { %v6800_v24 = vmax.f32 %v6798_v39, %v17064_v7  ;;  %v17069_v29 = vsel %vm20592_vm0, %v6688_v11, -1e+30  ;;  %vm20602_vm3 = vnez %v20601_v15  ;;  %v20609_v15 = vld [vmem:[#allocation109_spill] sm:$0xff] }
0x11f0   : > { %20593 = vst [vmem:[#allocation70_spill] sm:$0xff] %v17069_v29  ;;  %v6837_v43 = vmax.f32 %v6835_v31, %v17069_v29  ;;  %vm20610_vm6 = vnez %v20609_v15 }
0x11f3   : > { %v6692_v61 = vpop.f32.mrb[8].mxu0 }
0x11f4   : > { %v17074_v12 = vsel %vm20595_vm2, %v6692_v61, -1e+30  ;;  %v6694_v23 = vpop.f32.mrb[9].mxu0 }
0x11f5   : > { %v6801_v17 = vmax.f32 %v6799_v63, %v17074_v12  ;;  %v17079_v28 = vsel %vm20597_vm14, %v6694_v23, -1e+30  ;;  %v6696_v26 = vpop.f32.mrb[10].mxu0 }
0x11f6   : > { %20598 = vst [vmem:[#allocation75_spill] sm:$0xff] %v17079_v28  ;;  %v6838_v39 = vmax.f32 %v6836_v6, %v17079_v28  ;;  %v17084_v11 = vsel %vm20600_vm1, %v6696_v26, -1e+30  ;;  %v6698_v31 = vpop.f32.mrb[11].mxu0 }
0x11f7   : > { %v6802_v27 = vmax.f32 %v6800_v24, %v17084_v11  ;;  %v17089_v61 = vsel %vm20602_vm3, %v6698_v31, -1e+30 }
0x11f8   : > { %20603 = vst [vmem:[#allocation50_spill] sm:$0xff] %v17089_v61  ;;  %v6839_v63 = vmax.f32 %v6837_v43, %v17089_v61 }
0x11fb   : > { %v6702_v29 = vpop.f32.mrb[12].mxu0 }
0x11fc   : > { %v17094_v23 = vsel %vm20605_vm4, %v6702_v29, -1e+30  ;;  %v6704_v54 = vpop.f32.mrb[13].mxu0 }
0x11fd   : > { %v6803_v6 = vmax.f32 %v6801_v17, %v17094_v23  ;;  %v17099_v26 = vsel %vm20607_vm5, %v6704_v54, -1e+30  ;;  %v6706_v28 = vpop.f32.mrb[14].mxu0 }
0x11fe   : > { %20608 = vst [vmem:[#allocation89_spill] sm:$0xff] %v17099_v26  ;;  %v6840_v24 = vmax.f32 %v6838_v39, %v17099_v26  ;;  %v17104_v31 = vsel %vm20610_vm6, %v6706_v28, -1e+30  ;;  %v6708_v43 = vpop.f32.mrb[15].mxu0 }
0x11ff   : > { %v6804_v61 = vmax.f32 %v6802_v27, %v17104_v31  ;;  %v17109_v29 = vsel %vm20612_vm7, %v6708_v43, -1e+30 }
0x1200   : > { %v6841_v17 = vmax.f32 %v6839_v63, %v17109_v29 }
0x1201   : > { %v6805_v59 = vmax.f32 %v6803_v6, %v6804_v61 }
0x1202   : > { %v6842_v37 = vmax.f32 %v6840_v24, %v6841_v17 }
0x1203   : > { %v6806_v54 = vrot.slane %v6805_v59, 4 }
0x1204   : > { %v6843_v50 = vrot.slane %v6842_v37, 4 }
0x1205   : > { %v6807_v8 = vmax.f32 %v6805_v59, %v6806_v54 }
0x1206   : > { %v6844_v41 = vmax.f32 %v6842_v37, %v6843_v50 }
0x1207   : > { %v6808_v39 = vrot.slane %v6807_v8, 2 }
0x1208   : > { %v6845_v26 = vrot.slane %v6844_v41, 2 }
0x1209   : > { %v6809_v15 = vmax.f32 %v6807_v8, %v6808_v39  ;;  %v20621_v39 = vld [vmem:[#allocation20_spill] sm:$0xff]  ;;  %v20622_v8 = vld [vmem:[#allocation23_spill] sm:$0xff] }
0x120a   : > { %v6846_v28 = vmax.f32 %v6844_v41, %v6845_v26 }
0x120b   : > { %v6810_v49 = vrot.slane %v6809_v15, 1 }
0x120c   : > { %v6847_v38 = vrot.slane %v6846_v28, 1 }
0x120d   : > { %v17112_v56 = vmax.f32 %v6809_v15, %v6810_v49 }
0x120e   : > { %v17114_v27 = vmax.f32 %v6846_v28, %v6847_v38 }
0x120f   : > { %v6849_v43 = vsub.f32 %v16794_v57, %v17112_v56  ;;  %v6851_v61 = vsub.f32 %v16812_v4, %v17112_v56  ;;  %v6853_v59 = vsub.f32 %v16798_v51, %v17112_v56  ;;  %v6855_v50 = vsub.f32 %v16818_v47, %v17112_v56 }
0x1210   : > { %v6857_v41 = vsub.f32 %v16834_v53, %v17112_v56  ;;  %v6859_v49 = vsub.f32 %v16844_v33, %v17112_v56  ;;  %v6861_v38 = vsub.f32 %v16854_v60, %v17112_v56  ;;  %v6863_v57 = vsub.f32 %v16864_v46, %v17112_v56 }
0x1211   : > { %v6865_v4 = vsub.f32 %v16874_v62, %v17112_v56  ;;  %v6867_v51 = vsub.f32 %v16884_v35, %v17112_v56  ;;  %v6869_v47 = vsub.f32 %v16894_v21, %v17112_v56  ;;  %v6871_v53 = vsub.f32 %v16904_v55, %v17112_v56  ;;  %v20628_v62 = vld [vmem:[#allocation70_spill] sm:$0xff] }
0x1212   : > { %v6873_v33 = vsub.f32 %v16914_v13, %v17112_v56  ;;  %v6913_v24 = vmul.f32 1.442695, %v6849_v43  ;;  %v6917_v54 = vmul.f32 1.442695, %v6851_v61  ;;  %v6921_v26 = vmul.f32 1.442695, %v6853_v59 }
0x1213   : > { %v6925_v28 = vmul.f32 1.442695, %v6855_v50  ;;  %v6929_v19 = vmul.f32 1.442695, %v6857_v41  ;;  %v6933_v6 = vmul.f32 1.442695, %v6859_v49  ;;  %v20632_v60 = vsub.f32 %v16924_v42, %v17112_v56 }
0x1214   : > { %8478 = vpow2.f32 %v6913_v24  ;;  %v6937_v17 = vmul.f32 1.442695, %v6861_v38  ;;  %v6941_v63 = vmul.f32 1.442695, %v6863_v57  ;;  %v6945_v41 = vmul.f32 1.442695, %v6865_v4 }
0x1215   : > { %8480 = vpow2.f32 %v6917_v54  ;;  %v20614_v4 = vld [vmem:[#allocation22_spill] sm:$0xff]  ;;  %v6949_v37 = vmul.f32 1.442695, %v6867_v51  ;;  %v20616_v57 = vld [vmem:[#allocation17_spill] sm:$0xff]  ;;  %v20618_v24 = vld [vmem:[#allocation19_spill] sm:$0xff]  ;;  %v20635_v42 = vsub.f32 %v16954_v34, %v17112_v56  ;;  %v20639_v34 = vsub.f32 %v16822_v18, %v17114_v27 }
0x1216   : > { %8482 = vpow2.f32 %v6921_v26  ;;  %v20615_v38 = vld [vmem:[#allocation10_spill] sm:$0xff]  ;;  %v20619_v54 = vld [vmem:[#allocation21_spill] sm:$0xff]  ;;  %v20620_v51 = vld [vmem:[#allocation12_spill] sm:$0xff]  ;;  %v6957_v59 = vmul.f32 1.442695, %v6871_v53 }
0x1217   : > { %8484 = vpow2.f32 %v6925_v28  ;;  %v20624_v43 = vld [vmem:[#allocation13_spill] sm:$0xff]  ;;  %v6961_v21 = vmul.f32 1.442695, %v6873_v33  ;;  %v20630_v55 = vld [vmem:[#allocation50_spill] sm:$0xff]  ;;  %v6965_v61 = vmul.f32 1.442695, %v20632_v60 }
0x1218   : > { %8486 = vpow2.f32 %v6929_v19  ;;  %v20613_v19 = vld [vmem:[#allocation76_spill] sm:$0xff]  ;;  %v20625_v28 = vld [vmem:[#allocation25_spill] sm:$0xff]  ;;  %v6977_v60 = vmul.f32 1.442695, %v20635_v42 }
0x1219   : > { %8488 = vpow2.f32 %v6933_v6  ;;  %v20631_v50 = vld [vmem:[#allocation89_spill] sm:$0xff] }
0x121a   : > { %8490 = vpow2.f32 %v6937_v17 }
0x121b   : > { %8492 = vpow2.f32 %v6941_v63  ;;  %v6953_v63 = vmul.f32 1.442695, %v6869_v47 }
0x121c   : > { %8494 = vpow2.f32 %v6945_v41  ;;  %v20627_v41 = vld [vmem:[#allocation104_spill] sm:$0xff] }
0x121d   : > { %8496 = vpow2.f32 %v6949_v37 }
0x121e   : > { %v17192_v26 = vpop.eup %8478  ;;  %8498 = vpow2.f32 %v6953_v63 }
0x121f   : > { %v17200_v6 = vpop.eup %8480  ;;  %8500 = vpow2.f32 %v6957_v59  ;;  %v20634_v59 = vsub.f32 %v16944_v5, %v17112_v56 }
0x1220   : > { %v7041_v49 = vadd.f32 %v17200_v6, %v17192_v26  ;;  %v17214_v17 = vpop.eup %8482  ;;  %8502 = vpow2.f32 %v6961_v21 }
0x1221   : > { %20617 = vst [vmem:[#allocation16_spill] sm:$0xff] %v17214_v17  ;;  %v17227_v35 = vpop.eup %8484  ;;  %8504 = vpow2.f32 %v6965_v61  ;;  %v20637_v61 = vsub.f32 %v16802_v16, %v17114_v27  ;;  %v20642_v16 = vsub.f32 %v16808_v0, %v17114_v27 }
0x1222   : > { %v7042_v15 = vadd.f32 %v17214_v17, %v7041_v49  ;;  %20623 = vst [vmem:[#allocation106_spill] sm:$0xff] %v17227_v35  ;;  %v17237_v46 = vpop.eup %8486 }
0x1223   : > { %20626 = vst [vmem:[#allocation110_spill] sm:$0xff] %v17237_v46  ;;  %v17252_v37 = vpop.eup %8488  ;;  %v6915_v5 = vmul.f32 1.442695, %v20637_v61 }
0x1224   : > { %v7043_v49 = vadd.f32 %v17227_v35, %v7042_v15  ;;  %v20629_v15 = vld [vmem:[#allocation75_spill] sm:$0xff]  ;;  %v20633_v35 = vsub.f32 %v16934_v2, %v17112_v56  ;;  %v20636_v2 = vsub.f32 %v16964_v45, %v17112_v56 }
0x1226   : > { %v7044_v47 = vadd.f32 %v17237_v46, %v7043_v49  ;;  %v17261_v49 = vpop.eup %8490  ;;  %v6969_v53 = vmul.f32 1.442695, %v20633_v35  ;;  %v6981_v35 = vmul.f32 1.442695, %v20636_v2 }
0x1227   : > { %v17267_v46 = vpop.eup %8492 }
0x1228   : > { %v7045_v33 = vadd.f32 %v17252_v37, %v7044_v47  ;;  %v17273_v17 = vpop.eup %8494  ;;  %v6973_v47 = vmul.f32 1.442695, %v20634_v59  ;;  %8506 = vpow2.f32 %v6969_v53  ;;  %v20640_v53 = vsub.f32 %v16974_v44, %v17112_v56 }
0x1229   : > { %v17282_v21 = vpop.eup %8496  ;;  %v20645_v44 = vsub.f32 %v16828_v1, %v17114_v27 }
0x122a   : > { %v7046_v63 = vadd.f32 %v17261_v49, %v7045_v33  ;;  %v17291_v59 = vpop.eup %8498  ;;  %8508 = vpow2.f32 %v6973_v47  ;;  %v6985_v42 = vmul.f32 1.442695, %v20640_v53  ;;  %v20643_v47 = vsub.f32 %v16984_v48, %v17112_v56 }
0x122b   : > { %20638 = vst [vmem:[#allocation88_spill] sm:$0xff] %v17291_v59  ;;  %8510 = vpow2.f32 %v6977_v60  ;;  %v17300_v2 = vpop.eup %8500  ;;  %v20648_v48 = vsub.f32 %v16839_v52, %v17114_v27 }
0x122c   : > { %v7047_v13 = vadd.f32 %v17267_v46, %v7046_v63  ;;  %20641 = vst [vmem:[#allocation98_spill] sm:$0xff] %v17300_v2  ;;  %8512 = vpow2.f32 %v6981_v35  ;;  %v6989_v61 = vmul.f32 1.442695, %v20643_v47  ;;  %v17309_v60 = vpop.eup %8502  ;;  %v20646_v35 = vsub.f32 %v16994_v25, %v17112_v56 }
0x122d   : > { %8514 = vpow2.f32 %v6915_v5  ;;  %20644 = vst [vmem:[#allocation91_spill] sm:$0xff] %v17309_v60  ;;  %v17318_v53 = vpop.eup %8504  ;;  %v6931_v5 = vmul.f32 1.442695, %v20648_v48  ;;  %v20650_v25 = vsub.f32 %v16849_v20, %v17114_v27  ;;  %v20653_v20 = vsub.f32 %v17014_v9, %v17112_v56 }
0x122e   : > { %v7048_v33 = vadd.f32 %v17273_v17, %v7047_v13  ;;  %v6919_v13 = vmul.f32 1.442695, %v20639_v34  ;;  %v6993_v0 = vmul.f32 1.442695, %v20646_v35  ;;  %20647 = vst [vmem:[#allocation92_spill] sm:$0xff] %v17318_v53 }
0x1230   : > { %v7049_v63 = vadd.f32 %v17282_v21, %v7048_v33  ;;  %v6923_v33 = vmul.f32 1.442695, %v20642_v16  ;;  %8516 = vpow2.f32 %v6919_v13  ;;  %v20649_v13 = vsub.f32 %v17004_v40, %v17112_v56 }
0x1231   : > { %8518 = vpow2.f32 %v6985_v42  ;;  %v6935_v16 = vmul.f32 1.442695, %v20650_v25  ;;  %v20652_v40 = vsub.f32 %v16859_v3, %v17114_v27  ;;  %v20655_v3 = vsub.f32 %v17019_v30, %v17112_v56 }
0x1232   : > { %v7050_v45 = vadd.f32 %v17291_v59, %v7049_v63  ;;  %v6927_v63 = vmul.f32 1.442695, %v20645_v44  ;;  %8520 = vpow2.f32 %v6923_v33  ;;  %v6997_v1 = vmul.f32 1.442695, %v20649_v13 }
0x1233   : > { %8522 = vpow2.f32 %v6989_v61  ;;  %v20651_v33 = vsub.f32 %v17009_v14, %v17112_v56 }
0x1234   : > { %v7051_v18 = vadd.f32 %v17300_v2, %v7050_v45  ;;  %v17327_v45 = vpop.eup %8506  ;;  %8524 = vpow2.f32 %v6927_v63  ;;  %v7005_v63 = vmul.f32 1.442695, %v20653_v20 }
0x1235   : > { %8526 = vpow2.f32 %v6993_v0  ;;  %v7001_v52 = vmul.f32 1.442695, %v20651_v33  ;;  %v17336_v61 = vpop.eup %8508  ;;  %v20654_v0 = vsub.f32 %v16869_v10, %v17114_v27  ;;  %v20657_v10 = vsub.f32 %v17024_v32, %v17112_v56 }
0x1236   : > { %v7052_v34 = vadd.f32 %v17309_v60, %v7051_v18  ;;  %8528 = vpow2.f32 %v6931_v5  ;;  %v6939_v18 = vmul.f32 1.442695, %v20652_v40  ;;  %v17341_v44 = vpop.eup %8510  ;;  %v7009_v5 = vmul.f32 1.442695, %v20655_v3 }
0x1237   : > { %8530 = vpow2.f32 %v6997_v1  ;;  %v17347_v14 = vpop.eup %8512  ;;  %v20656_v1 = vsub.f32 %v16879_v22, %v17114_v27  ;;  %v20661_v3 = vsub.f32 %v17064_v7, %v17112_v56 }
0x1238   : > { %v7053_v42 = vadd.f32 %v17318_v53, %v7052_v34  ;;  %8532 = vpow2.f32 %v6935_v16  ;;  %v6943_v34 = vmul.f32 1.442695, %v20654_v0  ;;  %v17352_v48 = vpop.eup %8514  ;;  %v7013_v16 = vmul.f32 1.442695, %v20657_v10 }
0x1239   : > { %8534 = vpow2.f32 %v7001_v52  ;;  %v20660_v0 = vsub.f32 %v20613_v19, %v17114_v27 }
0x123a   : > { %v7054_v47 = vadd.f32 %v17327_v45, %v7053_v42  ;;  %v17358_v9 = vpop.eup %8516  ;;  %8536 = vpow2.f32 %v6939_v18  ;;  %v6947_v42 = vmul.f32 1.442695, %v20656_v1  ;;  %v20659_v18 = vsub.f32 %v17053_v58, %v17112_v56 }
0x123b   : > { %v17363_v25 = vpop.eup %8518  ;;  %8538 = vpow2.f32 %v7005_v63  ;;  %v7078_v30 = vadd.f32 %v17358_v9, %v17352_v48 }
0x123c   : > { %v7055_v35 = vadd.f32 %v17336_v61, %v7054_v47  ;;  %v17371_v52 = vpop.eup %8520  ;;  %8540 = vpow2.f32 %v6943_v34  ;;  %v20658_v47 = vsub.f32 %v16889_v36, %v17114_v27  ;;  %v7017_v32 = vmul.f32 1.442695, %v20659_v18 }
0x123d   : > { %v17376_v40 = vpop.eup %8522  ;;  %8542 = vpow2.f32 %v7009_v5  ;;  %v7079_v63 = vadd.f32 %v17371_v52, %v7078_v30  ;;  %v6955_v34 = vmul.f32 1.442695, %v20660_v0  ;;  %v7021_v5 = vmul.f32 1.442695, %v20661_v3 }
0x123e   : > { %v7056_v13 = vadd.f32 %v17341_v44, %v7055_v35  ;;  %v6951_v22 = vmul.f32 1.442695, %v20658_v47  ;;  %v17383_v35 = vpop.eup %8524  ;;  %8544 = vpow2.f32 %v6947_v42  ;;  %v20662_v42 = vsub.f32 %v20614_v4, %v17114_v27 }
0x123f   : > { %v17388_v36 = vpop.eup %8526  ;;  %8546 = vpow2.f32 %v7013_v16  ;;  %v20663_v16 = vsub.f32 %v17074_v12, %v17112_v56 }
0x1240   : > { %v7057_v33 = vadd.f32 %v17347_v14, %v7056_v13  ;;  %v7080_v13 = vadd.f32 %v17383_v35, %v7079_v63  ;;  %v17395_v1 = vpop.eup %8528  ;;  %8548 = vpow2.f32 %v6951_v22  ;;  %v6959_v10 = vmul.f32 1.442695, %v20662_v42 }
0x1241   : > { %v17400_v19 = vpop.eup %8530  ;;  %8550 = vpow2.f32 %v7017_v32  ;;  %v20664_v22 = vsub.f32 %v20615_v38, %v17114_v27  ;;  %v20665_v32 = vsub.f32 %v17084_v11, %v17112_v56 }
0x1242   : > { %v7058_v20 = vadd.f32 %v17363_v25, %v7057_v33  ;;  %v7025_v33 = vmul.f32 1.442695, %v20663_v16  ;;  %v7081_v30 = vadd.f32 %v17395_v1, %v7080_v13  ;;  %v17407_v47 = vpop.eup %8532  ;;  %8552 = vpow2.f32 %v6955_v34 }
0x1243   : > { %v6963_v18 = vmul.f32 1.442695, %v20664_v22  ;;  %v17412_v4 = vpop.eup %8534  ;;  %8554 = vpow2.f32 %v7021_v5  ;;  %v20666_v34 = vsub.f32 %v20616_v57, %v17114_v27  ;;  %v20667_v5 = vsub.f32 %v17094_v23, %v17112_v56 }
0x1244   : > { %v7059_v58 = vadd.f32 %v17376_v40, %v7058_v20  ;;  %v7029_v20 = vmul.f32 1.442695, %v20665_v32  ;;  %v7082_v63 = vadd.f32 %v17407_v47, %v7081_v30  ;;  %v17419_v0 = vpop.eup %8536  ;;  %8556 = vpow2.f32 %v6959_v10 }
0x1245   : > { %v6967_v3 = vmul.f32 1.442695, %v20666_v34  ;;  %v17424_v38 = vpop.eup %8538  ;;  %8558 = vpow2.f32 %v7025_v33  ;;  %v20668_v10 = vsub.f32 %v20618_v24, %v17114_v27  ;;  %v20669_v33 = vsub.f32 %v17104_v31, %v17112_v56 }
0x1246   : > { %v7060_v7 = vadd.f32 %v17388_v36, %v7059_v58  ;;  %v7033_v58 = vmul.f32 1.442695, %v20667_v5  ;;  %v7083_v13 = vadd.f32 %v17419_v0, %v7082_v63  ;;  %v17431_v42 = vpop.eup %8540  ;;  %8560 = vpow2.f32 %v6963_v18 }
0x1247   : > { %v6971_v16 = vmul.f32 1.442695, %v20668_v10  ;;  %v17436_v57 = vpop.eup %8542  ;;  %8562 = vpow2.f32 %v7029_v20  ;;  %v20670_v18 = vsub.f32 %v20619_v54, %v17114_v27  ;;  %v20671_v31 = vsub.f32 %v20620_v51, %v17114_v27 }
0x1248   : > { %v7061_v12 = vadd.f32 %v17400_v19, %v7060_v7  ;;  %v7037_v7 = vmul.f32 1.442695, %v20669_v33  ;;  %v7084_v30 = vadd.f32 %v17431_v42, %v7083_v13  ;;  %v17443_v22 = vpop.eup %8544  ;;  %8564 = vpow2.f32 %v6967_v3 }
0x1249   : > { %v6975_v32 = vmul.f32 1.442695, %v20670_v18  ;;  %v17448_v24 = vpop.eup %8546  ;;  %8566 = vpow2.f32 %v7033_v58  ;;  %v6979_v63 = vmul.f32 1.442695, %v20671_v31  ;;  %v20673_v58 = vsub.f32 %v20621_v39, %v17114_v27 }
0x124a   : > { %v7062_v11 = vadd.f32 %v17412_v4, %v7061_v12  ;;  %v7085_v12 = vadd.f32 %v17443_v22, %v7084_v30  ;;  %v17452_v56 = vpop.eup %8548  ;;  %8568 = vpow2.f32 %v6971_v16  ;;  %v20675_v33 = vsub.f32 %v20622_v8, %v17114_v27 }
0x124b   : > { %v17457_v34 = vpop.eup %8550  ;;  %8570 = vpow2.f32 %v7037_v7 }
0x124c   : > { %v7063_v23 = vadd.f32 %v17424_v38, %v7062_v11  ;;  %v7086_v3 = vadd.f32 %v17452_v56, %v7085_v12  ;;  %v17461_v5 = vpop.eup %8552  ;;  %8572 = vpow2.f32 %v6975_v32  ;;  %v6983_v11 = vmul.f32 1.442695, %v20673_v58  ;;  %v20677_v32 = vld [vmem:[#allocation24_spill] sm:$0xff]  ;;  %v20680_v58 = vld [vmem:[#allocation15_spill] sm:$0xff] }
0x124d   : > { %20672 = vst [vmem:[#allocation95_spill] sm:$0xff] %v17461_v5  ;;  %v17466_v13 = vpop.eup %8554  ;;  %8574 = vpow2.f32 %v6979_v63  ;;  %v6987_v7 = vmul.f32 1.442695, %v20675_v33  ;;  %v20678_v12 = vsub.f32 %v20624_v43, %v17114_v27 }
0x124e   : > { %v7064_v20 = vadd.f32 %v17436_v57, %v7063_v23  ;;  %v7087_v51 = vadd.f32 %v17461_v5, %v7086_v3  ;;  %v17470_v16 = vpop.eup %8556  ;;  %8576 = vpow2.f32 %v6983_v11 }
0x124f   : > { %20674 = vst [vmem:[#allocation14_spill] sm:$0xff] %v17470_v16  ;;  %v17475_v23 = vpop.eup %8558  ;;  %v6991_v31 = vmul.f32 1.442695, %v20678_v12  ;;  %8578 = vpow2.f32 %v6987_v7 }
0x1250   : > { %v7065_v54 = vadd.f32 %v17448_v24, %v7064_v20  ;;  %v7088_v39 = vadd.f32 %v17470_v16, %v7087_v51  ;;  %v17479_v18 = vpop.eup %8560  ;;  %v6892_v20 = vsub.f32 %v20677_v32, %v17114_v27  ;;  %v20681_v51 = vsub.f32 %v20625_v28, %v17114_v27 }
0x1251   : > { %20676 = vst [vmem:[#allocation11_spill] sm:$0xff] %v17479_v18  ;;  %v17486_v63 = vpop.eup %8562  ;;  %8580 = vpow2.f32 %v6991_v31 }
0x1252   : > { %v7066_v10 = vadd.f32 %v17457_v34, %v7065_v54  ;;  %v7089_v54 = vadd.f32 %v17479_v18, %v7088_v39  ;;  %v17490_v3 = vpop.eup %8564  ;;  %v6995_v11 = vmul.f32 1.442695, %v20681_v51  ;;  %v6999_v53 = vmul.f32 1.442695, %v6892_v20  ;;  %v20683_v51 = vld [vmem:[#allocation6_spill] sm:$0xff]  ;;  %v20684_v20 = vld [vmem:[#allocation5_spill] sm:$0xff] }
0x1253   : > { %20679 = vst [vmem:[#allocation68_spill] sm:$0xff] %v17490_v3  ;;  %v17497_v33 = vpop.eup %8566  ;;  %v6900_v31 = vsub.f32 %v20684_v20, %v17114_v27 }
0x1254   : > { %v7067_v30 = vadd.f32 %v17466_v13, %v7066_v10  ;;  %v6894_v10 = vsub.f32 %v20680_v58, %v17114_v27  ;;  %v7090_v32 = vadd.f32 %v17490_v3, %v7089_v54  ;;  %v17501_v12 = vpop.eup %8568  ;;  %8582 = vpow2.f32 %v6995_v11 }
0x1255   : > { %v17505_v60 = vpop.eup %8570  ;;  %8584 = vpow2.f32 %v6999_v53  ;;  %v20685_v53 = vsub.f32 %v20627_v41, %v17114_v27  ;;  %v20687_v41 = vsub.f32 %v20629_v15, %v17114_v27 }
0x1256   : > { %v7068_v8 = vadd.f32 %v17475_v23, %v7067_v30  ;;  %v20682_v30 = vld [vmem:[#allocation26_spill] sm:$0xff]  ;;  %v7091_v28 = vadd.f32 %v17501_v12, %v7090_v32  ;;  %v17509_v58 = vpop.eup %8572  ;;  %v7003_v54 = vmul.f32 1.442695, %v6894_v10 }
0x1257   : > { %v6896_v39 = vsub.f32 %v20682_v30, %v17114_v27  ;;  %v17515_v30 = vpop.eup %8574 }
0x1258   : > { %v7069_v43 = vadd.f32 %v17486_v63, %v7068_v8  ;;  %v6898_v8 = vsub.f32 %v20683_v51, %v17114_v27  ;;  %v7092_v18 = vadd.f32 %v17509_v58, %v7091_v28  ;;  %v17520_v59 = vpop.eup %8576  ;;  %8586 = vpow2.f32 %v7003_v54 }
0x1259   : > { %v7015_v28 = vmul.f32 1.442695, %v6900_v31 }
0x125a   : > { %v7070_v7 = vadd.f32 %v17497_v33, %v7069_v43  ;;  %v7007_v43 = vmul.f32 1.442695, %v6896_v39  ;;  %v7093_v32 = vadd.f32 %v17515_v30, %v7092_v18  ;;  %v7011_v51 = vmul.f32 1.442695, %v6898_v8 }
0x125b   : > { %v7019_v18 = vmul.f32 1.442695, %v20685_v53 }
0x125c   : > { %v7071_v3 = vadd.f32 %v17505_v60, %v7070_v7  ;;  %v7094_v10 = vadd.f32 %v17520_v59, %v7093_v32  ;;  %v17523_v7 = vpop.eup %8578  ;;  %8588 = vpow2.f32 %v7007_v43 }
0x125d   : > { %v17526_v20 = vpop.eup %8580  ;;  %8590 = vpow2.f32 %v7011_v51  ;;  %v7027_v51 = vmul.f32 1.442695, %v20687_v41 }
0x125e   : > { %v7072_v2 = vrot.slane %v7071_v3, 4  ;;  %v7095_v5 = vadd.f32 %v17523_v7, %v7094_v10  ;;  %8592 = vpow2.f32 %v7015_v28 }
0x125f   : > { %8594 = vpow2.f32 %v7019_v18  ;;  %v20689_v18 = vsub.f32 %v20631_v50, %v17114_v27 }
0x1260   : > { %v7073_v11 = vadd.f32 %v7072_v2, %v7071_v3  ;;  %v7096_v8 = vadd.f32 %v17526_v20, %v7095_v5  ;;  %v17532_v2 = vpop.eup %8582  ;;  %v20686_v3 = vsub.f32 %v20628_v62, %v17114_v27  ;;  %v20688_v5 = vsub.f32 %v20630_v55, %v17114_v27 }
0x1261   : > { %v17538_v32 = vpop.eup %8584  ;;  %v7035_v15 = vmul.f32 1.442695, %v20689_v18 }
0x1262   : > { %v7074_v16 = vrot.slane %v7073_v11, 2  ;;  %v7023_v54 = vmul.f32 1.442695, %v20686_v3  ;;  %v7097_v43 = vadd.f32 %v17532_v2, %v7096_v8  ;;  %v17547_v10 = vpop.eup %8586  ;;  %v20690_v3 = vsub.f32 %v17109_v29, %v17114_v27 }
0x1264   : > { %v7075_v39 = vadd.f32 %v7074_v16, %v7073_v11  ;;  %v7031_v16 = vmul.f32 1.442695, %v20688_v5  ;;  %v7098_v11 = vadd.f32 %v17538_v32, %v7097_v43  ;;  %8596 = vpow2.f32 %v7023_v54 }
0x1265   : > { %8598 = vpow2.f32 %v7027_v51 }
0x1266   : > { %v7076_v31 = vrot.slane %v7075_v39, 1  ;;  %v7099_v28 = vadd.f32 %v17547_v10, %v7098_v11  ;;  %v17550_v53 = vpop.eup %8588  ;;  %8600 = vpow2.f32 %v7031_v16 }
0x1267   : > { %v17556_v55 = vpop.eup %8590 }
0x1268   : > { %v7077_v62 = vadd.f32 %v7076_v31, %v7075_v39  ;;  %v7100_v8 = vadd.f32 %v17550_v53, %v7099_v28  ;;  %v7039_v39 = vmul.f32 1.442695, %v20690_v3  ;;  %v17562_v31 = vpop.eup %8592 }
0x1269   : > { %v17565_v41 = vpop.eup %8594 }
0x126a   : > { %8602 = vrcp.f32 %v7077_v62  ;;  %v7101_v54 = vadd.f32 %v17556_v55, %v7100_v8 }
0x126b   : > { %8604 = vpow2.f32 %v7035_v15 }
0x126c   : > { %v7102_v43 = vadd.f32 %v17562_v31, %v7101_v54  ;;  %8606 = vpow2.f32 %v7039_v39 }
0x126e   : > { %v7103_v50 = vadd.f32 %v17565_v41, %v7102_v43  ;;  %v17568_v51 = vpop.eup %8596 }
0x126f   : > { %v17571_v16 = vpop.eup %8598 }
0x1270   : > { %v7104_v5 = vadd.f32 %v17568_v51, %v7103_v50  ;;  %v17573_v29 = vpop.eup %8600 }
0x1272   : > { %v7105_v27 = vadd.f32 %v17571_v16, %v7104_v5 }
0x1274   : > { %v17576_v11 = vpop.eup %8602  ;;  %v7106_v62 = vadd.f32 %v17573_v29, %v7105_v27 }
0x1275   : > { %v17579_v28 = vpop.eup %8604  ;;  %v17584_v15 = vmul.f32 %v17576_v11, %v17327_v45  ;;  %v17588_v8 = vmul.f32 %v17576_v11, %v17336_v61  ;;  %v17594_v39 = vmul.f32 %v17576_v11, %v17341_v44  ;;  %v17598_v54 = vmul.f32 %v17576_v11, %v17347_v14 }
0x1276   : > { %v7107_v18 = vadd.f32 %v17579_v28, %v7106_v62  ;;  %v17590_v3 = vpop.eup %8606  ;;  %v17605_v50 = vmul.f32 %v17576_v11, %v17363_v25  ;;  %v17609_v61 = vmul.f32 %v17576_v11, %v17376_v40  ;;  %v17615_v14 = vmul.f32 %v17576_v11, %v17388_v36 }
0x1277   : > { %v17619_v5 = vmul.f32 %v17576_v11, %v17400_v19  ;;  %v17623_v27 = vmul.f32 %v17576_v11, %v17412_v4  ;;  %v17629_v62 = vmul.f32 %v17576_v11, %v17424_v38  ;;  %v17633_v36 = vmul.f32 %v17576_v11, %v17436_v57 }
0x1278   : > { %v7108_v43 = vadd.f32 %v17590_v3, %v7107_v18  ;;  %v17639_v18 = vmul.f32 %v17576_v11, %v17448_v24  ;;  %v17643_v4 = vmul.f32 %v17576_v11, %v17457_v34  ;;  %v17647_v40 = vmul.f32 %v17576_v11, %v17466_v13 }
0x1279   : > { %20691 = vst [vmem:[#allocation52_spill] sm:$0xff] %v17633_v36  ;;  %v17653_v44 = vmul.f32 %v17576_v11, %v17475_v23  ;;  %v17657_v24 = vmul.f32 %v17576_v11, %v17486_v63  ;;  %v17665_v13 = vmul.f32 %v17576_v11, %v17497_v33  ;;  %v7116_v33 = vmul.f32 %v17576_v11, %v17192_v26  ;;  %v20695_v36 = vld [vmem:[#allocation106_spill] sm:$0xff] }
0x127a   : > { %v7109_v25 = vrot.slane %v7108_v43, 4  ;;  %20692 = vst [vmem:[#allocation64_spill] sm:$0xff] %v17643_v4  ;;  %20693 = vst [vmem:[#allocation58_spill] sm:$0xff] %v17647_v40  ;;  %v20694_v4 = vld [vmem:[#allocation16_spill] sm:$0xff] }
0x127b   : > { %v7121_v40 = vmul.f32 %v17576_v11, %v20694_v4 }
0x127c   : > { %v7110_v38 = vadd.f32 %v7109_v25, %v7108_v43  ;;  %v17669_v43 = vmul.f32 %v17576_v11, %v17505_v60  ;;  %v7119_v60 = vmul.f32 %v17576_v11, %v17200_v6  ;;  %v7123_v25 = vmul.f32 %v17576_v11, %v20695_v36 }
0x127e   : > { %v7111_v23 = vrot.slane %v7110_v38, 2  ;;  %v7181_v36 = vpack.c.bf16 %v7119_v60, %v7116_v33 }
0x1280   : > { %v7112_v57 = vadd.f32 %v7111_v23, %v7110_v38  ;;  %v20696_v23 = vld [vmem:[#allocation110_spill] sm:$0xff] }
0x1282   : > { %v7113_v34 = vrot.slane %v7112_v57, 1 }
0x1284   : > { %v7114_v45 = vadd.f32 %v7113_v34, %v7112_v57 }
0x1286   : > { %8608 = vrcp.f32 %v7114_v45 }
0x1290   : > { %v17675_v19 = vpop.eup %8608 }
0x1291   : > { %v7118_v38 = vmul.f32 %v17675_v19, %v17352_v48  ;;  %v7120_v45 = vmul.f32 %v17675_v19, %v17358_v9  ;;  %v7122_v57 = vmul.f32 %v17675_v19, %v17371_v52  ;;  %v7124_v26 = vmul.f32 %v17675_v19, %v17383_v35 }
0x1292   : > { %v7126_v6 = vmul.f32 %v17675_v19, %v17395_v1  ;;  %v7128_v4 = vmul.f32 %v17675_v19, %v17407_v47  ;;  %v7125_v48 = vmul.f32 %v17576_v11, %v20696_v23  ;;  %v7127_v9 = vmul.f32 %v17576_v11, %v17252_v37 }
0x1293   : > { %v7182_v34 = vpack.c.bf16 %v7120_v45, %v7118_v38  ;;  %v7129_v52 = vmul.f32 %v17576_v11, %v17261_v49  ;;  %v7184_v63 = vpack.c.bf16 %v7124_v26, %v7122_v57  ;;  %v7183_v35 = vpack.c.bf16 %v7123_v25, %v7121_v40 }
0x1294   : > { %v7130_v38 = vmul.f32 %v17675_v19, %v17419_v0  ;;  %v17707_v1 = vmul.f32 %v17675_v19, %v17501_v12  ;;  %v7132_v47 = vmul.f32 %v17675_v19, %v17431_v42  ;;  %v7148_v37 = vmul.f32 %v17675_v19, %v17509_v58 }
0x1295   : > { %7217 = vmatprep.subr.bf16.mxu1 %v7182_v34  ;;  %v7150_v49 = vmul.f32 %v17675_v19, %v17515_v30  ;;  %v7152_v40 = vmul.f32 %v17675_v19, %v17520_v59  ;;  %v7186_v25 = vpack.c.bf16 %v7128_v4, %v7126_v6  ;;  %v7154_v0 = vmul.f32 %v17675_v19, %v17523_v7 }
0x1296   : > { %7218 = vmatpush1.bf16.msra.mxu1 %v7181_v36  ;;  %v7156_v12 = vmul.f32 %v17675_v19, %v17526_v20  ;;  %v7158_v42 = vmul.f32 %v17675_v19, %v17532_v2  ;;  %v7196_v33 = vpack.c.bf16 %v7148_v37, %v17707_v1  ;;  %v7160_v30 = vmul.f32 %v17675_v19, %v17538_v32  ;;  %v20701_v37 = vld [vmem:[#allocation11_spill] sm:$0xff] }
0x1297   : > { %7219 = vmatprep.subr.bf16.mxu1 %v7184_v63  ;;  %v7198_v58 = vpack.c.bf16 %v7152_v40, %v7150_v49  ;;  %v7162_v59 = vmul.f32 %v17675_v19, %v17547_v10  ;;  %v7164_v60 = vmul.f32 %v17675_v19, %v17550_v53  ;;  %v7166_v7 = vmul.f32 %v17675_v19, %v17556_v55  ;;  %v20702_v49 = vld [vmem:[#allocation68_spill] sm:$0xff] }
0x1298   : > { %v7200_v63 = vpack.c.bf16 %v7156_v12, %v7154_v0  ;;  %v7168_v20 = vmul.f32 %v17675_v19, %v17562_v31  ;;  %v7202_v2 = vpack.c.bf16 %v7160_v30, %v7158_v42  ;;  %v7170_v45 = vmul.f32 %v17675_v19, %v17565_v41  ;;  %v20703_v0 = vld [vmem:[#allocation91_spill] sm:$0xff]  ;;  %v20704_v42 = vld [vmem:[#allocation92_spill] sm:$0xff] }
0x1299   : > { %v7172_v32 = vmul.f32 %v17675_v19, %v17568_v51  ;;  %v7174_v10 = vmul.f32 %v17675_v19, %v17571_v16  ;;  %v7204_v57 = vpack.c.bf16 %v7164_v60, %v7162_v59  ;;  %v7176_v55 = vmul.f32 %v17675_v19, %v17573_v29 }
0x129a   : > { %7220 = vmatpush1.bf16.msra.mxu1 %v7183_v35  ;;  %v7206_v53 = vpack.c.bf16 %v7168_v20, %v7166_v7  ;;  %v7178_v31 = vmul.f32 %v17675_v19, %v17579_v28  ;;  %v7185_v26 = vpack.c.bf16 %v7127_v9, %v7125_v48  ;;  %v7131_v34 = vmul.f32 %v17576_v11, %v17267_v46  ;;  %v20698_v35 = vld [vmem:[#allocation14_spill] sm:$0xff] }
0x129b   : > { %7221 = vmatprep.subr.bf16.mxu1 %v7186_v25  ;;  %v7208_v41 = vpack.c.bf16 %v7172_v32, %v7170_v45  ;;  %v7180_v51 = vmul.f32 %v17675_v19, %v17590_v3  ;;  %v7188_v6 = vpack.c.bf16 %v7132_v47, %v7130_v38  ;;  %v7134_v16 = vmul.f32 %v17675_v19, %v17443_v22  ;;  %v20697_v3 = vld [vmem:[#allocation95_spill] sm:$0xff]  ;;  %v20699_v38 = vld [vmem:[#allocation88_spill] sm:$0xff] }
0x129c   : > { %v7136_v4 = vmul.f32 %v17675_v19, %v17452_v56  ;;  %v7210_v36 = vpack.c.bf16 %v7176_v55, %v7174_v10  ;;  %v7187_v28 = vpack.c.bf16 %v7131_v34, %v7129_v52  ;;  %v7133_v23 = vmul.f32 %v17576_v11, %v17273_v17  ;;  %v20700_v52 = vld [vmem:[#allocation98_spill] sm:$0xff] }
0x129d   : > { %v7212_v29 = vpack.c.bf16 %v7180_v51, %v7178_v31  ;;  %v7135_v46 = vmul.f32 %v17576_v11, %v17282_v21  ;;  %v7138_v9 = vmul.f32 %v17675_v19, %v20697_v3  ;;  %v7140_v22 = vmul.f32 %v17675_v19, %v20698_v35 }
0x129e   : > { %7222 = vmatpush1.bf16.msra.mxu1 %v7185_v26  ;;  %v7190_v48 = vpack.c.bf16 %v7136_v4, %v7134_v16  ;;  %v7137_v1 = vmul.f32 %v17576_v11, %v20699_v38  ;;  %v7139_v47 = vmul.f32 %v17576_v11, %v20700_v52  ;;  %v7142_v21 = vmul.f32 %v17675_v19, %v20701_v37 }
0x129f   : > { %7223 = vmatprep.subr.bf16.mxu1 %v7188_v6  ;;  %v7189_v56 = vpack.c.bf16 %v7135_v46, %v7133_v23  ;;  %v7192_v17 = vpack.c.bf16 %v7140_v22, %v7138_v9  ;;  %v7144_v40 = vmul.f32 %v17675_v19, %v20702_v49  ;;  %v7141_v12 = vmul.f32 %v17576_v11, %v20703_v0 }
0x12a0   : > { %v7191_v25 = vpack.c.bf16 %v7139_v47, %v7137_v1  ;;  %v7143_v30 = vmul.f32 %v17576_v11, %v20704_v42  ;;  %v20705_v7 = vpack.c.bf16 %v17588_v8, %v17584_v15  ;;  %v20706_v19 = vpack.c.bf16 %v17598_v54, %v17594_v39  ;;  %v20710_v8 = vld [vmem:[#allocation52_spill] sm:$0xff]  ;;  %v20712_v54 = vld [vmem:[#allocation58_spill] sm:$0xff] }
0x12a1   : > { %v7194_v59 = vpack.c.bf16 %v7144_v40, %v7142_v21  ;;  %v20707_v20 = vpack.c.bf16 %v17609_v61, %v17605_v50  ;;  %v20708_v11 = vpack.c.bf16 %v17619_v5, %v17615_v14  ;;  %v20709_v15 = vpack.c.bf16 %v17629_v62, %v17623_v27  ;;  %v20713_v50 = vld [vmem:[#allocation64_spill] sm:$0xff]  ;;  %v20717_v27 = vld [vmem:[#allocation18_spill] sm:$0xff] }
0x12a2   : > { %7224 = vmatpush1.bf16.msra.mxu1 %v7187_v28  ;;  %v7193_v60 = vpack.c.bf16 %v7143_v30, %v7141_v12  ;;  %v20711_v39 = vpack.c.bf16 %v17639_v18, %v20710_v8  ;;  %v20714_v61 = vpack.c.bf16 %v20712_v54, %v20713_v50  ;;  %v20715_v14 = vpack.c.bf16 %v17657_v24, %v17653_v44 }
0x12a3   : > { %7225 = vmatprep.subr.bf16.mxu1 %v7190_v48  ;;  %v20716_v5 = vpack.c.bf16 %v17669_v43, %v17665_v13  ;;  %v7213_v62 = vrot.slane %v20717_v27, 6 }
0x12a6   : > { %7226 = vmatpush1.bf16.msra.mxu1 %v7189_v56 }
0x12a7   : > { %7227 = vmatprep.subr.bf16.mxu1 %v7192_v17 }
0x12aa   : > { %7228 = vmatpush1.bf16.msra.mxu1 %v7191_v25 }
0x12ab   : > { %7229 = vmatprep.subr.bf16.mxu1 %v7194_v59 }
0x12ae   : > { %7230 = vmatpush1.bf16.msra.mxu1 %v7193_v60 }
0x12af   : > { %7231 = vmatprep.subr.bf16.mxu1 %v7196_v33 }
0x12b2   : > { %7232 = vmatpush1.bf16.msra.mxu1 %v20705_v7 }
0x12b3   : > { %7233 = vmatprep.subr.bf16.mxu1 %v7198_v58 }
0x12b6   : > { %7234 = vmatpush1.bf16.msra.mxu1 %v20706_v19 }
0x12b7   : > { %7235 = vmatprep.subr.bf16.mxu1 %v7200_v63 }
0x12ba   : > { %7236 = vmatpush1.bf16.msra.mxu1 %v20707_v20 }
0x12bb   : > { %7237 = vmatprep.subr.bf16.mxu1 %v7202_v2 }
0x12be   : > { %7238 = vmatpush1.bf16.msra.mxu1 %v20708_v11 }
0x12bf   : > { %7239 = vmatprep.subr.bf16.mxu1 %v7204_v57 }
0x12c2   : > { %7240 = vmatpush1.bf16.msra.mxu1 %v20709_v15 }
0x12c3   : > { %7241 = vmatprep.subr.bf16.mxu1 %v7206_v53 }
0x12c6   : > { %7242 = vmatpush1.bf16.msra.mxu1 %v20711_v39 }
0x12c7   : > { %7243 = vmatprep.subr.bf16.mxu1 %v7208_v41 }
0x12ca   : > { %7244 = vmatpush1.bf16.msra.mxu1 %v20714_v61 }
0x12cb   : > { %7245 = vmatprep.subr.bf16.mxu1 %v7210_v36 }
0x12ce   : > { %7246 = vmatpush1.bf16.msra.mxu1 %v20715_v14 }
0x12cf   : > { %7247 = vmatprep.subr.bf16.mxu1 %v7212_v29 }
0x12d2   : > { %7248 = vmatpush1.bf16.msra.mxu1 %v20716_v5 }
0x12d5   : > { %7250 = vmatmul.mubr.bf16.vlgmr.msra.gmra.mrb[36].mxu1 %v7213_v62 }
0x13a8   : > { %v7251_v18 = vpop.f32.mrb[36].mxu1 }
0x13a9   : > { %v7260_v33 = vrot.slane %v7251_v18, 4  ;;  %v7253_v58 = vpop.f32.mrb[37].mxu1 }
0x13aa   : > { %v7261_v44 = vrot.slane %v7253_v58, 4  ;;  %v7255_v24 = vpop.f32.mrb[38].mxu1 }
0x13ab   : > { %7264 = vst [vmem:[%s10507_s27 + $0x30] sm:$0xf0] %v7260_v33  ;;  %v7256_v13 = vpop.f32.mrb[39].mxu1 }
0x13ac   : > { %7265 = vst [vmem:[%s10507_s27 + $0x38] sm:$0xf0] %v7261_v44 }
0x13ad   : > { %8623 = shalt.err (!%p8620_p3)
}
0x13ae   : > { %s8624_s11 = scalar_lea.hbm %s17805_s6, 1024  ;;  %s8628_s14 = scalar_lea.hbm %s17858_s4, 2048 }
0x13af   : > { %p8625_p4 = scmp.ne.s32.totalorder %s17805_s6, %s8624_s11  ;;  %p8629_p9 = scmp.lt.u32.totalorder %s17805_s6, %s17858_s4 }
0x13b0   : > { %p8630_p10 = scmp.lt.u32.totalorder %s8628_s14, %s8624_s11  ;;  %p8632_p12 = scmp.lt.u32.totalorder %s8624_s11, %s17805_s6 }
0x13b1   : > { %p8626_p7 = pnand %p8625_p4, %p8741_p5 }
0x13b2   : > { %p8631_p11 = por %p8630_p10, %p8629_p9 }
0x13b3   : > { %p8627_p8 = pneg %p8626_p7 }
0x13b4   : > { %p8633_p13 = por %p8632_p12, %p8631_p11 }
0x13b6   : > { %p8634_p0 = pnand %p8633_p13, %p8627_p8 }
0x13b8   : > { %8637 = shalt.err (!%p8634_p0)
}
0x13b9   : > { %s8676_s23 = smov 256   ;;  %s8677_s27 = smov 16  }
0x13ba   : > { %7504 = dma.vmem_to_hbm [thread:$0]  (%p8741_p5), %s17807_s29, 1024, %s17805_s6, %s17813_s19, %s8676_s23, %s8676_s23, %s8677_s27  }
0x13bb PF: > { %p7510_p1 = scmp.ge.s32.totalorder %s8672_s18, 2  ;;  %s7295_s28 = sand.u32 1, %s8660_s15  }
0x13bc   : > { %s7296_s30 = scalar_lea.sflag [#allocation3], %s7295_s28 }
0x13bd   : > { %p7507_p2 = pnand %p7510_p1, %p8745_p6 }
0x13bf   : > { %8655 = dma.done.wait (!%p7507_p2), %s7296_s30, 1024  }
0x13c0   : > { %8657 = vsyncadd (!%p7507_p2), %s7296_s30, 4294966272  ;;  %p14_p3 = scmp.ge.s32.totalorder %s8728_s21, 4   ;;  %s20718_s15 = smov %s8664_s16 }
0x13c1   : > { %s20719_s16 = smov %s8668_s17  ;;  %s20720_s17 = smov %s8739_s24 }
0x13c2   : > { %s20721_s18 = smov %s8728_s21  ;;  %16 = sbr.rel (!%p14_p3) target bundleno = 3 (0x3), region = 71 }
0x13c9   :  { %7301 = vsyncpa [#allocation3], 1 }
0x13ca   :  { %7303 = vsyncpa [#allocation3 + $0x1], 1 }

</bundles_post_ra>
